<compile_context>
chip_gen: v5e
topology: v5e:2x2
jax: 0.10.0
libtpu: 0.0.40
codegen_flags: <defaults>
</compile_context>

<pallas_src>
import jax
import jax.numpy as jnp
from jax.experimental import pallas as pl
from jax.experimental.pallas import tpu as pltpu


_VMEM_LIMIT = 32 * 1024 * 1024


# ----------------------------------------------------------------------------
# Fused kernel: backbone epilogue (step 0) + 5 streamed FC column tiles
# ----------------------------------------------------------------------------
def _layout_net_kernel(cols_ref, cw_ref, cb_ref, pool_ref, pw_ref, pb_ref,
                       w_ref, b_ref, hw_ref, hb_ref,
                       feat_ref, heads_ref,
                       in_sc, lo_sc):
    j = pl.program_id(0)
    n_tile = w_ref.shape[-1]                      # 1024

    # ---- step 0: backbone stand-in, feature stays resident in VMEM --------
    @pl.when(j == 0)
    def _():
        h0 = jnp.dot(cols_ref[...], cw_ref[...],
                     preferred_element_type=jnp.float32)          # [B*HW, 64]
        h0 = jnp.maximum(h0 + cb_ref[...], 0.0)
        pooled = jnp.dot(pool_ref[...], h0.astype(jnp.bfloat16),
                         preferred_element_type=jnp.float32)      # [B, 64] GAP
        feat = jnp.dot(pooled.astype(jnp.bfloat16), pw_ref[...],
                       preferred_element_type=jnp.float32) + pb_ref[...]
        feat_ref[...] = feat                                      # a_features
        in_sc[...] = feat.astype(jnp.bfloat16)                    # matmul input

    # ---- main 2048 -> 1024 column tile for this step -----------------------
    # steps 0-2 consume x (backbone feature); steps 3-4 consume lo (swapped
    # into in_sc at the end of step 2).
    h = jnp.dot(in_sc[...], w_ref[0],
                preferred_element_type=jnp.float32) + b_ref[0]    # [B, 1024]
    h = jnp.where(h > 0.0, h, 0.2 * h)            # LeakyReLU(0.2); Dropout = id

    # steps 0,1: stash the fc_layout activation ("lo") columns in VMEM
    @pl.when(j < 2)
    def _():
        col0 = pl.multiple_of(j * n_tile, n_tile)
        lo_sc[:, pl.ds(col0, n_tile)] = h.astype(jnp.bfloat16)

    # packed tiny head (fc_2 / fc_4 / fc_6; zero slab on steps 0,1)
    heads_ref[0] = (jnp.dot(h.astype(jnp.bfloat16), hw_ref[0],
                            preferred_element_type=jnp.float32) + hb_ref[0])

    # after the last x-consuming tile, swap the resident input to lo
    @pl.when(j == 2)
    def _():
        in_sc[...] = lo_sc[...]


def fused_layout_net(cols, conv_w, conv_b, pool, proj_w, proj_b,
                     w_tiles, b_tiles, hw_tiles, hb_tiles, batch):
    rows, kdim = cols.shape
    n_tiles, kfc, tn = w_tiles.shape              # (5, 2048, 1024)
    feat_c = conv_w.shape[1]                      # 64
    feat_dim = proj_w.shape[1]                    # 2048
    head_n = hw_tiles.shape[-1]                   # 128

    return pl.pallas_call(
        _layout_net_kernel,
        out_shape=(jax.ShapeDtypeStruct((batch, feat_dim), jnp.float32),
                   jax.ShapeDtypeStruct((n_tiles, batch, head_n), jnp.float32)),
        grid=(n_tiles,),
        in_specs=[
            pl.BlockSpec((rows, kdim), lambda j: (0, 0)),          # cols (resident)
            pl.BlockSpec((kdim, feat_c), lambda j: (0, 0)),        # conv_w
            pl.BlockSpec((1, feat_c), lambda j: (0, 0)),           # conv_b
            pl.BlockSpec((batch, rows), lambda j: (0, 0)),         # pool matrix
            pl.BlockSpec((feat_c, feat_dim), lambda j: (0, 0)),    # proj_w
            pl.BlockSpec((1, feat_dim), lambda j: (0, 0)),         # proj_b
            pl.BlockSpec((1, kfc, tn), lambda j: (j, 0, 0)),       # pre-tiled FC w
            pl.BlockSpec((1, 1, tn), lambda j: (j, 0, 0)),         # FC bias
            pl.BlockSpec((1, tn, head_n), lambda j: (j, 0, 0)),    # packed head w
            pl.BlockSpec((1, 1, head_n), lambda j: (j, 0, 0)),     # packed head b
        ],
        out_specs=(
            pl.BlockSpec((batch, feat_dim), lambda j: (0, 0)),     # a_features
            pl.BlockSpec((1, batch, head_n), lambda j: (j, 0, 0)), # heads
        ),
        scratch_shapes=[
            pltpu.VMEM((batch, kfc), jnp.bfloat16),   # in_sc (x, then lo)
            pltpu.VMEM((batch, kfc), jnp.bfloat16),   # lo_sc
        ],
        compiler_params=pltpu.CompilerParams(
            dimension_semantics=("arbitrary",),       # sequential: lo dependency
            vmem_limit_bytes=_VMEM_LIMIT),
    )(cols, conv_w, conv_b, pool, proj_w, proj_b,
      w_tiles, b_tiles, hw_tiles, hb_tiles)


# ----------------------------------------------------------------------------
# im2col glue for the 3x3 'same' conv stand-in
# ----------------------------------------------------------------------------
def _im2col_3x3(x_nhwc):
    # TODO(synk): at realistic backbone resolutions move this into the kernel
    # (shifted BlockSpec index_maps); at 2x16x16x3 it is ~27 KB and negligible.
    B, H, W, C = x_nhwc.shape
    xp = jnp.pad(x_nhwc, ((0, 0), (1, 1), (1, 1), (0, 0)))
    patches = [xp[:, dh:dh + H, dw:dw + W, :] for dh in range(3) for dw in range(3)]
    cols = jnp.concatenate(patches, axis=-1)      # [B, H, W, 9*C]
    return cols.reshape(B * H * W, 9 * C)


# ----------------------------------------------------------------------------
# Parameters.  Heads use the module's explicit re-init: N(0, 0.01) weights,
# zero biases.  Big FC weights are pre-tiled to [5, 2048, 1024] bf16 so each
# grid step streams one contiguous block; tiny heads are lane-padded to 128.
# ----------------------------------------------------------------------------
def init_params(key):
    ks = jax.random.split(key, 9)

    def nrm(k, shape):
        return 0.01 * jax.random.normal(k, shape, jnp.float32)

    zeros = lambda *s: jnp.zeros(s, jnp.float32)
    bf = lambda a: a.astype(jnp.bfloat16)

    # Backbone stand-in (the pretrained resnet34 cannot be reproduced here).
    conv_w = nrm(ks[0], (3, 3, 3, 64)).reshape(27, 64)        # HWIO -> [27, 64]
    proj_w = nrm(ks[1], (64, 2048))

    fc_layout_w = nrm(ks[2], (2048, 2048))
    fc1_w = nrm(ks[3], (2048, 1024))
    fc2_w = nrm(ks[4], (1024, 8))                             # (PITCH+ROLL)*2
    fc3_w = nrm(ks[5], (2048, 1024))
    fc4_w = nrm(ks[6], (1024, 4))                             # LO_ORI_BIN*2
    fc5_w = nrm(ks[7], (2048, 1024))
    fc6_w = nrm(ks[8], (1024, 6))

    fc_layout_b = zeros(2048)
    fc1_b, fc3_b, fc5_b = zeros(1024), zeros(1024), zeros(1024)
    fc2_b, fc4_b, fc6_b = zeros(8), zeros(4), zeros(6)

    # Pre-tiled main FC slab: [5, 2048, 1024]
    #   tiles: fc_layout[:, :1024], fc_layout[:, 1024:], fc_1, fc_3, fc_5
    w_tiles = jnp.stack([fc_layout_w[:, :1024], fc_layout_w[:, 1024:],
                         fc1_w, fc3_w, fc5_w], axis=0)
    b_tiles = jnp.stack([fc_layout_b[:1024], fc_layout_b[1024:],
                         fc1_b, fc3_b, fc5_b], axis=0).reshape(5, 1, 1024)

    # Packed, lane-padded tiny heads: [5, 1024, 128]
    def pad_head(w, b):
        n = w.shape[1]
        wp = jnp.zeros((1024, 128), jnp.float32).at[:, :n].set(w)
        bp = jnp.zeros((128,), jnp.float32).at[:n].set(b)
        return wp, bp

    hw2, hb2 = pad_head(fc2_w, fc2_b)
    hw4, hb4 = pad_head(fc4_w, fc4_b)
    hw6, hb6 = pad_head(fc6_w, fc6_b)
    zw = jnp.zeros((1024, 128), jnp.float32)
    zb = jnp.zeros((128,), jnp.float32)
    hw_tiles = jnp.stack([zw, zw, hw2, hw4, hw6], axis=0)
    hb_tiles = jnp.stack([zb, zb, hb2, hb4, hb6], axis=0).reshape(5, 1, 128)

    return {
        "conv_w": bf(conv_w), "conv_b": zeros(1, 64),
        "proj_w": bf(proj_w), "proj_b": zeros(1, 2048),
        "w_tiles": bf(w_tiles), "b_tiles": b_tiles,
        "hw_tiles": bf(hw_tiles), "hb_tiles": hb_tiles,
    }


# ----------------------------------------------------------------------------
# LayoutNet forward
# ----------------------------------------------------------------------------
def layout_net_forward(params, query_image_nchw):
    PITCH_BIN, ROLL_BIN, LO_ORI_BIN = 2, 2, 2

    x_img = jnp.transpose(query_image_nchw, (0, 2, 3, 1)).astype(jnp.float32)
    B, H, W, _ = x_img.shape
    HW = H * W

    # TODO(synk): the pretrained resnet34 backbone (model_zoo weight download)
    # cannot be reproduced in-script; a deterministic fused conv3x3 + ReLU +
    # GAP + 64->2048 projection stand-in produces the 2048-d feature.
    cols = _im2col_3x3(x_img).astype(jnp.bfloat16)             # [B*HW, 27]
    # GAP as a ones/HW matmul so the pool stays on the MXU inside the kernel.
    pool = (jnp.repeat(jnp.eye(B, dtype=jnp.float32), HW, axis=1)
            / HW).astype(jnp.bfloat16)                         # [B, B*HW]

    # NOTE: nn.Dropout layers are identity at inference time (no scaling).
    feat, heads = fused_layout_net(
        cols, params["conv_w"], params["conv_b"], pool,
        params["proj_w"], params["proj_b"],
        params["w_tiles"], params["b_tiles"],
        params["hw_tiles"], params["hb_tiles"], B)

    cam = heads[2, :, 0:8]        # fc_2(leaky(fc_1(x)))
    lo_ori = heads[3, :, 0:4]     # fc_4(leaky(fc_3(lo)))
    lo_ct = heads[4, :, 0:6]      # fc_6(leaky(fc_5(lo)))

    pitch_reg = cam[:, 0:PITCH_BIN]
    pitch_cls = cam[:, PITCH_BIN:PITCH_BIN * 2]
    roll_reg = cam[:, PITCH_BIN * 2:PITCH_BIN * 2 + ROLL_BIN]
    roll_cls = cam[:, PITCH_BIN * 2 + ROLL_BIN:PITCH_BIN * 2 + ROLL_BIN * 2]
    lo_ori_reg = lo_ori[:, :LO_ORI_BIN]
    lo_ori_cls = lo_ori[:, LO_ORI_BIN:]
    lo_centroid = lo_ct[:, :3]
    lo_coeffs = lo_ct[:, 3:]

    return {
        "pitch_reg": pitch_reg,
        "roll_reg": roll_reg,
        "pitch_cls": pitch_cls,
        "roll_cls": roll_cls,
        "lo_ori_reg": lo_ori_reg,
        "lo_ori_cls": lo_ori_cls,
        "lo_centroid": lo_centroid,
        "lo_coeffs": lo_coeffs,
        "a_features": feat,
    }


# ----------------------------------------------------------------------------
if __name__ == "__main__":
    key = jax.random.PRNGKey(0)
    k_params, k_img = jax.random.split(key)

    params = init_params(k_params)
    query_image = jax.random.normal(k_img, (2, 3, 16, 16), jnp.float32)  # NCHW

    preds = jax.jit(layout_net_forward)(params, query_image)
    preds = jax.block_until_ready(preds)

    expected = {
        "pitch_reg": (2, 2), "pitch_cls": (2, 2),
        "roll_reg": (2, 2), "roll_cls": (2, 2),
        "lo_ori_reg": (2, 2), "lo_ori_cls": (2, 2),
        "lo_centroid": (2, 3), "lo_coeffs": (2, 3),
        "a_features": (2, 2048),
    }
    for name, shape in expected.items():
        assert preds[name].shape == shape, (name, preds[name].shape, shape)
        assert jnp.all(jnp.isfinite(preds[name]))

    print("KERNEL_OK")
</pallas_src>

<mosaic_0001>
module attributes {stable_mosaic.version = 11 : i64} {
  func.func @_layout_net_kernel(%arg0: i32, %arg1: memref<512x27xbf16, #tpu.memory_space<vmem>>, %arg2: memref<27x64xbf16, #tpu.memory_space<vmem>>, %arg3: memref<1x64xf32, #tpu.memory_space<vmem>>, %arg4: memref<2x512xbf16, #tpu.memory_space<vmem>>, %arg5: memref<64x2048xbf16, #tpu.memory_space<vmem>>, %arg6: memref<1x2048xf32, #tpu.memory_space<vmem>>, %arg7: memref<1x2048x1024xbf16, #tpu.memory_space<vmem>>, %arg8: memref<1x1x1024xf32, #tpu.memory_space<vmem>>, %arg9: memref<1x1024x128xbf16, #tpu.memory_space<vmem>>, %arg10: memref<1x1x128xf32, #tpu.memory_space<vmem>>, %arg11: memref<2x2048xf32, #tpu.memory_space<vmem>>, %arg12: memref<1x2x128xf32, #tpu.memory_space<vmem>>, %arg13: memref<2x2048xbf16, #tpu.memory_space<vmem>>, %arg14: memref<2x2048xbf16, #tpu.memory_space<vmem>>) attributes {dimension_semantics = [#tpu.dimension_semantics<arbitrary>], iteration_bounds = array<i64: 5>, scalar_prefetch = 0 : i64, scratch_operands = 2 : i64, tpu.core_type = #tpu.core_type<tc>, window_params = [{pipeline_mode = #tpu.pipeline_mode<synchronous>, transform_indices = @transform_0, window_bounds = array<i64: 512, 27>}, {pipeline_mode = #tpu.pipeline_mode<synchronous>, transform_indices = @transform_1, window_bounds = array<i64: 27, 64>}, {pipeline_mode = #tpu.pipeline_mode<synchronous>, transform_indices = @transform_2, window_bounds = array<i64: 1, 64>}, {pipeline_mode = #tpu.pipeline_mode<synchronous>, transform_indices = @transform_3, window_bounds = array<i64: 2, 512>}, {pipeline_mode = #tpu.pipeline_mode<synchronous>, transform_indices = @transform_4, window_bounds = array<i64: 64, 2048>}, {pipeline_mode = #tpu.pipeline_mode<synchronous>, transform_indices = @transform_5, window_bounds = array<i64: 1, 2048>}, {transform_indices = @transform_6, window_bounds = array<i64: 1, 2048, 1024>}, {transform_indices = @transform_7, window_bounds = array<i64: 1, 1, 1024>}, {transform_indices = @transform_8, window_bounds = array<i64: 1, 1024, 128>}, {transform_indices = @transform_9, window_bounds = array<i64: 1, 1, 128>}, {pipeline_mode = #tpu.pipeline_mode<synchronous>, transform_indices = @transform_10, window_bounds = array<i64: 2, 2048>}, {transform_indices = @transform_11, window_bounds = array<i64: 1, 2, 128>}]} {
    %c0_i32 = arith.constant 0 : i32
    %0 = arith.cmpi eq, %arg0, %c0_i32 : i32
    %1 = arith.extui %0 : i1 to i32
    %c0_i32_0 = arith.constant 0 : i32
    %2 = arith.cmpi ne, %1, %c0_i32_0 : i32
    scf.if %2 {
      %c0_23 = arith.constant 0 : index
      %c0_24 = arith.constant 0 : index
      %33 = vector.load %arg1[%c0_23, %c0_24] : memref<512x27xbf16, #tpu.memory_space<vmem>>, vector<512x27xbf16>
      %c0_25 = arith.constant 0 : index
      %c0_26 = arith.constant 0 : index
      %34 = vector.load %arg2[%c0_25, %c0_26] : memref<27x64xbf16, #tpu.memory_space<vmem>>, vector<27x64xbf16>
      %cst_27 = arith.constant dense<0.000000e+00> : vector<512x64xf32>
      %35 = tpu.matmul %33, %34, %cst_27 {dimension_numbers = #tpu.dot_dimension_numbers<[1], [0], [0], [1], [0, 0, 1, 1], [], []>} : vector<512x27xbf16>, vector<27x64xbf16>, vector<512x64xf32> -> vector<512x64xf32>
      %c0_28 = arith.constant 0 : index
      %c0_29 = arith.constant 0 : index
      %36 = vector.load %arg3[%c0_28, %c0_29] : memref<1x64xf32, #tpu.memory_space<vmem>>, vector<1x64xf32>
      %37 = vector.broadcast %36 : vector<1x64xf32> to vector<512x64xf32>
      %38 = arith.addf %35, %37 : vector<512x64xf32>
      %cst_30 = arith.constant 0.000000e+00 : f32
      %39 = vector.broadcast %cst_30 : f32 to vector<512x64xf32>
      %40 = arith.maximumf %38, %39 : vector<512x64xf32>
      %c0_31 = arith.constant 0 : index
      %c0_32 = arith.constant 0 : index
      %41 = vector.load %arg4[%c0_31, %c0_32] : memref<2x512xbf16, #tpu.memory_space<vmem>>, vector<2x512xbf16>
      %42 = arith.truncf %40 : vector<512x64xf32> to vector<512x64xbf16>
      %cst_33 = arith.constant dense<0.000000e+00> : vector<2x64xf32>
      %43 = tpu.matmul %41, %42, %cst_33 {dimension_numbers = #tpu.dot_dimension_numbers<[1], [0], [0], [1], [0, 0, 1, 1], [], []>} : vector<2x512xbf16>, vector<512x64xbf16>, vector<2x64xf32> -> vector<2x64xf32>
      %44 = arith.truncf %43 : vector<2x64xf32> to vector<2x64xbf16>
      %c0_34 = arith.constant 0 : index
      %c0_35 = arith.constant 0 : index
      %45 = vector.load %arg5[%c0_34, %c0_35] : memref<64x2048xbf16, #tpu.memory_space<vmem>>, vector<64x2048xbf16>
      %cst_36 = arith.constant dense<0.000000e+00> : vector<2x2048xf32>
      %46 = tpu.matmul %44, %45, %cst_36 {dimension_numbers = #tpu.dot_dimension_numbers<[1], [0], [0], [1], [0, 0, 1, 1], [], []>} : vector<2x64xbf16>, vector<64x2048xbf16>, vector<2x2048xf32> -> vector<2x2048xf32>
      %c0_37 = arith.constant 0 : index
      %c0_38 = arith.constant 0 : index
      %47 = vector.load %arg6[%c0_37, %c0_38] : memref<1x2048xf32, #tpu.memory_space<vmem>>, vector<1x2048xf32>
      %48 = vector.broadcast %47 : vector<1x2048xf32> to vector<2x2048xf32>
      %49 = arith.addf %46, %48 : vector<2x2048xf32>
      %c0_39 = arith.constant 0 : index
      %c0_40 = arith.constant 0 : index
      %50 = vector.load %arg11[%c0_39, %c0_40] : memref<2x2048xf32, #tpu.memory_space<vmem>>, vector<2x2048xf32>
      tpu.vector_store %arg11[%c0_39, %c0_40], %49 {strides = array<i32>} : memref<2x2048xf32, #tpu.memory_space<vmem>>, vector<2x2048xf32>,
      %51 = arith.truncf %49 : vector<2x2048xf32> to vector<2x2048xbf16>
      %c0_41 = arith.constant 0 : index
      %c0_42 = arith.constant 0 : index
      %52 = vector.load %arg13[%c0_41, %c0_42] : memref<2x2048xbf16, #tpu.memory_space<vmem>>, vector<2x2048xbf16>
      tpu.vector_store %arg13[%c0_41, %c0_42], %51 {strides = array<i32>} : memref<2x2048xbf16, #tpu.memory_space<vmem>>, vector<2x2048xbf16>,
    } else {
    }
    %c0 = arith.constant 0 : index
    %c0_1 = arith.constant 0 : index
    %3 = vector.load %arg13[%c0, %c0_1] : memref<2x2048xbf16, #tpu.memory_space<vmem>>, vector<2x2048xbf16>
    %c0_2 = arith.constant 0 : index
    %c0_3 = arith.constant 0 : index
    %c0_4 = arith.constant 0 : index
    %4 = vector.load %arg7[%c0_2, %c0_3, %c0_4] : memref<1x2048x1024xbf16, #tpu.memory_space<vmem>>, vector<1x2048x1024xbf16>
    %5 = vector.shape_cast %4 : vector<1x2048x1024xbf16> to vector<2048x1024xbf16>
    %cst = arith.constant dense<0.000000e+00> : vector<2x1024xf32>
    %6 = tpu.matmul %3, %5, %cst {dimension_numbers = #tpu.dot_dimension_numbers<[1], [0], [0], [1], [0, 0, 1, 1], [], []>} : vector<2x2048xbf16>, vector<2048x1024xbf16>, vector<2x1024xf32> -> vector<2x1024xf32>
    %c0_5 = arith.constant 0 : index
    %c0_6 = arith.constant 0 : index
    %c0_7 = arith.constant 0 : index
    %7 = vector.load %arg8[%c0_5, %c0_6, %c0_7] : memref<1x1x1024xf32, #tpu.memory_space<vmem>>, vector<1x1x1024xf32>
    %8 = vector.shape_cast %7 : vector<1x1x1024xf32> to vector<1x1024xf32>
    %9 = vector.broadcast %8 : vector<1x1024xf32> to vector<2x1024xf32>
    %10 = arith.addf %6, %9 : vector<2x1024xf32>
    %cst_8 = arith.constant 0.000000e+00 : f32
    %11 = vector.broadcast %cst_8 : f32 to vector<2x1024xf32>
    %12 = arith.cmpf ogt, %10, %11 : vector<2x1024xf32>
    %cst_9 = arith.constant 2.000000e-01 : f32
    %13 = vector.broadcast %cst_9 : f32 to vector<2x1024xf32>
    %14 = arith.mulf %13, %10 : vector<2x1024xf32>
    %15 = arith.select %12, %10, %14 : vector<2x1024xi1>, vector<2x1024xf32>
    %c2_i32 = arith.constant 2 : i32
    %16 = arith.cmpi slt, %arg0, %c2_i32 : i32
    %17 = arith.extui %16 : i1 to i32
    %c0_i32_10 = arith.constant 0 : i32
    %18 = arith.cmpi ne, %17, %c0_i32_10 : i32
    scf.if %18 {
      %c1024_i32 = arith.constant 1024 : i32
      %33 = arith.muli %arg0, %c1024_i32 : i32
      %34 = tpu.assume_multiple %33, 1024 : i32
      %35 = arith.truncf %15 : vector<2x1024xf32> to vector<2x1024xbf16>
      %c0_23 = arith.constant 0 : index
      %36 = arith.index_cast %34 : i32 to index
      %37 = vector.load %arg14[%c0_23, %36] : memref<2x2048xbf16, #tpu.memory_space<vmem>>, vector<2x1024xbf16>
      tpu.vector_store %arg14[%c0_23, %36], %35 {strides = array<i32>} : memref<2x2048xbf16, #tpu.memory_space<vmem>>, vector<2x1024xbf16>,
    } else {
    }
    %19 = arith.truncf %15 : vector<2x1024xf32> to vector<2x1024xbf16>
    %c0_11 = arith.constant 0 : index
    %c0_12 = arith.constant 0 : index
    %c0_13 = arith.constant 0 : index
    %20 = vector.load %arg9[%c0_11, %c0_12, %c0_13] : memref<1x1024x128xbf16, #tpu.memory_space<vmem>>, vector<1x1024x128xbf16>
    %21 = vector.shape_cast %20 : vector<1x1024x128xbf16> to vector<1024x128xbf16>
    %cst_14 = arith.constant dense<0.000000e+00> : vector<2x128xf32>
    %22 = tpu.matmul %19, %21, %cst_14 {dimension_numbers = #tpu.dot_dimension_numbers<[1], [0], [0], [1], [0, 0, 1, 1], [], []>} : vector<2x1024xbf16>, vector<1024x128xbf16>, vector<2x128xf32> -> vector<2x128xf32>
    %c0_15 = arith.constant 0 : index
    %c0_16 = arith.constant 0 : index
    %c0_17 = arith.constant 0 : index
    %23 = vector.load %arg10[%c0_15, %c0_16, %c0_17] : memref<1x1x128xf32, #tpu.memory_space<vmem>>, vector<1x1x128xf32>
    %24 = vector.shape_cast %23 : vector<1x1x128xf32> to vector<1x128xf32>
    %25 = vector.broadcast %24 : vector<1x128xf32> to vector<2x128xf32>
    %26 = arith.addf %22, %25 : vector<2x128xf32>
    %c0_18 = arith.constant 0 : index
    %c0_19 = arith.constant 0 : index
    %c0_20 = arith.constant 0 : index
    %27 = vector.load %arg12[%c0_18, %c0_19, %c0_20] : memref<1x2x128xf32, #tpu.memory_space<vmem>>, vector<1x2x128xf32>
    %28 = vector.shape_cast %27 : vector<1x2x128xf32> to vector<2x128xf32>
    %29 = vector.shape_cast %26 : vector<2x128xf32> to vector<1x2x128xf32>
    tpu.vector_store %arg12[%c0_18, %c0_19, %c0_20], %29 {strides = array<i32>} : memref<1x2x128xf32, #tpu.memory_space<vmem>>, vector<1x2x128xf32>,
    %c2_i32_21 = arith.constant 2 : i32
    %30 = arith.cmpi eq, %arg0, %c2_i32_21 : i32
    %31 = arith.extui %30 : i1 to i32
    %c0_i32_22 = arith.constant 0 : i32
    %32 = arith.cmpi ne, %31, %c0_i32_22 : i32
    scf.if %32 {
      %c0_23 = arith.constant 0 : index
      %c0_24 = arith.constant 0 : index
      %33 = vector.load %arg14[%c0_23, %c0_24] : memref<2x2048xbf16, #tpu.memory_space<vmem>>, vector<2x2048xbf16>
      %c0_25 = arith.constant 0 : index
      %c0_26 = arith.constant 0 : index
      %34 = vector.load %arg13[%c0_25, %c0_26] : memref<2x2048xbf16, #tpu.memory_space<vmem>>, vector<2x2048xbf16>
      tpu.vector_store %arg13[%c0_25, %c0_26], %33 {strides = array<i32>} : memref<2x2048xbf16, #tpu.memory_space<vmem>>, vector<2x2048xbf16>,
    } else {
    }
    return
  }
  func.func @transform_0(%arg0: i32) -> (i32, i32) {
    %c0_i32 = arith.constant 0 : i32
    %c0_i32_0 = arith.constant 0 : i32
    %c0_i32_1 = arith.constant 0 : i32
    return %c0_i32, %c0_i32_0 : i32, i32
  }
  func.func @transform_1(%arg0: i32) -> (i32, i32) {
    %c0_i32 = arith.constant 0 : i32
    %c0_i32_0 = arith.constant 0 : i32
    %c0_i32_1 = arith.constant 0 : i32
    return %c0_i32, %c0_i32_0 : i32, i32
  }
  func.func @transform_2(%arg0: i32) -> (i32, i32) {
    %c0_i32 = arith.constant 0 : i32
    %c0_i32_0 = arith.constant 0 : i32
    %c0_i32_1 = arith.constant 0 : i32
    return %c0_i32, %c0_i32_0 : i32, i32
  }
  func.func @transform_3(%arg0: i32) -> (i32, i32) {
    %c0_i32 = arith.constant 0 : i32
    %c0_i32_0 = arith.constant 0 : i32
    %c0_i32_1 = arith.constant 0 : i32
    return %c0_i32, %c0_i32_0 : i32, i32
  }
  func.func @transform_4(%arg0: i32) -> (i32, i32) {
    %c0_i32 = arith.constant 0 : i32
    %c0_i32_0 = arith.constant 0 : i32
    %c0_i32_1 = arith.constant 0 : i32
    return %c0_i32, %c0_i32_0 : i32, i32
  }
  func.func @transform_5(%arg0: i32) -> (i32, i32) {
    %c0_i32 = arith.constant 0 : i32
    %c0_i32_0 = arith.constant 0 : i32
    %c0_i32_1 = arith.constant 0 : i32
    return %c0_i32, %c0_i32_0 : i32, i32
  }
  func.func @transform_6(%arg0: i32) -> (i32, i32, i32) {
    %c0_i32 = arith.constant 0 : i32
    %c0_i32_0 = arith.constant 0 : i32
    %c0_i32_1 = arith.constant 0 : i32
    return %arg0, %c0_i32, %c0_i32_0 : i32, i32, i32
  }
  func.func @transform_7(%arg0: i32) -> (i32, i32, i32) {
    %c0_i32 = arith.constant 0 : i32
    %c0_i32_0 = arith.constant 0 : i32
    %c0_i32_1 = arith.constant 0 : i32
    return %arg0, %c0_i32, %c0_i32_0 : i32, i32, i32
  }
  func.func @transform_8(%arg0: i32) -> (i32, i32, i32) {
    %c0_i32 = arith.constant 0 : i32
    %c0_i32_0 = arith.constant 0 : i32
    %c0_i32_1 = arith.constant 0 : i32
    return %arg0, %c0_i32, %c0_i32_0 : i32, i32, i32
  }
  func.func @transform_9(%arg0: i32) -> (i32, i32, i32) {
    %c0_i32 = arith.constant 0 : i32
    %c0_i32_0 = arith.constant 0 : i32
    %c0_i32_1 = arith.constant 0 : i32
    return %arg0, %c0_i32, %c0_i32_0 : i32, i32, i32
  }
  func.func @transform_10(%arg0: i32) -> (i32, i32) {
    %c0_i32 = arith.constant 0 : i32
    %c0_i32_0 = arith.constant 0 : i32
    %c0_i32_1 = arith.constant 0 : i32
    return %c0_i32, %c0_i32_0 : i32, i32
  }
  func.func @transform_11(%arg0: i32) -> (i32, i32, i32) {
    %c0_i32 = arith.constant 0 : i32
    %c0_i32_0 = arith.constant 0 : i32
    %c0_i32_1 = arith.constant 0 : i32
    return %arg0, %c0_i32, %c0_i32_0 : i32, i32, i32
  }
}

</mosaic_0001>

<bundles_post_ra>
// kernel: layout_net_forward.1
= control target key start
LH: loop header
LB: loop body
LE: loop exit
PB: predicated region body
PF: predicated region fallthrough
CT: control target
= control target key end

     0   :  { %s20227_s0 = inlined_call_operand.vmem [shape: bf16[512,27], index: 0, kind: input, shape index: {}]   ;;  %s20228_s1 = inlined_call_operand.hbm [shape: bf16[27,64], index: 1, kind: input, shape index: {}]   ;;  %s20229_s2 = inlined_call_operand.hbm [shape: f32[1,64], index: 2, kind: input, shape index: {}]   ;;  %s20230_s3 = inlined_call_operand.vmem [shape: bf16[2,512], index: 3, kind: input, shape index: {}]   ;;  %s20231_s4 = inlined_call_operand.hbm [shape: bf16[64,2048], index: 4, kind: input, shape index: {}]   ;;  %s20232_s5 = inlined_call_operand.hbm [shape: f32[1,2048], index: 5, kind: input, shape index: {}]   ;;  %s20233_s6 = inlined_call_operand.hbm [shape: bf16[5,2048,1024], index: 6, kind: input, shape index: {}]   ;;  %s20234_s7 = inlined_call_operand.hbm [shape: f32[5,1,1024], index: 7, kind: input, shape index: {}]   ;;  %s20235_s8 = inlined_call_operand.hbm [shape: bf16[5,1024,128], index: 8, kind: input, shape index: {}]   ;;  %s20236_s9 = inlined_call_operand.hbm [shape: f32[5,1,128], index: 9, kind: input, shape index: {}]   ;;  %s20237_s10 = inlined_call_operand.hbm [shape: f32[2,2048], index: 10, kind: output, shape index: {0}]   ;;  %s20238_s11 = inlined_call_operand.vmem [shape: f32[5,2,128], index: 11, kind: output, shape index: {1}]  }
   0x1   :  { %20248 = sst [smem:[#allocation26_spill]] %s20227_s0 }
   0x2   :  { %20249 = sst [smem:[#allocation27_spill]] %s20228_s1 }
   0x3   :  { %20250 = sst [smem:[#allocation28_spill]] %s20230_s3 }
   0x4   :  { %20251 = sst [smem:[#allocation29_spill]] %s20233_s6 }
   0x5   :  { %20252 = sst [smem:[#allocation30_spill]] %s20237_s10 }
   0x6   :  { %20253 = sst [smem:[#allocation31_spill]] %s20238_s11 }
   0x7   :  { %17 = vsyncpa [#allocation5], 0 }
   0x8   :  { %18 = vsyncpa [#allocation8], 0 }
   0x9   :  { %19 = vsyncpa [#allocation11], 0 }
   0xa   :  { %20 = vsyncpa [#allocation6], 0  ;;  %s17344_s17 = smov 0   ;;  %s17346_s18 = smov 0  }
   0xb   :  { %s17348_s19 = smov 0   ;;  %s17350_s20 = smov 0  }
   0xc LB: > { %20254 = sst [smem:[#allocation22_spill]] %s17267_s19  ;;  %s17363_s21 = sadd.s32 4294967295, %s17271_s20   ;;  %s17271_s20 = sphi %s17350_s20, %s20272_s20   ;;  %s17267_s19 = sphi %s17348_s19, %s20274_s19   ;;  %s17263_s18 = sphi %s17346_s18, %s20276_s18   ;;  %s17259_s17 = sphi %s17344_s17, %s20275_s17  }
   0xd   : > { %s17366_s22 = sadd.s32 1, %s17271_s20   ;;  %s159_s24 = sadd.s32 1, %s17267_s19 }
   0xe   : > { %20255 = sst [smem:[#allocation23_spill]] %s17366_s22  ;;  %s156_s23 = ssub.s32 %s17271_s20, %s17366_s22 }
   0xf   : > { %p157_p0 = scmp.eq.s32.totalorder %s156_s23, 0  ;;  %p166_p1 = scmp.ne.s32.totalorder %s17267_s19, %s17263_s18 }
  0x10   : > { %p167_p2 = scmp.eq.s32.totalorder %s17271_s20, 0  ;;  %p172_p3 = scmp.ne.s32.totalorder %s17263_s18, %s17259_s17 }
  0x11   : > { %s17376_s25 = scalar_select %p157_p0, %s17267_s19, %s159_s24  }
  0x12   : > { %p17378_p4 = por %p167_p2, %p166_p1  ;;  %p173_p5 = scmp.eq.s32.totalorder %s17363_s21, 0 }
  0x13   : > { %20256 = sst [smem:[#allocation24_spill]] %s17376_s25  ;;  %p10764_p6 = scmp.ge.s32.totalorder %s17271_s20, 1 }
  0x14   : > { %p308_p7 = scmp.lt.s32.totalorder %s17271_s20, 6  ;;  %p17387_p8 = por %p173_p5, %p172_p3 }
  0x15   : > { %p10765_p9 = scmp.ne.s32.totalorder %s17363_s21, 0  ;;  %s20261_s1 = sld [smem:[#allocation27_spill]] }
  0x16   : > { %s20258_s27 = scalar_select %p17387_p8, 1, 0 }
  0x17   : > { %p17392_p10 = pnand %p10764_p6, %p308_p7  ;;  %s17273_s13 = smov [#allocation4]  }
  0x18   : > { %20259 = sst [smem:[#allocation25_spill]] %s20258_s27  ;;  %s324_s14 = sshll.u32 %s17273_s13, 4  ;;  %s325_s14 = int_to_ptr.vmem [resolvable:$true] %s324_s14 }
  0x19   : > { %p16809_p11 = pneg %p17392_p10  ;;  %p16839_p13 = scmp.lt.s32.totalorder %s17271_s20, 5 }
  0x1a   : > { %s379_s16 = sand.u32 1, %s17271_s20   ;;  %s20242_s17 = smov 64  }
  0x1b   : > { %s322_s12 = sshll.u32 %s20261_s1, 4  ;;  %p17403_p12 = pnand %p16809_p11, %p173_p5  ;;  %s323_s12 = int_to_ptr.hbm [resolvable:$true] %s322_s12 }
  0x1c   : > { %s20244_s23 = smov 4   ;;  %s17415_s24 = sand.u32 1, %s17267_s19  }
  0x1d   : > { %16812 = dma.hbm_to_vmem [thread:$0]  (!%p17403_p12), %s323_s12, 256, %s325_s14, [#allocation5], %s20242_s17, %s20242_s17, %s20244_s23  }
  0x1e   : > { %s10770_s29 = sshll.u32 %s17415_s24, 13  ;;  %s15587_s30 = sshll.u32 %s17271_s20, 13 }
  0x1f   : > { %s20263_s6 = sld [smem:[#allocation29_spill]]  ;;  %s383_s10 = scalar_lea.vmem [#allocation12], %s10770_s29 }
  0x20   : > { %s391_s3 = sshll.u32 %s383_s10, 4  ;;  %p17426_p0 = pnand %p16839_p13, %p17378_p4  ;;  %s392_s3 = int_to_ptr.vmem [resolvable:$true] %s391_s3 }
  0x21   : > { %s10773_s12 = sshll.u32 %s17415_s24, 3  ;;  %s17431_s14 = scalar_lea.sflag [#allocation5], %s379_s16 }
  0x22   : > { %p16987_p2 = pneg %p17426_p0 }
  0x25   : > { %s388_s25 = scalar_lea.hbm %s20263_s6, %s15587_s30  ;;  %s16990_s26 = scalar_lea.hbm %s20263_s6, 40960 }
  0x26   : > { %s389_s22 = sshll.u32 %s388_s25, 4  ;;  %s390_s22 = int_to_ptr.hbm [resolvable:$true] %s389_s22 }
  0x27   : > { %s16983_s17 = sshra.s32 %s390_s22, 4  ;;  %s16984_s17 = int_to_ptr.hbm [resolvable:$true] %s16983_s17 }
  0x28   : > { %s16985_s1 = scalar_lea.hbm %s16984_s17, 8192  ;;  %p16991_p4 = scmp.lt.s32.totalorder %s16984_s17, %s20263_s6 }
  0x29   : > { %p16986_p1 = scmp.ne.s32.totalorder %s16984_s17, %s16985_s1  ;;  %p16992_p7 = scmp.lt.s32.totalorder %s16990_s26, %s16985_s1 }
  0x2b   : > { %p16988_p3 = pnand %p16987_p2, %p16986_p1  ;;  %p16993_p11 = por %p16992_p7, %p16991_p4 }
  0x2d   : > { %p16989_p6 = pneg %p16988_p3 }
  0x2f   : > { %p16994_p13 = pnand %p16993_p11, %p16989_p6 }
  0x31   : > { %16997 = shalt.err (!%p16994_p13)
}
  0x32   : > { %s17276_s16 = smov 512   ;;  %s17277_s13 = smov 32  }
  0x33   : > { %16825 = dma.hbm_to_vmem [thread:$0]  (!%p17426_p0), %s390_s22, 131072, %s392_s3, %s17431_s14, %s17276_s16, %s17276_s16, %s17277_s13  }
  0x34   : > { %s10774_s23 = sshll.u32 %s17271_s20, 3  ;;  %s405_s19 = scalar_lea.vmem [#allocation13], %s10773_s12 }
  0x35   : > { %s413_s10 = sshll.u32 %s405_s19, 4  ;;  %s409_s29 = scalar_lea.hbm %s20234_s7, %s10774_s23  ;;  %s414_s10 = int_to_ptr.vmem [resolvable:$true] %s413_s10 }
  0x36   : > { %s411_s17 = sshll.u32 %s409_s29, 4  ;;  %s337_s30 = sshll.u32 %s20229_s2, 4  ;;  %s412_s17 = int_to_ptr.hbm [resolvable:$true] %s411_s17  ;;  %s338_s30 = int_to_ptr.hbm [resolvable:$true] %s337_s30 }
  0x37   : > { %s17013_s6 = sshra.s32 %s412_s17, 4  ;;  %s17020_s11 = scalar_lea.hbm %s20234_s7, 40  ;;  %s17014_s6 = int_to_ptr.hbm [resolvable:$true] %s17013_s6 }
  0x38   : > { %s17015_s27 = scalar_lea.hbm %s17014_s6, 8  ;;  %p17021_p4 = scmp.lt.s32.totalorder %s17014_s6, %s20234_s7 }
  0x39   : > { %p17016_p1 = scmp.ne.s32.totalorder %s17014_s6, %s17015_s27  ;;  %p17022_p7 = scmp.lt.s32.totalorder %s17020_s11, %s17015_s27 }
  0x3b   : > { %p17018_p3 = pnand %p17016_p1, %p16987_p2  ;;  %p17023_p11 = por %p17022_p7, %p17021_p4 }
  0x3d   : > { %p17019_p6 = pneg %p17018_p3 }
  0x3f   : > { %p17024_p13 = pnand %p17023_p11, %p17019_p6 }
  0x41   : > { %17027 = shalt.err (!%p17024_p13)
}
  0x42   : > { %16828 = dma.hbm_to_vmem [thread:$0]  (!%p17426_p0), %s412_s17, 128, %s414_s10, %s17431_s14  }
  0x43   : > { %s10775_s12 = sshll.u32 %s17415_s24, 9  ;;  %s17278_s16 = smov [#allocation7]  }
  0x44   : > { %s339_s13 = sshll.u32 %s17278_s16, 4  ;;  %s15588_s25 = sshll.u32 %s17271_s20, 9  ;;  %s340_s13 = int_to_ptr.vmem [resolvable:$true] %s339_s13 }
  0x45   : > { %16815 = dma.hbm_to_vmem [thread:$0]  (!%p17403_p12), %s338_s30, 16, %s340_s13, [#allocation8]  }
  0x46   : > { %s429_s29 = scalar_lea.hbm %s20235_s8, %s15588_s25  ;;  %s424_s1 = scalar_lea.vmem [#allocation14], %s10775_s12 }
  0x47   : > { %s432_s26 = sshll.u32 %s424_s1, 4  ;;  %s430_s3 = sshll.u32 %s429_s29, 4  ;;  %s433_s26 = int_to_ptr.vmem [resolvable:$true] %s432_s26  ;;  %s431_s3 = int_to_ptr.hbm [resolvable:$true] %s430_s3 }
  0x48   : > { %s351_s10 = sshll.u32 %s20231_s4, 4  ;;  %s17073_s17 = sshra.s32 %s431_s3, 4  ;;  %s17074_s17 = int_to_ptr.hbm [resolvable:$true] %s17073_s17  ;;  %s352_s10 = int_to_ptr.hbm [resolvable:$true] %s351_s10 }
  0x49   : > { %s17075_s22 = scalar_lea.hbm %s17074_s17, 512  ;;  %s17080_s12 = scalar_lea.hbm %s20235_s8, 2560 }
  0x4a   : > { %p17076_p1 = scmp.ne.s32.totalorder %s17074_s17, %s17075_s22  ;;  %p17081_p4 = scmp.lt.s32.totalorder %s17074_s17, %s20235_s8 }
  0x4b   : > { %p17082_p7 = scmp.lt.s32.totalorder %s17080_s12, %s17075_s22 }
  0x4c   : > { %p17078_p3 = pnand %p17076_p1, %p16987_p2 }
  0x4d   : > { %p17083_p11 = por %p17082_p7, %p17081_p4 }
  0x4e   : > { %p17079_p6 = pneg %p17078_p3 }
  0x50   : > { %p17084_p13 = pnand %p17083_p11, %p17079_p6 }
  0x52   : > { %17087 = shalt.err (!%p17084_p13)
}
  0x53   : > { %s20265_s25 = smov 4   ;;  %s20266_s6 = smov 64  }
  0x54   : > { %16831 = dma.hbm_to_vmem [thread:$0]  (!%p17426_p0), %s431_s3, 8192, %s433_s26, %s17431_s14, %s20266_s6, %s20266_s6, %s20265_s25  }
  0x55   : > { %s17279_s27 = smov [#allocation9]   ;;  %s366_s11 = sshll.u32 %s20232_s5, 4  ;;  %s367_s11 = int_to_ptr.hbm [resolvable:$true] %s366_s11 }
  0x56   : > { %s353_s29 = sshll.u32 %s17279_s27, 4  ;;  %s17280_s17 = smov 1024   ;;  %s354_s29 = int_to_ptr.vmem [resolvable:$true] %s353_s29 }
  0x57   : > { %16818 = dma.hbm_to_vmem [thread:$0]  (!%p17403_p12), %s352_s10, 8192, %s354_s29, [#allocation8], %s17280_s17, %s17280_s17, %s20266_s6  }
  0x58   : > { %s17281_s22 = smov [#allocation10]   ;;  %s448_s26 = scalar_lea.hbm %s20236_s9, %s17271_s20 }
  0x59   : > { %s368_s30 = sshll.u32 %s17281_s22, 4  ;;  %s450_s3 = sshll.u32 %s448_s26, 4  ;;  %s369_s30 = int_to_ptr.vmem [resolvable:$true] %s368_s30  ;;  %s451_s3 = int_to_ptr.hbm [resolvable:$true] %s450_s3 }
  0x5a   : > { %16821 = dma.hbm_to_vmem [thread:$0]  (!%p17403_p12), %s367_s11, 256, %s369_s30, [#allocation11]  }
  0x5b   : > { %s445_s16 = scalar_lea.vmem [#allocation15], %s17415_s24  ;;  %s17163_s25 = sshra.s32 %s451_s3, 4  ;;  %s17164_s25 = int_to_ptr.hbm [resolvable:$true] %s17163_s25 }
  0x5c   : > { %s452_s13 = sshll.u32 %s445_s16, 4  ;;  %s17165_s27 = scalar_lea.hbm %s17164_s25, 1  ;;  %s453_s13 = int_to_ptr.vmem [resolvable:$true] %s452_s13 }
  0x5d   : > { %p17166_p1 = scmp.ne.s32.totalorder %s17164_s25, %s17165_s27  ;;  %s17170_s29 = scalar_lea.hbm %s20236_s9, 5 }
  0x5e   : > { %p17171_p12 = scmp.lt.s32.totalorder %s17164_s25, %s20236_s9  ;;  %p17172_p4 = scmp.lt.s32.totalorder %s17170_s29, %s17165_s27 }
  0x5f   : > { %p17168_p3 = pnand %p17166_p1, %p16987_p2 }
  0x60   : > { %p17173_p7 = por %p17172_p4, %p17171_p12 }
  0x61   : > { %p17169_p6 = pneg %p17168_p3 }
  0x63   : > { %p17174_p11 = pnand %p17173_p7, %p17169_p6 }
  0x65   : > { %17177 = shalt.err (!%p17174_p11)
}
  0x66   : > { %16834 = dma.hbm_to_vmem [thread:$0]  (!%p17426_p0), %s451_s3, 16, %s453_s13, %s17431_s14  }
  0x67   : > { %461 = sbr.rel (%p17392_p10) target bundleno = 3077 (0xc05), region = 60 }
  0x6c   : > { %17238 = dma.done.wait (%p173_p5), [#allocation5], 256  }
  0x6d   : > { %17240 = vsyncadd (%p173_p5), [#allocation5], 4294967040 }
  0x6e   : > { %17242 = dma.done.wait (%p173_p5), [#allocation8], 8208  }
  0x6f   : > { %17244 = vsyncadd (%p173_p5), [#allocation8], 4294959088 }
  0x70   : > { %17246 = dma.done.wait (%p173_p5), [#allocation11], 256  }
  0x71   : > { %17248 = vsyncadd (%p173_p5), [#allocation11], 4294967040  ;;  %s483_s28 = sand.u32 1, %s17363_s21   ;;  %s17532_s24 = sand.u32 1, %s17263_s18  }
  0x72   : > { %s10783_s14 = sshll.u32 %s17532_s24, 13  ;;  %s484_s1 = scalar_lea.sflag [#allocation5], %s483_s28 }
  0x73   : > { %s17535_s19 = scalar_lea.vmem [#allocation12], %s10783_s14 }
  0x74   : > { %17250 = dma.done.wait (%p17387_p8), %s484_s1, 139408  }
  0x75   : > { %17252 = vsyncadd (%p17387_p8), %s484_s1, 4294827888  ;;  %s10784_s11 = sshll.u32 %s17532_s24, 3  ;;  %s10785_s17 = sshll.u32 %s17532_s24, 9 }
  0x76   : > { %p569_p5 = scmp.lt.s32.totalorder %s17363_s21, 4  ;;  %s20268_s26 = sld [smem:[#allocation31_spill]] }
  0x77   : > { %s17550_s16 = scalar_lea.vmem [#allocation13], %s10784_s11  ;;  %s17552_s13 = scalar_lea.vmem [#allocation14], %s10785_s17 }
  0x78   : > { %s570_s22 = scalar_select %p569_p5, %s17363_s21, 4 }
  0x79   : > { %s516_s25 = scalar_lea.vmem [#allocation15], %s17532_s24  ;;  %577 = sbr.rel (%p10765_p9) target bundleno = 872 (0x368), region = 96 }
  0x7a   : > { %s10786_s30 = sshll.u32 %s570_s22, 1  ;;  %s20269_s6 = sld [smem:[#allocation26_spill]] (!%p10765_p9) }
  0x7b   : > { %s20270_s29 = sld [smem:[#allocation28_spill]] (!%p10765_p9) }
  0x7c   : > { %s17548_s3 = scalar_lea.vmem %s20268_s26, %s10786_s30 }
  0x7e   : > { %v10922_v0 = vld [vmem:[#allocation4 + $0x8] sm:$0xf]  ;;  %v15622_v1 = vld [vmem:[#allocation4 + $0x8] sm:$0x30]  ;;  %vm918_vm0 = vcmask 1044480   ;;  %vm919_vm1 = vcmask 1045504  }
  0x7f   : > { %v10923_v2 = vor.u32 %v15622_v1, %v10922_v0  ;;  %v17282_v3 = vmov 65535   ;;  %v15621_v7 = vld [vmem:[#allocation4] sm:$0xff]  ;;  %vm821_vm2 = vcmask 220160   ;;  %v17666_v37 = vld [vmem:[#allocation7] ss:$0 sm:$0xff]  ;;  %vm1674_vm3 = vcmask 523264  }
  0x80   : > { %v920_v4 = vsel %vm918_vm0, 4294967295, %v17282_v3  ;;  %v15589_v8 = vld [vmem:[%s20269_s6] sm:$0xff]  ;;  %v15603_v9 = vld [vmem:[%s20269_s6 + $0x70] sm:$0xff]  ;;  %v15590_v10 = vld [vmem:[%s20269_s6 + $0x8] sm:$0xff]  ;;  %vm1914_vm4 = vcmask 1041408   ;;  %vm1916_vm5 = vcmask 1045508  }
  0x81   : > { %v921_v5 = vsel %vm919_vm1, %v920_v4, 0  ;;  %v15604_v11 = vld [vmem:[%s20269_s6 + $0x78] sm:$0xff]  ;;  %v15610_v12 = vld [vmem:[%s20269_s6 + $0xa8] sm:$0xff]  ;;  %v15591_v13 = vld [vmem:[%s20269_s6 + $0x10] sm:$0xff]  ;;  %vm1918_vm6 = vcmask 1043456   ;;  %vm1971_vm7 = vcmask 1042434  }
  0x82   : > { %v923_v6 = vand.u32 %v10923_v2, %v921_v5  ;;  %v15605_v14 = vld [vmem:[%s20269_s6 + $0x80] sm:$0xff]  ;;  %v15611_v15 = vld [vmem:[%s20269_s6 + $0xb0] sm:$0xff]  ;;  %v15592_v16 = vld [vmem:[%s20269_s6 + $0x18] sm:$0xff]  ;;  %vm1967_vm8 = vcmask 1040384   ;;  %vm1976_vm9 = vcmask 1044484   ;;  %vm1980_vm10 = vcmask 1046534  }
  0x83   : > { %v15606_v17 = vld [vmem:[%s20269_s6 + $0x88] sm:$0xff]  ;;  %v15612_v18 = vld [vmem:[%s20269_s6 + $0xb8] sm:$0xff]  ;;  %v15617_v19 = vld [vmem:[%s20269_s6 + $0xe0] sm:$0xff] }
  0x84   : > { %931 = vmatpush.bf16.msra.mxu0 %v923_v6  ;;  %16775 = vmatpush.bf16.msra.mxu1 %v923_v6  ;;  %v15593_v20 = vld [vmem:[%s20269_s6 + $0x20] sm:$0xff]  ;;  %v15607_v21 = vld [vmem:[%s20269_s6 + $0x90] sm:$0xff]  ;;  %v15618_v23 = vld [vmem:[%s20269_s6 + $0xe8] sm:$0xff] }
  0x85   : > { %16776 = vmatpush.bf16.msra.mxu2 %v923_v6  ;;  %16777 = vmatpush.bf16.msra.mxu3 %v923_v6  ;;  %v15613_v22 = vld [vmem:[%s20269_s6 + $0xc0] sm:$0xff]  ;;  %v15594_v24 = vld [vmem:[%s20269_s6 + $0x28] sm:$0xff]  ;;  %v15608_v25 = vld [vmem:[%s20269_s6 + $0x98] sm:$0xff] }
  0x86   : > { %v15614_v26 = vld [vmem:[%s20269_s6 + $0xc8] sm:$0xff]  ;;  %v15619_v27 = vld [vmem:[%s20269_s6 + $0xf0] sm:$0xff]  ;;  %v15609_v29 = vld [vmem:[%s20269_s6 + $0xa0] sm:$0xff] }
  0x87   : > { %v15595_v28 = vld [vmem:[%s20269_s6 + $0x30] sm:$0xff]  ;;  %v15620_v31 = vld [vmem:[%s20269_s6 + $0xf8] sm:$0xff]  ;;  %v15597_v34 = vld [vmem:[%s20269_s6 + $0x40] sm:$0xff] }
  0x88   : > { %932 = vmatpush.bf16.msra.mxu0 %v15621_v7  ;;  %16778 = vmatpush.bf16.msra.mxu1 %v15621_v7  ;;  %v15615_v30 = vld [vmem:[%s20269_s6 + $0xd0] sm:$0xff]  ;;  %v15596_v32 = vld [vmem:[%s20269_s6 + $0x38] sm:$0xff]  ;;  %v15598_v45 = vld [vmem:[%s20269_s6 + $0x48] sm:$0xff] }
  0x89   : > { %16779 = vmatpush.bf16.msra.mxu2 %v15621_v7  ;;  %16780 = vmatpush.bf16.msra.mxu3 %v15621_v7  ;;  %v15616_v33 = vld [vmem:[%s20269_s6 + $0xd8] sm:$0xff]  ;;  %v15599_v56 = vld [vmem:[%s20269_s6 + $0x50] sm:$0xff] }
  0x8a   : > { %v15600_v4 = vld [vmem:[%s20269_s6 + $0x58] sm:$0xff] }
  0x8b   : > { %10924 = vmatmul.msk.bf16.vlgmr.msra.gmra.mxu0 %vm821_vm2, %v15589_v8  ;;  %10938 = vmatmul.msk.bf16.vlgmr.msra.gmra.mxu1 %vm821_vm2, %v15603_v9 }
  0x8c   : > { %10945 = vmatmul.msk.bf16.vlgmr.msra.gmra.mxu2 %vm821_vm2, %v15610_v12  ;;  %10952 = vmatmul.msk.bf16.vlgmr.msra.gmra.mxu3 %vm821_vm2, %v15617_v19 }
  0x9b   : > { %10925 = vmatmul.msk.bf16.gmra.mxu0 %vm821_vm2, %v15590_v10  ;;  %10939 = vmatmul.msk.bf16.gmra.mxu1 %vm821_vm2, %v15604_v11 }
  0x9c   : > { %10946 = vmatmul.msk.bf16.gmra.mxu2 %vm821_vm2, %v15611_v15  ;;  %10953 = vmatmul.msk.bf16.gmra.mxu3 %vm821_vm2, %v15618_v23  ;;  %v15601_v15 = vld [vmem:[%s20269_s6 + $0x60] sm:$0xff]  ;;  %v15602_v23 = vld [vmem:[%s20269_s6 + $0x68] sm:$0xff] }
  0xab   : > { %10926 = vmatmul.msk.bf16.gmra.mxu0 %vm821_vm2, %v15591_v13  ;;  %10940 = vmatmul.msk.bf16.gmra.mxu1 %vm821_vm2, %v15605_v14 }
  0xac   : > { %10947 = vmatmul.msk.bf16.gmra.mxu2 %vm821_vm2, %v15612_v18  ;;  %10954 = vmatmul.msk.bf16.gmra.mxu3 %vm821_vm2, %v15619_v27 }
  0xbb   : > { %10927 = vmatmul.msk.bf16.gmra.mxu0 %vm821_vm2, %v15592_v16  ;;  %10941 = vmatmul.msk.bf16.gmra.mxu1 %vm821_vm2, %v15606_v17 }
  0xbc   : > { %10948 = vmatmul.msk.bf16.gmra.mxu2 %vm821_vm2, %v15613_v22  ;;  %10955 = vmatmul.msk.bf16.gmra.mxu3 %vm821_vm2, %v15620_v31 }
  0xcb   : > { %10928 = vmatmul.msk.bf16.gmra.mxu0 %vm821_vm2, %v15593_v20  ;;  %10942 = vmatmul.msk.bf16.gmra.mxu1 %vm821_vm2, %v15607_v21 }
  0xcc   : > { %10949 = vmatmul.msk.bf16.gmra.mxu2 %vm821_vm2, %v15614_v26 }
  0xdb   : > { %10929 = vmatmul.msk.bf16.gmra.mxu0 %vm821_vm2, %v15594_v24  ;;  %10943 = vmatmul.msk.bf16.gmra.mxu1 %vm821_vm2, %v15608_v25 }
  0xdc   : > { %10950 = vmatmul.msk.bf16.gmra.mxu2 %vm821_vm2, %v15615_v30 }
  0xeb   : > { %10930 = vmatmul.msk.bf16.gmra.mxu0 %vm821_vm2, %v15595_v28  ;;  %10944 = vmatmul.msk.bf16.gmra.mxu1 %vm821_vm2, %v15609_v29 }
  0xec   : > { %10951 = vmatmul.msk.bf16.gmra.mxu2 %vm821_vm2, %v15616_v33 }
  0xfb   : > { %10931 = vmatmul.msk.bf16.gmra.mxu0 %vm821_vm2, %v15596_v32 }
 0x108   : > { %v934_v35 = vpop.f32.mrf.mxu0  ;;  %v17664_v36 = vpop.f32.mrf.mxu1 }
 0x109   : > { %v935_v38 = vadd.f32 %v17666_v37, %v934_v35  ;;  %v1005_v31 = vadd.f32 %v17666_v37, %v17664_v36 }
 0x10b   : > { %10932 = vmatmul.msk.bf16.gmra.mxu0 %vm821_vm2, %v15597_v34  ;;  %v1094_v42 = vmax.f32 %v935_v38, 0.0  ;;  %v1122_v35 = vmax.f32 %v1005_v31, 0.0 }
 0x10f   : > { %v1039_v55 = vpop.f32.mrf.mxu2  ;;  %v17713_v19 = vpop.f32.mrf.mxu3 }
 0x110   : > { %v936_v39 = vpop.f32.mrf.mxu0  ;;  %v1006_v40 = vpop.f32.mrf.mxu1 }
 0x111   : > { %v937_v41 = vadd.f32 %v17666_v37, %v936_v39  ;;  %v1007_v32 = vadd.f32 %v17666_v37, %v1006_v40  ;;  %v1040_v40 = vadd.f32 %v17666_v37, %v1039_v55 }
 0x113   : > { %v1095_v43 = vmax.f32 %v937_v41, 0.0  ;;  %v1123_v38 = vmax.f32 %v1007_v32, 0.0 }
 0x115   : > { %v17671_v44 = vpack.c.bf16 %v1095_v43, %v1094_v42 }
 0x117   : > { %v17687_v59 = vpop.f32.mrf.mxu2  ;;  %v17722_v26 = vpop.f32.mrf.mxu3 }
 0x118   : > { %v939_v46 = vpop.f32.mrf.mxu0  ;;  %v1009_v47 = vpop.f32.mrf.mxu1 }
 0x119   : > { %v940_v48 = vadd.f32 %v17666_v37, %v939_v46  ;;  %v1010_v24 = vadd.f32 %v17666_v37, %v1009_v47  ;;  %v1173_v46 = vpack.c.bf16 %v1123_v38, %v1122_v35 }
 0x11b   : > { %10933 = vmatmul.msk.bf16.gmra.mxu0 %vm821_vm2, %v15598_v45  ;;  %v1096_v52 = vmax.f32 %v940_v48, 0.0  ;;  %v1124_v29 = vmax.f32 %v1010_v24, 0.0 }
 0x11f   : > { %v1044_v3 = vpop.f32.mrf.mxu2  ;;  %v17734_v42 = vpop.f32.mrf.mxu3 }
 0x120   : > { %v941_v49 = vpop.f32.mrf.mxu0  ;;  %v1011_v50 = vpop.f32.mrf.mxu1  ;;  %v1045_v48 = vadd.f32 %v17666_v37, %v1044_v3 }
 0x121   : > { %v942_v51 = vadd.f32 %v17666_v37, %v941_v49  ;;  %v1012_v25 = vadd.f32 %v17666_v37, %v1011_v50 }
 0x123   : > { %v1097_v53 = vmax.f32 %v942_v51, 0.0  ;;  %v1125_v30 = vmax.f32 %v1012_v25, 0.0 }
 0x125   : > { %v17679_v54 = vpack.c.bf16 %v1097_v53, %v1096_v52  ;;  %v1174_v34 = vpack.c.bf16 %v1125_v30, %v1124_v29 }
 0x127   : > { %v1046_v8 = vpop.f32.mrf.mxu2  ;;  %1214 = vmatpush.bf16.msrb.mxu2 %v1174_v34 }
 0x128   : > { %v944_v57 = vpop.f32.mrf.mxu0  ;;  %v17684_v58 = vpop.f32.mrf.mxu1  ;;  %v1047_v49 = vadd.f32 %v17666_v37, %v1046_v8 }
 0x129   : > { %v945_v60 = vadd.f32 %v17666_v37, %v944_v57 }
 0x12a   : > { %v1139_v57 = vmax.f32 %v1047_v49, 0.0 }
 0x12b   : > { %10934 = vmatmul.msk.bf16.gmra.mxu0 %vm821_vm2, %v15599_v56  ;;  %v1098_v0 = vmax.f32 %v945_v60, 0.0  ;;  %1215 = vmatpush.bf16.msrb.mxu2 %v1173_v46  ;;  %v1138_v56 = vmax.f32 %v1045_v48, 0.0  ;;  %v1136_v60 = vmax.f32 %v1040_v40, 0.0 }
 0x12f   : > { %v1049_v18 = vpop.f32.mrf.mxu2 }
 0x130   : > { %v946_v61 = vpop.f32.mrf.mxu0  ;;  %v17690_v62 = vpop.f32.mrf.mxu1  ;;  %v1050_v43 = vadd.f32 %v17666_v37, %v1049_v18 }
 0x131   : > { %v947_v63 = vadd.f32 %v17666_v37, %v946_v61  ;;  %v1042_v61 = vadd.f32 %v17666_v37, %v17687_v59 }
 0x132   : > { %v1140_v47 = vmax.f32 %v1050_v43, 0.0 }
 0x133   : > { %v1099_v1 = vmax.f32 %v947_v63, 0.0  ;;  %v1181_v63 = vpack.c.bf16 %v1139_v57, %v1138_v56  ;;  %v1137_v55 = vmax.f32 %v1042_v61, 0.0 }
 0x135   : > { %v17693_v2 = vpack.c.bf16 %v1099_v1, %v1098_v0  ;;  %v17745_v0 = vpop.f32.mrf.mxu3  ;;  %v1180_v3 = vpack.c.bf16 %v1137_v55, %v1136_v60 }
 0x137   : > { %v1051_v22 = vpop.f32.mrf.mxu2 }
 0x138   : > { %v949_v5 = vpop.f32.mrf.mxu0  ;;  %v17698_v6 = vpop.f32.mrf.mxu1  ;;  %v1052_v45 = vadd.f32 %v17666_v37, %v1051_v22 }
 0x139   : > { %v950_v7 = vadd.f32 %v17666_v37, %v949_v5  ;;  %v1020_v25 = vadd.f32 %v17666_v37, %v17698_v6 }
 0x13a   : > { %v1141_v36 = vmax.f32 %v1052_v45, 0.0 }
 0x13b   : > { %10935 = vmatmul.msk.bf16.gmra.mxu0 %vm821_vm2, %v15600_v4  ;;  %v1100_v12 = vmax.f32 %v950_v7, 0.0  ;;  %v1128_v34 = vmax.f32 %v1020_v25, 0.0 }
 0x13c   : > { %v1182_v53 = vpack.c.bf16 %v1141_v36, %v1140_v47 }
 0x13d   : > { %v17755_v24 = vpop.f32.mrf.mxu3 }
 0x13e   : > { %1227 = vmatpush.bf16.msrb.mxu3 %v1182_v53 }
 0x13f   : > { %v17730_v33 = vpop.f32.mrf.mxu2 }
 0x140   : > { %v951_v9 = vpop.f32.mrf.mxu0  ;;  %v17702_v10 = vpop.f32.mrf.mxu1 }
 0x141   : > { %v952_v11 = vadd.f32 %v17666_v37, %v951_v9  ;;  %v1022_v30 = vadd.f32 %v17666_v37, %v17702_v10 }
 0x142   : > { %1228 = vmatpush.bf16.msrb.mxu3 %v1181_v63 }
 0x143   : > { %v1101_v13 = vmax.f32 %v952_v11, 0.0  ;;  %v1129_v35 = vmax.f32 %v1022_v30, 0.0 }
 0x145   : > { %v17705_v14 = vpack.c.bf16 %v1101_v13, %v1100_v12  ;;  %v1176_v46 = vpack.c.bf16 %v1129_v35, %v1128_v34  ;;  %v1086_v47 = vpop.f32.mrf.mxu3  ;;  %v1080_v34 = vadd.f32 %v17666_v37, %v17734_v42  ;;  %v1082_v35 = vadd.f32 %v17666_v37, %v17745_v0 }
 0x146   : > { %1229 = vmatpush.bf16.msrb.mxu3 %v1180_v3 }
 0x147   : > { %v17741_v50 = vpop.f32.mrf.mxu2 }
 0x148   : > { %v17710_v16 = vpop.f32.mrf.mxu0  ;;  %v1024_v17 = vpop.f32.mrf.mxu1 }
 0x149   : > { %v1025_v12 = vadd.f32 %v17666_v37, %v1024_v17  ;;  %v1015_v17 = vadd.f32 %v17666_v37, %v17684_v58 }
 0x14b   : > { %10936 = vmatmul.msk.bf16.gmra.mxu0 %vm821_vm2, %v15601_v15  ;;  %v1126_v43 = vmax.f32 %v1015_v17, 0.0 }
 0x14d   : > { %v1089_v3 = vpop.f32.mrf.mxu3 }
 0x14f   : > { %v17749_v9 = vpop.f32.mrf.mxu2 }
 0x150   : > { %v17715_v20 = vpop.f32.mrf.mxu0  ;;  %v1026_v21 = vpop.f32.mrf.mxu1 }
 0x151   : > { %v1027_v13 = vadd.f32 %v17666_v37, %v1026_v21  ;;  %v1017_v21 = vadd.f32 %v17666_v37, %v17690_v62 }
 0x153   : > { %v1131_v31 = vmax.f32 %v1027_v13, 0.0  ;;  %v1127_v10 = vmax.f32 %v1017_v21, 0.0 }
 0x155   : > { %v1175_v49 = vpack.c.bf16 %v1127_v10, %v1126_v43  ;;  %v1075_v10 = vadd.f32 %v17666_v37, %v17713_v19 }
 0x158   : > { %v17724_v27 = vpop.f32.mrf.mxu0  ;;  %v1029_v28 = vpop.f32.mrf.mxu1 }
 0x159   : > { %v1030_v11 = vadd.f32 %v17666_v37, %v1029_v28  ;;  %v1130_v28 = vmax.f32 %v1025_v12, 0.0  ;;  %v960_v60 = vadd.f32 %v17666_v37, %v17724_v27 }
 0x15b   : > { %10937 = vmatmul.msk.bf16.gmra.mxu0 %vm821_vm2, %v15602_v23  ;;  %v1132_v18 = vmax.f32 %v1030_v11, 0.0  ;;  %v1177_v38 = vpack.c.bf16 %v1131_v31, %v1130_v28  ;;  %v1085_v31 = vadd.f32 %v17666_v37, %v17755_v24 }
 0x160   : > { %v17732_v39 = vpop.f32.mrf.mxu0  ;;  %v1031_v41 = vpop.f32.mrf.mxu1 }
 0x161   : > { %v1032_v59 = vadd.f32 %v17666_v37, %v1031_v41  ;;  %v17765_v41 = vpop.f32.mrf.mxu2 }
 0x163   : > { %v1133_v22 = vmax.f32 %v1032_v59, 0.0 }
 0x165   : > { %v1178_v32 = vpack.c.bf16 %v1133_v22, %v1132_v18  ;;  %v1091_v18 = vpop.f32.mrf.mxu3 }
 0x168   : > { %v964_v51 = vpop.f32.mrf.mxu0  ;;  %v1034_v52 = vpop.f32.mrf.mxu1 }
 0x169   : > { %v1035_v1 = vadd.f32 %v17666_v37, %v1034_v52  ;;  %v965_v62 = vadd.f32 %v17666_v37, %v964_v51  ;;  %v962_v52 = vadd.f32 %v17666_v37, %v17732_v39  ;;  %v17773_v57 = vpop.f32.mrf.mxu2  ;;  %v957_v51 = vadd.f32 %v17666_v37, %v17715_v20 }
 0x16a   : > { %v955_v39 = vadd.f32 %v17666_v37, %v17710_v16  ;;  %v1090_v16 = vadd.f32 %v17666_v37, %v1089_v3 }
 0x16b   : > { %v1134_v8 = vmax.f32 %v1035_v1, 0.0  ;;  %v1106_v61 = vmax.f32 %v965_v62, 0.0  ;;  %v1105_v55 = vmax.f32 %v962_v52, 0.0  ;;  %v1150_v62 = vmax.f32 %v1075_v10, 0.0 }
 0x16c   : > { %v1156_v30 = vmax.f32 %v1090_v16, 0.0 }
 0x170   : > { %v966_v4 = vpop.f32.mrf.mxu0  ;;  %v1036_v5 = vpop.f32.mrf.mxu1 }
 0x171   : > { %v1037_v7 = vadd.f32 %v17666_v37, %v1036_v5  ;;  %v967_v36 = vadd.f32 %v17666_v37, %v966_v4  ;;  %v1104_v4 = vmax.f32 %v960_v60, 0.0  ;;  %v1103_v5 = vmax.f32 %v957_v51, 0.0  ;;  %v1066_v59 = vpop.f32.mrf.mxu2 }
 0x173   : > { %v1135_v15 = vmax.f32 %v1037_v7, 0.0  ;;  %v1107_v53 = vmax.f32 %v967_v36, 0.0  ;;  %v1164_v7 = vpack.c.bf16 %v1105_v55, %v1104_v4 }
 0x175   : > { %v1179_v23 = vpack.c.bf16 %v1135_v15, %v1134_v8  ;;  %v1165_v1 = vpack.c.bf16 %v1107_v53, %v1106_v61  ;;  %v1102_v8 = vmax.f32 %v955_v39, 0.0  ;;  %v1067_v53 = vadd.f32 %v17666_v37, %v1066_v59 }
 0x176   : > { %v1060_v61 = vadd.f32 %v17666_v37, %v17749_v9 }
 0x177   : > { %1230 = vmatpush.bf16.msrb.mxu3 %v1179_v23  ;;  %v1163_v13 = vpack.c.bf16 %v1103_v5, %v1102_v8  ;;  %v1092_v23 = vadd.f32 %v17666_v37, %v1091_v18  ;;  %v1147_v55 = vmax.f32 %v1067_v53, 0.0 }
 0x178   : > { %v969_v29 = vpop.f32.mrf.mxu0  ;;  %v1144_v3 = vmax.f32 %v1060_v61, 0.0 }
 0x179   : > { %v970_v6 = vadd.f32 %v17666_v37, %v969_v29  ;;  %v1069_v29 = vpop.f32.mrf.mxu2  ;;  %v1157_v28 = vmax.f32 %v1092_v23, 0.0 }
 0x17a   : > { %v1070_v36 = vadd.f32 %v17666_v37, %v1069_v29 }
 0x17b   : > { %1231 = vmatpush.bf16.msrb.mxu3 %v1178_v32  ;;  %v1108_v40 = vmax.f32 %v970_v6, 0.0  ;;  %v1087_v32 = vadd.f32 %v17666_v37, %v1086_v47 }
 0x17f   : > { %1232 = vmatpush.bf16.msrb.mxu3 %v1177_v38  ;;  %v1155_v38 = vmax.f32 %v1087_v32, 0.0 }
 0x180   : > { %v971_v45 = vpop.f32.mrf.mxu0 }
 0x181   : > { %v972_v58 = vadd.f32 %v17666_v37, %v971_v45  ;;  %v1152_v45 = vmax.f32 %v1080_v34, 0.0  ;;  %v1071_v47 = vpop.f32.mrf.mxu2 }
 0x183   : > { %v1109_v48 = vmax.f32 %v972_v58, 0.0  ;;  %1233 = vmatpush.bf16.msrb.mxu3 %v1176_v46  ;;  %v1153_v46 = vmax.f32 %v1082_v35, 0.0  ;;  %v1072_v58 = vadd.f32 %v17666_v37, %v1071_v47 }
 0x185   : > { %v1166_v56 = vpack.c.bf16 %v1109_v48, %v1108_v40  ;;  %v1188_v19 = vpack.c.bf16 %v1153_v46, %v1152_v45  ;;  %v11150_v45 = vld [vmem:[#allocation9 + $0x180] sm:$0xf] }
 0x186   : > { %v15679_v46 = vld [vmem:[#allocation9 + $0x1bc] sm:$0xf0] }
 0x187   : > { %1201 = vmatpush.bf16.msrb.mxu1 %v1166_v56  ;;  %1234 = vmatpush.bf16.msrb.mxu3 %v1175_v49  ;;  %v1149_v49 = vmax.f32 %v1072_v58, 0.0  ;;  %v11151_v47 = vor.u32 %v15679_v46, %v11150_v45  ;;  %v15681_v58 = vld [vmem:[#allocation9 + $0x1cc] sm:$0xf0]  ;;  %v15642_v45 = vld [vmem:[#allocation9 + $0x9c] sm:$0xf] }
 0x188   : > { %v974_v63 = vpop.f32.mrf.mxu0  ;;  %v11048_v46 = vld [vmem:[#allocation9 + $0xd8] sm:$0xf0] }
 0x189   : > { %v975_v27 = vadd.f32 %v17666_v37, %v974_v63  ;;  %v1062_v63 = vadd.f32 %v17666_v37, %v17765_v41 }
 0x18b   : > { %1202 = vmatpush.bf16.msrb.mxu1 %v1165_v1  ;;  %v1110_v20 = vmax.f32 %v975_v27, 0.0  ;;  %v1055_v1 = vadd.f32 %v17666_v37, %v17730_v33  ;;  %v1145_v39 = vmax.f32 %v1062_v63, 0.0  ;;  %v1158_v33 = vld [vmem:[%s20270_s29] sm:$0xf] }
 0x18c   : > { %1192 = vst [vmem:[#allocation1] ss:$9 sm:$0xff] %v1158_v33 }
 0x18d   : > { %v1142_v5 = vmax.f32 %v1055_v1, 0.0  ;;  %v1184_v9 = vpack.c.bf16 %v1145_v39, %v1144_v3  ;;  %v15639_v1 = vld [vmem:[#allocation9 + $0x84] sm:$0xf]  ;;  %v11038_v39 = vld [vmem:[#allocation9 + $0x90] sm:$0xf] }
 0x18e   : > { %v11024_v3 = vld [vmem:[#allocation9 + $0xc0] sm:$0xf0] }
 0x18f   : > { %1203 = vmatpush.bf16.msrb.mxu1 %v1164_v7 }
 0x190   : > { %v976_v11 = vpop.f32.mrf.mxu0 }
 0x191   : > { %v977_v12 = vadd.f32 %v17666_v37, %v976_v11 }
 0x193   : > { %v1111_v15 = vmax.f32 %v977_v12, 0.0  ;;  %1204 = vmatpush.bf16.msrb.mxu1 %v1163_v13  ;;  %v1195_v12 = vld [vmem:[#allocation1 + $0x12] sm:$0xff] }
 0x194   : > { %1235 = vmatmul.bf16.vlgmr.msrb.gmra.mxu3 %v1195_v12 }
 0x195   : > { %v17783_v22 = vpack.c.bf16 %v1111_v15, %v1110_v20  ;;  %v1196_v20 = vld [vmem:[#allocation1 + $0x1b] sm:$0xff] }
 0x197   : > { %1205 = vmatpush.bf16.msrb.mxu1 %v17705_v14  ;;  %v1190_v14 = vpack.c.bf16 %v1157_v28, %v1156_v30 }
 0x198   : > { %v979_v25 = vpop.f32.mrf.mxu0 }
 0x199   : > { %v980_v17 = vadd.f32 %v17666_v37, %v979_v25 }
 0x19b   : > { %1206 = vmatpush.bf16.msrb.mxu1 %v17693_v2  ;;  %v1154_v2 = vmax.f32 %v1085_v31, 0.0  ;;  %v1112_v43 = vmax.f32 %v980_v17, 0.0 }
 0x19d   : > { %v1189_v42 = vpack.c.bf16 %v1155_v38, %v1154_v2 }
 0x19f   : > { %1207 = vmatpush.bf16.msrb.mxu1 %v17679_v54  ;;  %v1077_v54 = vadd.f32 %v17666_v37, %v17722_v26  ;;  %v1065_v26 = vadd.f32 %v17666_v37, %v17773_v57  ;;  %v1057_v57 = vadd.f32 %v17666_v37, %v17741_v50  ;;  %v1193_v50 = vld [vmem:[#allocation1] sm:$0xff] }
 0x1a0   : > { %v981_v21 = vpop.f32.mrf.mxu0 }
 0x1a1   : > { %v982_v6 = vadd.f32 %v17666_v37, %v981_v21  ;;  %v1151_v48 = vmax.f32 %v1077_v54, 0.0  ;;  %v1146_v51 = vmax.f32 %v1065_v26, 0.0  ;;  %v1143_v8 = vmax.f32 %v1057_v57, 0.0  ;;  %v1194_v54 = vld [vmem:[#allocation1 + $0x9] sm:$0xff] }
 0x1a3   : > { %v1113_v24 = vmax.f32 %v982_v6, 0.0  ;;  %1208 = vmatpush.bf16.msrb.mxu1 %v17671_v44  ;;  %v1148_v44 = vmax.f32 %v1070_v36, 0.0  ;;  %v1187_v52 = vpack.c.bf16 %v1151_v48, %v1150_v62  ;;  %v1185_v4 = vpack.c.bf16 %v1147_v55, %v1146_v51  ;;  %v11152_v36 = vld [vmem:[#allocation9 + $0x1c0] sm:$0xf0]  ;;  %v11086_v48 = vld [vmem:[#allocation9 + $0x100] sm:$0xf] }
 0x1a4   : > { %v1183_v27 = vpack.c.bf16 %v1143_v8, %v1142_v5  ;;  %v11022_v51 = vld [vmem:[#allocation9 + $0x80] sm:$0xf]  ;;  %v11027_v5 = vor.u32 %v15639_v1, %v11024_v3  ;;  %v11190_v1 = vld [vmem:[#allocation9 + $0x1a8] sm:$0xf] }
 0x1a5   : > { %v17804_v0 = vpack.c.bf16 %v1113_v24, %v1112_v43  ;;  %v1186_v56 = vpack.c.bf16 %v1149_v49, %v1148_v44  ;;  %v15655_v44 = vld [vmem:[#allocation9 + $0x104] sm:$0xf]  ;;  %v15647_v55 = vld [vmem:[#allocation9 + $0xbc] sm:$0xf0] }
 0x1a6   : > { %1209 = vmatmul.bf16.vlgmr.msrb.gmra.mxu1 %v1193_v50  ;;  %v11088_v49 = vld [vmem:[#allocation9 + $0x140] sm:$0xf0]  ;;  %v11023_v57 = vor.u32 %v15647_v55, %v11022_v51  ;;  %v10974_v50 = vld [vmem:[#allocation9 + $0x10] sm:$0xf]  ;;  %v11174_v51 = vld [vmem:[#allocation9 + $0x198] sm:$0xf] }
 0x1a7   : > { %1240 = vmatpush.bf16.msra.mxu1 %v1190_v14  ;;  %v11091_v26 = vor.u32 %v15655_v44, %v11088_v49  ;;  %v15682_v55 = vld [vmem:[#allocation9 + $0x1d4] sm:$0xf0] }
 0x1a8   : > { %v984_v40 = vpop.f32.mrf.mxu0 }
 0x1a9   : > { %v985_v2 = vadd.f32 %v17666_v37, %v984_v40 }
 0x1ab   : > { %1241 = vmatpush.bf16.msra.mxu1 %v1189_v42  ;;  %v1114_v24 = vmax.f32 %v985_v2, 0.0  ;;  %v15671_v42 = vld [vmem:[#allocation9 + $0x184] sm:$0xf]  ;;  %v11112_v2 = vld [vmem:[#allocation9 + $0x158] sm:$0xf0] }
 0x1ac   : > { %v11155_v62 = vor.u32 %v15671_v42, %v11152_v36  ;;  %v11051_v36 = vor.u32 %v15642_v45, %v11048_v46  ;;  %v11118_v46 = vld [vmem:[#allocation9 + $0x120] sm:$0xf] }
 0x1ae   : > { %1695 = vmatpush.bf16.msra.mxu3 %v11155_v62  ;;  %v15624_v62 = vld [vmem:[#allocation9 + $0xc] sm:$0xf] }
 0x1af   : > { %1242 = vmatpush.bf16.msra.mxu1 %v1188_v19  ;;  %v15663_v19 = vld [vmem:[#allocation9 + $0x13c] sm:$0xf0] }
 0x1b0   : > { %v986_v60 = vpop.f32.mrf.mxu0 }
 0x1b1   : > { %v987_v21 = vadd.f32 %v17666_v37, %v986_v60 }
 0x1b2   : > { %1696 = vmatpush.bf16.msra.mxu3 %v11091_v26 }
 0x1b3   : > { %1243 = vmatpush.bf16.msra.mxu1 %v1187_v52  ;;  %v1115_v6 = vmax.f32 %v987_v21, 0.0  ;;  %v15665_v52 = vld [vmem:[#allocation9 + $0x14c] sm:$0xf0] }
 0x1b5   : > { %v1169_v10 = vpack.c.bf16 %v1115_v6, %v1114_v24  ;;  %v15648_v24 = vld [vmem:[#allocation9 + $0xc4] sm:$0xf0] }
 0x1b6   : > { %1697 = vmatpush.bf16.msra.mxu3 %v11027_v5  ;;  %v11175_v5 = vor.u32 %v15682_v55, %v11174_v51  ;;  %v10990_v51 = vld [vmem:[#allocation9 + $0x20] sm:$0xf] }
 0x1b7   : > { %1244 = vmatpush.bf16.msra.mxu1 %v1186_v56  ;;  %v15635_v55 = vld [vmem:[#allocation9 + $0x5c] sm:$0xf0] }
 0x1b8   : > { %v989_v7 = vpop.f32.mrf.mxu0 }
 0x1b9   : > { %v990_v17 = vadd.f32 %v17666_v37, %v989_v7 }
 0x1bb   : > { %1245 = vmatpush.bf16.msra.mxu1 %v1185_v4  ;;  %v1116_v38 = vmax.f32 %v990_v17, 0.0  ;;  %v15649_v4 = vld [vmem:[#allocation9 + $0xcc] sm:$0xf0]  ;;  %v15664_v17 = vld [vmem:[#allocation9 + $0x144] sm:$0xf0] }
 0x1bc   : > { %v11039_v7 = vor.u32 %v15649_v4, %v11038_v39 }
 0x1bf   : > { %1246 = vmatpush.bf16.msra.mxu1 %v1184_v9  ;;  %v10958_v9 = vld [vmem:[#allocation9] sm:$0xf] }
 0x1c0   : > { %v991_v41 = vpop.f32.mrf.mxu0 }
 0x1c1   : > { %v992_v28 = vadd.f32 %v17666_v37, %v991_v41  ;;  %v15623_v41 = vld [vmem:[#allocation9 + $0x4] sm:$0xf] }
 0x1c3   : > { %1247 = vmatpush.bf16.msra.mxu1 %v1183_v27  ;;  %v1117_v34 = vmax.f32 %v992_v28, 0.0  ;;  %v15631_v27 = vld [vmem:[#allocation9 + $0x3c] sm:$0xf0] }
 0x1c4   : > { %v10959_v33 = vor.u32 %v15631_v27, %v10958_v9  ;;  %v11104_v9 = vld [vmem:[#allocation9 + $0x150] sm:$0xf0]  ;;  %v11110_v27 = vld [vmem:[#allocation9 + $0x118] sm:$0xf] }
 0x1c5   : > { %v1170_v43 = vpack.c.bf16 %v1117_v34, %v1116_v38  ;;  %v11096_v34 = vld [vmem:[#allocation9 + $0x148] sm:$0xf0] }
 0x1c6   : > { %1248 = vmatmul.bf16.vlgmr.msra.gmra.mxu1 %v1196_v20 }
 0x1c8   : > { %v994_v11 = vpop.f32.mrf.mxu0 }
 0x1c9   : > { %v995_v25 = vadd.f32 %v17666_v37, %v994_v11  ;;  %v10960_v11 = vld [vmem:[#allocation9 + $0x40] sm:$0xf0] }
 0x1cb   : > { %v1118_v14 = vmax.f32 %v995_v25, 0.0  ;;  %v11160_v25 = vld [vmem:[#allocation9 + $0x1c8] sm:$0xf0] }
 0x1d0   : > { %v996_v59 = vpop.f32.mrf.mxu0 }
 0x1d1   : > { %v997_v16 = vadd.f32 %v17666_v37, %v996_v59  ;;  %v15633_v59 = vld [vmem:[#allocation9 + $0x4c] sm:$0xf0] }
 0x1d2   : > { %v10975_v20 = vor.u32 %v15633_v59, %v10974_v50  ;;  %v15641_v59 = vld [vmem:[#allocation9 + $0x94] sm:$0xf] }
 0x1d3   : > { %v1119_v31 = vmax.f32 %v997_v16, 0.0  ;;  %v15672_v16 = vld [vmem:[#allocation9 + $0x18c] sm:$0xf] }
 0x1d4   : > { %v11163_v28 = vor.u32 %v15672_v16, %v11160_v25 }
 0x1d5   : > { %v1171_v35 = vpack.c.bf16 %v1119_v31, %v1118_v14  ;;  %v15656_v14 = vld [vmem:[#allocation9 + $0x10c] sm:$0xf] }
 0x1d6   : > { %v11099_v38 = vor.u32 %v15656_v14, %v11096_v34 }
 0x1d8   : > { %v999_v13 = vpop.f32.mrf.mxu0 }
 0x1d9   : > { %v1000_v15 = vadd.f32 %v17666_v37, %v999_v13  ;;  %v10963_v13 = vor.u32 %v15623_v41, %v10960_v11  ;;  %v11126_v41 = vld [vmem:[#allocation9 + $0x128] sm:$0xf] }
 0x1db   : > { %v1120_v29 = vmax.f32 %v1000_v15, 0.0  ;;  %1698 = vmatpush.bf16.msra.mxu3 %v10963_v13  ;;  %v11158_v15 = vld [vmem:[#allocation9 + $0x188] sm:$0xf]  ;;  %v11046_v13 = vld [vmem:[#allocation9 + $0x98] sm:$0xf] }
 0x1df   : > { %1721 = vmatpush.bf16.msrb.mxu3 %v11163_v28  ;;  %v10982_v28 = vld [vmem:[#allocation9 + $0x18] sm:$0xf] }
 0x1e0   : > { %v1001_v18 = vpop.f32.mrf.mxu0 }
 0x1e1   : > { %v1002_v23 = vadd.f32 %v17666_v37, %v1001_v18  ;;  %v11166_v37 = vld [vmem:[#allocation9 + $0x190] sm:$0xf]  ;;  %v15680_v18 = vld [vmem:[#allocation9 + $0x1c4] sm:$0xf0] }
 0x1e2   : > { %v11167_v40 = vor.u32 %v15681_v58, %v11166_v37  ;;  %v10966_v37 = vld [vmem:[#allocation9 + $0x8] sm:$0xf] }
 0x1e3   : > { %v1121_v30 = vmax.f32 %v1002_v23, 0.0  ;;  %v11159_v23 = vor.u32 %v15680_v18, %v11158_v15  ;;  %1722 = vmatpush.bf16.msrb.mxu3 %v11099_v38  ;;  %v15632_v58 = vld [vmem:[#allocation9 + $0x44] sm:$0xf0]  ;;  %v15675_v38 = vld [vmem:[#allocation9 + $0x1a4] sm:$0xf] }
 0x1e4   : > { %1734 = vmatpush.bf16.msrb.mxu1 %v11167_v40  ;;  %v10968_v40 = vld [vmem:[#allocation9 + $0x48] sm:$0xf0]  ;;  %v10967_v44 = vor.u32 %v15632_v58, %v10966_v37  ;;  %v11062_v15 = vld [vmem:[#allocation9 + $0xa8] sm:$0xf]  ;;  %v15661_v37 = vld [vmem:[#allocation9 + $0x134] sm:$0xf] }
 0x1e5   : > { %v1172_v32 = vpack.c.bf16 %v1121_v30, %v1120_v29  ;;  %v15674_v29 = vld [vmem:[#allocation9 + $0x19c] sm:$0xf]  ;;  %v15652_v18 = vld [vmem:[#allocation9 + $0xe4] sm:$0xf0]  ;;  %v11136_v58 = vld [vmem:[#allocation9 + $0x170] sm:$0xf0] }
 0x1e6   : > { %v11176_v30 = vld [vmem:[#allocation9 + $0x1d8] sm:$0xf0]  ;;  %v11063_v25 = vor.u32 %v15652_v18, %v11062_v15  ;;  %v11064_v15 = vld [vmem:[#allocation9 + $0xe8] sm:$0xf0]  ;;  %v11070_v18 = vld [vmem:[#allocation9 + $0xb0] sm:$0xf] }
 0x1e7   : > { %1216 = vmatpush.bf16.msrb.mxu2 %v1172_v32  ;;  %v11179_v31 = vor.u32 %v15674_v29, %v11176_v30  ;;  %v11094_v32 = vld [vmem:[#allocation9 + $0x108] sm:$0xf]  ;;  %v15625_v29 = vld [vmem:[#allocation9 + $0x14] sm:$0xf] }
 0x1e8   : > { %v11095_v21 = vor.u32 %v15664_v17, %v11094_v32  ;;  %v10976_v30 = vld [vmem:[#allocation9 + $0x50] sm:$0xf0]  ;;  %v10998_v32 = vld [vmem:[#allocation9 + $0x28] sm:$0xf] }
 0x1e9   : > { %v15636_v17 = vld [vmem:[#allocation9 + $0x64] sm:$0xf0]  ;;  %v10979_v14 = vor.u32 %v15625_v29, %v10976_v30  ;;  %v15628_v29 = vld [vmem:[#allocation9 + $0x2c] sm:$0xf] }
 0x1ea   : > { %v10999_v34 = vor.u32 %v15636_v17, %v10998_v32  ;;  %v11000_v30 = vld [vmem:[#allocation9 + $0x68] sm:$0xf0] }
 0x1eb   : > { %1217 = vmatpush.bf16.msrb.mxu2 %v1171_v35  ;;  %v15658_v35 = vld [vmem:[#allocation9 + $0x11c] sm:$0xf]  ;;  %v11003_v32 = vor.u32 %v15628_v29, %v11000_v30 }
 0x1ec   : > { %v11115_v6 = vor.u32 %v15658_v35, %v11112_v2  ;;  %v11182_v35 = vld [vmem:[#allocation9 + $0x1a0] sm:$0xf] }
 0x1ed   : > { %v15683_v2 = vld [vmem:[#allocation9 + $0x1dc] sm:$0xf0] }
 0x1ef   : > { %1218 = vmatpush.bf16.msrb.mxu2 %v1170_v43  ;;  %v11030_v43 = vld [vmem:[#allocation9 + $0x88] sm:$0xf] }
 0x1f0   : > { %v11031_v42 = vor.u32 %v15648_v24, %v11030_v43  ;;  %v15677_v43 = vld [vmem:[#allocation9 + $0x1b4] sm:$0xf] }
 0x1f1   : > { %v11200_v24 = vld [vmem:[#allocation9 + $0x1f0] sm:$0xf0] }
 0x1f2   : > { %v11203_v45 = vor.u32 %v15677_v43, %v11200_v24  ;;  %v15670_v43 = vld [vmem:[#allocation9 + $0x174] sm:$0xf0]  ;;  %v15662_v24 = vld [vmem:[#allocation9 + $0x13c] sm:$0xf] }
 0x1f3   : > { %1219 = vmatpush.bf16.msrb.mxu2 %v1169_v10  ;;  %v15640_v10 = vld [vmem:[#allocation9 + $0x8c] sm:$0xf] }
 0x1f7   : > { %1220 = vmatpush.bf16.msrb.mxu2 %v17804_v0  ;;  %v11087_v0 = vor.u32 %v15663_v19, %v11086_v48  ;;  %v15626_v48 = vld [vmem:[#allocation9 + $0x1c] sm:$0xf] }
 0x1f8   : > { %v10984_v19 = vld [vmem:[#allocation9 + $0x58] sm:$0xf0] }
 0x1f9   : > { %v10987_v49 = vor.u32 %v15626_v48, %v10984_v19  ;;  %v11139_v48 = vor.u32 %v15661_v37, %v11136_v58  ;;  %v11054_v19 = vld [vmem:[#allocation9 + $0xa0] sm:$0xf] }
 0x1fb   : > { %1221 = vmatpush.bf16.msrb.mxu2 %v17783_v22  ;;  %v11102_v22 = vld [vmem:[#allocation9 + $0x110] sm:$0xf] }
 0x1fc   : > { %v11103_v53 = vor.u32 %v15665_v52, %v11102_v22 }
 0x1fe   : > { %1222 = vmatmul.bf16.vlgmr.msrb.gmra.mxu2 %v1194_v54  ;;  %1735 = vmatpush.bf16.msrb.mxu1 %v11103_v53  ;;  %v11032_v54 = vld [vmem:[#allocation9 + $0xc8] sm:$0xf0]  ;;  %v15673_v53 = vld [vmem:[#allocation9 + $0x194] sm:$0xf] }
 0x1ff   : > { %1682 = vmatpush.bf16.msra.mxu2 %v11151_v47  ;;  %v11035_v47 = vor.u32 %v15640_v10, %v11032_v54  ;;  %v11183_v10 = vor.u32 %v15683_v2, %v11182_v35  ;;  %v11208_v35 = vld [vmem:[#allocation9 + $0x1f8] sm:$0xf0] }
 0x201   : > { %1723 = vmatpush.bf16.msrb.mxu3 %v11035_v47  ;;  %v15659_v47 = vld [vmem:[#allocation9 + $0x124] sm:$0xf] }
 0x202   : > { %1736 = vmatpush.bf16.msrb.mxu1 %v11039_v7 }
 0x203   : > { %1683 = vmatpush.bf16.msra.mxu2 %v11087_v0  ;;  %v10971_v0 = vor.u32 %v15624_v62, %v10968_v40 }
 0x205   : > { %1724 = vmatpush.bf16.msrb.mxu3 %v10971_v0  ;;  %v15643_v0 = vld [vmem:[#allocation9 + $0xa4] sm:$0xf] }
 0x206   : > { %1737 = vmatpush.bf16.msrb.mxu1 %v10975_v20  ;;  %v15650_v20 = vld [vmem:[#allocation9 + $0xd4] sm:$0xf0] }
 0x207   : > { %1684 = vmatpush.bf16.msra.mxu2 %v11023_v57  ;;  %v15684_v57 = vld [vmem:[#allocation9 + $0x1e4] sm:$0xf0] }
 0x208   : > { %v11191_v7 = vor.u32 %v15684_v57, %v11190_v1  ;;  %v15627_v1 = vld [vmem:[#allocation9 + $0x24] sm:$0xf] }
 0x209   : > { %v10992_v57 = vld [vmem:[#allocation9 + $0x60] sm:$0xf0] }
 0x20a   : > { %1773 = vmatpush.bf16.msra.mxu1 %v11179_v31  ;;  %v15634_v31 = vld [vmem:[#allocation9 + $0x54] sm:$0xf0] }
 0x20b   : > { %1685 = vmatpush.bf16.msra.mxu2 %v10959_v33 }
 0x20e   : > { %1774 = vmatpush.bf16.msra.mxu1 %v11115_v6  ;;  %v11184_v6 = vld [vmem:[#allocation9 + $0x1e0] sm:$0xf0] }
 0x20f   : > { %1708 = vmatpush.bf16.msrb.mxu2 %v11159_v23  ;;  %v11047_v23 = vor.u32 %v15650_v20, %v11046_v13  ;;  %v11187_v54 = vor.u32 %v15675_v38, %v11184_v6  ;;  %v15644_v20 = vld [vmem:[#allocation9 + $0xac] sm:$0xf]  ;;  %v11142_v6 = vld [vmem:[#allocation9 + $0x138] sm:$0xf] }
 0x212   : > { %1775 = vmatpush.bf16.msra.mxu1 %v11051_v36  ;;  %v11120_v36 = vld [vmem:[#allocation9 + $0x160] sm:$0xf0] }
 0x213   : > { %1709 = vmatpush.bf16.msrb.mxu2 %v11095_v21  ;;  %v10983_v21 = vor.u32 %v15634_v31, %v10982_v28  ;;  %v11123_v40 = vor.u32 %v15659_v47, %v11120_v36  ;;  %v11006_v28 = vld [vmem:[#allocation9 + $0x30] sm:$0xf]  ;;  %v15646_v47 = vld [vmem:[#allocation9 + $0xbc] sm:$0xf] }
 0x214   : > { %v15637_v31 = vld [vmem:[#allocation9 + $0x6c] sm:$0xf0]  ;;  %v11080_v36 = vld [vmem:[#allocation9 + $0xf8] sm:$0xf0] }
 0x215   : > { %v11007_v17 = vor.u32 %v15637_v31, %v11006_v28  ;;  %v11083_v58 = vor.u32 %v15646_v47, %v11080_v36 }
 0x216   : > { %1776 = vmatpush.bf16.msra.mxu1 %v10987_v49  ;;  %v11056_v49 = vld [vmem:[#allocation9 + $0xe0] sm:$0xf0] }
 0x217   : > { %v17834_v61 = vpop.f32.mrf.mxu3  ;;  %1710 = vmatpush.bf16.msrb.mxu2 %v11031_v42  ;;  %v15667_v42 = vld [vmem:[#allocation9 + $0x15c] sm:$0xf0] }
 0x218   : > { %v11119_v62 = vor.u32 %v15667_v42, %v11118_v46  ;;  %v11078_v46 = vld [vmem:[#allocation9 + $0xb8] sm:$0xf] }
 0x219   : > { %v15654_v42 = vld [vmem:[#allocation9 + $0xf4] sm:$0xf0] }
 0x21a   : > { %v11079_v37 = vor.u32 %v15654_v42, %v11078_v46 }
 0x21b   : > { %1711 = vmatpush.bf16.msrb.mxu2 %v10967_v44  ;;  %v15651_v44 = vld [vmem:[#allocation9 + $0xdc] sm:$0xf0] }
 0x21f   : > { %v1238_v8 = vpop.f32.mrf.mxu3 }
 0x220   : > { %v15657_v8 = vld [vmem:[#allocation9 + $0x114] sm:$0xf] }
 0x223   : > { %v17832_v56 = vpop.f32.mrf.mxu1 }
 0x22b   : > { %v1212_v60 = vpop.f32.mrf.mxu1 }
 0x22c   : > { %v11168_v60 = vld [vmem:[#allocation9 + $0x1d0] sm:$0xf0] }
 0x22d   : > { %v11171_v39 = vor.u32 %v15673_v53, %v11168_v60  ;;  %v11059_v53 = vor.u32 %v15643_v0, %v11056_v49 }
 0x243   : > { %v17836_v63 = vpop.f32.mrf.mxu1 }
 0x24b   : > { %v1251_v12 = vpop.f32.mrf.mxu1 }
 0x24c   : > { %v11040_v12 = vld [vmem:[#allocation9 + $0xd0] sm:$0xf0] }
 0x24d   : > { %v11043_v16 = vor.u32 %v15641_v59, %v11040_v12  ;;  %v15669_v59 = vld [vmem:[#allocation9 + $0x16c] sm:$0xf0] }
 0x281   : > { %v1223_v22 = vpop.f32.mrf.mxu2 }
 0x282   : > { %v1224_v52 = vadd.f32 %v1223_v22, %v17832_v56  ;;  %v15666_v56 = vld [vmem:[#allocation9 + $0x154] sm:$0xf0]  ;;  %v15645_v22 = vld [vmem:[#allocation9 + $0xb4] sm:$0xf] }
 0x283   : > { %v11111_v11 = vor.u32 %v15666_v56, %v11110_v27  ;;  %v11192_v27 = vld [vmem:[#allocation9 + $0x1e8] sm:$0xf0]  ;;  %v11198_v56 = vld [vmem:[#allocation9 + $0x1b0] sm:$0xf] }
 0x284   : > { %v1237_v26 = vadd.f32 %v17834_v61, %v1224_v52  ;;  %v15668_v61 = vld [vmem:[#allocation9 + $0x164] sm:$0xf0]  ;;  %v11072_v52 = vld [vmem:[#allocation9 + $0xf0] sm:$0xf0] }
 0x285   : > { %v11127_v50 = vor.u32 %v15668_v61, %v11126_v41  ;;  %v11075_v60 = vor.u32 %v15645_v22, %v11072_v52  ;;  %v15685_v41 = vld [vmem:[#allocation9 + $0x1ec] sm:$0xf0] }
 0x286   : > { %v1250_v3 = vadd.f32 %v17836_v63, %v1237_v26  ;;  %v11107_v63 = vor.u32 %v15657_v8, %v11104_v9  ;;  %v11055_v26 = vor.u32 %v15651_v44, %v11054_v19  ;;  %v15676_v9 = vld [vmem:[#allocation9 + $0x1ac] sm:$0xf]  ;;  %v11016_v19 = vld [vmem:[#allocation9 + $0x78] sm:$0xf0] }
 0x287   : > { %v11195_v61 = vor.u32 %v15676_v9, %v11192_v27 }
 0x288   : > { %v17841_v4 = vpack.c.bf16 %v1250_v3, %v1250_v3  ;;  %v15629_v3 = vld [vmem:[#allocation9 + $0x34] sm:$0xf] }
 0x289   : > { %v1225_v33 = vpop.f32.mrf.mxu2 }
 0x28a   : > { %11212 = vmatmul.msk.bf16.vlgmr.msra.gmra.mxu2 %vm1674_vm3, %v17841_v4  ;;  %11213 = vmatmul.msk.bf16.vlgmr.msra.gmra.mxu3 %vm1674_vm3, %v17841_v4  ;;  %v11199_v33 = vor.u32 %v15685_v41, %v11198_v56 }
 0x28b   : > { %11216 = vmatmul.msk.bf16.vlgmr.msrb.gmra.mxu1 %vm1674_vm3, %v17841_v4  ;;  %1747 = vmatpush.bf16.msra.mxu2 %v11171_v39  ;;  %v11008_v39 = vld [vmem:[#allocation9 + $0x70] sm:$0xf0] }
 0x28c   : > { %1760 = vmatpush.bf16.msra.mxu3 %v11175_v5  ;;  %1812 = vmatpush.bf16.msrb.mxu1 %v11191_v7  ;;  %v10991_v5 = vor.u32 %v15635_v55, %v10990_v51  ;;  %v10995_v7 = vor.u32 %v15627_v1, %v10992_v57  ;;  %v11011_v8 = vor.u32 %v15629_v3, %v11008_v39 }
 0x28f   : > { %1748 = vmatpush.bf16.msra.mxu2 %v11107_v63  ;;  %v15660_v63 = vld [vmem:[#allocation9 + $0x12c] sm:$0xf] }
 0x290   : > { %1761 = vmatpush.bf16.msra.mxu3 %v11111_v11  ;;  %1813 = vmatpush.bf16.msrb.mxu1 %v11127_v50  ;;  %v11128_v11 = vld [vmem:[#allocation9 + $0x168] sm:$0xf0]  ;;  %v11134_v50 = vld [vmem:[#allocation9 + $0x130] sm:$0xf] }
 0x291   : > { %v11131_v12 = vor.u32 %v15660_v63, %v11128_v11  ;;  %v11135_v13 = vor.u32 %v15669_v59, %v11134_v50 }
 0x293   : > { %1749 = vmatpush.bf16.msra.mxu2 %v11043_v16  ;;  %v15653_v16 = vld [vmem:[#allocation9 + $0xec] sm:$0xf0] }
 0x294   : > { %1762 = vmatpush.bf16.msra.mxu3 %v11047_v23  ;;  %1814 = vmatpush.bf16.msrb.mxu1 %v11063_v25  ;;  %v11067_v23 = vor.u32 %v15644_v20, %v11064_v15  ;;  %v11071_v25 = vor.u32 %v15653_v16, %v11070_v18 }
 0x297   : > { %1750 = vmatpush.bf16.msra.mxu2 %v10979_v14  ;;  %v11206_v14 = vld [vmem:[#allocation9 + $0x1b8] sm:$0xf] }
 0x298   : > { %1763 = vmatpush.bf16.msra.mxu3 %v10983_v21  ;;  %1815 = vmatpush.bf16.msrb.mxu1 %v10999_v34  ;;  %v15686_v21 = vld [vmem:[#allocation9 + $0x1f4] sm:$0xf0]  ;;  %v15678_v34 = vld [vmem:[#allocation9 + $0x1bc] sm:$0xf] }
 0x299   : > { %v11207_v2 = vor.u32 %v15686_v21, %v11206_v14  ;;  %v11211_v38 = vor.u32 %v15678_v34, %v11208_v35 }
 0x29a   : > { %11214 = vmatmul.msk.bf16.vlgmr.msrb.gmra.mxu2 %vm1674_vm3, %v17841_v4  ;;  %11215 = vmatmul.msk.bf16.vlgmr.msrb.gmra.mxu3 %vm1674_vm3, %v17841_v4 }
 0x29b   : > { %11219 = vmatmul.msk.bf16.vlgmr.msra.gmra.mxu1 %vm1674_vm3, %v17841_v4  ;;  %1786 = vmatpush.bf16.msrb.mxu2 %v11183_v10  ;;  %v11144_v10 = vld [vmem:[#allocation9 + $0x178] sm:$0xf0] }
 0x29c   : > { %1799 = vmatpush.bf16.msrb.mxu3 %v11187_v54  ;;  %1851 = vmatpush.bf16.msra.mxu1 %v11203_v45  ;;  %v11143_v54 = vor.u32 %v15670_v43, %v11142_v6  ;;  %v11147_v45 = vor.u32 %v15662_v24, %v11144_v10 }
 0x29f   : > { %1787 = vmatpush.bf16.msrb.mxu2 %v11119_v62  ;;  %v11014_v62 = vld [vmem:[#allocation9 + $0x38] sm:$0xf] }
 0x2a0   : > { %1800 = vmatpush.bf16.msrb.mxu3 %v11123_v40  ;;  %1852 = vmatpush.bf16.msra.mxu1 %v11139_v48  ;;  %v15638_v40 = vld [vmem:[#allocation9 + $0x74] sm:$0xf0]  ;;  %v15630_v48 = vld [vmem:[#allocation9 + $0x3c] sm:$0xf] }
 0x2a1   : > { %v11015_v44 = vor.u32 %v15638_v40, %v11014_v62  ;;  %v11019_v0 = vor.u32 %v15630_v48, %v11016_v19 }
 0x2a3   : > { %1788 = vmatpush.bf16.msrb.mxu2 %v11055_v26 }
 0x2a4   : > { %1801 = vmatpush.bf16.msrb.mxu3 %v11059_v53  ;;  %1853 = vmatpush.bf16.msra.mxu1 %v11075_v60  ;;  %v1318_v53 = vld [vmem:[#allocation10] sm:$0xff] }
 0x2a5   : > { %v1323_v55 = vperm.slane %v1318_v53, 1  ;;  %v1324_v3 = vperm.slane %v1318_v53, 2  ;;  %v1325_v39 = vperm.slane %v1318_v53, 3  ;;  %v1326_v15 = vperm.slane %v1318_v53, 4 }
 0x2a6   : > { %v1327_v18 = vperm.slane %v1318_v53, 5  ;;  %v1328_v16 = vperm.slane %v1318_v53, 6 }
 0x2a7   : > { %1789 = vmatpush.bf16.msrb.mxu2 %v10991_v5  ;;  %v1322_v5 = vperm.slane %v1318_v53, 0 }
 0x2a8   : > { %1802 = vmatpush.bf16.msrb.mxu3 %v10995_v7  ;;  %1854 = vmatpush.bf16.msra.mxu1 %v11011_v8 }
 0x2aa   : > { %11217 = vmatmul.msk.bf16.vlgmr.msra.gmra.mxu2 %vm1674_vm3, %v17841_v4  ;;  %11218 = vmatmul.msk.bf16.vlgmr.msra.gmra.mxu3 %vm1674_vm3, %v17841_v4 }
 0x2ab   : > { %11222 = vmatmul.msk.bf16.vlgmr.msrb.gmra.mxu1 %vm1674_vm3, %v17841_v4  ;;  %1825 = vmatpush.bf16.msra.mxu2 %v11195_v61 }
 0x2ac   : > { %1838 = vmatpush.bf16.msra.mxu3 %v11199_v33 }
 0x2af   : > { %1826 = vmatpush.bf16.msra.mxu2 %v11131_v12 }
 0x2b0   : > { %1839 = vmatpush.bf16.msra.mxu3 %v11135_v13  ;;  %v1329_v13 = vperm.slane %v1318_v53, 7 }
 0x2b3   : > { %1827 = vmatpush.bf16.msra.mxu2 %v11067_v23 }
 0x2b4   : > { %1840 = vmatpush.bf16.msra.mxu3 %v11071_v25 }
 0x2b7   : > { %1828 = vmatpush.bf16.msra.mxu2 %v11003_v32 }
 0x2b8   : > { %1841 = vmatpush.bf16.msra.mxu3 %v11007_v17 }
 0x2ba   : > { %11220 = vmatmul.msk.bf16.vlgmr.msrb.gmra.mxu2 %vm1674_vm3, %v17841_v4  ;;  %11221 = vmatmul.msk.bf16.vlgmr.msrb.gmra.mxu3 %vm1674_vm3, %v17841_v4 }
 0x2bb   : > { %11225 = vmatmul.msk.bf16.vlgmr.msra.gmra.mxu1 %vm1674_vm3, %v17841_v4  ;;  %1864 = vmatpush.bf16.msrb.mxu2 %v11207_v2 }
 0x2bc   : > { %1877 = vmatpush.bf16.msrb.mxu3 %v11211_v38 }
 0x2bf   : > { %1865 = vmatpush.bf16.msrb.mxu2 %v11143_v54 }
 0x2c0   : > { %1878 = vmatpush.bf16.msrb.mxu3 %v11147_v45 }
 0x2c3   : > { %1866 = vmatpush.bf16.msrb.mxu2 %v11079_v37 }
 0x2c4   : > { %1879 = vmatpush.bf16.msrb.mxu3 %v11083_v58 }
 0x2c7   : > { %1867 = vmatpush.bf16.msrb.mxu2 %v11015_v44 }
 0x2c8   : > { %1880 = vmatpush.bf16.msrb.mxu3 %v11019_v0 }
 0x2ca   : > { %11223 = vmatmul.msk.bf16.vlgmr.msra.gmra.mxu2 %vm1674_vm3, %v17841_v4  ;;  %11224 = vmatmul.msk.bf16.vlgmr.msra.gmra.mxu3 %vm1674_vm3, %v17841_v4 }
 0x2da   : > { %11226 = vmatmul.msk.bf16.vlgmr.msrb.gmra.mxu2 %vm1674_vm3, %v17841_v4  ;;  %11227 = vmatmul.msk.bf16.vlgmr.msrb.gmra.mxu3 %vm1674_vm3, %v17841_v4 }
 0x308   : > { %v1739_v49 = vpop.f32.mrf.mxu1 }
 0x309   : > { %v1740_v31 = vadd.f32 %v1739_v49, %v1326_v15 }
 0x30d   : > { %v1687_v22 = vpop.f32.mrf.mxu2  ;;  %v1700_v52 = vpop.f32.mrf.mxu3 }
 0x30e   : > { %v1701_v57 = vadd.f32 %v1700_v52, %v1323_v55  ;;  %v1688_v4 = vadd.f32 %v1687_v22, %v1322_v5 }
 0x310   : > { %v1741_v26 = vpop.f32.mrf.mxu1  ;;  %v1902_v9 = vrot.slane %v1701_v57, 6  ;;  %v1937_v29 = vpack.c.bf16 %v1701_v57, %v1688_v4 }
 0x312   : > { %v1915_v63 = vsel %vm1914_vm4, %v1688_v4, %v1902_v9  ;;  %v1953_v24 = vrot.slane %v1937_v29, 3 }
 0x314   : > { %v1970_v62 = vsel %vm1967_vm8, %v1937_v29, %v1953_v24 }
 0x315   : > { %v1689_v60 = vpop.f32.mrf.mxu2  ;;  %v1702_v51 = vpop.f32.mrf.mxu3 }
 0x316   : > { %v1319_v60 = vld [vmem:[#allocation10 + $0x8] sm:$0xff] }
 0x317   : > { %v1332_v57 = vperm.slane %v1319_v60, 2 }
 0x318   : > { %v1778_v1 = vpop.f32.mrf.mxu1 }
 0x319   : > { %v1779_v23 = vadd.f32 %v1778_v1, %v1329_v13  ;;  %v1331_v1 = vperm.slane %v1319_v60, 1 }
 0x31b   : > { %v1907_v14 = vrot.slane %v1779_v23, 2 }
 0x31d   : > { %v1713_v7 = vpop.f32.mrf.mxu2  ;;  %v1726_v8 = vpop.f32.mrf.mxu3 }
 0x31e   : > { %v1714_v27 = vadd.f32 %v1713_v7, %v1324_v3  ;;  %v1727_v56 = vadd.f32 %v1726_v8, %v1325_v39  ;;  %v1333_v39 = vperm.slane %v1319_v60, 3  ;;  %v1330_v7 = vperm.slane %v1319_v60, 0 }
 0x320   : > { %v1903_v41 = vrot.slane %v1714_v27, 4  ;;  %v1904_v61 = vrot.slane %v1727_v56, 2  ;;  %v1780_v33 = vpop.f32.mrf.mxu1  ;;  %v1938_v25 = vpack.c.bf16 %v1727_v56, %v1714_v27 }
 0x322   : > { %v1917_v11 = vsel %vm1916_vm5, %v1903_v41, %v1904_v61  ;;  %v1954_v21 = vrot.slane %v1938_v25, 6  ;;  %v1955_v34 = vrot.slane %v1938_v25, 1 }
 0x323   : > { %v1919_v50 = vsel %vm1918_vm6, %v1915_v63, %v1917_v11 }
 0x324   : > { %1933 = vst [vmem:[#allocation16] sm:$0xff] %v1919_v50  ;;  %v1974_v42 = vsel %vm1971_vm7, %v1954_v21, %v1955_v34  ;;  %v1334_v50 = vperm.slane %v1319_v60, 4 }
 0x325   : > { %v1715_v59 = vpop.f32.mrf.mxu2  ;;  %v1728_v12 = vpop.f32.mrf.mxu3  ;;  %v1975_v44 = vsel %vm1914_vm4, %v1970_v62, %v1974_v42 }
 0x326   : > { %v1335_v59 = vperm.slane %v1319_v60, 5 }
 0x328   : > { %v1817_v20 = vpop.f32.mrf.mxu1 }
 0x329   : > { %v1818_v5 = vadd.f32 %v1817_v20, %v1332_v57 }
 0x32b   : > { %v1909_v4 = vrot.slane %v1818_v5, 4 }
 0x32d   : > { %v1752_v30 = vpop.f32.mrf.mxu2  ;;  %v1765_v28 = vpop.f32.mrf.mxu3 }
 0x32e   : > { %v1753_v32 = vadd.f32 %v1752_v30, %v1327_v18  ;;  %v1766_v17 = vadd.f32 %v1765_v28, %v1328_v16  ;;  %v1336_v16 = vperm.slane %v1319_v60, 6 }
 0x330   : > { %v1905_v35 = vrot.slane %v1753_v32, 6  ;;  %v1939_v2 = vpack.c.bf16 %v1753_v32, %v1740_v31  ;;  %v1906_v38 = vrot.slane %v1766_v17, 4  ;;  %v1940_v6 = vpack.c.bf16 %v1779_v23, %v1766_v17  ;;  %v1819_v43 = vpop.f32.mrf.mxu1 }
 0x331   : > { %v1337_v23 = vperm.slane %v1319_v60, 7 }
 0x332   : > { %v1920_v10 = vsel %vm1914_vm4, %v1740_v31, %v1905_v35  ;;  %v1956_v54 = vrot.slane %v1939_v2, 4  ;;  %v1957_v45 = vrot.slane %v1939_v2, 7  ;;  %v1921_v46 = vsel %vm1916_vm5, %v1906_v38, %v1907_v14 }
 0x333   : > { %v1922_v47 = vsel %vm1918_vm6, %v1920_v10, %v1921_v46  ;;  %v1958_v36 = vrot.slane %v1940_v6, 2  ;;  %v1959_v37 = vrot.slane %v1940_v6, 5 }
 0x334   : > { %v1979_v58 = vsel %vm1976_vm9, %v1956_v54, %v1957_v45  ;;  %1934 = vst [vmem:[#allocation16 + $0x8] sm:$0xff] %v1922_v47 }
 0x335   : > { %v1983_v40 = vsel %vm1980_vm10, %v1958_v36, %v1959_v37  ;;  %v1754_v48 = vpop.f32.mrf.mxu2  ;;  %v1767_v19 = vpop.f32.mrf.mxu3 }
 0x336   : > { %v1984_v0 = vsel %vm1916_vm5, %v1979_v58, %v1983_v40 }
 0x337   : > { %v1985_v49 = vsel %vm1918_vm6, %v1975_v44, %v1984_v0 }
 0x338   : > { %2003 = vst [vmem:[#allocation2] sm:$0xff] %v1985_v49  ;;  %v1856_v22 = vpop.f32.mrf.mxu1 }
 0x339   : > { %v1857_v15 = vadd.f32 %v1856_v22, %v1335_v59 }
 0x33b   : > { %v1911_v21 = vrot.slane %v1857_v15, 6 }
 0x33d   : > { %v1791_v52 = vpop.f32.mrf.mxu2  ;;  %v1804_v26 = vpop.f32.mrf.mxu3 }
 0x33e   : > { %v1805_v3 = vadd.f32 %v1804_v26, %v1331_v1  ;;  %v1792_v41 = vadd.f32 %v1791_v52, %v1330_v7 }
 0x340   : > { %v1858_v53 = vpop.f32.mrf.mxu1  ;;  %v1908_v27 = vrot.slane %v1805_v3, 6  ;;  %v1941_v25 = vpack.c.bf16 %v1805_v3, %v1792_v41 }
 0x342   : > { %v1923_v33 = vsel %vm1914_vm4, %v1792_v41, %v1908_v27  ;;  %v1960_v34 = vrot.slane %v1941_v25, 3 }
 0x344   : > { %v1988_v47 = vsel %vm1967_vm8, %v1941_v25, %v1960_v34 }
 0x345   : > { %v1793_v51 = vpop.f32.mrf.mxu2  ;;  %v1806_v55 = vpop.f32.mrf.mxu3 }
 0x34d   : > { %v1830_v8 = vpop.f32.mrf.mxu2  ;;  %v1843_v9 = vpop.f32.mrf.mxu3 }
 0x34e   : > { %v1831_v56 = vadd.f32 %v1830_v8, %v1333_v39  ;;  %v1844_v20 = vadd.f32 %v1843_v9, %v1334_v50 }
 0x350   : > { %v1910_v61 = vrot.slane %v1831_v56, 2  ;;  %v1942_v18 = vpack.c.bf16 %v1831_v56, %v1818_v5  ;;  %v1943_v29 = vpack.c.bf16 %v1857_v15, %v1844_v20  ;;  %v1926_v24 = vsel %vm1914_vm4, %v1844_v20, %v1911_v21 }
 0x352   : > { %v1924_v63 = vsel %vm1916_vm5, %v1909_v4, %v1910_v61  ;;  %v1961_v31 = vrot.slane %v1942_v18, 6  ;;  %v1962_v32 = vrot.slane %v1942_v18, 1  ;;  %v1963_v35 = vrot.slane %v1943_v29, 4 }
 0x353   : > { %v1925_v11 = vsel %vm1918_vm6, %v1923_v33, %v1924_v63  ;;  %v1964_v2 = vrot.slane %v1943_v29, 7 }
 0x354   : > { %1935 = vst [vmem:[#allocation16 + $0x10] sm:$0xff] %v1925_v11  ;;  %v1991_v10 = vsel %vm1971_vm7, %v1961_v31, %v1962_v32 }
 0x355   : > { %v1832_v12 = vpop.f32.mrf.mxu2  ;;  %v1845_v13 = vpop.f32.mrf.mxu3  ;;  %v1995_v36 = vsel %vm1976_vm9, %v1963_v35, %v1964_v2  ;;  %v1992_v58 = vsel %vm1914_vm4, %v1988_v47, %v1991_v10 }
 0x35d   : > { %v1869_v30 = vpop.f32.mrf.mxu2  ;;  %v1882_v28 = vpop.f32.mrf.mxu3 }
 0x35e   : > { %v1870_v17 = vadd.f32 %v1869_v30, %v1336_v16  ;;  %v1883_v14 = vadd.f32 %v1882_v28, %v1337_v23 }
 0x360   : > { %v1912_v38 = vrot.slane %v1870_v17, 4  ;;  %v1913_v6 = vrot.slane %v1883_v14, 2  ;;  %v1944_v43 = vpack.c.bf16 %v1883_v14, %v1870_v17 }
 0x362   : > { %v1927_v54 = vsel %vm1916_vm5, %v1912_v38, %v1913_v6  ;;  %v1965_v45 = vrot.slane %v1944_v43, 2  ;;  %v1966_v46 = vrot.slane %v1944_v43, 5 }
 0x363   : > { %v1928_v42 = vsel %vm1918_vm6, %v1926_v24, %v1927_v54 }
 0x364   : > { %1936 = vst [vmem:[#allocation16 + $0x18] sm:$0xff] %v1928_v42  ;;  %v1998_v37 = vsel %vm1980_vm10, %v1965_v45, %v1966_v46 }
 0x365   : > { %v1999_v62 = vsel %vm1916_vm5, %v1995_v36, %v1998_v37  ;;  %v1871_v40 = vpop.f32.mrf.mxu2  ;;  %v1884_v48 = vpop.f32.mrf.mxu3 }
 0x366   : > { %v2000_v19 = vsel %vm1918_vm6, %v1992_v58, %v1999_v62 }
 0x367   : > { %2004 = vst [vmem:[#allocation2 + $0x8] sm:$0xff] %v2000_v19 }
 0x368 PF: > { %v11454_v44 = vld [vmem:[%s17535_s19 + $0x1c0] sm:$0xf]  ;;  %p15324_p8 = scmp.ge.s32.totalorder %s17363_s21, 2 }
 0x369   : > { %v15747_v0 = vld [vmem:[%s17535_s19 + $0x1dc] sm:$0xf0] }
 0x36a   : > { %v11710_v49 = vld [vmem:[%s17535_s19 + $0x3c0] sm:$0xf]  ;;  %v11455_v22 = vor.u32 %v15747_v0, %v11454_v44 }
 0x36b   : > { %v15811_v52 = vld [vmem:[%s17535_s19 + $0x3dc] sm:$0xf0] }
 0x36c   : > { %v11966_v26 = vld [vmem:[%s17535_s19 + $0x5c0] sm:$0xf]  ;;  %v11711_v60 = vor.u32 %v15811_v52, %v11710_v49  ;;  %8205 = vmatpush.bf16.msra.mxu0 %v11455_v22 }
 0x36d   : > { %v15875_v53 = vld [vmem:[%s17535_s19 + $0x5dc] sm:$0xf0] }
 0x36e   : > { %v11967_v51 = vor.u32 %v15875_v53, %v11966_v26  ;;  %v12222_v55 = vld [vmem:[%s17535_s19 + $0x7c0] sm:$0xf]  ;;  %8218 = vmatpush.bf16.msra.mxu1 %v11711_v60 }
 0x36f   : > { %v15939_v1 = vld [vmem:[%s17535_s19 + $0x7dc] sm:$0xf0] }
 0x370   : > { %v11422_v57 = vld [vmem:[%s17535_s19 + $0x180] sm:$0xf]  ;;  %v12223_v3 = vor.u32 %v15939_v1, %v12222_v55  ;;  %8231 = vmatpush.bf16.msra.mxu2 %v11967_v51 }
 0x371   : > { %v15739_v39 = vld [vmem:[%s17535_s19 + $0x19c] sm:$0xf0] }
 0x372   : > { %v11678_v5 = vld [vmem:[%s17535_s19 + $0x380] sm:$0xf]  ;;  %v11423_v8 = vor.u32 %v15739_v39, %v11422_v57  ;;  %8244 = vmatpush.bf16.msra.mxu3 %v12223_v3 }
 0x373   : > { %v15803_v7 = vld [vmem:[%s17535_s19 + $0x39c] sm:$0xf0] }
 0x374   : > { %v11679_v9 = vor.u32 %v15803_v7, %v11678_v5  ;;  %v11934_v27 = vld [vmem:[%s17535_s19 + $0x580] sm:$0xf]  ;;  %8206 = vmatpush.bf16.msra.mxu0 %v11423_v8 }
 0x375   : > { %v15867_v56 = vld [vmem:[%s17535_s19 + $0x59c] sm:$0xf0] }
 0x376   : > { %v12190_v4 = vld [vmem:[%s17535_s19 + $0x780] sm:$0xf]  ;;  %v11935_v41 = vor.u32 %v15867_v56, %v11934_v27  ;;  %8219 = vmatpush.bf16.msra.mxu1 %v11679_v9 }
 0x377   : > { %v15931_v61 = vld [vmem:[%s17535_s19 + $0x79c] sm:$0xf0] }
 0x378   : > { %v11390_v33 = vld [vmem:[%s17535_s19 + $0x140] sm:$0xf]  ;;  %v12191_v11 = vor.u32 %v15931_v61, %v12190_v4  ;;  %8232 = vmatpush.bf16.msra.mxu2 %v11935_v41 }
 0x379   : > { %v15731_v63 = vld [vmem:[%s17535_s19 + $0x15c] sm:$0xf0] }
 0x37a   : > { %v11646_v50 = vld [vmem:[%s17535_s19 + $0x340] sm:$0xf]  ;;  %v11391_v13 = vor.u32 %v15731_v63, %v11390_v33  ;;  %8245 = vmatpush.bf16.msra.mxu3 %v12191_v11 }
 0x37b   : > { %v15795_v59 = vld [vmem:[%s17535_s19 + $0x35c] sm:$0xf0] }
 0x37c   : > { %v11902_v12 = vld [vmem:[%s17535_s19 + $0x540] sm:$0xf]  ;;  %v11647_v16 = vor.u32 %v15795_v59, %v11646_v50  ;;  %8207 = vmatpush.bf16.msra.mxu0 %v11391_v13 }
 0x37d   : > { %v15859_v20 = vld [vmem:[%s17535_s19 + $0x55c] sm:$0xf0] }
 0x37e   : > { %v12158_v15 = vld [vmem:[%s17535_s19 + $0x740] sm:$0xf]  ;;  %v11903_v23 = vor.u32 %v15859_v20, %v11902_v12  ;;  %8220 = vmatpush.bf16.msra.mxu1 %v11647_v16 }
 0x37f   : > { %v15923_v18 = vld [vmem:[%s17535_s19 + $0x75c] sm:$0xf0] }
 0x380   : > { %v11358_v25 = vld [vmem:[%s17535_s19 + $0x100] sm:$0xf]  ;;  %v12159_v28 = vor.u32 %v15923_v18, %v12158_v15  ;;  %8233 = vmatpush.bf16.msra.mxu2 %v11903_v23 }
 0x381   : > { %v15723_v29 = vld [vmem:[%s17535_s19 + $0x11c] sm:$0xf0] }
 0x382   : > { %v11614_v30 = vld [vmem:[%s17535_s19 + $0x300] sm:$0xf]  ;;  %v11359_v34 = vor.u32 %v15723_v29, %v11358_v25  ;;  %8246 = vmatpush.bf16.msra.mxu3 %v12159_v28 }
 0x383   : > { %v15787_v31 = vld [vmem:[%s17535_s19 + $0x31c] sm:$0xf0] }
 0x384   : > { %v11870_v32 = vld [vmem:[%s17535_s19 + $0x500] sm:$0xf]  ;;  %v11615_v35 = vor.u32 %v15787_v31, %v11614_v30  ;;  %8208 = vmatpush.bf16.msra.mxu0 %v11359_v34 }
 0x385   : > { %v15851_v17 = vld [vmem:[%s17535_s19 + $0x51c] sm:$0xf0] }
 0x386   : > { %v12126_v14 = vld [vmem:[%s17535_s19 + $0x700] sm:$0xf]  ;;  %v11871_v2 = vor.u32 %v15851_v17, %v11870_v32  ;;  %8221 = vmatpush.bf16.msra.mxu1 %v11615_v35 }
 0x387   : > { %v15915_v21 = vld [vmem:[%s17535_s19 + $0x71c] sm:$0xf0] }
 0x388   : > { %v11326_v38 = vld [vmem:[%s17535_s19 + $0xc0] sm:$0xf]  ;;  %v12127_v24 = vor.u32 %v15915_v21, %v12126_v14  ;;  %8234 = vmatpush.bf16.msra.mxu2 %v11871_v2 }
 0x389   : > { %v15715_v6 = vld [vmem:[%s17535_s19 + $0xdc] sm:$0xf0] }
 0x38a   : > { %v11582_v43 = vld [vmem:[%s17535_s19 + $0x2c0] sm:$0xf]  ;;  %v11327_v47 = vor.u32 %v15715_v6, %v11326_v38  ;;  %8247 = vmatpush.bf16.msra.mxu3 %v12127_v24 }
 0x38b   : > { %v15779_v10 = vld [vmem:[%s17535_s19 + $0x2dc] sm:$0xf0] }
 0x38c   : > { %v11838_v54 = vld [vmem:[%s17535_s19 + $0x4c0] sm:$0xf]  ;;  %v11583_v36 = vor.u32 %v15779_v10, %v11582_v43  ;;  %8209 = vmatpush.bf16.msra.mxu0 %v11327_v47 }
 0x38d   : > { %v15843_v45 = vld [vmem:[%s17535_s19 + $0x4dc] sm:$0xf0] }
 0x38e   : > { %v12094_v46 = vld [vmem:[%s17535_s19 + $0x6c0] sm:$0xf]  ;;  %v11839_v37 = vor.u32 %v15843_v45, %v11838_v54  ;;  %8222 = vmatpush.bf16.msra.mxu1 %v11583_v36 }
 0x38f   : > { %v15907_v42 = vld [vmem:[%s17535_s19 + $0x6dc] sm:$0xf0] }
 0x390   : > { %v11294_v58 = vld [vmem:[%s17535_s19 + $0x80] sm:$0xf]  ;;  %v12095_v48 = vor.u32 %v15907_v42, %v12094_v46  ;;  %8235 = vmatpush.bf16.msra.mxu2 %v11839_v37 }
 0x391   : > { %v15707_v62 = vld [vmem:[%s17535_s19 + $0x9c] sm:$0xf0] }
 0x392   : > { %v11550_v40 = vld [vmem:[%s17535_s19 + $0x280] sm:$0xf]  ;;  %v11295_v52 = vor.u32 %v15707_v62, %v11294_v58  ;;  %8248 = vmatpush.bf16.msra.mxu3 %v12095_v48 }
 0x393   : > { %v15771_v19 = vld [vmem:[%s17535_s19 + $0x29c] sm:$0xf0] }
 0x394   : > { %v11806_v44 = vld [vmem:[%s17535_s19 + $0x480] sm:$0xf]  ;;  %v11551_v26 = vor.u32 %v15771_v19, %v11550_v40  ;;  %8210 = vmatpush.bf16.msra.mxu0 %v11295_v52 }
 0x395   : > { %v15835_v0 = vld [vmem:[%s17535_s19 + $0x49c] sm:$0xf0] }
 0x396   : > { %v12062_v49 = vld [vmem:[%s17535_s19 + $0x680] sm:$0xf]  ;;  %v11807_v53 = vor.u32 %v15835_v0, %v11806_v44  ;;  %8223 = vmatpush.bf16.msra.mxu1 %v11551_v26 }
 0x397   : > { %v15899_v22 = vld [vmem:[%s17535_s19 + $0x69c] sm:$0xf0] }
 0x398   : > { %v11262_v60 = vld [vmem:[%s17535_s19 + $0x40] sm:$0xf]  ;;  %v12063_v1 = vor.u32 %v15899_v22, %v12062_v49  ;;  %8236 = vmatpush.bf16.msra.mxu2 %v11807_v53 }
 0x399   : > { %v15699_v51 = vld [vmem:[%s17535_s19 + $0x5c] sm:$0xf0] }
 0x39a   : > { %v11518_v55 = vld [vmem:[%s17535_s19 + $0x240] sm:$0xf]  ;;  %v11263_v8 = vor.u32 %v15699_v51, %v11262_v60  ;;  %8249 = vmatpush.bf16.msra.mxu3 %v12063_v1 }
 0x39b   : > { %v15763_v57 = vld [vmem:[%s17535_s19 + $0x25c] sm:$0xf0] }
 0x39c   : > { %v11774_v3 = vld [vmem:[%s17535_s19 + $0x440] sm:$0xf]  ;;  %v11519_v56 = vor.u32 %v15763_v57, %v11518_v55  ;;  %8211 = vmatpush.bf16.msra.mxu0 %v11263_v8 }
 0x39d   : > { %v15827_v39 = vld [vmem:[%s17535_s19 + $0x45c] sm:$0xf0] }
 0x39e   : > { %v12030_v5 = vld [vmem:[%s17535_s19 + $0x640] sm:$0xf]  ;;  %v11775_v4 = vor.u32 %v15827_v39, %v11774_v3  ;;  %8224 = vmatpush.bf16.msra.mxu1 %v11519_v56 }
 0x39f   : > { %v15891_v7 = vld [vmem:[%s17535_s19 + $0x65c] sm:$0xf0] }
 0x3a0   : > { %v11230_v9 = vld [vmem:[%s17535_s19] sm:$0xf]  ;;  %v12031_v63 = vor.u32 %v15891_v7, %v12030_v5  ;;  %8237 = vmatpush.bf16.msra.mxu2 %v11775_v4 }
 0x3a1   : > { %v15691_v27 = vld [vmem:[%s17535_s19 + $0x1c] sm:$0xf0] }
 0x3a2   : > { %v11486_v41 = vld [vmem:[%s17535_s19 + $0x200] sm:$0xf]  ;;  %v11231_v15 = vor.u32 %v15691_v27, %v11230_v9  ;;  %8250 = vmatpush.bf16.msra.mxu3 %v12031_v63 }
 0x3a3   : > { %v15755_v61 = vld [vmem:[%s17535_s19 + $0x21c] sm:$0xf0] }
 0x3a4   : > { %v11742_v33 = vld [vmem:[%s17535_s19 + $0x400] sm:$0xf]  ;;  %v11487_v25 = vor.u32 %v15755_v61, %v11486_v41  ;;  %8212 = vmatpush.bf16.msra.mxu0 %v11231_v15 }
 0x3a5   : > { %v15819_v11 = vld [vmem:[%s17535_s19 + $0x41c] sm:$0xf0] }
 0x3a6   : > { %v11998_v50 = vld [vmem:[%s17535_s19 + $0x600] sm:$0xf]  ;;  %v11743_v29 = vor.u32 %v15819_v11, %v11742_v33  ;;  %8225 = vmatpush.bf16.msra.mxu1 %v11487_v25 }
 0x3a7   : > { %v15883_v59 = vld [vmem:[%s17535_s19 + $0x61c] sm:$0xf0] }
 0x3a8   : > { %v12478_v12 = vld [vmem:[%s17535_s19 + $0x9c0] sm:$0xf]  ;;  %v11999_v31 = vor.u32 %v15883_v59, %v11998_v50  ;;  %8238 = vmatpush.bf16.msra.mxu2 %v11743_v29 }
 0x3a9   : > { %v16003_v13 = vld [vmem:[%s17535_s19 + $0x9dc] sm:$0xf0] }
 0x3aa   : > { %v12734_v20 = vld [vmem:[%s17535_s19 + $0xbc0] sm:$0xf]  ;;  %v12479_v32 = vor.u32 %v16003_v13, %v12478_v12  ;;  %8251 = vmatpush.bf16.msra.mxu3 %v11999_v31 }
 0x3ab   : > { %v16067_v18 = vld [vmem:[%s17535_s19 + $0xbdc] sm:$0xf0] }
 0x3ac   : > { %v12990_v16 = vld [vmem:[%s17535_s19 + $0xdc0] sm:$0xf]  ;;  %v12735_v17 = vor.u32 %v16067_v18, %v12734_v20  ;;  %8257 = vmatpush.bf16.msrb.mxu0 %v12479_v32 }
 0x3ad   : > { %v16131_v23 = vld [vmem:[%s17535_s19 + $0xddc] sm:$0xf0] }
 0x3ae   : > { %v13246_v30 = vld [vmem:[%s17535_s19 + $0xfc0] sm:$0xf]  ;;  %v12991_v14 = vor.u32 %v16131_v23, %v12990_v16  ;;  %8270 = vmatpush.bf16.msrb.mxu1 %v12735_v17 }
 0x3af   : > { %v16195_v28 = vld [vmem:[%s17535_s19 + $0xfdc] sm:$0xf0] }
 0x3b0   : > { %v12446_v21 = vld [vmem:[%s17535_s19 + $0x980] sm:$0xf]  ;;  %v13247_v2 = vor.u32 %v16195_v28, %v13246_v30  ;;  %8283 = vmatpush.bf16.msrb.mxu2 %v12991_v14 }
 0x3b1   : > { %v15995_v34 = vld [vmem:[%s17535_s19 + $0x99c] sm:$0xf0] }
 0x3b2   : > { %v12702_v35 = vld [vmem:[%s17535_s19 + $0xb80] sm:$0xf]  ;;  %v12447_v54 = vor.u32 %v15995_v34, %v12446_v21  ;;  %8296 = vmatpush.bf16.msrb.mxu3 %v13247_v2 }
 0x3b3   : > { %v16059_v38 = vld [vmem:[%s17535_s19 + $0xb9c] sm:$0xf0] }
 0x3b4   : > { %v12958_v6 = vld [vmem:[%s17535_s19 + $0xd80] sm:$0xf]  ;;  %v12703_v42 = vor.u32 %v16059_v38, %v12702_v35  ;;  %8258 = vmatpush.bf16.msrb.mxu0 %v12447_v54 }
 0x3b5   : > { %v16123_v43 = vld [vmem:[%s17535_s19 + $0xd9c] sm:$0xf0] }
 0x3b6   : > { %v13214_v24 = vld [vmem:[%s17535_s19 + $0xf80] sm:$0xf]  ;;  %v12959_v47 = vor.u32 %v16123_v43, %v12958_v6  ;;  %8271 = vmatpush.bf16.msrb.mxu1 %v12703_v42 }
 0x3b7   : > { %v16187_v10 = vld [vmem:[%s17535_s19 + $0xf9c] sm:$0xf0] }
 0x3b8   : > { %v12414_v45 = vld [vmem:[%s17535_s19 + $0x940] sm:$0xf]  ;;  %v13215_v62 = vor.u32 %v16187_v10, %v13214_v24  ;;  %8284 = vmatpush.bf16.msrb.mxu2 %v12959_v47 }
 0x3b9   : > { %v15987_v46 = vld [vmem:[%s17535_s19 + $0x95c] sm:$0xf0] }
 0x3ba   : > { %v12670_v36 = vld [vmem:[%s17535_s19 + $0xb40] sm:$0xf]  ;;  %v12415_v0 = vor.u32 %v15987_v46, %v12414_v45  ;;  %8297 = vmatpush.bf16.msrb.mxu3 %v13215_v62 }
 0x3bb   : > { %v16051_v37 = vld [vmem:[%s17535_s19 + $0xb5c] sm:$0xf0] }
 0x3bc   : > { %v2005_v58 = vld [vmem:[#allocation2] sm:$0xff]  ;;  %v12671_v49 = vor.u32 %v16051_v37, %v12670_v36  ;;  %8259 = vmatpush.bf16.msrb.mxu0 %v12415_v0 }
 0x3bd   : > { %v12926_v40 = vld [vmem:[%s17535_s19 + $0xd40] sm:$0xf]  ;;  %3050 = vst [vmem:[#allocation1] ss:$9 sm:$0xff] %v2005_v58 }
 0x3be   : > { %v16115_v48 = vld [vmem:[%s17535_s19 + $0xd5c] sm:$0xf0]  ;;  %8272 = vmatpush.bf16.msrb.mxu1 %v12671_v49 }
 0x3bf   : > { %v13182_v19 = vld [vmem:[%s17535_s19 + $0xf40] sm:$0xf]  ;;  %v12927_v22 = vor.u32 %v16115_v48, %v12926_v40  ;;  %v2006_v40 = vld [vmem:[#allocation2 + $0x8] sm:$0xff] }
 0x3c0   : > { %v16179_v44 = vld [vmem:[%s17535_s19 + $0xf5c] sm:$0xf0] }
 0x3c1   : > { %v12382_v52 = vld [vmem:[%s17535_s19 + $0x900] sm:$0xf]  ;;  %v13183_v60 = vor.u32 %v16179_v44, %v13182_v19  ;;  %8285 = vmatpush.bf16.msrb.mxu2 %v12927_v22 }
 0x3c2   : > { %v15979_v26 = vld [vmem:[%s17535_s19 + $0x91c] sm:$0xf0] }
 0x3c3   : > { %v12638_v53 = vld [vmem:[%s17535_s19 + $0xb00] sm:$0xf]  ;;  %v12383_v5 = vor.u32 %v15979_v26, %v12382_v52  ;;  %8298 = vmatpush.bf16.msrb.mxu3 %v13183_v60 }
 0x3c4   : > { %v16043_v51 = vld [vmem:[%s17535_s19 + $0xb1c] sm:$0xf0]  ;;  %v18001_v4 = vld [vmem:[#allocation1 + $0x12] sm:$0xff]  ;;  %v18003_v41 = vld [vmem:[#allocation1] sm:$0xff] }
 0x3c5   : > { %v12894_v55 = vld [vmem:[%s17535_s19 + $0xd00] sm:$0xf]  ;;  %v12639_v27 = vor.u32 %v16043_v51, %v12638_v53  ;;  %v18005_v61 = vld [vmem:[#allocation1 + $0x1b] sm:$0xff]  ;;  %8239 = vmatmul.bf16.vlgmr.msra.gmra.mxu2 %v18001_v4  ;;  %8213 = vmatmul.bf16.vlgmr.msra.gmra.mxu0 %v18003_v41 }
 0x3c6   : > { %v16107_v1 = vld [vmem:[%s17535_s19 + $0xd1c] sm:$0xf0]  ;;  %8252 = vmatmul.bf16.vlgmr.msra.gmra.mxu3 %v18005_v61  ;;  %8260 = vmatpush.bf16.msrb.mxu0 %v12383_v5  ;;  %v18039_v62 = vld [vmem:[#allocation1 + $0x36] sm:$0xff]  ;;  %v18043_v0 = vld [vmem:[#allocation1 + $0x3f] sm:$0xff] }
 0x3c7   : > { %v13150_v57 = vld [vmem:[%s17535_s19 + $0xf00] sm:$0xf]  ;;  %v12895_v56 = vor.u32 %v16107_v1, %v12894_v55  ;;  %8273 = vmatpush.bf16.msrb.mxu1 %v12639_v27 }
 0x3c8   : > { %v16171_v3 = vld [vmem:[%s17535_s19 + $0xf1c] sm:$0xf0] }
 0x3c9   : > { %v12350_v39 = vld [vmem:[%s17535_s19 + $0x8c0] sm:$0xf]  ;;  %v13151_v33 = vor.u32 %v16171_v3, %v13150_v57  ;;  %8286 = vmatpush.bf16.msrb.mxu2 %v12895_v56 }
 0x3ca   : > { %v15971_v7 = vld [vmem:[%s17535_s19 + $0x8dc] sm:$0xf0] }
 0x3cb   : > { %v12606_v8 = vld [vmem:[%s17535_s19 + $0xac0] sm:$0xf]  ;;  %v12351_v13 = vor.u32 %v15971_v7, %v12350_v39  ;;  %8299 = vmatpush.bf16.msrb.mxu3 %v13151_v33 }
 0x3cc   : > { %v16035_v9 = vld [vmem:[%s17535_s19 + $0xadc] sm:$0xf0] }
 0x3cd   : > { %v12862_v63 = vld [vmem:[%s17535_s19 + $0xcc0] sm:$0xf]  ;;  %v12607_v20 = vor.u32 %v16035_v9, %v12606_v8  ;;  %8261 = vmatpush.bf16.msrb.mxu0 %v12351_v13 }
 0x3ce   : > { %v16099_v11 = vld [vmem:[%s17535_s19 + $0xcdc] sm:$0xf0] }
 0x3cf   : > { %v18010_v50 = vld [vmem:[#allocation1 + $0x9] sm:$0xff]  ;;  %v12863_v15 = vor.u32 %v16099_v11, %v12862_v63  ;;  %8274 = vmatpush.bf16.msrb.mxu1 %v12607_v20 }
 0x3d0   : > { %v13118_v59 = vld [vmem:[%s17535_s19 + $0xec0] sm:$0xf]  ;;  %8226 = vmatmul.bf16.vlgmr.msra.gmra.mxu1 %v18010_v50 }
 0x3d1   : > { %v16163_v12 = vld [vmem:[%s17535_s19 + $0xedc] sm:$0xf0]  ;;  %8287 = vmatpush.bf16.msrb.mxu2 %v12863_v15 }
 0x3d2   : > { %v12318_v18 = vld [vmem:[%s17535_s19 + $0x880] sm:$0xf]  ;;  %v13119_v25 = vor.u32 %v16163_v12, %v13118_v59 }
 0x3d3   : > { %v15963_v16 = vld [vmem:[%s17535_s19 + $0x89c] sm:$0xf0] }
 0x3d4   : > { %v12574_v23 = vld [vmem:[%s17535_s19 + $0xa80] sm:$0xf]  ;;  %v12319_v17 = vor.u32 %v15963_v16, %v12318_v18  ;;  %8300 = vmatpush.bf16.msrb.mxu3 %v13119_v25 }
 0x3d5   : > { %v16027_v29 = vld [vmem:[%s17535_s19 + $0xa9c] sm:$0xf0] }
 0x3d6   : > { %v12830_v30 = vld [vmem:[%s17535_s19 + $0xc80] sm:$0xf]  ;;  %v12575_v21 = vor.u32 %v16027_v29, %v12574_v23  ;;  %8262 = vmatpush.bf16.msrb.mxu0 %v12319_v17 }
 0x3d7   : > { %v16091_v28 = vld [vmem:[%s17535_s19 + $0xc9c] sm:$0xf0] }
 0x3d8   : > { %v13086_v31 = vld [vmem:[%s17535_s19 + $0xe80] sm:$0xf]  ;;  %v12831_v34 = vor.u32 %v16091_v28, %v12830_v30  ;;  %8275 = vmatpush.bf16.msrb.mxu1 %v12575_v21 }
 0x3d9   : > { %v16155_v32 = vld [vmem:[%s17535_s19 + $0xe9c] sm:$0xf0] }
 0x3da   : > { %v12286_v14 = vld [vmem:[%s17535_s19 + $0x840] sm:$0xf]  ;;  %v13087_v6 = vor.u32 %v16155_v32, %v13086_v31  ;;  %8288 = vmatpush.bf16.msrb.mxu2 %v12831_v34 }
 0x3db   : > { %v15955_v35 = vld [vmem:[%s17535_s19 + $0x85c] sm:$0xf0] }
 0x3dc   : > { %v12542_v2 = vld [vmem:[%s17535_s19 + $0xa40] sm:$0xf]  ;;  %v12287_v42 = vor.u32 %v15955_v35, %v12286_v14  ;;  %8301 = vmatpush.bf16.msrb.mxu3 %v13087_v6 }
 0x3dd   : > { %v16019_v38 = vld [vmem:[%s17535_s19 + $0xa5c] sm:$0xf0] }
 0x3de   : > { %v12798_v43 = vld [vmem:[%s17535_s19 + $0xc40] sm:$0xf]  ;;  %v12543_v48 = vor.u32 %v16019_v38, %v12542_v2  ;;  %8263 = vmatpush.bf16.msrb.mxu0 %v12287_v42 }
 0x3df   : > { %v16083_v24 = vld [vmem:[%s17535_s19 + $0xc5c] sm:$0xf0] }
 0x3e0   : > { %v13054_v10 = vld [vmem:[%s17535_s19 + $0xe40] sm:$0xf]  ;;  %v12799_v19 = vor.u32 %v16083_v24, %v12798_v43  ;;  %8276 = vmatpush.bf16.msrb.mxu1 %v12543_v48 }
 0x3e1   : > { %v16147_v54 = vld [vmem:[%s17535_s19 + $0xe5c] sm:$0xf0] }
 0x3e2   : > { %v12254_v45 = vld [vmem:[%s17535_s19 + $0x800] sm:$0xf]  ;;  %v13055_v22 = vor.u32 %v16147_v54, %v13054_v10  ;;  %8289 = vmatpush.bf16.msrb.mxu2 %v12799_v19 }
 0x3e3   : > { %v15947_v46 = vld [vmem:[%s17535_s19 + $0x81c] sm:$0xf0] }
 0x3e4   : > { %v12510_v47 = vld [vmem:[%s17535_s19 + $0xa00] sm:$0xf]  ;;  %v12255_v55 = vor.u32 %v15947_v46, %v12254_v45  ;;  %8302 = vmatpush.bf16.msrb.mxu3 %v13055_v22 }
 0x3e5   : > { %v16011_v36 = vld [vmem:[%s17535_s19 + $0xa1c] sm:$0xf0] }
 0x3e6   : > { %v12766_v37 = vld [vmem:[%s17535_s19 + $0xc00] sm:$0xf]  ;;  %v12511_v39 = vor.u32 %v16011_v36, %v12510_v47  ;;  %8264 = vmatpush.bf16.msrb.mxu0 %v12255_v55 }
 0x3e7   : > { %v16075_v58 = vld [vmem:[%s17535_s19 + $0xc1c] sm:$0xf0] }
 0x3e8   : > { %v18041_v44 = vld [vmem:[#allocation1 + $0x24] sm:$0xff]  ;;  %v18045_v49 = vld [vmem:[#allocation1 + $0x2d] sm:$0xff]  ;;  %v12767_v5 = vor.u32 %v16075_v58, %v12766_v37  ;;  %8277 = vmatpush.bf16.msrb.mxu1 %v12511_v39 }
 0x3e9   : > { %v13022_v52 = vld [vmem:[%s17535_s19 + $0xe00] sm:$0xf]  ;;  %3060 = vst [vmem:[#allocation1] ss:$9 sm:$0xff] %v2006_v40  ;;  %8265 = vmatmul.bf16.vlgmr.msrb.gmra.mxu0 %v18041_v44 }
 0x3ea   : > { %v16139_v26 = vld [vmem:[%s17535_s19 + $0xe1c] sm:$0xf0]  ;;  %8290 = vmatpush.bf16.msrb.mxu2 %v12767_v5 }
 0x3eb   : > { %v13502_v53 = vld [vmem:[%s17535_s19 + $0x11c0] sm:$0xf]  ;;  %v13023_v9 = vor.u32 %v16139_v26, %v13022_v52  ;;  %8278 = vmatmul.bf16.vlgmr.msrb.gmra.mxu1 %v18045_v49 }
 0x3ec   : > { %v16259_v60 = vld [vmem:[%s17535_s19 + $0x11dc] sm:$0xf0] }
 0x3ed   : > { %v13758_v51 = vld [vmem:[%s17535_s19 + $0x13c0] sm:$0xf]  ;;  %v13503_v27 = vor.u32 %v16259_v60, %v13502_v53  ;;  %8303 = vmatpush.bf16.msrb.mxu3 %v13023_v9  ;;  %8291 = vmatmul.bf16.vlgmr.msrb.gmra.mxu2 %v18039_v62 }
 0x3ee   : > { %v16323_v1 = vld [vmem:[%s17535_s19 + $0x13dc] sm:$0xf0] }
 0x3ef   : > { %v14014_v57 = vld [vmem:[%s17535_s19 + $0x15c0] sm:$0xf]  ;;  %v13759_v56 = vor.u32 %v16323_v1, %v13758_v51  ;;  %8309 = vmatpush.bf16.msra.mxu0 %v13503_v27 }
 0x3f0   : > { %v16387_v3 = vld [vmem:[%s17535_s19 + $0x15dc] sm:$0xf0]  ;;  %8304 = vmatmul.bf16.vlgmr.msrb.gmra.mxu3 %v18043_v0 }
 0x3f1   : > { %v14270_v7 = vld [vmem:[%s17535_s19 + $0x17c0] sm:$0xf]  ;;  %v14015_v33 = vor.u32 %v16387_v3, %v14014_v57  ;;  %8322 = vmatpush.bf16.msra.mxu1 %v13759_v56 }
 0x3f2   : > { %v16451_v8 = vld [vmem:[%s17535_s19 + $0x17dc] sm:$0xf0] }
 0x3f3   : > { %v13470_v63 = vld [vmem:[%s17535_s19 + $0x1180] sm:$0xf]  ;;  %v14271_v12 = vor.u32 %v16451_v8, %v14270_v7  ;;  %8335 = vmatpush.bf16.msra.mxu2 %v14015_v33 }
 0x3f4   : > { %v16251_v11 = vld [vmem:[%s17535_s19 + $0x119c] sm:$0xf0] }
 0x3f5   : > { %v13726_v59 = vld [vmem:[%s17535_s19 + $0x1380] sm:$0xf]  ;;  %v13471_v23 = vor.u32 %v16251_v11, %v13470_v63  ;;  %8348 = vmatpush.bf16.msra.mxu3 %v14271_v12 }
 0x3f6   : > { %v16315_v13 = vld [vmem:[%s17535_s19 + $0x139c] sm:$0xf0] }
 0x3f7   : > { %v13982_v20 = vld [vmem:[%s17535_s19 + $0x1580] sm:$0xf]  ;;  %v13727_v25 = vor.u32 %v16315_v13, %v13726_v59  ;;  %8310 = vmatpush.bf16.msra.mxu0 %v13471_v23 }
 0x3f8   : > { %v16379_v15 = vld [vmem:[%s17535_s19 + $0x159c] sm:$0xf0] }
 0x3f9   : > { %v14238_v18 = vld [vmem:[%s17535_s19 + $0x1780] sm:$0xf]  ;;  %v13983_v29 = vor.u32 %v16379_v15, %v13982_v20  ;;  %8323 = vmatpush.bf16.msra.mxu1 %v13727_v25 }
 0x3fa   : > { %v16443_v16 = vld [vmem:[%s17535_s19 + $0x179c] sm:$0xf0] }
 0x3fb   : > { %v13438_v30 = vld [vmem:[%s17535_s19 + $0x1140] sm:$0xf]  ;;  %v14239_v32 = vor.u32 %v16443_v16, %v14238_v18  ;;  %8336 = vmatpush.bf16.msra.mxu2 %v13983_v29 }
 0x3fc   : > { %v16243_v28 = vld [vmem:[%s17535_s19 + $0x115c] sm:$0xf0] }
 0x3fd   : > { %v13694_v31 = vld [vmem:[%s17535_s19 + $0x1340] sm:$0xf]  ;;  %v13439_v2 = vor.u32 %v16243_v28, %v13438_v30  ;;  %8349 = vmatpush.bf16.msra.mxu3 %v14239_v32 }
 0x3fe   : > { %v16307_v17 = vld [vmem:[%s17535_s19 + $0x135c] sm:$0xf0] }
 0x3ff   : > { %v13950_v14 = vld [vmem:[%s17535_s19 + $0x1540] sm:$0xf]  ;;  %v13695_v38 = vor.u32 %v16307_v17, %v13694_v31  ;;  %8311 = vmatpush.bf16.msra.mxu0 %v13439_v2 }
 0x400   : > { %v16371_v21 = vld [vmem:[%s17535_s19 + $0x155c] sm:$0xf0] }
 0x401   : > { %v14206_v34 = vld [vmem:[%s17535_s19 + $0x1740] sm:$0xf]  ;;  %v13951_v6 = vor.u32 %v16371_v21, %v13950_v14  ;;  %8324 = vmatpush.bf16.msra.mxu1 %v13695_v38 }
 0x402   : > { %v16435_v35 = vld [vmem:[%s17535_s19 + $0x175c] sm:$0xf0] }
 0x403   : > { %v13406_v43 = vld [vmem:[%s17535_s19 + $0x1100] sm:$0xf]  ;;  %v14207_v54 = vor.u32 %v16435_v35, %v14206_v34  ;;  %8337 = vmatpush.bf16.msra.mxu2 %v13951_v6 }
 0x404   : > { %v16235_v24 = vld [vmem:[%s17535_s19 + $0x111c] sm:$0xf0] }
 0x405   : > { %v13662_v10 = vld [vmem:[%s17535_s19 + $0x1300] sm:$0xf]  ;;  %v13407_v37 = vor.u32 %v16235_v24, %v13406_v43  ;;  %8350 = vmatpush.bf16.msra.mxu3 %v14207_v54 }
 0x406   : > { %v16299_v45 = vld [vmem:[%s17535_s19 + $0x131c] sm:$0xf0] }
 0x407   : > { %v13918_v46 = vld [vmem:[%s17535_s19 + $0x1500] sm:$0xf]  ;;  %v13663_v58 = vor.u32 %v16299_v45, %v13662_v10  ;;  %8312 = vmatpush.bf16.msra.mxu0 %v13407_v37 }
 0x408   : > { %v16363_v42 = vld [vmem:[%s17535_s19 + $0x151c] sm:$0xf0] }
 0x409   : > { %v14174_v47 = vld [vmem:[%s17535_s19 + $0x1700] sm:$0xf]  ;;  %v13919_v40 = vor.u32 %v16363_v42, %v13918_v46  ;;  %8325 = vmatpush.bf16.msra.mxu1 %v13663_v58 }
 0x40a   : > { %v16427_v36 = vld [vmem:[%s17535_s19 + $0x171c] sm:$0xf0] }
 0x40b   : > { %v13374_v48 = vld [vmem:[%s17535_s19 + $0x10c0] sm:$0xf]  ;;  %v14175_v52 = vor.u32 %v16427_v36, %v14174_v47  ;;  %8338 = vmatpush.bf16.msra.mxu2 %v13919_v40 }
 0x40c   : > { %v16227_v19 = vld [vmem:[%s17535_s19 + $0x10dc] sm:$0xf0] }
 0x40d   : > { %v13630_v22 = vld [vmem:[%s17535_s19 + $0x12c0] sm:$0xf]  ;;  %v13375_v1 = vor.u32 %v16227_v19, %v13374_v48  ;;  %8351 = vmatpush.bf16.msra.mxu3 %v14175_v52 }
 0x40e   : > { %v16291_v26 = vld [vmem:[%s17535_s19 + $0x12dc] sm:$0xf0] }
 0x40f   : > { %v13886_v53 = vld [vmem:[%s17535_s19 + $0x14c0] sm:$0xf]  ;;  %v13631_v57 = vor.u32 %v16291_v26, %v13630_v22  ;;  %8313 = vmatpush.bf16.msra.mxu0 %v13375_v1 }
 0x410   : > { %v16355_v60 = vld [vmem:[%s17535_s19 + $0x14dc] sm:$0xf0] }
 0x411   : > { %v14142_v51 = vld [vmem:[%s17535_s19 + $0x16c0] sm:$0xf]  ;;  %v13887_v3 = vor.u32 %v16355_v60, %v13886_v53  ;;  %8326 = vmatpush.bf16.msra.mxu1 %v13631_v57 }
 0x412   : > { %v16419_v55 = vld [vmem:[%s17535_s19 + $0x16dc] sm:$0xf0] }
 0x413   : > { %v13342_v39 = vld [vmem:[%s17535_s19 + $0x1080] sm:$0xf]  ;;  %v14143_v8 = vor.u32 %v16419_v55, %v14142_v51  ;;  %8339 = vmatpush.bf16.msra.mxu2 %v13887_v3  ;;  %v3061_v3 = vld [vmem:[#allocation1] sm:$0xff] }
 0x414   : > { %v16219_v5 = vld [vmem:[%s17535_s19 + $0x109c] sm:$0xf0] }
 0x415   : > { %v13598_v7 = vld [vmem:[%s17535_s19 + $0x1280] sm:$0xf]  ;;  %v13343_v11 = vor.u32 %v16219_v5, %v13342_v39  ;;  %8352 = vmatpush.bf16.msra.mxu3 %v14143_v8 }
 0x416   : > { %v16283_v9 = vld [vmem:[%s17535_s19 + $0x129c] sm:$0xf0] }
 0x417   : > { %v13854_v27 = vld [vmem:[%s17535_s19 + $0x1480] sm:$0xf]  ;;  %v13599_v59 = vor.u32 %v16283_v9, %v13598_v7  ;;  %8314 = vmatpush.bf16.msra.mxu0 %v13343_v11  ;;  %v3063_v7 = vld [vmem:[#allocation1 + $0x12] sm:$0xff]  ;;  %v3064_v9 = vld [vmem:[#allocation1 + $0x1b] sm:$0xff] }
 0x418   : > { %v16347_v56 = vld [vmem:[%s17535_s19 + $0x149c] sm:$0xf0] }
 0x419   : > { %v14110_v33 = vld [vmem:[%s17535_s19 + $0x1680] sm:$0xf]  ;;  %v13855_v12 = vor.u32 %v16347_v56, %v13854_v27  ;;  %8327 = vmatpush.bf16.msra.mxu1 %v13599_v59 }
 0x41a   : > { %v16411_v63 = vld [vmem:[%s17535_s19 + $0x169c] sm:$0xf0] }
 0x41b   : > { %v13310_v13 = vld [vmem:[%s17535_s19 + $0x1040] sm:$0xf]  ;;  %v14111_v18 = vor.u32 %v16411_v63, %v14110_v33  ;;  %8340 = vmatpush.bf16.msra.mxu2 %v13855_v12 }
 0x41c   : > { %v16211_v20 = vld [vmem:[%s17535_s19 + $0x105c] sm:$0xf0] }
 0x41d   : > { %v13566_v15 = vld [vmem:[%s17535_s19 + $0x1240] sm:$0xf]  ;;  %v13311_v28 = vor.u32 %v16211_v20, %v13310_v13  ;;  %8353 = vmatpush.bf16.msra.mxu3 %v14111_v18 }
 0x41e   : > { %v16275_v16 = vld [vmem:[%s17535_s19 + $0x125c] sm:$0xf0] }
 0x41f   : > { %v13822_v23 = vld [vmem:[%s17535_s19 + $0x1440] sm:$0xf]  ;;  %v13567_v17 = vor.u32 %v16275_v16, %v13566_v15  ;;  %8315 = vmatpush.bf16.msra.mxu0 %v13311_v28 }
 0x420   : > { %v16339_v25 = vld [vmem:[%s17535_s19 + $0x145c] sm:$0xf0] }
 0x421   : > { %v14078_v29 = vld [vmem:[%s17535_s19 + $0x1640] sm:$0xf]  ;;  %v13823_v14 = vor.u32 %v16339_v25, %v13822_v23  ;;  %8328 = vmatpush.bf16.msra.mxu1 %v13567_v17 }
 0x422   : > { %v16403_v30 = vld [vmem:[%s17535_s19 + $0x165c] sm:$0xf0] }
 0x423   : > { %v13278_v31 = vld [vmem:[%s17535_s19 + $0x1000] sm:$0xf]  ;;  %v14079_v2 = vor.u32 %v16403_v30, %v14078_v29  ;;  %8341 = vmatpush.bf16.msra.mxu2 %v13823_v14 }
 0x424   : > { %v16203_v32 = vld [vmem:[%s17535_s19 + $0x101c] sm:$0xf0] }
 0x425   : > { %v13534_v21 = vld [vmem:[%s17535_s19 + $0x1200] sm:$0xf]  ;;  %v13279_v45 = vor.u32 %v16203_v32, %v13278_v31  ;;  %8354 = vmatpush.bf16.msra.mxu3 %v14079_v2 }
 0x426   : > { %v16267_v34 = vld [vmem:[%s17535_s19 + $0x121c] sm:$0xf0] }
 0x427   : > { %v13790_v35 = vld [vmem:[%s17535_s19 + $0x1400] sm:$0xf]  ;;  %v13535_v36 = vor.u32 %v16267_v34, %v13534_v21  ;;  %8316 = vmatpush.bf16.msra.mxu0 %v13279_v45 }
 0x428   : > { %v16331_v38 = vld [vmem:[%s17535_s19 + $0x141c] sm:$0xf0] }
 0x429   : > { %v14046_v6 = vld [vmem:[%s17535_s19 + $0x1600] sm:$0xf]  ;;  %v13791_v37 = vor.u32 %v16331_v38, %v13790_v35  ;;  %8329 = vmatpush.bf16.msra.mxu1 %v13535_v36 }
 0x42a   : > { %v16395_v43 = vld [vmem:[%s17535_s19 + $0x161c] sm:$0xf0]  ;;  %8317 = vmatmul.bf16.vlgmr.msra.gmra.mxu0 %v3061_v3 }
 0x42b   : > { %v14526_v24 = vld [vmem:[%s17535_s19 + $0x19c0] sm:$0xf]  ;;  %v14047_v48 = vor.u32 %v16395_v43, %v14046_v6  ;;  %8342 = vmatpush.bf16.msra.mxu2 %v13791_v37 }
 0x42c   : > { %v16515_v10 = vld [vmem:[%s17535_s19 + $0x19dc] sm:$0xf0] }
 0x42d   : > { %v14782_v54 = vld [vmem:[%s17535_s19 + $0x1bc0] sm:$0xf]  ;;  %v14527_v19 = vor.u32 %v16515_v10, %v14526_v24  ;;  %8355 = vmatpush.bf16.msra.mxu3 %v14047_v48 }
 0x42e   : > { %v16579_v46 = vld [vmem:[%s17535_s19 + $0x1bdc] sm:$0xf0]  ;;  %8343 = vmatmul.bf16.vlgmr.msra.gmra.mxu2 %v3063_v7 }
 0x42f   : > { %v15038_v42 = vld [vmem:[%s17535_s19 + $0x1dc0] sm:$0xf]  ;;  %v14783_v22 = vor.u32 %v16579_v46, %v14782_v54  ;;  %8361 = vmatpush.bf16.msrb.mxu0 %v14527_v19 }
 0x430   : > { %v16643_v47 = vld [vmem:[%s17535_s19 + $0x1ddc] sm:$0xf0]  ;;  %8356 = vmatmul.bf16.vlgmr.msra.gmra.mxu3 %v3064_v9 }
 0x431   : > { %v15294_v58 = vld [vmem:[%s17535_s19 + $0x1fc0] sm:$0xf]  ;;  %v15039_v52 = vor.u32 %v16643_v47, %v15038_v42  ;;  %8374 = vmatpush.bf16.msrb.mxu1 %v14783_v22 }
 0x432   : > { %v16707_v40 = vld [vmem:[%s17535_s19 + $0x1fdc] sm:$0xf0] }
 0x433   : > { %v14494_v26 = vld [vmem:[%s17535_s19 + $0x1980] sm:$0xf]  ;;  %v15295_v51 = vor.u32 %v16707_v40, %v15294_v58  ;;  %8387 = vmatpush.bf16.msrb.mxu2 %v15039_v52 }
 0x434   : > { %v16507_v53 = vld [vmem:[%s17535_s19 + $0x199c] sm:$0xf0] }
 0x435   : > { %v14750_v60 = vld [vmem:[%s17535_s19 + $0x1b80] sm:$0xf]  ;;  %v14495_v27 = vor.u32 %v16507_v53, %v14494_v26  ;;  %8400 = vmatpush.bf16.msrb.mxu3 %v15295_v51 }
 0x436   : > { %v16571_v55 = vld [vmem:[%s17535_s19 + $0x1b9c] sm:$0xf0] }
 0x437   : > { %v15006_v1 = vld [vmem:[%s17535_s19 + $0x1d80] sm:$0xf]  ;;  %v14751_v56 = vor.u32 %v16571_v55, %v14750_v60  ;;  %8362 = vmatpush.bf16.msrb.mxu0 %v14495_v27 }
 0x438   : > { %v16635_v57 = vld [vmem:[%s17535_s19 + $0x1d9c] sm:$0xf0] }
 0x439   : > { %v15262_v39 = vld [vmem:[%s17535_s19 + $0x1f80] sm:$0xf]  ;;  %v15007_v33 = vor.u32 %v16635_v57, %v15006_v1  ;;  %8375 = vmatpush.bf16.msrb.mxu1 %v14751_v56 }
 0x43a   : > { %v16699_v5 = vld [vmem:[%s17535_s19 + $0x1f9c] sm:$0xf0] }
 0x43b   : > { %v3062_v8 = vld [vmem:[#allocation1 + $0x9] sm:$0xff]  ;;  %v15263_v12 = vor.u32 %v16699_v5, %v15262_v39  ;;  %8388 = vmatpush.bf16.msrb.mxu2 %v15007_v33 }
 0x43c   : > { %v14462_v63 = vld [vmem:[%s17535_s19 + $0x1940] sm:$0xf]  ;;  %8330 = vmatmul.bf16.vlgmr.msra.gmra.mxu1 %v3062_v8 }
 0x43d   : > { %v16499_v11 = vld [vmem:[%s17535_s19 + $0x195c] sm:$0xf0]  ;;  %8401 = vmatpush.bf16.msrb.mxu3 %v15263_v12 }
 0x43e   : > { %v14718_v59 = vld [vmem:[%s17535_s19 + $0x1b40] sm:$0xf]  ;;  %v14463_v23 = vor.u32 %v16499_v11, %v14462_v63 }
 0x43f   : > { %v16563_v13 = vld [vmem:[%s17535_s19 + $0x1b5c] sm:$0xf0] }
 0x440   : > { %v14974_v20 = vld [vmem:[%s17535_s19 + $0x1d40] sm:$0xf]  ;;  %v14719_v25 = vor.u32 %v16563_v13, %v14718_v59  ;;  %8363 = vmatpush.bf16.msrb.mxu0 %v14463_v23 }
 0x441   : > { %v16627_v15 = vld [vmem:[%s17535_s19 + $0x1d5c] sm:$0xf0] }
 0x442   : > { %v15230_v18 = vld [vmem:[%s17535_s19 + $0x1f40] sm:$0xf]  ;;  %v14975_v29 = vor.u32 %v16627_v15, %v14974_v20  ;;  %8376 = vmatpush.bf16.msrb.mxu1 %v14719_v25 }
 0x443   : > { %v16691_v16 = vld [vmem:[%s17535_s19 + $0x1f5c] sm:$0xf0] }
 0x444   : > { %v14430_v30 = vld [vmem:[%s17535_s19 + $0x1900] sm:$0xf]  ;;  %v15231_v32 = vor.u32 %v16691_v16, %v15230_v18  ;;  %8389 = vmatpush.bf16.msrb.mxu2 %v14975_v29 }
 0x445   : > { %v16491_v28 = vld [vmem:[%s17535_s19 + $0x191c] sm:$0xf0] }
 0x446   : > { %v14686_v31 = vld [vmem:[%s17535_s19 + $0x1b00] sm:$0xf]  ;;  %v14431_v2 = vor.u32 %v16491_v28, %v14430_v30  ;;  %8402 = vmatpush.bf16.msrb.mxu3 %v15231_v32  ;;  %v15743_v28 = vld [vmem:[%s17535_s19 + $0x1c4] sm:$0xf] }
 0x447   : > { %v16555_v17 = vld [vmem:[%s17535_s19 + $0x1b1c] sm:$0xf0]  ;;  %v15807_v32 = vld [vmem:[%s17535_s19 + $0x3c4] sm:$0xf] }
 0x448   : > { %v14942_v14 = vld [vmem:[%s17535_s19 + $0x1d00] sm:$0xf]  ;;  %v14687_v38 = vor.u32 %v16555_v17, %v14686_v31  ;;  %8364 = vmatpush.bf16.msrb.mxu0 %v14431_v2  ;;  %v11456_v31 = vld [vmem:[%s17535_s19 + $0x1e0] sm:$0xf0] }
 0x449   : > { %v16619_v21 = vld [vmem:[%s17535_s19 + $0x1d1c] sm:$0xf0] }
 0x44a   : > { %v15198_v34 = vld [vmem:[%s17535_s19 + $0x1f00] sm:$0xf]  ;;  %v14943_v6 = vor.u32 %v16619_v21, %v14942_v14  ;;  %8377 = vmatpush.bf16.msrb.mxu1 %v14687_v38  ;;  %v11712_v14 = vld [vmem:[%s17535_s19 + $0x3e0] sm:$0xf0] }
 0x44b   : > { %v16683_v35 = vld [vmem:[%s17535_s19 + $0x1f1c] sm:$0xf0]  ;;  %v15871_v21 = vld [vmem:[%s17535_s19 + $0x5c4] sm:$0xf] }
 0x44c   : > { %v14398_v43 = vld [vmem:[%s17535_s19 + $0x18c0] sm:$0xf]  ;;  %v15199_v54 = vor.u32 %v16683_v35, %v15198_v34  ;;  %8390 = vmatpush.bf16.msrb.mxu2 %v14943_v6  ;;  %v11968_v34 = vld [vmem:[%s17535_s19 + $0x5e0] sm:$0xf0] }
 0x44d   : > { %v16483_v24 = vld [vmem:[%s17535_s19 + $0x18dc] sm:$0xf0]  ;;  %v15935_v38 = vld [vmem:[%s17535_s19 + $0x7c4] sm:$0xf] }
 0x44e   : > { %v14654_v10 = vld [vmem:[%s17535_s19 + $0x1ac0] sm:$0xf]  ;;  %v14399_v37 = vor.u32 %v16483_v24, %v14398_v43  ;;  %8403 = vmatpush.bf16.msrb.mxu3 %v15199_v54  ;;  %v12224_v6 = vld [vmem:[%s17535_s19 + $0x7e0] sm:$0xf0]  ;;  %v11459_v24 = vor.u32 %v15743_v28, %v11456_v31  ;;  %v11971_v54 = vor.u32 %v15871_v21, %v11968_v34 }
 0x44f   : > { %v16547_v45 = vld [vmem:[%s17535_s19 + $0x1adc] sm:$0xf0]  ;;  %v11328_v28 = vld [vmem:[%s17535_s19 + $0xe0] sm:$0xf0] }
 0x450   : > { %v14910_v46 = vld [vmem:[%s17535_s19 + $0x1cc0] sm:$0xf]  ;;  %v14655_v58 = vor.u32 %v16547_v45, %v14654_v10  ;;  %8365 = vmatpush.bf16.msrb.mxu0 %v14399_v37  ;;  %v11715_v10 = vor.u32 %v15807_v32, %v11712_v14  ;;  %v15735_v45 = vld [vmem:[%s17535_s19 + $0x184] sm:$0xf] }
 0x451   : > { %v16611_v42 = vld [vmem:[%s17535_s19 + $0x1cdc] sm:$0xf0]  ;;  %v15863_v37 = vld [vmem:[%s17535_s19 + $0x584] sm:$0xf] }
 0x452   : > { %v15166_v47 = vld [vmem:[%s17535_s19 + $0x1ec0] sm:$0xf]  ;;  %v14911_v40 = vor.u32 %v16611_v42, %v14910_v46  ;;  %8378 = vmatpush.bf16.msrb.mxu1 %v14655_v58  ;;  %v11424_v46 = vld [vmem:[%s17535_s19 + $0x1a0] sm:$0xf0] }
 0x453   : > { %v16675_v36 = vld [vmem:[%s17535_s19 + $0x1edc] sm:$0xf0]  ;;  %v15799_v42 = vld [vmem:[%s17535_s19 + $0x384] sm:$0xf] }
 0x454   : > { %v14366_v48 = vld [vmem:[%s17535_s19 + $0x1880] sm:$0xf]  ;;  %v15167_v52 = vor.u32 %v16675_v36, %v15166_v47  ;;  %8391 = vmatpush.bf16.msrb.mxu2 %v14911_v40  ;;  %v12227_v47 = vor.u32 %v15935_v38, %v12224_v6  ;;  %v11680_v36 = vld [vmem:[%s17535_s19 + $0x3a0] sm:$0xf0] }
 0x455   : > { %v16475_v19 = vld [vmem:[%s17535_s19 + $0x189c] sm:$0xf0]  ;;  %v11936_v58 = vld [vmem:[%s17535_s19 + $0x5a0] sm:$0xf0] }
 0x456   : > { %v14622_v22 = vld [vmem:[%s17535_s19 + $0x1a80] sm:$0xf]  ;;  %v14367_v1 = vor.u32 %v16475_v19, %v14366_v48  ;;  %8404 = vmatpush.bf16.msrb.mxu3 %v15167_v52  ;;  %v15927_v48 = vld [vmem:[%s17535_s19 + $0x784] sm:$0xf] }
 0x457   : > { %v16539_v26 = vld [vmem:[%s17535_s19 + $0x1a9c] sm:$0xf0]  ;;  %v12192_v19 = vld [vmem:[%s17535_s19 + $0x7a0] sm:$0xf0] }
 0x458   : > { %v14878_v53 = vld [vmem:[%s17535_s19 + $0x1c80] sm:$0xf]  ;;  %v14623_v57 = vor.u32 %v16539_v26, %v14622_v22  ;;  %8366 = vmatpush.bf16.msrb.mxu0 %v14367_v1  ;;  %v3067_v22 = vld [vmem:[#allocation1 + $0x36] sm:$0xff]  ;;  %v3068_v26 = vld [vmem:[#allocation1 + $0x3f] sm:$0xff] }
 0x459   : > { %v16603_v60 = vld [vmem:[%s17535_s19 + $0x1c9c] sm:$0xf0]  ;;  %v11392_v1 = vld [vmem:[%s17535_s19 + $0x160] sm:$0xf0] }
 0x45a   : > { %v15134_v51 = vld [vmem:[%s17535_s19 + $0x1e80] sm:$0xf]  ;;  %v14879_v3 = vor.u32 %v16603_v60, %v14878_v53  ;;  %8379 = vmatpush.bf16.msrb.mxu1 %v14623_v57  ;;  %v11427_v53 = vor.u32 %v15735_v45, %v11424_v46  ;;  %v11683_v60 = vor.u32 %v15799_v42, %v11680_v36  ;;  %v15791_v57 = vld [vmem:[%s17535_s19 + $0x344] sm:$0xf] }
 0x45b   : > { %v16667_v55 = vld [vmem:[%s17535_s19 + $0x1e9c] sm:$0xf0]  ;;  %v15775_v31 = vld [vmem:[%s17535_s19 + $0x2c4] sm:$0xf] }
 0x45c   : > { %v14334_v39 = vld [vmem:[%s17535_s19 + $0x1840] sm:$0xf]  ;;  %v15135_v8 = vor.u32 %v16667_v55, %v15134_v51  ;;  %8392 = vmatpush.bf16.msrb.mxu2 %v14879_v3  ;;  %v11939_v51 = vor.u32 %v15863_v37, %v11936_v58  ;;  %v15727_v55 = vld [vmem:[%s17535_s19 + $0x144] sm:$0xf]  ;;  %v12195_v3 = vor.u32 %v15927_v48, %v12192_v19 }
 0x45d   : > { %v16467_v5 = vld [vmem:[%s17535_s19 + $0x185c] sm:$0xf0]  ;;  %v15839_v14 = vld [vmem:[%s17535_s19 + $0x4c4] sm:$0xf] }
 0x45e   : > { %v14590_v7 = vld [vmem:[%s17535_s19 + $0x1a40] sm:$0xf]  ;;  %v14335_v11 = vor.u32 %v16467_v5, %v14334_v39  ;;  %8405 = vmatpush.bf16.msrb.mxu3 %v15135_v8  ;;  %v11648_v39 = vld [vmem:[%s17535_s19 + $0x360] sm:$0xf0] }
 0x45f   : > { %v16531_v9 = vld [vmem:[%s17535_s19 + $0x1a5c] sm:$0xf0]  ;;  %v15855_v5 = vld [vmem:[%s17535_s19 + $0x544] sm:$0xf] }
 0x460   : > { %v14846_v27 = vld [vmem:[%s17535_s19 + $0x1c40] sm:$0xf]  ;;  %v14591_v13 = vor.u32 %v16531_v9, %v14590_v7  ;;  %8367 = vmatpush.bf16.msrb.mxu0 %v14335_v11  ;;  %v11904_v7 = vld [vmem:[%s17535_s19 + $0x560] sm:$0xf0] }
 0x461   : > { %v16595_v56 = vld [vmem:[%s17535_s19 + $0x1c5c] sm:$0xf0]  ;;  %v15919_v8 = vld [vmem:[%s17535_s19 + $0x744] sm:$0xf] }
 0x462   : > { %v15102_v33 = vld [vmem:[%s17535_s19 + $0x1e40] sm:$0xf]  ;;  %v14847_v20 = vor.u32 %v16595_v56, %v14846_v27  ;;  %8380 = vmatpush.bf16.msrb.mxu1 %v14591_v13  ;;  %v12160_v9 = vld [vmem:[%s17535_s19 + $0x760] sm:$0xf0]  ;;  %v11395_v27 = vor.u32 %v15727_v55, %v11392_v1  ;;  %v11651_v56 = vor.u32 %v15791_v57, %v11648_v39 }
 0x463   : > { %v16659_v63 = vld [vmem:[%s17535_s19 + $0x1e5c] sm:$0xf0]  ;;  %v11360_v11 = vld [vmem:[%s17535_s19 + $0x120] sm:$0xf0] }
 0x464   : > { %v14302_v59 = vld [vmem:[%s17535_s19 + $0x1800] sm:$0xf]  ;;  %v15103_v23 = vor.u32 %v16659_v63, %v15102_v33  ;;  %8393 = vmatpush.bf16.msrb.mxu2 %v14847_v20  ;;  %v11907_v33 = vor.u32 %v15855_v5, %v11904_v7  ;;  %v15719_v63 = vld [vmem:[%s17535_s19 + $0x104] sm:$0xf] }
 0x465   : > { %v16459_v12 = vld [vmem:[%s17535_s19 + $0x181c] sm:$0xf0]  ;;  %v11616_v13 = vld [vmem:[%s17535_s19 + $0x320] sm:$0xf0] }
 0x466   : > { %v14558_v15 = vld [vmem:[%s17535_s19 + $0x1a00] sm:$0xf]  ;;  %v14303_v17 = vor.u32 %v16459_v12, %v14302_v59  ;;  %8406 = vmatpush.bf16.msrb.mxu3 %v15103_v23  ;;  %v15783_v59 = vld [vmem:[%s17535_s19 + $0x304] sm:$0xf]  ;;  %v12163_v12 = vor.u32 %v15919_v8, %v12160_v9  ;;  %v11363_v23 = vor.u32 %v15719_v63, %v11360_v11 }
 0x467   : > { %v16523_v18 = vld [vmem:[%s17535_s19 + $0x1a1c] sm:$0xf0]  ;;  %v15847_v20 = vld [vmem:[%s17535_s19 + $0x504] sm:$0xf] }
 0x468   : > { %v14814_v16 = vld [vmem:[%s17535_s19 + $0x1c00] sm:$0xf]  ;;  %v14559_v35 = vor.u32 %v16523_v18, %v14558_v15  ;;  %8368 = vmatpush.bf16.msrb.mxu0 %v14303_v17  ;;  %v11872_v15 = vld [vmem:[%s17535_s19 + $0x520] sm:$0xf0] }
 0x469   : > { %v16587_v25 = vld [vmem:[%s17535_s19 + $0x1c1c] sm:$0xf0]  ;;  %v15911_v18 = vld [vmem:[%s17535_s19 + $0x704] sm:$0xf] }
 0x46a   : > { %v15070_v29 = vld [vmem:[%s17535_s19 + $0x1e00] sm:$0xf]  ;;  %v14815_v2 = vor.u32 %v16587_v25, %v14814_v16  ;;  %8381 = vmatpush.bf16.msrb.mxu1 %v14559_v35  ;;  %v12128_v16 = vld [vmem:[%s17535_s19 + $0x720] sm:$0xf0]  ;;  %v11619_v25 = vor.u32 %v15783_v59, %v11616_v13 }
 0x46b   : > { %v16651_v30 = vld [vmem:[%s17535_s19 + $0x1e1c] sm:$0xf0]  ;;  %v12131_v32 = vor.u32 %v15911_v18, %v12128_v16  ;;  %v11584_v17 = vld [vmem:[%s17535_s19 + $0x2e0] sm:$0xf0] }
 0x46c   : > { %v15071_v43 = vor.u32 %v16651_v30, %v15070_v29  ;;  %8394 = vmatpush.bf16.msrb.mxu2 %v14815_v2  ;;  %v3065_v40 = vld [vmem:[#allocation1 + $0x24] sm:$0xff]  ;;  %8413 = vmatpush.bf16.msra.mxu0 %v11459_v24  ;;  %v3066_v52 = vld [vmem:[#allocation1 + $0x2d] sm:$0xff]  ;;  %v11875_v29 = vor.u32 %v15847_v20, %v11872_v15  ;;  %v11587_v38 = vor.u32 %v15775_v31, %v11584_v17 }
 0x46d   : > { %8369 = vmatmul.bf16.vlgmr.msrb.gmra.mxu0 %v3065_v40  ;;  %8382 = vmatmul.bf16.vlgmr.msrb.gmra.mxu1 %v3066_v52  ;;  %v15711_v30 = vld [vmem:[%s17535_s19 + $0xc4] sm:$0xf] }
 0x46e   : > { %8407 = vmatpush.bf16.msrb.mxu3 %v15071_v43  ;;  %8426 = vmatpush.bf16.msra.mxu1 %v11715_v10  ;;  %v11840_v21 = vld [vmem:[%s17535_s19 + $0x4e0] sm:$0xf0]  ;;  %v11331_v2 = vor.u32 %v15711_v30, %v11328_v28 }
 0x46f   : > { %8395 = vmatmul.bf16.vlgmr.msrb.gmra.mxu2 %v3067_v22  ;;  %v15903_v34 = vld [vmem:[%s17535_s19 + $0x6c4] sm:$0xf]  ;;  %v11843_v6 = vor.u32 %v15839_v14, %v11840_v21 }
 0x470   : > { %8439 = vmatpush.bf16.msra.mxu2 %v11971_v54  ;;  %8414 = vmatpush.bf16.msra.mxu0 %v11427_v53  ;;  %v12096_v35 = vld [vmem:[%s17535_s19 + $0x6e0] sm:$0xf0] }
 0x471   : > { %8408 = vmatmul.bf16.vlgmr.msrb.gmra.mxu3 %v3068_v26  ;;  %v15703_v43 = vld [vmem:[%s17535_s19 + $0x84] sm:$0xf]  ;;  %v12099_v54 = vor.u32 %v15903_v34, %v12096_v35 }
 0x472   : > { %8452 = vmatpush.bf16.msra.mxu3 %v12227_v47  ;;  %8427 = vmatpush.bf16.msra.mxu1 %v11683_v60  ;;  %v11296_v24 = vld [vmem:[%s17535_s19 + $0xa0] sm:$0xf0] }
 0x473   : > { %v15767_v10 = vld [vmem:[%s17535_s19 + $0x284] sm:$0xf]  ;;  %v11299_v37 = vor.u32 %v15703_v43, %v11296_v24 }
 0x474   : > { %8440 = vmatpush.bf16.msra.mxu2 %v11939_v51  ;;  %8415 = vmatpush.bf16.msra.mxu0 %v11395_v27  ;;  %v11552_v45 = vld [vmem:[%s17535_s19 + $0x2a0] sm:$0xf0] }
 0x475   : > { %v15831_v46 = vld [vmem:[%s17535_s19 + $0x484] sm:$0xf]  ;;  %v11555_v58 = vor.u32 %v15767_v10, %v11552_v45 }
 0x476   : > { %8453 = vmatpush.bf16.msra.mxu3 %v12195_v3  ;;  %8428 = vmatpush.bf16.msra.mxu1 %v11651_v56  ;;  %v11808_v42 = vld [vmem:[%s17535_s19 + $0x4a0] sm:$0xf0] }
 0x477   : > { %v15895_v47 = vld [vmem:[%s17535_s19 + $0x684] sm:$0xf]  ;;  %v11811_v40 = vor.u32 %v15831_v46, %v11808_v42 }
 0x478   : > { %8441 = vmatpush.bf16.msra.mxu2 %v11907_v33  ;;  %8416 = vmatpush.bf16.msra.mxu0 %v11363_v23  ;;  %v12064_v36 = vld [vmem:[%s17535_s19 + $0x6a0] sm:$0xf0] }
 0x479   : > { %v15695_v48 = vld [vmem:[%s17535_s19 + $0x44] sm:$0xf]  ;;  %v12067_v52 = vor.u32 %v15895_v47, %v12064_v36 }
 0x47a   : > { %8454 = vmatpush.bf16.msra.mxu3 %v12163_v12  ;;  %8429 = vmatpush.bf16.msra.mxu1 %v11619_v25  ;;  %v11264_v19 = vld [vmem:[%s17535_s19 + $0x60] sm:$0xf0] }
 0x47b   : > { %v15759_v22 = vld [vmem:[%s17535_s19 + $0x244] sm:$0xf]  ;;  %v11267_v1 = vor.u32 %v15695_v48, %v11264_v19 }
 0x47c   : > { %8442 = vmatpush.bf16.msra.mxu2 %v11875_v29  ;;  %8417 = vmatpush.bf16.msra.mxu0 %v11331_v2  ;;  %v11520_v26 = vld [vmem:[%s17535_s19 + $0x260] sm:$0xf0] }
 0x47d   : > { %v15823_v53 = vld [vmem:[%s17535_s19 + $0x444] sm:$0xf]  ;;  %v11523_v39 = vor.u32 %v15759_v22, %v11520_v26 }
 0x47e   : > { %8455 = vmatpush.bf16.msra.mxu3 %v12131_v32  ;;  %8430 = vmatpush.bf16.msra.mxu1 %v11587_v38  ;;  %v11776_v60 = vld [vmem:[%s17535_s19 + $0x460] sm:$0xf0] }
 0x47f   : > { %v15887_v51 = vld [vmem:[%s17535_s19 + $0x644] sm:$0xf]  ;;  %v11779_v5 = vor.u32 %v15823_v53, %v11776_v60 }
 0x480   : > { %8443 = vmatpush.bf16.msra.mxu2 %v11843_v6  ;;  %v12032_v55 = vld [vmem:[%s17535_s19 + $0x660] sm:$0xf0]  ;;  %8418 = vmatpush.bf16.msra.mxu0 %v11299_v37 }
 0x481   : > { %v15687_v57 = vld [vmem:[%s17535_s19 + $0x4] sm:$0xf]  ;;  %v12035_v27 = vor.u32 %v15887_v51, %v12032_v55 }
 0x482   : > { %8456 = vmatpush.bf16.msra.mxu3 %v12099_v54  ;;  %v11232_v3 = vld [vmem:[%s17535_s19 + $0x20] sm:$0xf0]  ;;  %8431 = vmatpush.bf16.msra.mxu1 %v11555_v58 }
 0x483   : > { %v15751_v7 = vld [vmem:[%s17535_s19 + $0x204] sm:$0xf]  ;;  %v11235_v13 = vor.u32 %v15687_v57, %v11232_v3 }
 0x484   : > { %8444 = vmatpush.bf16.msra.mxu2 %v11811_v40  ;;  %v11488_v8 = vld [vmem:[%s17535_s19 + $0x220] sm:$0xf0]  ;;  %8419 = vmatpush.bf16.msra.mxu0 %v11267_v1 }
 0x485   : > { %v15815_v9 = vld [vmem:[%s17535_s19 + $0x404] sm:$0xf]  ;;  %v11491_v16 = vor.u32 %v15751_v7, %v11488_v8 }
 0x486   : > { %8457 = vmatpush.bf16.msra.mxu3 %v12067_v52  ;;  %v11744_v56 = vld [vmem:[%s17535_s19 + $0x420] sm:$0xf0]  ;;  %8432 = vmatpush.bf16.msra.mxu1 %v11523_v39 }
 0x487   : > { %v15879_v33 = vld [vmem:[%s17535_s19 + $0x604] sm:$0xf]  ;;  %v11747_v23 = vor.u32 %v15815_v9, %v11744_v56 }
 0x488   : > { %v12000_v63 = vld [vmem:[%s17535_s19 + $0x620] sm:$0xf0]  ;;  %8445 = vmatpush.bf16.msra.mxu2 %v11779_v5  ;;  %8420 = vmatpush.bf16.msra.mxu0 %v11235_v13 }
 0x489   : > { %v15999_v11 = vld [vmem:[%s17535_s19 + $0x9c4] sm:$0xf]  ;;  %v12003_v30 = vor.u32 %v15879_v33, %v12000_v63 }
 0x48a   : > { %v12480_v59 = vld [vmem:[%s17535_s19 + $0x9e0] sm:$0xf0]  ;;  %8458 = vmatpush.bf16.msra.mxu3 %v12035_v27  ;;  %8433 = vmatpush.bf16.msra.mxu1 %v11491_v16 }
 0x48b   : > { %v16063_v12 = vld [vmem:[%s17535_s19 + $0xbc4] sm:$0xf]  ;;  %v12483_v28 = vor.u32 %v15999_v11, %v12480_v59  ;;  %8421 = vmatmul.bf16.vlgmr.msra.gmra.mxu0 %v18003_v41 }
 0x48c   : > { %v12736_v20 = vld [vmem:[%s17535_s19 + $0xbe0] sm:$0xf0]  ;;  %8446 = vmatpush.bf16.msra.mxu2 %v11747_v23 }
 0x48d   : > { %v16127_v15 = vld [vmem:[%s17535_s19 + $0xdc4] sm:$0xf]  ;;  %v12739_v31 = vor.u32 %v16063_v12, %v12736_v20  ;;  %8465 = vmatpush.bf16.msrb.mxu0 %v12483_v28  ;;  %8434 = vmatmul.bf16.vlgmr.msra.gmra.mxu1 %v18010_v50 }
 0x48e   : > { %v12992_v18 = vld [vmem:[%s17535_s19 + $0xde0] sm:$0xf0]  ;;  %8459 = vmatpush.bf16.msra.mxu3 %v12003_v30 }
 0x48f   : > { %v16191_v25 = vld [vmem:[%s17535_s19 + $0xfc4] sm:$0xf]  ;;  %v12995_v32 = vor.u32 %v16127_v15, %v12992_v18  ;;  %8478 = vmatpush.bf16.msrb.mxu1 %v12739_v31  ;;  %8447 = vmatmul.bf16.vlgmr.msra.gmra.mxu2 %v18001_v4 }
 0x490   : > { %v13248_v29 = vld [vmem:[%s17535_s19 + $0xfe0] sm:$0xf0] }
 0x491   : > { %v15991_v17 = vld [vmem:[%s17535_s19 + $0x984] sm:$0xf]  ;;  %v13251_v34 = vor.u32 %v16191_v25, %v13248_v29  ;;  %8491 = vmatpush.bf16.msrb.mxu2 %v12995_v32  ;;  %8460 = vmatmul.bf16.vlgmr.msra.gmra.mxu3 %v18005_v61 }
 0x492   : > { %v12448_v14 = vld [vmem:[%s17535_s19 + $0x9a0] sm:$0xf0] }
 0x493   : > { %v16055_v21 = vld [vmem:[%s17535_s19 + $0xb84] sm:$0xf]  ;;  %v12451_v24 = vor.u32 %v15991_v17, %v12448_v14  ;;  %8504 = vmatpush.bf16.msrb.mxu3 %v13251_v34 }
 0x494   : > { %v12704_v35 = vld [vmem:[%s17535_s19 + $0xba0] sm:$0xf0] }
 0x495   : > { %v16119_v2 = vld [vmem:[%s17535_s19 + $0xd84] sm:$0xf]  ;;  %v12707_v10 = vor.u32 %v16055_v21, %v12704_v35  ;;  %8466 = vmatpush.bf16.msrb.mxu0 %v12451_v24  ;;  %v8214_v35 = vpop.f32.mrf.mxu0 }
 0x496   : > { %v12960_v38 = vld [vmem:[%s17535_s19 + $0xda0] sm:$0xf0] }
 0x497   : > { %v16183_v6 = vld [vmem:[%s17535_s19 + $0xf84] sm:$0xf]  ;;  %v12963_v54 = vor.u32 %v16119_v2, %v12960_v38  ;;  %8479 = vmatpush.bf16.msrb.mxu1 %v12707_v10 }
 0x498   : > { %v13216_v43 = vld [vmem:[%s17535_s19 + $0xfa0] sm:$0xf0] }
 0x499   : > { %v15983_v45 = vld [vmem:[%s17535_s19 + $0x944] sm:$0xf]  ;;  %v13219_v47 = vor.u32 %v16183_v6, %v13216_v43  ;;  %8492 = vmatpush.bf16.msrb.mxu2 %v12963_v54  ;;  %v8227_v54 = vpop.f32.mrf.mxu1 }
 0x49a   : > { %v12416_v46 = vld [vmem:[%s17535_s19 + $0x960] sm:$0xf0] }
 0x49b   : > { %v16047_v42 = vld [vmem:[%s17535_s19 + $0xb44] sm:$0xf]  ;;  %v12419_v19 = vor.u32 %v15983_v45, %v12416_v46  ;;  %8505 = vmatpush.bf16.msrb.mxu3 %v13219_v47 }
 0x49c   : > { %v12672_v36 = vld [vmem:[%s17535_s19 + $0xb60] sm:$0xf0] }
 0x49d   : > { %v16111_v37 = vld [vmem:[%s17535_s19 + $0xd44] sm:$0xf]  ;;  %v12675_v22 = vor.u32 %v16047_v42, %v12672_v36  ;;  %8467 = vmatpush.bf16.msrb.mxu0 %v12419_v19 }
 0x49e   : > { %v12928_v58 = vld [vmem:[%s17535_s19 + $0xd60] sm:$0xf0] }
 0x49f   : > { %v16175_v40 = vld [vmem:[%s17535_s19 + $0xf44] sm:$0xf]  ;;  %v12931_v52 = vor.u32 %v16111_v37, %v12928_v58  ;;  %8480 = vmatpush.bf16.msrb.mxu1 %v12675_v22 }
 0x4a0   : > { %v13184_v48 = vld [vmem:[%s17535_s19 + $0xf60] sm:$0xf0] }
 0x4a1   : > { %v15975_v26 = vld [vmem:[%s17535_s19 + $0x904] sm:$0xf]  ;;  %v13187_v51 = vor.u32 %v16175_v40, %v13184_v48  ;;  %8493 = vmatpush.bf16.msrb.mxu2 %v12931_v52 }
 0x4a2   : > { %v12384_v53 = vld [vmem:[%s17535_s19 + $0x920] sm:$0xf0] }
 0x4a3   : > { %v16039_v60 = vld [vmem:[%s17535_s19 + $0xb04] sm:$0xf]  ;;  %v12387_v5 = vor.u32 %v15975_v26, %v12384_v53  ;;  %8506 = vmatpush.bf16.msrb.mxu3 %v13187_v51  ;;  %v8240_v51 = vpop.f32.mrf.mxu2 }
 0x4a4   : > { %v12640_v55 = vld [vmem:[%s17535_s19 + $0xb20] sm:$0xf0] }
 0x4a5   : > { %v16103_v1 = vld [vmem:[%s17535_s19 + $0xd04] sm:$0xf]  ;;  %v12643_v8 = vor.u32 %v16039_v60, %v12640_v55  ;;  %8468 = vmatpush.bf16.msrb.mxu0 %v12387_v5  ;;  %v8253_v5 = vpop.f32.mrf.mxu3 }
 0x4a6   : > { %v12896_v57 = vld [vmem:[%s17535_s19 + $0xd20] sm:$0xf0] }
 0x4a7   : > { %v16167_v3 = vld [vmem:[%s17535_s19 + $0xf04] sm:$0xf]  ;;  %v12899_v9 = vor.u32 %v16103_v1, %v12896_v57  ;;  %8481 = vmatpush.bf16.msrb.mxu1 %v12643_v8 }
 0x4a8   : > { %v13152_v39 = vld [vmem:[%s17535_s19 + $0xf20] sm:$0xf0] }
 0x4a9   : > { %v15967_v7 = vld [vmem:[%s17535_s19 + $0x8c4] sm:$0xf]  ;;  %v13155_v63 = vor.u32 %v16167_v3, %v13152_v39  ;;  %8494 = vmatpush.bf16.msrb.mxu2 %v12899_v9 }
 0x4aa   : > { %v12352_v27 = vld [vmem:[%s17535_s19 + $0x8e0] sm:$0xf0] }
 0x4ab   : > { %v16031_v56 = vld [vmem:[%s17535_s19 + $0xac4] sm:$0xf]  ;;  %v12355_v15 = vor.u32 %v15967_v7, %v12352_v27  ;;  %8507 = vmatpush.bf16.msrb.mxu3 %v13155_v63 }
 0x4ac   : > { %v12608_v33 = vld [vmem:[%s17535_s19 + $0xae0] sm:$0xf0] }
 0x4ad   : > { %v16095_v11 = vld [vmem:[%s17535_s19 + $0xcc4] sm:$0xf]  ;;  %v12611_v16 = vor.u32 %v16031_v56, %v12608_v33  ;;  %8469 = vmatpush.bf16.msrb.mxu0 %v12355_v15 }
 0x4ae   : > { %v12864_v59 = vld [vmem:[%s17535_s19 + $0xce0] sm:$0xf0] }
 0x4af   : > { %v3031_v12 = vld [vmem:[%s17550_s16] sm:$0xff]  ;;  %v12867_v23 = vor.u32 %v16095_v11, %v12864_v59  ;;  %8482 = vmatpush.bf16.msrb.mxu1 %v12611_v16  ;;  %v8216_v59 = vpop.f32.mrf.mxu0 }
 0x4b0   : > { %v16159_v13 = vld [vmem:[%s17535_s19 + $0xec4] sm:$0xf]  ;;  %v3033_v30 = vperm.slane %v3031_v12, 0 }
 0x4b1   : > { %v13120_v20 = vld [vmem:[%s17535_s19 + $0xee0] sm:$0xf0]  ;;  %8495 = vmatpush.bf16.msrb.mxu2 %v12867_v23 }
 0x4b2   : > { %v15959_v18 = vld [vmem:[%s17535_s19 + $0x884] sm:$0xf]  ;;  %v13123_v28 = vor.u32 %v16159_v13, %v13120_v20  ;;  %v8215_v10 = vadd.f32 %v8214_v35, %v3033_v30 }
 0x4b3   : > { %v12320_v25 = vld [vmem:[%s17535_s19 + $0x8a0] sm:$0xf0] }
 0x4b4   : > { %v16023_v29 = vld [vmem:[%s17535_s19 + $0xa84] sm:$0xf]  ;;  %v12323_v34 = vor.u32 %v15959_v18, %v12320_v25  ;;  %8508 = vmatpush.bf16.msrb.mxu3 %v13123_v28  ;;  %v8228_v58 = vadd.f32 %v8227_v54, %v8215_v10  ;;  %v8229_v18 = vpop.f32.mrf.mxu1 }
 0x4b5   : > { %v12576_v31 = vld [vmem:[%s17535_s19 + $0xaa0] sm:$0xf0] }
 0x4b6   : > { %v16087_v32 = vld [vmem:[%s17535_s19 + $0xc84] sm:$0xf]  ;;  %v12579_v2 = vor.u32 %v16023_v29, %v12576_v31  ;;  %8470 = vmatpush.bf16.msrb.mxu0 %v12323_v34  ;;  %v8241_v39 = vadd.f32 %v8240_v51, %v8228_v58 }
 0x4b7   : > { %v12832_v17 = vld [vmem:[%s17535_s19 + $0xca0] sm:$0xf0] }
 0x4b8   : > { %v16151_v14 = vld [vmem:[%s17535_s19 + $0xe84] sm:$0xf]  ;;  %v12835_v38 = vor.u32 %v16087_v32, %v12832_v17  ;;  %8483 = vmatpush.bf16.msrb.mxu1 %v12579_v2  ;;  %v18320_v11 = vadd.f32 %v8253_v5, %v8241_v39  ;;  %v8242_v2 = vpop.f32.mrf.mxu2  ;;  %v8266_v39 = vpop.f32.mrf.mxu0 }
 0x4b9   : > { %v13088_v21 = vld [vmem:[%s17535_s19 + $0xea0] sm:$0xf0] }
 0x4ba   : > { %v15951_v6 = vld [vmem:[%s17535_s19 + $0x844] sm:$0xf]  ;;  %v13091_v45 = vor.u32 %v16151_v14, %v13088_v21  ;;  %8496 = vmatpush.bf16.msrb.mxu2 %v12835_v38 }
 0x4bb   : > { %v12288_v43 = vld [vmem:[%s17535_s19 + $0x860] sm:$0xf0] }
 0x4bc   : > { %v16015_v24 = vld [vmem:[%s17535_s19 + $0xa44] sm:$0xf]  ;;  %v12291_v40 = vor.u32 %v15951_v6, %v12288_v43  ;;  %8509 = vmatpush.bf16.msrb.mxu3 %v13091_v45  ;;  %v8255_v6 = vpop.f32.mrf.mxu3 }
 0x4bd   : > { %v12544_v46 = vld [vmem:[%s17535_s19 + $0xa60] sm:$0xf0] }
 0x4be   : > { %v16079_v42 = vld [vmem:[%s17535_s19 + $0xc44] sm:$0xf]  ;;  %v12547_v22 = vor.u32 %v16015_v24, %v12544_v46  ;;  %8471 = vmatpush.bf16.msrb.mxu0 %v12291_v40 }
 0x4bf   : > { %v12800_v47 = vld [vmem:[%s17535_s19 + $0xc60] sm:$0xf0] }
 0x4c0   : > { %v16143_v36 = vld [vmem:[%s17535_s19 + $0xe44] sm:$0xf]  ;;  %v12803_v52 = vor.u32 %v16079_v42, %v12800_v47  ;;  %8484 = vmatpush.bf16.msrb.mxu1 %v12547_v22 }
 0x4c1   : > { %v13056_v37 = vld [vmem:[%s17535_s19 + $0xe60] sm:$0xf0] }
 0x4c2   : > { %v15943_v48 = vld [vmem:[%s17535_s19 + $0x804] sm:$0xf]  ;;  %v13059_v55 = vor.u32 %v16143_v36, %v13056_v37  ;;  %8497 = vmatpush.bf16.msrb.mxu2 %v12803_v52 }
 0x4c3   : > { %v12256_v19 = vld [vmem:[%s17535_s19 + $0x820] sm:$0xf0] }
 0x4c4   : > { %v16007_v26 = vld [vmem:[%s17535_s19 + $0xa04] sm:$0xf]  ;;  %v12259_v27 = vor.u32 %v15943_v48, %v12256_v19  ;;  %8510 = vmatpush.bf16.msrb.mxu3 %v13059_v55 }
 0x4c5   : > { %v12512_v53 = vld [vmem:[%s17535_s19 + $0xa20] sm:$0xf0] }
 0x4c6   : > { %v16071_v60 = vld [vmem:[%s17535_s19 + $0xc04] sm:$0xf]  ;;  %v12515_v12 = vor.u32 %v16007_v26, %v12512_v53  ;;  %8472 = vmatpush.bf16.msrb.mxu0 %v12259_v27 }
 0x4c7   : > { %v12768_v1 = vld [vmem:[%s17535_s19 + $0xc20] sm:$0xf0] }
 0x4c8   : > { %v16135_v57 = vld [vmem:[%s17535_s19 + $0xe04] sm:$0xf]  ;;  %v12771_v13 = vor.u32 %v16071_v60, %v12768_v1  ;;  %8485 = vmatpush.bf16.msrb.mxu1 %v12515_v12 }
 0x4c9   : > { %v13024_v3 = vld [vmem:[%s17535_s19 + $0xe20] sm:$0xf0]  ;;  %8473 = vmatmul.bf16.vlgmr.msrb.gmra.mxu0 %v18041_v44 }
 0x4ca   : > { %v16255_v7 = vld [vmem:[%s17535_s19 + $0x11c4] sm:$0xf]  ;;  %v13027_v16 = vor.u32 %v16135_v57, %v13024_v3  ;;  %8498 = vmatpush.bf16.msrb.mxu2 %v12771_v13 }
 0x4cb   : > { %v13504_v8 = vld [vmem:[%s17535_s19 + $0x11e0] sm:$0xf0]  ;;  %8486 = vmatmul.bf16.vlgmr.msrb.gmra.mxu1 %v18045_v49 }
 0x4cc   : > { %v16319_v9 = vld [vmem:[%s17535_s19 + $0x13c4] sm:$0xf]  ;;  %v13507_v23 = vor.u32 %v16255_v7, %v13504_v8  ;;  %8511 = vmatpush.bf16.msrb.mxu3 %v13027_v16 }
 0x4cd   : > { %v13760_v56 = vld [vmem:[%s17535_s19 + $0x13e0] sm:$0xf0]  ;;  %8499 = vmatmul.bf16.vlgmr.msrb.gmra.mxu2 %v18039_v62 }
 0x4ce   : > { %v16383_v33 = vld [vmem:[%s17535_s19 + $0x15c4] sm:$0xf]  ;;  %v13763_v25 = vor.u32 %v16319_v9, %v13760_v56  ;;  %8517 = vmatpush.bf16.msra.mxu0 %v13507_v23  ;;  %v8267_v56 = vadd.f32 %v8266_v39, %v18320_v11 }
 0x4cf   : > { %v14016_v63 = vld [vmem:[%s17535_s19 + $0x15e0] sm:$0xf0]  ;;  %8512 = vmatmul.bf16.vlgmr.msrb.gmra.mxu3 %v18043_v0 }
 0x4d0   : > { %v16447_v20 = vld [vmem:[%s17535_s19 + $0x17c4] sm:$0xf]  ;;  %v14019_v29 = vor.u32 %v16383_v33, %v14016_v63  ;;  %8530 = vmatpush.bf16.msra.mxu1 %v13763_v25  ;;  %v8279_v33 = vpop.f32.mrf.mxu1 }
 0x4d1   : > { %v14272_v15 = vld [vmem:[%s17535_s19 + $0x17e0] sm:$0xf0]  ;;  %v8280_v18 = vadd.f32 %v8279_v33, %v8267_v56 }
 0x4d2   : > { %v16247_v30 = vld [vmem:[%s17535_s19 + $0x1184] sm:$0xf]  ;;  %v14275_v32 = vor.u32 %v16447_v20, %v14272_v15  ;;  %8543 = vmatpush.bf16.msra.mxu2 %v14019_v29 }
 0x4d3   : > { %v13472_v28 = vld [vmem:[%s17535_s19 + $0x11a0] sm:$0xf0] }
 0x4d4   : > { %v16311_v31 = vld [vmem:[%s17535_s19 + $0x1384] sm:$0xf]  ;;  %v13475_v38 = vor.u32 %v16247_v30, %v13472_v28  ;;  %8556 = vmatpush.bf16.msra.mxu3 %v14275_v32  ;;  %v8292_v28 = vpop.f32.mrf.mxu2 }
 0x4d5   : > { %v13728_v17 = vld [vmem:[%s17535_s19 + $0x13a0] sm:$0xf0] }
 0x4d6   : > { %v16375_v14 = vld [vmem:[%s17535_s19 + $0x1584] sm:$0xf]  ;;  %v13731_v43 = vor.u32 %v16311_v31, %v13728_v17  ;;  %8518 = vmatpush.bf16.msra.mxu0 %v13475_v38 }
 0x4d7   : > { %v13984_v21 = vld [vmem:[%s17535_s19 + $0x15a0] sm:$0xf0] }
 0x4d8   : > { %v16439_v34 = vld [vmem:[%s17535_s19 + $0x1784] sm:$0xf]  ;;  %v13987_v24 = vor.u32 %v16375_v14, %v13984_v21  ;;  %8531 = vmatpush.bf16.msra.mxu1 %v13731_v43  ;;  %v8293_v21 = vadd.f32 %v8292_v28, %v8280_v18  ;;  %v8268_v43 = vpop.f32.mrf.mxu0 }
 0x4d9   : > { %v14240_v35 = vld [vmem:[%s17535_s19 + $0x17a0] sm:$0xf0] }
 0x4da   : > { %v16239_v10 = vld [vmem:[%s17535_s19 + $0x1144] sm:$0xf]  ;;  %v14243_v46 = vor.u32 %v16439_v34, %v14240_v35  ;;  %8544 = vmatpush.bf16.msra.mxu2 %v13987_v24  ;;  %v8305_v34 = vpop.f32.mrf.mxu3 }
 0x4db   : > { %v13440_v54 = vld [vmem:[%s17535_s19 + $0x1160] sm:$0xf0]  ;;  %v18369_v6 = vadd.f32 %v8305_v34, %v8293_v21 }
 0x4dc   : > { %v16303_v45 = vld [vmem:[%s17535_s19 + $0x1344] sm:$0xf]  ;;  %v13443_v40 = vor.u32 %v16239_v10, %v13440_v54  ;;  %8557 = vmatpush.bf16.msra.mxu3 %v14243_v46 }
 0x4dd   : > { %v13696_v42 = vld [vmem:[%s17535_s19 + $0x1360] sm:$0xf0] }
 0x4de   : > { %v16367_v47 = vld [vmem:[%s17535_s19 + $0x1544] sm:$0xf]  ;;  %v13699_v48 = vor.u32 %v16303_v45, %v13696_v42  ;;  %8519 = vmatpush.bf16.msra.mxu0 %v13443_v40  ;;  %v8281_v42 = vpop.f32.mrf.mxu1 }
 0x4df   : > { %v13952_v36 = vld [vmem:[%s17535_s19 + $0x1560] sm:$0xf0] }
 0x4e0   : > { %v16431_v37 = vld [vmem:[%s17535_s19 + $0x1744] sm:$0xf]  ;;  %v13955_v19 = vor.u32 %v16367_v47, %v13952_v36  ;;  %8532 = vmatpush.bf16.msra.mxu1 %v13699_v48 }
 0x4e1   : > { %v14208_v58 = vld [vmem:[%s17535_s19 + $0x1760] sm:$0xf0] }
 0x4e2   : > { %v16231_v22 = vld [vmem:[%s17535_s19 + $0x1104] sm:$0xf]  ;;  %v14211_v53 = vor.u32 %v16431_v37, %v14208_v58  ;;  %8545 = vmatpush.bf16.msra.mxu2 %v13955_v19 }
 0x4e3   : > { %v13408_v52 = vld [vmem:[%s17535_s19 + $0x1120] sm:$0xf0] }
 0x4e4   : > { %v16295_v26 = vld [vmem:[%s17535_s19 + $0x1304] sm:$0xf]  ;;  %v13411_v3 = vor.u32 %v16231_v22, %v13408_v52  ;;  %8558 = vmatpush.bf16.msra.mxu3 %v14211_v53 }
 0x4e5   : > { %v13664_v60 = vld [vmem:[%s17535_s19 + $0x1320] sm:$0xf0] }
 0x4e6   : > { %v16359_v51 = vld [vmem:[%s17535_s19 + $0x1504] sm:$0xf]  ;;  %v13667_v5 = vor.u32 %v16295_v26, %v13664_v60  ;;  %8520 = vmatpush.bf16.msra.mxu0 %v13411_v3 }
 0x4e7   : > { %v13920_v55 = vld [vmem:[%s17535_s19 + $0x1520] sm:$0xf0] }
 0x4e8   : > { %v16423_v1 = vld [vmem:[%s17535_s19 + $0x1704] sm:$0xf]  ;;  %v13923_v7 = vor.u32 %v16359_v51, %v13920_v55  ;;  %8533 = vmatpush.bf16.msra.mxu1 %v13667_v5 }
 0x4e9   : > { %v14176_v57 = vld [vmem:[%s17535_s19 + $0x1720] sm:$0xf0] }
 0x4ea   : > { %v16223_v8 = vld [vmem:[%s17535_s19 + $0x10c4] sm:$0xf]  ;;  %v14179_v63 = vor.u32 %v16423_v1, %v14176_v57  ;;  %8546 = vmatpush.bf16.msra.mxu2 %v13923_v7  ;;  %v8294_v1 = vpop.f32.mrf.mxu2  ;;  %v8307_v7 = vpop.f32.mrf.mxu3 }
 0x4eb   : > { %v13376_v9 = vld [vmem:[%s17535_s19 + $0x10e0] sm:$0xf0] }
 0x4ec   : > { %v16287_v27 = vld [vmem:[%s17535_s19 + $0x12c4] sm:$0xf]  ;;  %v13379_v16 = vor.u32 %v16223_v8, %v13376_v9  ;;  %8559 = vmatpush.bf16.msra.mxu3 %v14179_v63 }
 0x4ed   : > { %v13632_v59 = vld [vmem:[%s17535_s19 + $0x12e0] sm:$0xf0] }
 0x4ee   : > { %v16351_v12 = vld [vmem:[%s17535_s19 + $0x14c4] sm:$0xf]  ;;  %v13635_v11 = vor.u32 %v16287_v27, %v13632_v59  ;;  %8521 = vmatpush.bf16.msra.mxu0 %v13379_v16 }
 0x4ef   : > { %v13888_v13 = vld [vmem:[%s17535_s19 + $0x14e0] sm:$0xf0] }
 0x4f0   : > { %v16415_v20 = vld [vmem:[%s17535_s19 + $0x16c4] sm:$0xf]  ;;  %v13891_v23 = vor.u32 %v16351_v12, %v13888_v13  ;;  %8534 = vmatpush.bf16.msra.mxu1 %v13635_v11 }
 0x4f1   : > { %v14144_v15 = vld [vmem:[%s17535_s19 + $0x16e0] sm:$0xf0] }
 0x4f2   : > { %v16215_v25 = vld [vmem:[%s17535_s19 + $0x1084] sm:$0xf]  ;;  %v14147_v31 = vor.u32 %v16415_v20, %v14144_v15  ;;  %8547 = vmatpush.bf16.msra.mxu2 %v13891_v23 }
 0x4f3   : > { %v13344_v29 = vld [vmem:[%s17535_s19 + $0x10a0] sm:$0xf0] }
 0x4f4   : > { %v16279_v30 = vld [vmem:[%s17535_s19 + $0x1284] sm:$0xf]  ;;  %v13347_v38 = vor.u32 %v16215_v25, %v13344_v29  ;;  %8560 = vmatpush.bf16.msra.mxu3 %v14147_v31 }
 0x4f5   : > { %v13600_v32 = vld [vmem:[%s17535_s19 + $0x12a0] sm:$0xf0] }
 0x4f6   : > { %v16343_v17 = vld [vmem:[%s17535_s19 + $0x1484] sm:$0xf]  ;;  %v13603_v24 = vor.u32 %v16279_v30, %v13600_v32  ;;  %8522 = vmatpush.bf16.msra.mxu0 %v13347_v38 }
 0x4f7   : > { %v13856_v14 = vld [vmem:[%s17535_s19 + $0x14a0] sm:$0xf0] }
 0x4f8   : > { %v16407_v35 = vld [vmem:[%s17535_s19 + $0x1684] sm:$0xf]  ;;  %v13859_v10 = vor.u32 %v16343_v17, %v13856_v14  ;;  %8535 = vmatpush.bf16.msra.mxu1 %v13603_v24 }
 0x4f9   : > { %v14112_v2 = vld [vmem:[%s17535_s19 + $0x16a0] sm:$0xf0] }
 0x4fa   : > { %v16207_v54 = vld [vmem:[%s17535_s19 + $0x1044] sm:$0xf]  ;;  %v14115_v47 = vor.u32 %v16407_v35, %v14112_v2  ;;  %8548 = vmatpush.bf16.msra.mxu2 %v13859_v10  ;;  %v16890_v10 = vld [vmem:[#allocation1] sm:$0xff] }
 0x4fb   : > { %v13312_v45 = vld [vmem:[%s17535_s19 + $0x1060] sm:$0xf0] }
 0x4fc   : > { %v16271_v46 = vld [vmem:[%s17535_s19 + $0x1244] sm:$0xf]  ;;  %v13315_v19 = vor.u32 %v16207_v54, %v13312_v45  ;;  %8561 = vmatpush.bf16.msra.mxu3 %v14115_v47  ;;  %v16891_v47 = vld [vmem:[#allocation1 + $0x12] sm:$0xff] }
 0x4fd   : > { %v13568_v36 = vld [vmem:[%s17535_s19 + $0x1260] sm:$0xf0] }
 0x4fe   : > { %v16335_v37 = vld [vmem:[%s17535_s19 + $0x1444] sm:$0xf]  ;;  %v13571_v26 = vor.u32 %v16271_v46, %v13568_v36  ;;  %8523 = vmatpush.bf16.msra.mxu0 %v13315_v19 }
 0x4ff   : > { %v13824_v58 = vld [vmem:[%s17535_s19 + $0x1460] sm:$0xf0] }
 0x500   : > { %v16399_v40 = vld [vmem:[%s17535_s19 + $0x1644] sm:$0xf]  ;;  %v13827_v53 = vor.u32 %v16335_v37, %v13824_v58  ;;  %8536 = vmatpush.bf16.msra.mxu1 %v13571_v26 }
 0x501   : > { %v14080_v48 = vld [vmem:[%s17535_s19 + $0x1660] sm:$0xf0] }
 0x502   : > { %v16199_v22 = vld [vmem:[%s17535_s19 + $0x1004] sm:$0xf]  ;;  %v14083_v57 = vor.u32 %v16399_v40, %v14080_v48  ;;  %8549 = vmatpush.bf16.msra.mxu2 %v13827_v53  ;;  %v16893_v40 = vld [vmem:[#allocation1 + $0x1b] sm:$0xff] }
 0x503   : > { %v13280_v52 = vld [vmem:[%s17535_s19 + $0x1020] sm:$0xf0] }
 0x504   : > { %v16263_v60 = vld [vmem:[%s17535_s19 + $0x1204] sm:$0xf]  ;;  %v13283_v56 = vor.u32 %v16199_v22, %v13280_v52  ;;  %8562 = vmatpush.bf16.msra.mxu3 %v14083_v57  ;;  %v8318_v57 = vpop.f32.mrf.mxu0 }
 0x505   : > { %v13536_v51 = vld [vmem:[%s17535_s19 + $0x1220] sm:$0xf0] }
 0x506   : > { %v16327_v55 = vld [vmem:[%s17535_s19 + $0x1404] sm:$0xf]  ;;  %v13539_v12 = vor.u32 %v16263_v60, %v13536_v51  ;;  %8524 = vmatpush.bf16.msra.mxu0 %v13283_v56 }
 0x507   : > { %v13792_v3 = vld [vmem:[%s17535_s19 + $0x1420] sm:$0xf0] }
 0x508   : > { %v16391_v39 = vld [vmem:[%s17535_s19 + $0x1604] sm:$0xf]  ;;  %v13795_v13 = vor.u32 %v16327_v55, %v13792_v3  ;;  %8537 = vmatpush.bf16.msra.mxu1 %v13539_v12 }
 0x509   : > { %v14048_v5 = vld [vmem:[%s17535_s19 + $0x1620] sm:$0xf0]  ;;  %8525 = vmatmul.bf16.vlgmr.msra.gmra.mxu0 %v16890_v10 }
 0x50a   : > { %v16511_v8 = vld [vmem:[%s17535_s19 + $0x19c4] sm:$0xf]  ;;  %v14051_v18 = vor.u32 %v16391_v39, %v14048_v5  ;;  %8550 = vmatpush.bf16.msra.mxu2 %v13795_v13  ;;  %v8319_v5 = vadd.f32 %v8318_v57, %v18369_v6 }
 0x50b   : > { %v14528_v9 = vld [vmem:[%s17535_s19 + $0x19e0] sm:$0xf0] }
 0x50c   : > { %v16575_v27 = vld [vmem:[%s17535_s19 + $0x1bc4] sm:$0xf]  ;;  %v14531_v16 = vor.u32 %v16511_v8, %v14528_v9  ;;  %8563 = vmatpush.bf16.msra.mxu3 %v14051_v18  ;;  %v8331_v8 = vpop.f32.mrf.mxu1 }
 0x50d   : > { %v14784_v33 = vld [vmem:[%s17535_s19 + $0x1be0] sm:$0xf0]  ;;  %8551 = vmatmul.bf16.vlgmr.msra.gmra.mxu2 %v16891_v47  ;;  %v8332_v12 = vadd.f32 %v8331_v8, %v8319_v5  ;;  %v11462_v8 = vld [vmem:[%s17535_s19 + $0x1c8] sm:$0xf] }
 0x50e   : > { %v16639_v63 = vld [vmem:[%s17535_s19 + $0x1dc4] sm:$0xf]  ;;  %v14787_v11 = vor.u32 %v16575_v27, %v14784_v33  ;;  %8569 = vmatpush.bf16.msrb.mxu0 %v14531_v16 }
 0x50f   : > { %v15040_v59 = vld [vmem:[%s17535_s19 + $0x1de0] sm:$0xf0]  ;;  %8564 = vmatmul.bf16.vlgmr.msra.gmra.mxu3 %v16893_v40 }
 0x510   : > { %v16703_v20 = vld [vmem:[%s17535_s19 + $0x1fc4] sm:$0xf]  ;;  %v15043_v23 = vor.u32 %v16639_v63, %v15040_v59  ;;  %8582 = vmatpush.bf16.msrb.mxu1 %v14787_v11 }
 0x511   : > { %v15296_v15 = vld [vmem:[%s17535_s19 + $0x1fe0] sm:$0xf0] }
 0x512   : > { %v16503_v25 = vld [vmem:[%s17535_s19 + $0x1984] sm:$0xf]  ;;  %v15299_v28 = vor.u32 %v16703_v20, %v15296_v15  ;;  %8595 = vmatpush.bf16.msrb.mxu2 %v15043_v23 }
 0x513   : > { %v14496_v29 = vld [vmem:[%s17535_s19 + $0x19a0] sm:$0xf0] }
 0x514   : > { %v16567_v30 = vld [vmem:[%s17535_s19 + $0x1b84] sm:$0xf]  ;;  %v14499_v34 = vor.u32 %v16503_v25, %v14496_v29  ;;  %8608 = vmatpush.bf16.msrb.mxu3 %v15299_v28 }
 0x515   : > { %v14752_v31 = vld [vmem:[%s17535_s19 + $0x1ba0] sm:$0xf0] }
 0x516   : > { %v16631_v32 = vld [vmem:[%s17535_s19 + $0x1d84] sm:$0xf]  ;;  %v14755_v35 = vor.u32 %v16567_v30, %v14752_v31  ;;  %8570 = vmatpush.bf16.msrb.mxu0 %v14499_v34  ;;  %v8344_v31 = vpop.f32.mrf.mxu2  ;;  %v8357_v34 = vpop.f32.mrf.mxu3 }
 0x517   : > { %v15008_v17 = vld [vmem:[%s17535_s19 + $0x1da0] sm:$0xf0] }
 0x518   : > { %v16695_v14 = vld [vmem:[%s17535_s19 + $0x1f84] sm:$0xf]  ;;  %v15011_v2 = vor.u32 %v16631_v32, %v15008_v17  ;;  %8583 = vmatpush.bf16.msrb.mxu1 %v14755_v35 }
 0x519   : > { %v15264_v21 = vld [vmem:[%s17535_s19 + $0x1fa0] sm:$0xf0] }
 0x51a   : > { %v16495_v38 = vld [vmem:[%s17535_s19 + $0x1944] sm:$0xf]  ;;  %v15267_v54 = vor.u32 %v16695_v14, %v15264_v21  ;;  %8596 = vmatpush.bf16.msrb.mxu2 %v15011_v2  ;;  %v8345_v21 = vadd.f32 %v8344_v31, %v8332_v12  ;;  %v15876_v12 = vld [vmem:[%s17535_s19 + $0x5e4] sm:$0xf0] }
 0x51b   : > { %v14464_v43 = vld [vmem:[%s17535_s19 + $0x1960] sm:$0xf0]  ;;  %v15804_v31 = vld [vmem:[%s17535_s19 + $0x3a4] sm:$0xf0] }
 0x51c   : > { %v16559_v24 = vld [vmem:[%s17535_s19 + $0x1b44] sm:$0xf]  ;;  %v14467_v48 = vor.u32 %v16495_v38, %v14464_v43  ;;  %8609 = vmatpush.bf16.msrb.mxu3 %v15267_v54  ;;  %v8320_v38 = vpop.f32.mrf.mxu0  ;;  %v18436_v10 = vadd.f32 %v8357_v34, %v8345_v21  ;;  %v15932_v21 = vld [vmem:[%s17535_s19 + $0x7a4] sm:$0xf0] }
 0x51d   : > { %v14720_v45 = vld [vmem:[%s17535_s19 + $0x1b60] sm:$0xf0]  ;;  %v11398_v38 = vld [vmem:[%s17535_s19 + $0x148] sm:$0xf] }
 0x51e   : > { %v16623_v46 = vld [vmem:[%s17535_s19 + $0x1d44] sm:$0xf]  ;;  %v14723_v19 = vor.u32 %v16559_v24, %v14720_v45  ;;  %8571 = vmatpush.bf16.msrb.mxu0 %v14467_v48  ;;  %v8333_v24 = vpop.f32.mrf.mxu1 }
 0x51f   : > { %v14976_v42 = vld [vmem:[%s17535_s19 + $0x1d60] sm:$0xf0]  ;;  %v11654_v24 = vld [vmem:[%s17535_s19 + $0x348] sm:$0xf] }
 0x520   : > { %v16892_v36 = vld [vmem:[#allocation1 + $0x9] sm:$0xff]  ;;  %v14979_v22 = vor.u32 %v16623_v46, %v14976_v42  ;;  %8584 = vmatpush.bf16.msrb.mxu1 %v14723_v19 }
 0x521   : > { %8538 = vmatmul.bf16.vlgmr.msra.gmra.mxu1 %v16892_v36  ;;  %v16687_v37 = vld [vmem:[%s17535_s19 + $0x1f44] sm:$0xf] }
 0x522   : > { %v15232_v58 = vld [vmem:[%s17535_s19 + $0x1f60] sm:$0xf0]  ;;  %8597 = vmatpush.bf16.msrb.mxu2 %v14979_v22 }
 0x523   : > { %v16487_v52 = vld [vmem:[%s17535_s19 + $0x1904] sm:$0xf]  ;;  %v15235_v60 = vor.u32 %v16687_v37, %v15232_v58 }
 0x524   : > { %v14432_v26 = vld [vmem:[%s17535_s19 + $0x1920] sm:$0xf0] }
 0x525   : > { %v16551_v53 = vld [vmem:[%s17535_s19 + $0x1b04] sm:$0xf]  ;;  %v14435_v7 = vor.u32 %v16487_v52, %v14432_v26  ;;  %8610 = vmatpush.bf16.msrb.mxu3 %v15235_v60 }
 0x526   : > { %v14688_v51 = vld [vmem:[%s17535_s19 + $0x1b20] sm:$0xf0] }
 0x527   : > { %v16615_v55 = vld [vmem:[%s17535_s19 + $0x1d04] sm:$0xf]  ;;  %v14691_v9 = vor.u32 %v16551_v53, %v14688_v51  ;;  %8572 = vmatpush.bf16.msrb.mxu0 %v14435_v7  ;;  %v8346_v7 = vpop.f32.mrf.mxu2 }
 0x528   : > { %v14944_v1 = vld [vmem:[%s17535_s19 + $0x1d20] sm:$0xf0] }
 0x529   : > { %v16679_v3 = vld [vmem:[%s17535_s19 + $0x1f04] sm:$0xf]  ;;  %v14947_v27 = vor.u32 %v16615_v55, %v14944_v1  ;;  %8585 = vmatpush.bf16.msrb.mxu1 %v14691_v9  ;;  %v15748_v9 = vld [vmem:[%s17535_s19 + $0x1e4] sm:$0xf0] }
 0x52a   : > { %v15200_v39 = vld [vmem:[%s17535_s19 + $0x1f20] sm:$0xf0] }
 0x52b   : > { %v16479_v56 = vld [vmem:[%s17535_s19 + $0x18c4] sm:$0xf]  ;;  %v15203_v59 = vor.u32 %v16679_v3, %v15200_v39  ;;  %8598 = vmatpush.bf16.msrb.mxu2 %v14947_v27  ;;  %v11718_v27 = vld [vmem:[%s17535_s19 + $0x3c8] sm:$0xf] }
 0x52c   : > { %v14400_v33 = vld [vmem:[%s17535_s19 + $0x18e0] sm:$0xf0] }
 0x52d   : > { %v16543_v63 = vld [vmem:[%s17535_s19 + $0x1ac4] sm:$0xf]  ;;  %v14403_v16 = vor.u32 %v16479_v56, %v14400_v33  ;;  %8611 = vmatpush.bf16.msrb.mxu3 %v15203_v59  ;;  %v8359_v56 = vpop.f32.mrf.mxu3  ;;  %v11974_v59 = vld [vmem:[%s17535_s19 + $0x5c8] sm:$0xf] }
 0x52e   : > { %v14656_v13 = vld [vmem:[%s17535_s19 + $0x1ae0] sm:$0xf0] }
 0x52f   : > { %v16607_v20 = vld [vmem:[%s17535_s19 + $0x1cc4] sm:$0xf]  ;;  %v14659_v11 = vor.u32 %v16543_v63, %v14656_v13  ;;  %8573 = vmatpush.bf16.msrb.mxu0 %v14403_v16  ;;  %v15812_v63 = vld [vmem:[%s17535_s19 + $0x3e4] sm:$0xf0]  ;;  %v11463_v16 = vor.u32 %v15748_v9, %v11462_v8  ;;  %v8383_v9 = vpop.f32.mrf.mxu1 }
 0x530   : > { %v14912_v6 = vld [vmem:[%s17535_s19 + $0x1ce0] sm:$0xf0] }
 0x531   : > { %v16671_v15 = vld [vmem:[%s17535_s19 + $0x1ec4] sm:$0xf]  ;;  %v14915_v23 = vor.u32 %v16607_v20, %v14912_v6  ;;  %8586 = vmatpush.bf16.msrb.mxu1 %v14659_v11  ;;  %v12230_v6 = vld [vmem:[%s17535_s19 + $0x7c8] sm:$0xf]  ;;  %v11719_v11 = vor.u32 %v15812_v63, %v11718_v27 }
 0x532   : > { %v15168_v18 = vld [vmem:[%s17535_s19 + $0x1ee0] sm:$0xf0]  ;;  %v15716_v63 = vld [vmem:[%s17535_s19 + $0xe4] sm:$0xf0] }
 0x533   : > { %v16471_v25 = vld [vmem:[%s17535_s19 + $0x1884] sm:$0xf]  ;;  %v15171_v28 = vor.u32 %v16671_v15, %v15168_v18  ;;  %8599 = vmatpush.bf16.msrb.mxu2 %v14915_v23  ;;  %v15940_v15 = vld [vmem:[%s17535_s19 + $0x7e4] sm:$0xf0]  ;;  %v11975_v23 = vor.u32 %v15876_v12, %v11974_v59 }
 0x534   : > { %v14368_v29 = vld [vmem:[%s17535_s19 + $0x18a0] sm:$0xf0]  ;;  %v11590_v59 = vld [vmem:[%s17535_s19 + $0x2c8] sm:$0xf] }
 0x535   : > { %v16535_v30 = vld [vmem:[%s17535_s19 + $0x1a84] sm:$0xf]  ;;  %v14371_v43 = vor.u32 %v16471_v25, %v14368_v29  ;;  %8612 = vmatpush.bf16.msrb.mxu3 %v15171_v28  ;;  %v11430_v25 = vld [vmem:[%s17535_s19 + $0x188] sm:$0xf]  ;;  %v12231_v28 = vor.u32 %v15940_v15, %v12230_v6 }
 0x536   : > { %v14624_v32 = vld [vmem:[%s17535_s19 + $0x1aa0] sm:$0xf0]  ;;  %v15740_v29 = vld [vmem:[%s17535_s19 + $0x1a4] sm:$0xf0] }
 0x537   : > { %v16599_v17 = vld [vmem:[%s17535_s19 + $0x1c84] sm:$0xf]  ;;  %v14627_v54 = vor.u32 %v16535_v30, %v14624_v32  ;;  %8574 = vmatpush.bf16.msrb.mxu0 %v14371_v43  ;;  %v11686_v30 = vld [vmem:[%s17535_s19 + $0x388] sm:$0xf]  ;;  %v11431_v34 = vor.u32 %v15740_v29, %v11430_v25 }
 0x538   : > { %v14880_v14 = vld [vmem:[%s17535_s19 + $0x1ca0] sm:$0xf0]  ;;  %v11942_v32 = vld [vmem:[%s17535_s19 + $0x588] sm:$0xf] }
 0x539   : > { %v16663_v35 = vld [vmem:[%s17535_s19 + $0x1e84] sm:$0xf]  ;;  %v14883_v45 = vor.u32 %v16599_v17, %v14880_v14  ;;  %8587 = vmatpush.bf16.msrb.mxu1 %v14627_v54  ;;  %v15868_v17 = vld [vmem:[%s17535_s19 + $0x5a4] sm:$0xf0]  ;;  %v16894_v54 = vld [vmem:[#allocation1 + $0x24] sm:$0xff] }
 0x53a   : > { %v15136_v2 = vld [vmem:[%s17535_s19 + $0x1ea0] sm:$0xf0]  ;;  %v12198_v14 = vld [vmem:[%s17535_s19 + $0x788] sm:$0xf] }
 0x53b   : > { %v16463_v46 = vld [vmem:[%s17535_s19 + $0x1844] sm:$0xf]  ;;  %v15139_v36 = vor.u32 %v16663_v35, %v15136_v2  ;;  %8600 = vmatpush.bf16.msrb.mxu2 %v14883_v45  ;;  %v11687_v35 = vor.u32 %v15804_v31, %v11686_v30  ;;  %v11943_v2 = vor.u32 %v15868_v17, %v11942_v32  ;;  %v15732_v43 = vld [vmem:[%s17535_s19 + $0x164] sm:$0xf0]  ;;  %v12199_v45 = vor.u32 %v15932_v21, %v12198_v14  ;;  %v8396_v31 = vpop.f32.mrf.mxu2 }
 0x53c   : > { %v14336_v42 = vld [vmem:[%s17535_s19 + $0x1860] sm:$0xf0]  ;;  %v11846_v6 = vld [vmem:[%s17535_s19 + $0x4c8] sm:$0xf] }
 0x53d   : > { %v16527_v47 = vld [vmem:[%s17535_s19 + $0x1a44] sm:$0xf]  ;;  %v14339_v22 = vor.u32 %v16463_v46, %v14336_v42  ;;  %8613 = vmatpush.bf16.msrb.mxu3 %v15139_v36  ;;  %v15796_v46 = vld [vmem:[%s17535_s19 + $0x364] sm:$0xf0]  ;;  %v16895_v36 = vld [vmem:[#allocation1 + $0x36] sm:$0xff] }
 0x53e   : > { %v14592_v37 = vld [vmem:[%s17535_s19 + $0x1a60] sm:$0xf0]  ;;  %v11910_v42 = vld [vmem:[%s17535_s19 + $0x548] sm:$0xf] }
 0x53f   : > { %v16591_v58 = vld [vmem:[%s17535_s19 + $0x1c44] sm:$0xf]  ;;  %v14595_v53 = vor.u32 %v16527_v47, %v14592_v37  ;;  %8575 = vmatpush.bf16.msrb.mxu0 %v14339_v22  ;;  %v15860_v47 = vld [vmem:[%s17535_s19 + $0x564] sm:$0xf0]  ;;  %v11655_v22 = vor.u32 %v15796_v46, %v11654_v24 }
 0x540   : > { %v14848_v40 = vld [vmem:[%s17535_s19 + $0x1c60] sm:$0xf0]  ;;  %v12102_v15 = vld [vmem:[%s17535_s19 + $0x6c8] sm:$0xf] }
 0x541   : > { %v16655_v48 = vld [vmem:[%s17535_s19 + $0x1e44] sm:$0xf]  ;;  %v14851_v60 = vor.u32 %v16591_v58, %v14848_v40  ;;  %8588 = vmatpush.bf16.msrb.mxu1 %v14595_v53  ;;  %v12166_v58 = vld [vmem:[%s17535_s19 + $0x748] sm:$0xf] }
 0x542   : > { %v15104_v19 = vld [vmem:[%s17535_s19 + $0x1e60] sm:$0xf0]  ;;  %v15924_v40 = vld [vmem:[%s17535_s19 + $0x764] sm:$0xf0] }
 0x543   : > { %v16455_v52 = vld [vmem:[%s17535_s19 + $0x1804] sm:$0xf]  ;;  %v15107_v57 = vor.u32 %v16655_v48, %v15104_v19  ;;  %8601 = vmatpush.bf16.msrb.mxu2 %v14851_v60  ;;  %v16897_v48 = vld [vmem:[#allocation1 + $0x3f] sm:$0xff]  ;;  %v11399_v19 = vor.u32 %v15732_v43, %v11398_v38  ;;  %v15724_v53 = vld [vmem:[%s17535_s19 + $0x124] sm:$0xf0] }
 0x544   : > { %v14304_v26 = vld [vmem:[%s17535_s19 + $0x1820] sm:$0xf0]  ;;  %v11622_v60 = vld [vmem:[%s17535_s19 + $0x308] sm:$0xf] }
 0x545   : > { %v16519_v51 = vld [vmem:[%s17535_s19 + $0x1a04] sm:$0xf]  ;;  %v14307_v33 = vor.u32 %v16455_v52, %v14304_v26  ;;  %8614 = vmatpush.bf16.msrb.mxu3 %v15107_v57  ;;  %v11911_v52 = vor.u32 %v15860_v47, %v11910_v42  ;;  %v11366_v26 = vld [vmem:[%s17535_s19 + $0x108] sm:$0xf] }
 0x546   : > { %v14560_v55 = vld [vmem:[%s17535_s19 + $0x1a20] sm:$0xf0]  ;;  %v15852_v57 = vld [vmem:[%s17535_s19 + $0x524] sm:$0xf0]  ;;  %v11367_v8 = vor.u32 %v15724_v53, %v11366_v26 }
 0x547   : > { %v16583_v1 = vld [vmem:[%s17535_s19 + $0x1c04] sm:$0xf]  ;;  %v14563_v13 = vor.u32 %v16519_v51, %v14560_v55  ;;  %8576 = vmatpush.bf16.msrb.mxu0 %v14307_v33  ;;  %v12167_v51 = vor.u32 %v15924_v40, %v12166_v58  ;;  %v15788_v55 = vld [vmem:[%s17535_s19 + $0x324] sm:$0xf0] }
 0x548   : > { %v14816_v3 = vld [vmem:[%s17535_s19 + $0x1c20] sm:$0xf0]  ;;  %v11623_v27 = vor.u32 %v15788_v55, %v11622_v60  ;;  %v11334_v33 = vld [vmem:[%s17535_s19 + $0xc8] sm:$0xf] }
 0x549   : > { %v16647_v39 = vld [vmem:[%s17535_s19 + $0x1e04] sm:$0xf]  ;;  %v14819_v20 = vor.u32 %v16583_v1, %v14816_v3  ;;  %8589 = vmatpush.bf16.msrb.mxu1 %v14563_v13  ;;  %v11878_v1 = vld [vmem:[%s17535_s19 + $0x508] sm:$0xf]  ;;  %v8370_v3 = vpop.f32.mrf.mxu0 }
 0x54a   : > { %v15072_v5 = vld [vmem:[%s17535_s19 + $0x1e20] sm:$0xf0]  ;;  %8577 = vmatmul.bf16.vlgmr.msrb.gmra.mxu0 %v16894_v54  ;;  %v8371_v7 = vadd.f32 %v8370_v3, %v18436_v10  ;;  %v11879_v56 = vor.u32 %v15852_v57, %v11878_v1  ;;  %v15844_v10 = vld [vmem:[%s17535_s19 + $0x4e4] sm:$0xf0]  ;;  %v8385_v54 = vpop.f32.mrf.mxu1 }
 0x54b   : > { %v15075_v18 = vor.u32 %v16647_v39, %v15072_v5  ;;  %8602 = vmatpush.bf16.msrb.mxu2 %v14819_v20  ;;  %8621 = vmatpush.bf16.msra.mxu0 %v11463_v16  ;;  %v16896_v37 = vld [vmem:[#allocation1 + $0x2d] sm:$0xff]  ;;  %v11335_v16 = vor.u32 %v15716_v63, %v11334_v33 }
 0x54c   : > { %8590 = vmatmul.bf16.vlgmr.msrb.gmra.mxu1 %v16896_v37  ;;  %v12134_v39 = vld [vmem:[%s17535_s19 + $0x708] sm:$0xf]  ;;  %v8384_v13 = vadd.f32 %v8383_v9, %v8371_v7 }
 0x54d   : > { %8615 = vmatpush.bf16.msrb.mxu3 %v15075_v18  ;;  %8634 = vmatpush.bf16.msra.mxu1 %v11719_v11  ;;  %v15916_v5 = vld [vmem:[%s17535_s19 + $0x724] sm:$0xf0] }
 0x54e   : > { %8603 = vmatmul.bf16.vlgmr.msrb.gmra.mxu2 %v16895_v36  ;;  %v12135_v12 = vor.u32 %v15916_v5, %v12134_v39  ;;  %v15780_v20 = vld [vmem:[%s17535_s19 + $0x2e4] sm:$0xf0]  ;;  %v8397_v21 = vadd.f32 %v8396_v31, %v8384_v13 }
 0x54f   : > { %8647 = vmatpush.bf16.msra.mxu2 %v11975_v23  ;;  %8622 = vmatpush.bf16.msra.mxu0 %v11431_v34  ;;  %v15908_v18 = vld [vmem:[%s17535_s19 + $0x6e4] sm:$0xf0]  ;;  %v11591_v11 = vor.u32 %v15780_v20, %v11590_v59  ;;  %v11847_v23 = vor.u32 %v15844_v10, %v11846_v6  ;;  %v8409_v34 = vpop.f32.mrf.mxu3 }
 0x550   : > { %8616 = vmatmul.bf16.vlgmr.msrb.gmra.mxu3 %v16897_v48  ;;  %v11302_v25 = vld [vmem:[%s17535_s19 + $0x88] sm:$0xf] }
 0x551   : > { %8660 = vmatpush.bf16.msra.mxu3 %v12231_v28  ;;  %8635 = vmatpush.bf16.msra.mxu1 %v11687_v35  ;;  %v15708_v29 = vld [vmem:[%s17535_s19 + $0xa4] sm:$0xf0]  ;;  %v12103_v28 = vor.u32 %v15908_v18, %v12102_v15  ;;  %v8372_v38 = vpop.f32.mrf.mxu0 }
 0x552   : > { %v11558_v30 = vld [vmem:[%s17535_s19 + $0x288] sm:$0xf]  ;;  %v11303_v43 = vor.u32 %v15708_v29, %v11302_v25 }
 0x553   : > { %8648 = vmatpush.bf16.msra.mxu2 %v11943_v2  ;;  %8623 = vmatpush.bf16.msra.mxu0 %v11399_v19  ;;  %v15772_v32 = vld [vmem:[%s17535_s19 + $0x2a4] sm:$0xf0] }
 0x554   : > { %v11814_v17 = vld [vmem:[%s17535_s19 + $0x488] sm:$0xf]  ;;  %v11559_v46 = vor.u32 %v15772_v32, %v11558_v30 }
 0x555   : > { %8661 = vmatpush.bf16.msra.mxu3 %v12199_v45  ;;  %8636 = vmatpush.bf16.msra.mxu1 %v11655_v22  ;;  %v15836_v14 = vld [vmem:[%s17535_s19 + $0x4a4] sm:$0xf0]  ;;  %v8410_v45 = vadd.f32 %v8409_v34, %v8397_v21 }
 0x556   : > { %v12070_v35 = vld [vmem:[%s17535_s19 + $0x688] sm:$0xf]  ;;  %v11815_v42 = vor.u32 %v15836_v14, %v11814_v17 }
 0x557   : > { %8649 = vmatpush.bf16.msra.mxu2 %v11911_v52  ;;  %8624 = vmatpush.bf16.msra.mxu0 %v11367_v8  ;;  %v15900_v2 = vld [vmem:[%s17535_s19 + $0x6a4] sm:$0xf0]  ;;  %vm9869_vm11 = vcmp.gt.f32.partialorder %v8410_v45, 0.0  ;;  %v9877_v22 = vmul.f32 0.2, %v8410_v45  ;;  %v8411_v59 = vpop.f32.mrf.mxu3 }
 0x558   : > { %v11270_v24 = vld [vmem:[%s17535_s19 + $0x48] sm:$0xf]  ;;  %v12071_v58 = vor.u32 %v15900_v2, %v12070_v35 }
 0x559   : > { %8662 = vmatpush.bf16.msra.mxu3 %v12167_v51  ;;  %8637 = vmatpush.bf16.msra.mxu1 %v11623_v27  ;;  %v15700_v47 = vld [vmem:[%s17535_s19 + $0x64] sm:$0xf0]  ;;  %v18513_v51 = vsel %vm9869_vm11, %v8410_v45, %v9877_v22  ;;  %v8398_v27 = vpop.f32.mrf.mxu2 }
 0x55a   : > { %v11526_v36 = vld [vmem:[%s17535_s19 + $0x248] sm:$0xf]  ;;  %v11271_v26 = vor.u32 %v15700_v47, %v11270_v24 }
 0x55b   : > { %8650 = vmatpush.bf16.msra.mxu2 %v11879_v56  ;;  %8625 = vmatpush.bf16.msra.mxu0 %v11335_v16  ;;  %v15764_v37 = vld [vmem:[%s17535_s19 + $0x264] sm:$0xf0] }
 0x55c   : > { %v11782_v40 = vld [vmem:[%s17535_s19 + $0x448] sm:$0xf]  ;;  %v11527_v55 = vor.u32 %v15764_v37, %v11526_v36 }
 0x55d   : > { %8663 = vmatpush.bf16.msra.mxu3 %v12135_v12  ;;  %8638 = vmatpush.bf16.msra.mxu1 %v11591_v11  ;;  %v15828_v48 = vld [vmem:[%s17535_s19 + $0x464] sm:$0xf0] }
 0x55e   : > { %v12038_v19 = vld [vmem:[%s17535_s19 + $0x648] sm:$0xf]  ;;  %v11783_v1 = vor.u32 %v15828_v48, %v11782_v40 }
 0x55f   : > { %8651 = vmatpush.bf16.msra.mxu2 %v11847_v23  ;;  %v15892_v52 = vld [vmem:[%s17535_s19 + $0x664] sm:$0xf0]  ;;  %8626 = vmatpush.bf16.msra.mxu0 %v11303_v43 }
 0x560   : > { %v11238_v53 = vld [vmem:[%s17535_s19 + $0x8] sm:$0xf]  ;;  %v12039_v5 = vor.u32 %v15892_v52, %v12038_v19 }
 0x561   : > { %8664 = vmatpush.bf16.msra.mxu3 %v12103_v28  ;;  %v15692_v60 = vld [vmem:[%s17535_s19 + $0x24] sm:$0xf0]  ;;  %8639 = vmatpush.bf16.msra.mxu1 %v11559_v46 }
 0x562   : > { %v11494_v57 = vld [vmem:[%s17535_s19 + $0x208] sm:$0xf]  ;;  %v11239_v12 = vor.u32 %v15692_v60, %v11238_v53 }
 0x563   : > { %8652 = vmatpush.bf16.msra.mxu2 %v11815_v42  ;;  %v15756_v3 = vld [vmem:[%s17535_s19 + $0x224] sm:$0xf0]  ;;  %8627 = vmatpush.bf16.msra.mxu0 %v11271_v26 }
 0x564   : > { %v11750_v39 = vld [vmem:[%s17535_s19 + $0x408] sm:$0xf]  ;;  %v11495_v10 = vor.u32 %v15756_v3, %v11494_v57 }
 0x565   : > { %8665 = vmatpush.bf16.msra.mxu3 %v12071_v58  ;;  %v15820_v7 = vld [vmem:[%s17535_s19 + $0x424] sm:$0xf0]  ;;  %8640 = vmatpush.bf16.msra.mxu1 %v11527_v55 }
 0x566   : > { %v12006_v8 = vld [vmem:[%s17535_s19 + $0x608] sm:$0xf]  ;;  %v11751_v15 = vor.u32 %v15820_v7, %v11750_v39 }
 0x567   : > { %v15884_v9 = vld [vmem:[%s17535_s19 + $0x624] sm:$0xf0]  ;;  %8653 = vmatpush.bf16.msra.mxu2 %v11783_v1  ;;  %8628 = vmatpush.bf16.msra.mxu0 %v11239_v12  ;;  %v8435_v12 = vpop.f32.mrf.mxu1 }
 0x568   : > { %v12486_v56 = vld [vmem:[%s17535_s19 + $0x9c8] sm:$0xf]  ;;  %v12007_v11 = vor.u32 %v15884_v9, %v12006_v8  ;;  %v8422_v8 = vpop.f32.mrf.mxu0 }
 0x569   : > { %v16004_v33 = vld [vmem:[%s17535_s19 + $0x9e4] sm:$0xf0]  ;;  %8666 = vmatpush.bf16.msra.mxu3 %v12039_v5  ;;  %8641 = vmatpush.bf16.msra.mxu1 %v11495_v10 }
 0x56a   : > { %v12742_v63 = vld [vmem:[%s17535_s19 + $0xbc8] sm:$0xf]  ;;  %v12487_v23 = vor.u32 %v16004_v33, %v12486_v56  ;;  %8629 = vmatmul.bf16.vlgmr.msra.gmra.mxu0 %v18003_v41 }
 0x56b   : > { %v16068_v13 = vld [vmem:[%s17535_s19 + $0xbe4] sm:$0xf0]  ;;  %8654 = vmatpush.bf16.msra.mxu2 %v11751_v15 }
 0x56c   : > { %v12998_v20 = vld [vmem:[%s17535_s19 + $0xdc8] sm:$0xf]  ;;  %v12743_v25 = vor.u32 %v16068_v13, %v12742_v63  ;;  %8673 = vmatpush.bf16.msrb.mxu0 %v12487_v23  ;;  %8642 = vmatmul.bf16.vlgmr.msra.gmra.mxu1 %v18010_v50 }
 0x56d   : > { %v16132_v6 = vld [vmem:[%s17535_s19 + $0xde4] sm:$0xf0]  ;;  %8667 = vmatpush.bf16.msra.mxu3 %v12007_v11 }
 0x56e   : > { %v13254_v18 = vld [vmem:[%s17535_s19 + $0xfc8] sm:$0xf]  ;;  %v12999_v29 = vor.u32 %v16132_v6, %v12998_v20  ;;  %8686 = vmatpush.bf16.msrb.mxu1 %v12743_v25  ;;  %8655 = vmatmul.bf16.vlgmr.msra.gmra.mxu2 %v18001_v4 }
 0x56f   : > { %v16196_v16 = vld [vmem:[%s17535_s19 + $0xfe4] sm:$0xf0] }
 0x570   : > { %v12454_v30 = vld [vmem:[%s17535_s19 + $0x988] sm:$0xf]  ;;  %v13255_v32 = vor.u32 %v16196_v16, %v13254_v18  ;;  %8699 = vmatpush.bf16.msrb.mxu2 %v12999_v29  ;;  %8668 = vmatmul.bf16.vlgmr.msra.gmra.mxu3 %v18005_v61 }
 0x571   : > { %v15996_v28 = vld [vmem:[%s17535_s19 + $0x9a4] sm:$0xf0] }
 0x572   : > { %v12710_v31 = vld [vmem:[%s17535_s19 + $0xb88] sm:$0xf]  ;;  %v12455_v2 = vor.u32 %v15996_v28, %v12454_v30  ;;  %8712 = vmatpush.bf16.msrb.mxu3 %v13255_v32 }
 0x573   : > { %v16060_v17 = vld [vmem:[%s17535_s19 + $0xba4] sm:$0xf0] }
 0x574   : > { %v12966_v14 = vld [vmem:[%s17535_s19 + $0xd88] sm:$0xf]  ;;  %v12711_v38 = vor.u32 %v16060_v17, %v12710_v31  ;;  %8674 = vmatpush.bf16.msrb.mxu0 %v12455_v2  ;;  %v8448_v31 = vpop.f32.mrf.mxu2 }
 0x575   : > { %v16124_v21 = vld [vmem:[%s17535_s19 + $0xda4] sm:$0xf0] }
 0x576   : > { %v13222_v34 = vld [vmem:[%s17535_s19 + $0xf88] sm:$0xf]  ;;  %v12967_v43 = vor.u32 %v16124_v21, %v12966_v14  ;;  %8687 = vmatpush.bf16.msrb.mxu1 %v12711_v38 }
 0x577   : > { %v16188_v35 = vld [vmem:[%s17535_s19 + $0xfa4] sm:$0xf0] }
 0x578   : > { %v12422_v24 = vld [vmem:[%s17535_s19 + $0x948] sm:$0xf]  ;;  %v13223_v46 = vor.u32 %v16188_v35, %v13222_v34  ;;  %8700 = vmatpush.bf16.msrb.mxu2 %v12967_v43  ;;  %v8461_v35 = vpop.f32.mrf.mxu3 }
 0x579   : > { %v15988_v54 = vld [vmem:[%s17535_s19 + $0x964] sm:$0xf0] }
 0x57a   : > { %v12678_v45 = vld [vmem:[%s17535_s19 + $0xb48] sm:$0xf]  ;;  %v12423_v40 = vor.u32 %v15988_v54, %v12422_v24  ;;  %8713 = vmatpush.bf16.msrb.mxu3 %v13223_v46  ;;  %v8424_v54 = vpop.f32.mrf.mxu0 }
 0x57b   : > { %v16052_v42 = vld [vmem:[%s17535_s19 + $0xb64] sm:$0xf0] }
 0x57c   : > { %v12934_v47 = vld [vmem:[%s17535_s19 + $0xd48] sm:$0xf]  ;;  %v12679_v19 = vor.u32 %v16052_v42, %v12678_v45  ;;  %8675 = vmatpush.bf16.msrb.mxu0 %v12423_v40 }
 0x57d   : > { %v16116_v36 = vld [vmem:[%s17535_s19 + $0xd64] sm:$0xf0] }
 0x57e   : > { %v13190_v37 = vld [vmem:[%s17535_s19 + $0xf48] sm:$0xf]  ;;  %v12935_v22 = vor.u32 %v16116_v36, %v12934_v47  ;;  %8688 = vmatpush.bf16.msrb.mxu1 %v12679_v19 }
 0x57f   : > { %v16180_v58 = vld [vmem:[%s17535_s19 + $0xf64] sm:$0xf0] }
 0x580   : > { %v12390_v48 = vld [vmem:[%s17535_s19 + $0x908] sm:$0xf]  ;;  %v13191_v55 = vor.u32 %v16180_v58, %v13190_v37  ;;  %8701 = vmatpush.bf16.msrb.mxu2 %v12935_v22  ;;  %v8437_v37 = vpop.f32.mrf.mxu1 }
 0x581   : > { %v15980_v52 = vld [vmem:[%s17535_s19 + $0x924] sm:$0xf0] }
 0x582   : > { %v12646_v26 = vld [vmem:[%s17535_s19 + $0xb08] sm:$0xf]  ;;  %v12391_v7 = vor.u32 %v15980_v52, %v12390_v48  ;;  %8714 = vmatpush.bf16.msrb.mxu3 %v13191_v55 }
 0x583   : > { %v16898_v53 = vld [vmem:[%s17550_s16] sm:$0xff] }
 0x584   : > { %v3034_v60 = vperm.slane %v16898_v53, 1  ;;  %v16044_v1 = vld [vmem:[%s17535_s19 + $0xb24] sm:$0xf0]  ;;  %8676 = vmatpush.bf16.msrb.mxu0 %v12391_v7 }
 0x585   : > { %v12902_v57 = vld [vmem:[%s17535_s19 + $0xd08] sm:$0xf]  ;;  %v12647_v9 = vor.u32 %v16044_v1, %v12646_v26 }
 0x586   : > { %v16108_v3 = vld [vmem:[%s17535_s19 + $0xd24] sm:$0xf0]  ;;  %v8423_v59 = vadd.f32 %v8422_v8, %v3034_v60 }
 0x587   : > { %v13158_v39 = vld [vmem:[%s17535_s19 + $0xf08] sm:$0xf]  ;;  %v12903_v27 = vor.u32 %v16108_v3, %v12902_v57  ;;  %8689 = vmatpush.bf16.msrb.mxu1 %v12647_v9 }
 0x588   : > { %v16172_v5 = vld [vmem:[%s17535_s19 + $0xf24] sm:$0xf0]  ;;  %v8436_v16 = vadd.f32 %v8435_v12, %v8423_v59 }
 0x589   : > { %v12358_v56 = vld [vmem:[%s17535_s19 + $0x8c8] sm:$0xf]  ;;  %v13159_v13 = vor.u32 %v16172_v5, %v13158_v39  ;;  %8702 = vmatpush.bf16.msrb.mxu2 %v12903_v27  ;;  %v8450_v5 = vpop.f32.mrf.mxu2 }
 0x58a   : > { %v15972_v33 = vld [vmem:[%s17535_s19 + $0x8e4] sm:$0xf0]  ;;  %v8449_v34 = vadd.f32 %v8448_v31, %v8436_v16 }
 0x58b   : > { %v12614_v63 = vld [vmem:[%s17535_s19 + $0xac8] sm:$0xf]  ;;  %v12359_v11 = vor.u32 %v15972_v33, %v12358_v56  ;;  %8715 = vmatpush.bf16.msrb.mxu3 %v13159_v13  ;;  %v8463_v56 = vpop.f32.mrf.mxu3 }
 0x58c   : > { %v16036_v20 = vld [vmem:[%s17535_s19 + $0xae4] sm:$0xf0]  ;;  %v18574_v24 = vadd.f32 %v8461_v35, %v8449_v34 }
 0x58d   : > { %v12870_v6 = vld [vmem:[%s17535_s19 + $0xcc8] sm:$0xf]  ;;  %v12615_v23 = vor.u32 %v16036_v20, %v12614_v63  ;;  %8677 = vmatpush.bf16.msrb.mxu0 %v12359_v11 }
 0x58e   : > { %v16100_v10 = vld [vmem:[%s17535_s19 + $0xce4] sm:$0xf0] }
 0x58f   : > { %v13126_v15 = vld [vmem:[%s17535_s19 + $0xec8] sm:$0xf]  ;;  %v12871_v25 = vor.u32 %v16100_v10, %v12870_v6  ;;  %8690 = vmatpush.bf16.msrb.mxu1 %v12615_v23 }
 0x590   : > { %v16164_v18 = vld [vmem:[%s17535_s19 + $0xee4] sm:$0xf0] }
 0x591   : > { %v12326_v29 = vld [vmem:[%s17535_s19 + $0x888] sm:$0xf]  ;;  %v13127_v32 = vor.u32 %v16164_v18, %v13126_v15  ;;  %8703 = vmatpush.bf16.msrb.mxu2 %v12871_v25 }
 0x592   : > { %v15964_v30 = vld [vmem:[%s17535_s19 + $0x8a4] sm:$0xf0] }
 0x593   : > { %v12582_v28 = vld [vmem:[%s17535_s19 + $0xa88] sm:$0xf]  ;;  %v12327_v43 = vor.u32 %v15964_v30, %v12326_v29  ;;  %8716 = vmatpush.bf16.msrb.mxu3 %v13127_v32 }
 0x594   : > { %v16028_v17 = vld [vmem:[%s17535_s19 + $0xaa4] sm:$0xf0] }
 0x595   : > { %v12838_v14 = vld [vmem:[%s17535_s19 + $0xc88] sm:$0xf]  ;;  %v12583_v45 = vor.u32 %v16028_v17, %v12582_v28  ;;  %8678 = vmatpush.bf16.msrb.mxu0 %v12327_v43 }
 0x596   : > { %v16092_v21 = vld [vmem:[%s17535_s19 + $0xca4] sm:$0xf0] }
 0x597   : > { %v13094_v2 = vld [vmem:[%s17535_s19 + $0xe88] sm:$0xf]  ;;  %v12839_v46 = vor.u32 %v16092_v21, %v12838_v14  ;;  %8691 = vmatpush.bf16.msrb.mxu1 %v12583_v45 }
 0x598   : > { %v16156_v38 = vld [vmem:[%s17535_s19 + $0xea4] sm:$0xf0] }
 0x599   : > { %v12294_v42 = vld [vmem:[%s17535_s19 + $0x848] sm:$0xf]  ;;  %v13095_v58 = vor.u32 %v16156_v38, %v13094_v2  ;;  %8704 = vmatpush.bf16.msrb.mxu2 %v12839_v46 }
 0x59a   : > { %v15956_v47 = vld [vmem:[%s17535_s19 + $0x864] sm:$0xf0] }
 0x59b   : > { %v12550_v36 = vld [vmem:[%s17535_s19 + $0xa48] sm:$0xf]  ;;  %v12295_v26 = vor.u32 %v15956_v47, %v12294_v42  ;;  %8717 = vmatpush.bf16.msrb.mxu3 %v13095_v58 }
 0x59c   : > { %v16020_v40 = vld [vmem:[%s17535_s19 + $0xa64] sm:$0xf0] }
 0x59d   : > { %v12806_v48 = vld [vmem:[%s17535_s19 + $0xc48] sm:$0xf]  ;;  %v12551_v55 = vor.u32 %v16020_v40, %v12550_v36  ;;  %8679 = vmatpush.bf16.msrb.mxu0 %v12295_v26 }
 0x59e   : > { %v16084_v19 = vld [vmem:[%s17535_s19 + $0xc64] sm:$0xf0] }
 0x59f   : > { %v13062_v22 = vld [vmem:[%s17535_s19 + $0xe48] sm:$0xf]  ;;  %v12807_v1 = vor.u32 %v16084_v19, %v12806_v48  ;;  %8692 = vmatpush.bf16.msrb.mxu1 %v12551_v55 }
 0x5a0   : > { %v16148_v52 = vld [vmem:[%s17535_s19 + $0xe64] sm:$0xf0] }
 0x5a1   : > { %v12262_v53 = vld [vmem:[%s17535_s19 + $0x808] sm:$0xf]  ;;  %v13063_v7 = vor.u32 %v16148_v52, %v13062_v22  ;;  %8705 = vmatpush.bf16.msrb.mxu2 %v12807_v1 }
 0x5a2   : > { %v15948_v60 = vld [vmem:[%s17535_s19 + $0x824] sm:$0xf0] }
 0x5a3   : > { %v12518_v57 = vld [vmem:[%s17535_s19 + $0xa08] sm:$0xf]  ;;  %v12263_v12 = vor.u32 %v15948_v60, %v12262_v53  ;;  %8718 = vmatpush.bf16.msrb.mxu3 %v13063_v7  ;;  %v8474_v7 = vpop.f32.mrf.mxu0 }
 0x5a4   : > { %v16012_v3 = vld [vmem:[%s17535_s19 + $0xa24] sm:$0xf0] }
 0x5a5   : > { %v12774_v39 = vld [vmem:[%s17535_s19 + $0xc08] sm:$0xf]  ;;  %v12519_v10 = vor.u32 %v16012_v3, %v12518_v57  ;;  %8680 = vmatpush.bf16.msrb.mxu0 %v12263_v12 }
 0x5a6   : > { %v16076_v8 = vld [vmem:[%s17535_s19 + $0xc24] sm:$0xf0] }
 0x5a7   : > { %v13030_v9 = vld [vmem:[%s17535_s19 + $0xe08] sm:$0xf]  ;;  %v12775_v15 = vor.u32 %v16076_v8, %v12774_v39  ;;  %8693 = vmatpush.bf16.msrb.mxu1 %v12519_v10 }
 0x5a8   : > { %v16140_v27 = vld [vmem:[%s17535_s19 + $0xe24] sm:$0xf0]  ;;  %8681 = vmatmul.bf16.vlgmr.msrb.gmra.mxu0 %v18041_v44 }
 0x5a9   : > { %v13510_v33 = vld [vmem:[%s17535_s19 + $0x11c8] sm:$0xf]  ;;  %v13031_v11 = vor.u32 %v16140_v27, %v13030_v9  ;;  %8706 = vmatpush.bf16.msrb.mxu2 %v12775_v15 }
 0x5aa   : > { %v16260_v63 = vld [vmem:[%s17535_s19 + $0x11e4] sm:$0xf0]  ;;  %8694 = vmatmul.bf16.vlgmr.msrb.gmra.mxu1 %v18045_v49 }
 0x5ab   : > { %v13766_v59 = vld [vmem:[%s17535_s19 + $0x13c8] sm:$0xf]  ;;  %v13511_v23 = vor.u32 %v16260_v63, %v13510_v33  ;;  %8719 = vmatpush.bf16.msrb.mxu3 %v13031_v11  ;;  %v8475_v63 = vadd.f32 %v8474_v7, %v18574_v24 }
 0x5ac   : > { %v16324_v13 = vld [vmem:[%s17535_s19 + $0x13e4] sm:$0xf0]  ;;  %8707 = vmatmul.bf16.vlgmr.msrb.gmra.mxu2 %v18039_v62 }
 0x5ad   : > { %v14022_v20 = vld [vmem:[%s17535_s19 + $0x15c8] sm:$0xf]  ;;  %v13767_v25 = vor.u32 %v16324_v13, %v13766_v59  ;;  %8725 = vmatpush.bf16.msra.mxu0 %v13511_v23  ;;  %v8487_v59 = vpop.f32.mrf.mxu1 }
 0x5ae   : > { %v16388_v6 = vld [vmem:[%s17535_s19 + $0x15e4] sm:$0xf0]  ;;  %8720 = vmatmul.bf16.vlgmr.msrb.gmra.mxu3 %v18043_v0 }
 0x5af   : > { %v14278_v18 = vld [vmem:[%s17535_s19 + $0x17c8] sm:$0xf]  ;;  %v14023_v29 = vor.u32 %v16388_v6, %v14022_v20  ;;  %8738 = vmatpush.bf16.msra.mxu1 %v13767_v25 }
 0x5b0   : > { %v16452_v16 = vld [vmem:[%s17535_s19 + $0x17e4] sm:$0xf0] }
 0x5b1   : > { %v13478_v30 = vld [vmem:[%s17535_s19 + $0x1188] sm:$0xf]  ;;  %v14279_v32 = vor.u32 %v16452_v16, %v14278_v18  ;;  %8751 = vmatpush.bf16.msra.mxu2 %v14023_v29  ;;  %v8488_v18 = vadd.f32 %v8487_v59, %v8475_v63 }
 0x5b2   : > { %v16252_v28 = vld [vmem:[%s17535_s19 + $0x11a4] sm:$0xf0] }
 0x5b3   : > { %v13734_v31 = vld [vmem:[%s17535_s19 + $0x1388] sm:$0xf]  ;;  %v13479_v2 = vor.u32 %v16252_v28, %v13478_v30  ;;  %8764 = vmatpush.bf16.msra.mxu3 %v14279_v32  ;;  %v8500_v30 = vpop.f32.mrf.mxu2 }
 0x5b4   : > { %v16316_v17 = vld [vmem:[%s17535_s19 + $0x13a4] sm:$0xf0] }
 0x5b5   : > { %v13990_v14 = vld [vmem:[%s17535_s19 + $0x1588] sm:$0xf]  ;;  %v13735_v38 = vor.u32 %v16316_v17, %v13734_v31  ;;  %8726 = vmatpush.bf16.msra.mxu0 %v13479_v2 }
 0x5b6   : > { %v16380_v21 = vld [vmem:[%s17535_s19 + $0x15a4] sm:$0xf0] }
 0x5b7   : > { %v14246_v34 = vld [vmem:[%s17535_s19 + $0x1788] sm:$0xf]  ;;  %v13991_v43 = vor.u32 %v16380_v21, %v13990_v14  ;;  %8739 = vmatpush.bf16.msra.mxu1 %v13735_v38  ;;  %v8501_v14 = vadd.f32 %v8500_v30, %v8488_v18  ;;  %v8513_v21 = vpop.f32.mrf.mxu3 }
 0x5b8   : > { %v16444_v35 = vld [vmem:[%s17535_s19 + $0x17a4] sm:$0xf0] }
 0x5b9   : > { %v13446_v54 = vld [vmem:[%s17535_s19 + $0x1148] sm:$0xf]  ;;  %v14247_v42 = vor.u32 %v16444_v35, %v14246_v34  ;;  %8752 = vmatpush.bf16.msra.mxu2 %v13991_v43  ;;  %v18645_v38 = vadd.f32 %v8513_v21, %v8501_v14  ;;  %v8476_v43 = vpop.f32.mrf.mxu0 }
 0x5ba   : > { %v16244_v45 = vld [vmem:[%s17535_s19 + $0x1164] sm:$0xf0] }
 0x5bb   : > { %v13702_v46 = vld [vmem:[%s17535_s19 + $0x1348] sm:$0xf]  ;;  %v13447_v48 = vor.u32 %v16244_v45, %v13446_v54  ;;  %8765 = vmatpush.bf16.msra.mxu3 %v14247_v42 }
 0x5bc   : > { %v16308_v47 = vld [vmem:[%s17535_s19 + $0x1364] sm:$0xf0] }
 0x5bd   : > { %v13958_v36 = vld [vmem:[%s17535_s19 + $0x1548] sm:$0xf]  ;;  %v13703_v19 = vor.u32 %v16308_v47, %v13702_v46  ;;  %8727 = vmatpush.bf16.msra.mxu0 %v13447_v48 }
 0x5be   : > { %v16372_v37 = vld [vmem:[%s17535_s19 + $0x1564] sm:$0xf0] }
 0x5bf   : > { %v14214_v58 = vld [vmem:[%s17535_s19 + $0x1748] sm:$0xf]  ;;  %v13959_v22 = vor.u32 %v16372_v37, %v13958_v36  ;;  %8740 = vmatpush.bf16.msra.mxu1 %v13703_v19  ;;  %v8489_v36 = vpop.f32.mrf.mxu1 }
 0x5c0   : > { %v16436_v40 = vld [vmem:[%s17535_s19 + $0x1764] sm:$0xf0] }
 0x5c1   : > { %v13414_v52 = vld [vmem:[%s17535_s19 + $0x1108] sm:$0xf]  ;;  %v14215_v60 = vor.u32 %v16436_v40, %v14214_v58  ;;  %8753 = vmatpush.bf16.msra.mxu2 %v13959_v22 }
 0x5c2   : > { %v16236_v26 = vld [vmem:[%s17535_s19 + $0x1124] sm:$0xf0] }
 0x5c3   : > { %v13670_v53 = vld [vmem:[%s17535_s19 + $0x1308] sm:$0xf]  ;;  %v13415_v5 = vor.u32 %v16236_v26, %v13414_v52  ;;  %8766 = vmatpush.bf16.msra.mxu3 %v14215_v60 }
 0x5c4   : > { %v16300_v55 = vld [vmem:[%s17535_s19 + $0x1324] sm:$0xf0] }
 0x5c5   : > { %v13926_v1 = vld [vmem:[%s17535_s19 + $0x1508] sm:$0xf]  ;;  %v13671_v8 = vor.u32 %v16300_v55, %v13670_v53  ;;  %8728 = vmatpush.bf16.msra.mxu0 %v13415_v5 }
 0x5c6   : > { %v16364_v57 = vld [vmem:[%s17535_s19 + $0x1524] sm:$0xf0] }
 0x5c7   : > { %v14182_v3 = vld [vmem:[%s17535_s19 + $0x1708] sm:$0xf]  ;;  %v13927_v9 = vor.u32 %v16364_v57, %v13926_v1  ;;  %8741 = vmatpush.bf16.msra.mxu1 %v13671_v8 }
 0x5c8   : > { %v16428_v39 = vld [vmem:[%s17535_s19 + $0x1724] sm:$0xf0] }
 0x5c9   : > { %v13382_v27 = vld [vmem:[%s17535_s19 + $0x10c8] sm:$0xf]  ;;  %v14183_v12 = vor.u32 %v16428_v39, %v14182_v3  ;;  %8754 = vmatpush.bf16.msra.mxu2 %v13927_v9  ;;  %v8502_v39 = vpop.f32.mrf.mxu2 }
 0x5ca   : > { %v16228_v56 = vld [vmem:[%s17535_s19 + $0x10e4] sm:$0xf0] }
 0x5cb   : > { %v13638_v33 = vld [vmem:[%s17535_s19 + $0x12c8] sm:$0xf]  ;;  %v13383_v16 = vor.u32 %v16228_v56, %v13382_v27  ;;  %8767 = vmatpush.bf16.msra.mxu3 %v14183_v12  ;;  %v8515_v27 = vpop.f32.mrf.mxu3 }
 0x5cc   : > { %v16292_v13 = vld [vmem:[%s17535_s19 + $0x12e4] sm:$0xf0] }
 0x5cd   : > { %v13894_v20 = vld [vmem:[%s17535_s19 + $0x14c8] sm:$0xf]  ;;  %v13639_v24 = vor.u32 %v16292_v13, %v13638_v33  ;;  %8729 = vmatpush.bf16.msra.mxu0 %v13383_v16 }
 0x5ce   : > { %v16356_v6 = vld [vmem:[%s17535_s19 + $0x14e4] sm:$0xf0] }
 0x5cf   : > { %v14150_v10 = vld [vmem:[%s17535_s19 + $0x16c8] sm:$0xf]  ;;  %v13895_v11 = vor.u32 %v16356_v6, %v13894_v20  ;;  %8742 = vmatpush.bf16.msra.mxu1 %v13639_v24 }
 0x5d0   : > { %v16420_v15 = vld [vmem:[%s17535_s19 + $0x16e4] sm:$0xf0] }
 0x5d1   : > { %v13350_v23 = vld [vmem:[%s17535_s19 + $0x1088] sm:$0xf]  ;;  %v14151_v28 = vor.u32 %v16420_v15, %v14150_v10  ;;  %8755 = vmatpush.bf16.msra.mxu2 %v13895_v11 }
 0x5d2   : > { %v16220_v25 = vld [vmem:[%s17535_s19 + $0x10a4] sm:$0xf0] }
 0x5d3   : > { %v13606_v29 = vld [vmem:[%s17535_s19 + $0x1288] sm:$0xf]  ;;  %v13351_v2 = vor.u32 %v16220_v25, %v13350_v23  ;;  %8768 = vmatpush.bf16.msra.mxu3 %v14151_v28 }
 0x5d4   : > { %v16284_v31 = vld [vmem:[%s17535_s19 + $0x12a4] sm:$0xf0] }
 0x5d5   : > { %v13862_v32 = vld [vmem:[%s17535_s19 + $0x1488] sm:$0xf]  ;;  %v13607_v54 = vor.u32 %v16284_v31, %v13606_v29  ;;  %8730 = vmatpush.bf16.msra.mxu0 %v13351_v2 }
 0x5d6   : > { %v16348_v17 = vld [vmem:[%s17535_s19 + $0x14a4] sm:$0xf0] }
 0x5d7   : > { %v14118_v34 = vld [vmem:[%s17535_s19 + $0x1688] sm:$0xf]  ;;  %v13863_v45 = vor.u32 %v16348_v17, %v13862_v32  ;;  %8743 = vmatpush.bf16.msra.mxu1 %v13607_v54 }
 0x5d8   : > { %v16412_v35 = vld [vmem:[%s17535_s19 + $0x16a4] sm:$0xf0] }
 0x5d9   : > { %v13318_v46 = vld [vmem:[%s17535_s19 + $0x1048] sm:$0xf]  ;;  %v14119_v37 = vor.u32 %v16412_v35, %v14118_v34  ;;  %8756 = vmatpush.bf16.msra.mxu2 %v13863_v45 }
 0x5da   : > { %v16212_v42 = vld [vmem:[%s17535_s19 + $0x1064] sm:$0xf0] }
 0x5db   : > { %v13574_v47 = vld [vmem:[%s17535_s19 + $0x1248] sm:$0xf]  ;;  %v13319_v52 = vor.u32 %v16212_v42, %v13318_v46  ;;  %8769 = vmatpush.bf16.msra.mxu3 %v14119_v37  ;;  %v16899_v46 = vld [vmem:[#allocation1] sm:$0xff] }
 0x5dc   : > { %v16276_v58 = vld [vmem:[%s17535_s19 + $0x1264] sm:$0xf0] }
 0x5dd   : > { %v13830_v40 = vld [vmem:[%s17535_s19 + $0x1448] sm:$0xf]  ;;  %v13575_v60 = vor.u32 %v16276_v58, %v13574_v47  ;;  %8731 = vmatpush.bf16.msra.mxu0 %v13319_v52 }
 0x5de   : > { %v16340_v48 = vld [vmem:[%s17535_s19 + $0x1464] sm:$0xf0] }
 0x5df   : > { %v14086_v19 = vld [vmem:[%s17535_s19 + $0x1648] sm:$0xf]  ;;  %v13831_v55 = vor.u32 %v16340_v48, %v13830_v40  ;;  %8744 = vmatpush.bf16.msra.mxu1 %v13575_v60  ;;  %v16901_v40 = vld [vmem:[#allocation1 + $0x9] sm:$0xff] }
 0x5e0   : > { %v16404_v22 = vld [vmem:[%s17535_s19 + $0x1664] sm:$0xf0] }
 0x5e1   : > { %v13286_v26 = vld [vmem:[%s17535_s19 + $0x1008] sm:$0xf]  ;;  %v14087_v5 = vor.u32 %v16404_v22, %v14086_v19  ;;  %8757 = vmatpush.bf16.msra.mxu2 %v13831_v55  ;;  %v16902_v22 = vld [vmem:[#allocation1 + $0x1b] sm:$0xff] }
 0x5e2   : > { %v16204_v53 = vld [vmem:[%s17535_s19 + $0x1024] sm:$0xf0] }
 0x5e3   : > { %v13542_v1 = vld [vmem:[%s17535_s19 + $0x1208] sm:$0xf]  ;;  %v13287_v59 = vor.u32 %v16204_v53, %v13286_v26  ;;  %8770 = vmatpush.bf16.msra.mxu3 %v14087_v5 }
 0x5e4   : > { %v16268_v57 = vld [vmem:[%s17535_s19 + $0x1224] sm:$0xf0] }
 0x5e5   : > { %v13798_v3 = vld [vmem:[%s17535_s19 + $0x1408] sm:$0xf]  ;;  %v13543_v6 = vor.u32 %v16268_v57, %v13542_v1  ;;  %8732 = vmatpush.bf16.msra.mxu0 %v13287_v59 }
 0x5e6   : > { %v16332_v7 = vld [vmem:[%s17535_s19 + $0x1424] sm:$0xf0] }
 0x5e7   : > { %v14054_v8 = vld [vmem:[%s17535_s19 + $0x1608] sm:$0xf]  ;;  %v13799_v10 = vor.u32 %v16332_v7, %v13798_v3  ;;  %8745 = vmatpush.bf16.msra.mxu1 %v13543_v6  ;;  %v8526_v7 = vpop.f32.mrf.mxu0 }
 0x5e8   : > { %v16396_v9 = vld [vmem:[%s17535_s19 + $0x1624] sm:$0xf0]  ;;  %8733 = vmatmul.bf16.vlgmr.msra.gmra.mxu0 %v16899_v46  ;;  %v8527_v27 = vadd.f32 %v8526_v7, %v18645_v38 }
 0x5e9   : > { %v14534_v56 = vld [vmem:[%s17535_s19 + $0x19c8] sm:$0xf]  ;;  %v14055_v16 = vor.u32 %v16396_v9, %v14054_v8  ;;  %8758 = vmatpush.bf16.msra.mxu2 %v13799_v10 }
 0x5ea   : > { %v16516_v33 = vld [vmem:[%s17535_s19 + $0x19e4] sm:$0xf0]  ;;  %8746 = vmatmul.bf16.vlgmr.msra.gmra.mxu1 %v16901_v40 }
 0x5eb   : > { %v14790_v63 = vld [vmem:[%s17535_s19 + $0x1bc8] sm:$0xf]  ;;  %v14535_v24 = vor.u32 %v16516_v33, %v14534_v56  ;;  %8771 = vmatpush.bf16.msra.mxu3 %v14055_v16  ;;  %v8539_v33 = vpop.f32.mrf.mxu1 }
 0x5ec   : > { %v16580_v12 = vld [vmem:[%s17535_s19 + $0x1be4] sm:$0xf0]  ;;  %v8540_v10 = vadd.f32 %v8539_v33, %v8527_v27 }
 0x5ed   : > { %v15046_v13 = vld [vmem:[%s17535_s19 + $0x1dc8] sm:$0xf]  ;;  %v14791_v11 = vor.u32 %v16580_v12, %v14790_v63  ;;  %8777 = vmatpush.bf16.msrb.mxu0 %v14535_v24 }
 0x5ee   : > { %v16644_v20 = vld [vmem:[%s17535_s19 + $0x1de4] sm:$0xf0]  ;;  %8772 = vmatmul.bf16.vlgmr.msra.gmra.mxu3 %v16902_v22 }
 0x5ef   : > { %v15302_v15 = vld [vmem:[%s17535_s19 + $0x1fc8] sm:$0xf]  ;;  %v15047_v23 = vor.u32 %v16644_v20, %v15046_v13  ;;  %8790 = vmatpush.bf16.msrb.mxu1 %v14791_v11 }
 0x5f0   : > { %v16708_v18 = vld [vmem:[%s17535_s19 + $0x1fe4] sm:$0xf0] }
 0x5f1   : > { %v14502_v25 = vld [vmem:[%s17535_s19 + $0x1988] sm:$0xf]  ;;  %v15303_v28 = vor.u32 %v16708_v18, %v15302_v15  ;;  %8803 = vmatpush.bf16.msrb.mxu2 %v15047_v23 }
 0x5f2   : > { %v16508_v29 = vld [vmem:[%s17535_s19 + $0x19a4] sm:$0xf0] }
 0x5f3   : > { %v14758_v30 = vld [vmem:[%s17535_s19 + $0x1b88] sm:$0xf]  ;;  %v14503_v34 = vor.u32 %v16508_v29, %v14502_v25  ;;  %8816 = vmatpush.bf16.msrb.mxu3 %v15303_v28  ;;  %v8541_v46 = vpop.f32.mrf.mxu1 }
 0x5f4   : > { %v16572_v31 = vld [vmem:[%s17535_s19 + $0x1ba4] sm:$0xf0]  ;;  %v11400_v46 = vld [vmem:[%s17535_s19 + $0x168] sm:$0xf0] }
 0x5f5   : > { %v15014_v32 = vld [vmem:[%s17535_s19 + $0x1d88] sm:$0xf]  ;;  %v14759_v35 = vor.u32 %v16572_v31, %v14758_v30  ;;  %8778 = vmatpush.bf16.msrb.mxu0 %v14503_v34 }
 0x5f6   : > { %v16636_v17 = vld [vmem:[%s17535_s19 + $0x1da4] sm:$0xf0] }
 0x5f7   : > { %v15270_v14 = vld [vmem:[%s17535_s19 + $0x1f88] sm:$0xf]  ;;  %v15015_v2 = vor.u32 %v16636_v17, %v15014_v32  ;;  %8791 = vmatpush.bf16.msrb.mxu1 %v14759_v35  ;;  %v8552_v32 = vpop.f32.mrf.mxu2  ;;  %v8565_v35 = vpop.f32.mrf.mxu3 }
 0x5f8   : > { %v16700_v21 = vld [vmem:[%s17535_s19 + $0x1fa4] sm:$0xf0]  ;;  %v8553_v34 = vadd.f32 %v8552_v32, %v8540_v10  ;;  %v15872_v10 = vld [vmem:[%s17535_s19 + $0x5cc] sm:$0xf] }
 0x5f9   : > { %v14470_v43 = vld [vmem:[%s17535_s19 + $0x1948] sm:$0xf]  ;;  %v15271_v42 = vor.u32 %v16700_v21, %v15270_v14  ;;  %8804 = vmatpush.bf16.msrb.mxu2 %v15015_v2 }
 0x5fa   : > { %v16500_v54 = vld [vmem:[%s17535_s19 + $0x1964] sm:$0xf0] }
 0x5fb   : > { %v14726_v45 = vld [vmem:[%s17535_s19 + $0x1b48] sm:$0xf]  ;;  %v14471_v52 = vor.u32 %v16500_v54, %v14470_v43  ;;  %8817 = vmatpush.bf16.msrb.mxu3 %v15271_v42  ;;  %v8528_v54 = vpop.f32.mrf.mxu0  ;;  %v18712_v42 = vadd.f32 %v8565_v35, %v8553_v34  ;;  %v15928_v34 = vld [vmem:[%s17535_s19 + $0x78c] sm:$0xf] }
 0x5fc   : > { %v16564_v47 = vld [vmem:[%s17535_s19 + $0x1b64] sm:$0xf0]  ;;  %v12200_v35 = vld [vmem:[%s17535_s19 + $0x7a8] sm:$0xf0] }
 0x5fd   : > { %v14982_v36 = vld [vmem:[%s17535_s19 + $0x1d48] sm:$0xf]  ;;  %v14727_v26 = vor.u32 %v16564_v47, %v14726_v45  ;;  %8779 = vmatpush.bf16.msrb.mxu0 %v14471_v52 }
 0x5fe   : > { %v16628_v37 = vld [vmem:[%s17535_s19 + $0x1d64] sm:$0xf0] }
 0x5ff   : > { %v16900_v58 = vld [vmem:[#allocation1 + $0x12] sm:$0xff]  ;;  %v14983_v53 = vor.u32 %v16628_v37, %v14982_v36  ;;  %8792 = vmatpush.bf16.msrb.mxu1 %v14727_v26  ;;  %v8554_v33 = vpop.f32.mrf.mxu2 }
 0x600   : > { %8759 = vmatmul.bf16.vlgmr.msra.gmra.mxu2 %v16900_v58  ;;  %v15238_v48 = vld [vmem:[%s17535_s19 + $0x1f48] sm:$0xf]  ;;  %v12136_v33 = vld [vmem:[%s17535_s19 + $0x728] sm:$0xf0] }
 0x601   : > { %v16692_v19 = vld [vmem:[%s17535_s19 + $0x1f64] sm:$0xf0]  ;;  %8805 = vmatpush.bf16.msrb.mxu2 %v14983_v53 }
 0x602   : > { %v14438_v60 = vld [vmem:[%s17535_s19 + $0x1908] sm:$0xf]  ;;  %v15239_v57 = vor.u32 %v16692_v19, %v15238_v48 }
 0x603   : > { %v16492_v55 = vld [vmem:[%s17535_s19 + $0x1924] sm:$0xf0] }
 0x604   : > { %v14694_v1 = vld [vmem:[%s17535_s19 + $0x1b08] sm:$0xf]  ;;  %v14439_v56 = vor.u32 %v16492_v55, %v14438_v60  ;;  %8818 = vmatpush.bf16.msrb.mxu3 %v15239_v57 }
 0x605   : > { %v16556_v3 = vld [vmem:[%s17535_s19 + $0x1b24] sm:$0xf0] }
 0x606   : > { %v14950_v39 = vld [vmem:[%s17535_s19 + $0x1d08] sm:$0xf]  ;;  %v14695_v63 = vor.u32 %v16556_v3, %v14694_v1  ;;  %8780 = vmatpush.bf16.msrb.mxu0 %v14439_v56 }
 0x607   : > { %v16620_v5 = vld [vmem:[%s17535_s19 + $0x1d24] sm:$0xf0] }
 0x608   : > { %v15206_v8 = vld [vmem:[%s17535_s19 + $0x1f08] sm:$0xf]  ;;  %v14951_v59 = vor.u32 %v16620_v5, %v14950_v39  ;;  %8793 = vmatpush.bf16.msrb.mxu1 %v14695_v63  ;;  %v15744_v63 = vld [vmem:[%s17535_s19 + $0x1cc] sm:$0xf] }
 0x609   : > { %v16684_v9 = vld [vmem:[%s17535_s19 + $0x1f24] sm:$0xf0] }
 0x60a   : > { %v14406_v12 = vld [vmem:[%s17535_s19 + $0x18c8] sm:$0xf]  ;;  %v15207_v6 = vor.u32 %v16684_v9, %v15206_v8  ;;  %8806 = vmatpush.bf16.msrb.mxu2 %v14951_v59  ;;  %v11464_v59 = vld [vmem:[%s17535_s19 + $0x1e8] sm:$0xf0] }
 0x60b   : > { %v16484_v13 = vld [vmem:[%s17535_s19 + $0x18e4] sm:$0xf0] }
 0x60c   : > { %v14662_v20 = vld [vmem:[%s17535_s19 + $0x1ac8] sm:$0xf]  ;;  %v14407_v11 = vor.u32 %v16484_v13, %v14406_v12  ;;  %8819 = vmatpush.bf16.msrb.mxu3 %v15207_v6  ;;  %v15808_v12 = vld [vmem:[%s17535_s19 + $0x3cc] sm:$0xf]  ;;  %v8567_v13 = vpop.f32.mrf.mxu3 }
 0x60d   : > { %v16548_v15 = vld [vmem:[%s17535_s19 + $0x1ae4] sm:$0xf0]  ;;  %v11720_v6 = vld [vmem:[%s17535_s19 + $0x3e8] sm:$0xf0] }
 0x60e   : > { %v14918_v18 = vld [vmem:[%s17535_s19 + $0x1cc8] sm:$0xf]  ;;  %v14663_v23 = vor.u32 %v16548_v15, %v14662_v20  ;;  %8781 = vmatpush.bf16.msrb.mxu0 %v14407_v11  ;;  %v11976_v15 = vld [vmem:[%s17535_s19 + $0x5e8] sm:$0xf0] }
 0x60f   : > { %v16612_v38 = vld [vmem:[%s17535_s19 + $0x1ce4] sm:$0xf0] }
 0x610   : > { %v15174_v16 = vld [vmem:[%s17535_s19 + $0x1ec8] sm:$0xf]  ;;  %v14919_v25 = vor.u32 %v16612_v38, %v14918_v18  ;;  %8794 = vmatpush.bf16.msrb.mxu1 %v14663_v23  ;;  %v11467_v23 = vor.u32 %v15744_v63, %v11464_v59 }
 0x611   : > { %v16676_v24 = vld [vmem:[%s17535_s19 + $0x1ee4] sm:$0xf0] }
 0x612   : > { %v14374_v29 = vld [vmem:[%s17535_s19 + $0x1888] sm:$0xf]  ;;  %v15175_v31 = vor.u32 %v16676_v24, %v15174_v16  ;;  %8807 = vmatpush.bf16.msrb.mxu2 %v14919_v25  ;;  %v15936_v16 = vld [vmem:[%s17535_s19 + $0x7cc] sm:$0xf]  ;;  %v11723_v25 = vor.u32 %v15808_v12, %v11720_v6  ;;  %v8591_v12 = vpop.f32.mrf.mxu1 }
 0x613   : > { %v16476_v30 = vld [vmem:[%s17535_s19 + $0x18a4] sm:$0xf0]  ;;  %v12232_v24 = vld [vmem:[%s17535_s19 + $0x7e8] sm:$0xf0] }
 0x614   : > { %v14630_v28 = vld [vmem:[%s17535_s19 + $0x1a88] sm:$0xf]  ;;  %v14375_v45 = vor.u32 %v16476_v30, %v14374_v29  ;;  %8820 = vmatpush.bf16.msrb.mxu3 %v15175_v31  ;;  %v11979_v29 = vor.u32 %v15872_v10, %v11976_v15  ;;  %v15736_v30 = vld [vmem:[%s17535_s19 + $0x18c] sm:$0xf]  ;;  %v12235_v32 = vor.u32 %v15936_v16, %v12232_v24 }
 0x615   : > { %v16540_v17 = vld [vmem:[%s17535_s19 + $0x1aa4] sm:$0xf0]  ;;  %v15800_v31 = vld [vmem:[%s17535_s19 + $0x38c] sm:$0xf] }
 0x616   : > { %v14886_v14 = vld [vmem:[%s17535_s19 + $0x1c88] sm:$0xf]  ;;  %v14631_v47 = vor.u32 %v16540_v17, %v14630_v28  ;;  %8782 = vmatpush.bf16.msrb.mxu0 %v14375_v45  ;;  %v11432_v28 = vld [vmem:[%s17535_s19 + $0x1a8] sm:$0xf0] }
 0x617   : > { %v16604_v21 = vld [vmem:[%s17535_s19 + $0x1ca4] sm:$0xf0]  ;;  %v11688_v17 = vld [vmem:[%s17535_s19 + $0x3a8] sm:$0xf0] }
 0x618   : > { %v15142_v2 = vld [vmem:[%s17535_s19 + $0x1e88] sm:$0xf]  ;;  %v14887_v36 = vor.u32 %v16604_v21, %v14886_v14  ;;  %8795 = vmatpush.bf16.msrb.mxu1 %v14631_v47  ;;  %v15864_v14 = vld [vmem:[%s17535_s19 + $0x58c] sm:$0xf] }
 0x619   : > { %v16668_v43 = vld [vmem:[%s17535_s19 + $0x1ea4] sm:$0xf0]  ;;  %v11944_v21 = vld [vmem:[%s17535_s19 + $0x5a8] sm:$0xf0] }
 0x61a   : > { %v14342_v37 = vld [vmem:[%s17535_s19 + $0x1848] sm:$0xf]  ;;  %v15143_v48 = vor.u32 %v16668_v43, %v15142_v2  ;;  %8808 = vmatpush.bf16.msrb.mxu2 %v14887_v36  ;;  %v11435_v2 = vor.u32 %v15736_v30, %v11432_v28  ;;  %v11691_v43 = vor.u32 %v15800_v31, %v11688_v17  ;;  %v11947_v54 = vor.u32 %v15864_v14, %v11944_v21  ;;  %v15728_v45 = vld [vmem:[%s17535_s19 + $0x14c] sm:$0xf]  ;;  %v16903_v36 = vld [vmem:[#allocation1 + $0x24] sm:$0xff]  ;;  %v8604_v14 = vpop.f32.mrf.mxu2 }
 0x61b   : > { %v16468_v58 = vld [vmem:[%s17535_s19 + $0x1864] sm:$0xf0]  ;;  %v15792_v47 = vld [vmem:[%s17535_s19 + $0x34c] sm:$0xf] }
 0x61c   : > { %v14598_v40 = vld [vmem:[%s17535_s19 + $0x1a48] sm:$0xf]  ;;  %v14343_v60 = vor.u32 %v16468_v58, %v14342_v37  ;;  %8821 = vmatpush.bf16.msrb.mxu3 %v15143_v48  ;;  %v12203_v37 = vor.u32 %v15928_v34, %v12200_v35  ;;  %v11656_v58 = vld [vmem:[%s17535_s19 + $0x368] sm:$0xf0] }
 0x61d   : > { %v16532_v19 = vld [vmem:[%s17535_s19 + $0x1a64] sm:$0xf0]  ;;  %v11912_v48 = vld [vmem:[%s17535_s19 + $0x568] sm:$0xf0] }
 0x61e   : > { %v14854_v22 = vld [vmem:[%s17535_s19 + $0x1c48] sm:$0xf]  ;;  %v14599_v57 = vor.u32 %v16532_v19, %v14598_v40  ;;  %8783 = vmatpush.bf16.msrb.mxu0 %v14343_v60  ;;  %v15856_v40 = vld [vmem:[%s17535_s19 + $0x54c] sm:$0xf]  ;;  %v11403_v60 = vor.u32 %v15728_v45, %v11400_v46 }
 0x61f   : > { %v16596_v52 = vld [vmem:[%s17535_s19 + $0x1c64] sm:$0xf0]  ;;  %v16904_v19 = vld [vmem:[#allocation1 + $0x36] sm:$0xff] }
 0x620   : > { %v15110_v26 = vld [vmem:[%s17535_s19 + $0x1e48] sm:$0xf]  ;;  %v14855_v3 = vor.u32 %v16596_v52, %v14854_v22  ;;  %8796 = vmatpush.bf16.msrb.mxu1 %v14599_v57  ;;  %v15920_v52 = vld [vmem:[%s17535_s19 + $0x74c] sm:$0xf] }
 0x621   : > { %v16660_v53 = vld [vmem:[%s17535_s19 + $0x1e64] sm:$0xf0]  ;;  %v15720_v57 = vld [vmem:[%s17535_s19 + $0x10c] sm:$0xf] }
 0x622   : > { %v14310_v55 = vld [vmem:[%s17535_s19 + $0x1808] sm:$0xf]  ;;  %v15111_v8 = vor.u32 %v16660_v53, %v15110_v26  ;;  %8809 = vmatpush.bf16.msrb.mxu2 %v14855_v3  ;;  %v12168_v26 = vld [vmem:[%s17535_s19 + $0x768] sm:$0xf0]  ;;  %v16906_v53 = vld [vmem:[#allocation1 + $0x3f] sm:$0xff] }
 0x623   : > { %v16460_v1 = vld [vmem:[%s17535_s19 + $0x1824] sm:$0xf0]  ;;  %v11368_v3 = vld [vmem:[%s17535_s19 + $0x128] sm:$0xf0] }
 0x624   : > { %v14566_v39 = vld [vmem:[%s17535_s19 + $0x1a08] sm:$0xf]  ;;  %v14311_v20 = vor.u32 %v16460_v1, %v14310_v55  ;;  %8822 = vmatpush.bf16.msrb.mxu3 %v15111_v8  ;;  %v11659_v55 = vor.u32 %v15792_v47, %v11656_v58  ;;  %v11915_v1 = vor.u32 %v15856_v40, %v11912_v48  ;;  %v15848_v8 = vld [vmem:[%s17535_s19 + $0x50c] sm:$0xf]  ;;  %v11371_v59 = vor.u32 %v15720_v57, %v11368_v3 }
 0x625   : > { %v16524_v5 = vld [vmem:[%s17535_s19 + $0x1a24] sm:$0xf0]  ;;  %v15712_v6 = vld [vmem:[%s17535_s19 + $0xcc] sm:$0xf] }
 0x626   : > { %v14822_v7 = vld [vmem:[%s17535_s19 + $0x1c08] sm:$0xf]  ;;  %v14567_v18 = vor.u32 %v16524_v5, %v14566_v39  ;;  %8784 = vmatpush.bf16.msrb.mxu0 %v14311_v20  ;;  %v15784_v39 = vld [vmem:[%s17535_s19 + $0x30c] sm:$0xf]  ;;  %v12171_v5 = vor.u32 %v15920_v52, %v12168_v26 }
 0x627   : > { %v16588_v9 = vld [vmem:[%s17535_s19 + $0x1c24] sm:$0xf0]  ;;  %v11336_v10 = vld [vmem:[%s17535_s19 + $0xe8] sm:$0xf0] }
 0x628   : > { %v15078_v27 = vld [vmem:[%s17535_s19 + $0x1e08] sm:$0xf]  ;;  %v14823_v38 = vor.u32 %v16588_v9, %v14822_v7  ;;  %8797 = vmatpush.bf16.msrb.mxu1 %v14567_v18  ;;  %v11624_v7 = vld [vmem:[%s17535_s19 + $0x328] sm:$0xf0] }
 0x629   : > { %v16652_v56 = vld [vmem:[%s17535_s19 + $0x1e24] sm:$0xf0]  ;;  %8785 = vmatmul.bf16.vlgmr.msrb.gmra.mxu0 %v16903_v36  ;;  %v11880_v9 = vld [vmem:[%s17535_s19 + $0x528] sm:$0xf0]  ;;  %v11627_v13 = vor.u32 %v15784_v39, %v11624_v7 }
 0x62a   : > { %v15079_v11 = vor.u32 %v16652_v56, %v15078_v27  ;;  %8810 = vmatpush.bf16.msrb.mxu2 %v14823_v38  ;;  %8829 = vmatpush.bf16.msra.mxu0 %v11467_v23  ;;  %v16905_v22 = vld [vmem:[#allocation1 + $0x2d] sm:$0xff]  ;;  %v8578_v27 = vpop.f32.mrf.mxu0  ;;  %v15912_v56 = vld [vmem:[%s17535_s19 + $0x70c] sm:$0xf]  ;;  %v11883_v20 = vor.u32 %v15848_v8, %v11880_v9 }
 0x62b   : > { %8798 = vmatmul.bf16.vlgmr.msrb.gmra.mxu1 %v16905_v22  ;;  %v8579_v63 = vadd.f32 %v8578_v27, %v18712_v42  ;;  %v15776_v15 = vld [vmem:[%s17535_s19 + $0x2cc] sm:$0xf]  ;;  %v12139_v18 = vor.u32 %v15912_v56, %v12136_v33 }
 0x62c   : > { %8823 = vmatpush.bf16.msrb.mxu3 %v15079_v11  ;;  %8842 = vmatpush.bf16.msra.mxu1 %v11723_v25  ;;  %v11592_v16 = vld [vmem:[%s17535_s19 + $0x2e8] sm:$0xf0]  ;;  %v11339_v25 = vor.u32 %v15712_v6, %v11336_v10 }
 0x62d   : > { %8811 = vmatmul.bf16.vlgmr.msrb.gmra.mxu2 %v16904_v19  ;;  %v8592_v38 = vadd.f32 %v8591_v12, %v8579_v63  ;;  %v15840_v24 = vld [vmem:[%s17535_s19 + $0x4cc] sm:$0xf] }
 0x62e   : > { %8855 = vmatpush.bf16.msra.mxu2 %v11979_v29  ;;  %8830 = vmatpush.bf16.msra.mxu0 %v11435_v2  ;;  %v11848_v42 = vld [vmem:[%s17535_s19 + $0x4e8] sm:$0xf0]  ;;  %v11595_v29 = vor.u32 %v15776_v15, %v11592_v16 }
 0x62f   : > { %8824 = vmatmul.bf16.vlgmr.msrb.gmra.mxu3 %v16906_v53  ;;  %v15904_v11 = vld [vmem:[%s17535_s19 + $0x6cc] sm:$0xf]  ;;  %v11851_v30 = vor.u32 %v15840_v24, %v11848_v42  ;;  %v8605_v2 = vadd.f32 %v8604_v14, %v8592_v38 }
 0x630   : > { %8868 = vmatpush.bf16.msra.mxu3 %v12235_v32  ;;  %8843 = vmatpush.bf16.msra.mxu1 %v11691_v43  ;;  %v12104_v23 = vld [vmem:[%s17535_s19 + $0x6e8] sm:$0xf0]  ;;  %v8617_v43 = vpop.f32.mrf.mxu3 }
 0x631   : > { %v15704_v28 = vld [vmem:[%s17535_s19 + $0x8c] sm:$0xf]  ;;  %v12107_v17 = vor.u32 %v15904_v11, %v12104_v23  ;;  %v8618_v58 = vadd.f32 %v8617_v43, %v8605_v2 }
 0x632   : > { %8856 = vmatpush.bf16.msra.mxu2 %v11947_v54  ;;  %8831 = vmatpush.bf16.msra.mxu0 %v11403_v60  ;;  %v11304_v31 = vld [vmem:[%s17535_s19 + $0xa8] sm:$0xf0]  ;;  %v8580_v46 = vpop.f32.mrf.mxu0 }
 0x633   : > { %v15768_v32 = vld [vmem:[%s17535_s19 + $0x28c] sm:$0xf]  ;;  %v11307_v47 = vor.u32 %v15704_v28, %v11304_v31  ;;  %vm9870_vm12 = vcmp.gt.f32.partialorder %v8618_v58, 0.0 }
 0x634   : > { %8869 = vmatpush.bf16.msra.mxu3 %v12203_v37  ;;  %8844 = vmatpush.bf16.msra.mxu1 %v11659_v55  ;;  %v11560_v21 = vld [vmem:[%s17535_s19 + $0x2a8] sm:$0xf0]  ;;  %v8593_v37 = vpop.f32.mrf.mxu1 }
 0x635   : > { %v15832_v34 = vld [vmem:[%s17535_s19 + $0x48c] sm:$0xf]  ;;  %v11563_v40 = vor.u32 %v15768_v32, %v11560_v21 }
 0x636   : > { %8857 = vmatpush.bf16.msra.mxu2 %v11915_v1  ;;  %8832 = vmatpush.bf16.msra.mxu0 %v11371_v59  ;;  %v11816_v35 = vld [vmem:[%s17535_s19 + $0x4a8] sm:$0xf0]  ;;  %v9878_v1 = vmul.f32 0.2, %v8618_v58 }
 0x637   : > { %v15896_v54 = vld [vmem:[%s17535_s19 + $0x68c] sm:$0xf]  ;;  %v11819_v48 = vor.u32 %v15832_v34, %v11816_v35 }
 0x638   : > { %8870 = vmatpush.bf16.msra.mxu3 %v12171_v5  ;;  %8845 = vmatpush.bf16.msra.mxu1 %v11627_v13  ;;  %v12072_v45 = vld [vmem:[%s17535_s19 + $0x6a8] sm:$0xf0]  ;;  %v18789_v7 = vsel %vm9870_vm12, %v8618_v58, %v9878_v1 }
 0x639   : > { %v15696_v36 = vld [vmem:[%s17535_s19 + $0x4c] sm:$0xf]  ;;  %v12075_v26 = vor.u32 %v15896_v54, %v12072_v45 }
 0x63a   : > { %8858 = vmatpush.bf16.msra.mxu2 %v11883_v20  ;;  %8833 = vmatpush.bf16.msra.mxu0 %v11339_v25  ;;  %v11272_v19 = vld [vmem:[%s17535_s19 + $0x68] sm:$0xf0]  ;;  %v8606_v20 = vpop.f32.mrf.mxu2 }
 0x63b   : > { %v15760_v22 = vld [vmem:[%s17535_s19 + $0x24c] sm:$0xf]  ;;  %v11275_v3 = vor.u32 %v15696_v36, %v11272_v19 }
 0x63c   : > { %8871 = vmatpush.bf16.msra.mxu3 %v12139_v18  ;;  %8846 = vmatpush.bf16.msra.mxu1 %v11595_v29  ;;  %v11528_v52 = vld [vmem:[%s17535_s19 + $0x268] sm:$0xf0]  ;;  %v8619_v18 = vpop.f32.mrf.mxu3 }
 0x63d   : > { %v15824_v53 = vld [vmem:[%s17535_s19 + $0x44c] sm:$0xf]  ;;  %v11531_v8 = vor.u32 %v15760_v22, %v11528_v52 }
 0x63e   : > { %8859 = vmatpush.bf16.msra.mxu2 %v11851_v30  ;;  %v11784_v60 = vld [vmem:[%s17535_s19 + $0x468] sm:$0xf0]  ;;  %8834 = vmatpush.bf16.msra.mxu0 %v11307_v47 }
 0x63f   : > { %v15888_v55 = vld [vmem:[%s17535_s19 + $0x64c] sm:$0xf]  ;;  %v11787_v9 = vor.u32 %v15824_v53, %v11784_v60 }
 0x640   : > { %8872 = vmatpush.bf16.msra.mxu3 %v12107_v17  ;;  %v12040_v57 = vld [vmem:[%s17535_s19 + $0x668] sm:$0xf0]  ;;  %8847 = vmatpush.bf16.msra.mxu1 %v11563_v40 }
 0x641   : > { %v15688_v39 = vld [vmem:[%s17535_s19 + $0xc] sm:$0xf]  ;;  %v12043_v63 = vor.u32 %v15888_v55, %v12040_v57 }
 0x642   : > { %v11240_v5 = vld [vmem:[%s17535_s19 + $0x28] sm:$0xf0]  ;;  %8860 = vmatpush.bf16.msra.mxu2 %v11819_v48  ;;  %8835 = vmatpush.bf16.msra.mxu0 %v11275_v3 }
 0x643   : > { %v15752_v27 = vld [vmem:[%s17535_s19 + $0x20c] sm:$0xf]  ;;  %v11243_v38 = vor.u32 %v15688_v39, %v11240_v5 }
 0x644   : > { %v11496_v56 = vld [vmem:[%s17535_s19 + $0x228] sm:$0xf0]  ;;  %8873 = vmatpush.bf16.msra.mxu3 %v12075_v26  ;;  %8848 = vmatpush.bf16.msra.mxu1 %v11531_v8 }
 0x645   : > { %v15816_v33 = vld [vmem:[%s17535_s19 + $0x40c] sm:$0xf]  ;;  %v11499_v11 = vor.u32 %v15752_v27, %v11496_v56 }
 0x646   : > { %v11752_v59 = vld [vmem:[%s17535_s19 + $0x428] sm:$0xf0]  ;;  %8861 = vmatpush.bf16.msra.mxu2 %v11787_v9  ;;  %8836 = vmatpush.bf16.msra.mxu0 %v11243_v38 }
 0x647   : > { %v15880_v12 = vld [vmem:[%s17535_s19 + $0x60c] sm:$0xf]  ;;  %v11755_v23 = vor.u32 %v15816_v33, %v11752_v59 }
 0x648   : > { %v12008_v13 = vld [vmem:[%s17535_s19 + $0x628] sm:$0xf0]  ;;  %8874 = vmatpush.bf16.msra.mxu3 %v12043_v63  ;;  %8849 = vmatpush.bf16.msra.mxu1 %v11499_v11 }
 0x649   : > { %v16000_v6 = vld [vmem:[%s17535_s19 + $0x9cc] sm:$0xf]  ;;  %v12011_v30 = vor.u32 %v15880_v12, %v12008_v13  ;;  %8837 = vmatmul.bf16.vlgmr.msra.gmra.mxu0 %v18003_v41  ;;  %v8630_v13 = vpop.f32.mrf.mxu0 }
 0x64a   : > { %v12488_v10 = vld [vmem:[%s17535_s19 + $0x9e8] sm:$0xf0]  ;;  %8862 = vmatpush.bf16.msra.mxu2 %v11755_v23 }
 0x64b   : > { %v16064_v15 = vld [vmem:[%s17535_s19 + $0xbcc] sm:$0xf]  ;;  %v12491_v28 = vor.u32 %v16000_v6, %v12488_v10  ;;  %8850 = vmatmul.bf16.vlgmr.msra.gmra.mxu1 %v18010_v50 }
 0x64c   : > { %v12744_v16 = vld [vmem:[%s17535_s19 + $0xbe8] sm:$0xf0]  ;;  %8875 = vmatpush.bf16.msra.mxu3 %v12011_v30 }
 0x64d   : > { %v16128_v24 = vld [vmem:[%s17535_s19 + $0xdcc] sm:$0xf]  ;;  %v12747_v31 = vor.u32 %v16064_v15, %v12744_v16  ;;  %8881 = vmatpush.bf16.msrb.mxu0 %v12491_v28  ;;  %8863 = vmatmul.bf16.vlgmr.msra.gmra.mxu2 %v18001_v4  ;;  %v8643_v16 = vpop.f32.mrf.mxu1 }
 0x64e   : > { %v13000_v42 = vld [vmem:[%s17535_s19 + $0xde8] sm:$0xf0] }
 0x64f   : > { %v16192_v25 = vld [vmem:[%s17535_s19 + $0xfcc] sm:$0xf]  ;;  %v13003_v32 = vor.u32 %v16128_v24, %v13000_v42  ;;  %8894 = vmatpush.bf16.msrb.mxu1 %v12747_v31  ;;  %8876 = vmatmul.bf16.vlgmr.msra.gmra.mxu3 %v18005_v61 }
 0x650   : > { %v13256_v29 = vld [vmem:[%s17535_s19 + $0xfe8] sm:$0xf0] }
 0x651   : > { %v15992_v17 = vld [vmem:[%s17535_s19 + $0x98c] sm:$0xf]  ;;  %v13259_v34 = vor.u32 %v16192_v25, %v13256_v29  ;;  %8907 = vmatpush.bf16.msrb.mxu2 %v13003_v32 }
 0x652   : > { %v12456_v14 = vld [vmem:[%s17535_s19 + $0x9a8] sm:$0xf0] }
 0x653   : > { %v16056_v21 = vld [vmem:[%s17535_s19 + $0xb8c] sm:$0xf]  ;;  %v12459_v46 = vor.u32 %v15992_v17, %v12456_v14  ;;  %8920 = vmatpush.bf16.msrb.mxu3 %v13259_v34  ;;  %v8656_v34 = vpop.f32.mrf.mxu2 }
 0x654   : > { %v12712_v35 = vld [vmem:[%s17535_s19 + $0xba8] sm:$0xf0] }
 0x655   : > { %v16120_v2 = vld [vmem:[%s17535_s19 + $0xd8c] sm:$0xf]  ;;  %v12715_v47 = vor.u32 %v16056_v21, %v12712_v35  ;;  %8882 = vmatpush.bf16.msrb.mxu0 %v12459_v46  ;;  %v8669_v46 = vpop.f32.mrf.mxu3 }
 0x656   : > { %v12968_v43 = vld [vmem:[%s17535_s19 + $0xda8] sm:$0xf0] }
 0x657   : > { %v16184_v54 = vld [vmem:[%s17535_s19 + $0xf8c] sm:$0xf]  ;;  %v12971_v36 = vor.u32 %v16120_v2, %v12968_v43  ;;  %8895 = vmatpush.bf16.msrb.mxu1 %v12715_v47 }
 0x658   : > { %v13224_v45 = vld [vmem:[%s17535_s19 + $0xfa8] sm:$0xf0] }
 0x659   : > { %v15984_v37 = vld [vmem:[%s17535_s19 + $0x94c] sm:$0xf]  ;;  %v13227_v48 = vor.u32 %v16184_v54, %v13224_v45  ;;  %8908 = vmatpush.bf16.msrb.mxu2 %v12971_v36 }
 0x65a   : > { %v12424_v58 = vld [vmem:[%s17535_s19 + $0x968] sm:$0xf0] }
 0x65b   : > { %v16048_v40 = vld [vmem:[%s17535_s19 + $0xb4c] sm:$0xf]  ;;  %v12427_v60 = vor.u32 %v15984_v37, %v12424_v58  ;;  %8921 = vmatpush.bf16.msrb.mxu3 %v13227_v48 }
 0x65c   : > { %v12680_v19 = vld [vmem:[%s17535_s19 + $0xb68] sm:$0xf0] }
 0x65d   : > { %v16112_v22 = vld [vmem:[%s17535_s19 + $0xd4c] sm:$0xf]  ;;  %v12683_v1 = vor.u32 %v16048_v40, %v12680_v19  ;;  %8883 = vmatpush.bf16.msrb.mxu0 %v12427_v60  ;;  %v8632_v40 = vpop.f32.mrf.mxu0 }
 0x65e   : > { %v12936_v52 = vld [vmem:[%s17535_s19 + $0xd68] sm:$0xf0] }
 0x65f   : > { %v16176_v26 = vld [vmem:[%s17535_s19 + $0xf4c] sm:$0xf]  ;;  %v12939_v57 = vor.u32 %v16112_v22, %v12936_v52  ;;  %8896 = vmatpush.bf16.msrb.mxu1 %v12683_v1 }
 0x660   : > { %v13192_v53 = vld [vmem:[%s17535_s19 + $0xf68] sm:$0xf0] }
 0x661   : > { %v15976_v55 = vld [vmem:[%s17535_s19 + $0x90c] sm:$0xf]  ;;  %v13195_v9 = vor.u32 %v16176_v26, %v13192_v53  ;;  %8909 = vmatpush.bf16.msrb.mxu2 %v12939_v57  ;;  %v8645_v53 = vpop.f32.mrf.mxu1 }
 0x662   : > { %v12392_v3 = vld [vmem:[%s17535_s19 + $0x928] sm:$0xf0] }
 0x663   : > { %v16040_v39 = vld [vmem:[%s17535_s19 + $0xb0c] sm:$0xf]  ;;  %v12395_v12 = vor.u32 %v15976_v55, %v12392_v3  ;;  %8922 = vmatpush.bf16.msrb.mxu3 %v13195_v9 }
 0x664   : > { %v16907_v5 = vld [vmem:[%s17550_s16] sm:$0xff] }
 0x665   : > { %v3035_v8 = vperm.slane %v16907_v5, 2  ;;  %v12648_v27 = vld [vmem:[%s17535_s19 + $0xb28] sm:$0xf0]  ;;  %8884 = vmatpush.bf16.msrb.mxu0 %v12395_v12  ;;  %v8658_v12 = vpop.f32.mrf.mxu2 }
 0x666   : > { %v16104_v56 = vld [vmem:[%s17535_s19 + $0xd0c] sm:$0xf]  ;;  %v12651_v20 = vor.u32 %v16040_v39, %v12648_v27 }
 0x667   : > { %v12904_v33 = vld [vmem:[%s17535_s19 + $0xd28] sm:$0xf0]  ;;  %v8631_v38 = vadd.f32 %v8630_v13, %v3035_v8 }
 0x668   : > { %v16168_v63 = vld [vmem:[%s17535_s19 + $0xf0c] sm:$0xf]  ;;  %v12907_v6 = vor.u32 %v16104_v56, %v12904_v33  ;;  %8897 = vmatpush.bf16.msrb.mxu1 %v12651_v20 }
 0x669   : > { %v13160_v59 = vld [vmem:[%s17535_s19 + $0xf28] sm:$0xf0]  ;;  %v8644_v30 = vadd.f32 %v8643_v16, %v8631_v38 }
 0x66a   : > { %v15968_v10 = vld [vmem:[%s17535_s19 + $0x8cc] sm:$0xf]  ;;  %v13163_v24 = vor.u32 %v16168_v63, %v13160_v59  ;;  %8910 = vmatpush.bf16.msrb.mxu2 %v12907_v6 }
 0x66b   : > { %v12360_v15 = vld [vmem:[%s17535_s19 + $0x8e8] sm:$0xf0]  ;;  %v8657_v45 = vadd.f32 %v8656_v34, %v8644_v30 }
 0x66c   : > { %v16032_v18 = vld [vmem:[%s17535_s19 + $0xacc] sm:$0xf]  ;;  %v12363_v28 = vor.u32 %v15968_v10, %v12360_v15  ;;  %8923 = vmatpush.bf16.msrb.mxu3 %v13163_v24  ;;  %v8671_v15 = vpop.f32.mrf.mxu3 }
 0x66d   : > { %v12616_v42 = vld [vmem:[%s17535_s19 + $0xae8] sm:$0xf0]  ;;  %v18850_v58 = vadd.f32 %v8669_v46, %v8657_v45 }
 0x66e   : > { %v16096_v11 = vld [vmem:[%s17535_s19 + $0xccc] sm:$0xf]  ;;  %v12619_v31 = vor.u32 %v16032_v18, %v12616_v42  ;;  %8885 = vmatpush.bf16.msrb.mxu0 %v12363_v28 }
 0x66f   : > { %v12872_v23 = vld [vmem:[%s17535_s19 + $0xce8] sm:$0xf0] }
 0x670   : > { %v16160_v25 = vld [vmem:[%s17535_s19 + $0xecc] sm:$0xf]  ;;  %v12875_v32 = vor.u32 %v16096_v11, %v12872_v23  ;;  %8898 = vmatpush.bf16.msrb.mxu1 %v12619_v31 }
 0x671   : > { %v13128_v29 = vld [vmem:[%s17535_s19 + $0xee8] sm:$0xf0] }
 0x672   : > { %v15960_v17 = vld [vmem:[%s17535_s19 + $0x88c] sm:$0xf]  ;;  %v13131_v35 = vor.u32 %v16160_v25, %v13128_v29  ;;  %8911 = vmatpush.bf16.msrb.mxu2 %v12875_v32 }
 0x673   : > { %v12328_v14 = vld [vmem:[%s17535_s19 + $0x8a8] sm:$0xf0] }
 0x674   : > { %v16024_v21 = vld [vmem:[%s17535_s19 + $0xa8c] sm:$0xf]  ;;  %v12331_v37 = vor.u32 %v15960_v17, %v12328_v14  ;;  %8924 = vmatpush.bf16.msrb.mxu3 %v13131_v35 }
 0x675   : > { %v12584_v2 = vld [vmem:[%s17535_s19 + $0xaa8] sm:$0xf0] }
 0x676   : > { %v16088_v43 = vld [vmem:[%s17535_s19 + $0xc8c] sm:$0xf]  ;;  %v12587_v48 = vor.u32 %v16024_v21, %v12584_v2  ;;  %8886 = vmatpush.bf16.msrb.mxu0 %v12331_v37 }
 0x677   : > { %v12840_v54 = vld [vmem:[%s17535_s19 + $0xca8] sm:$0xf0] }
 0x678   : > { %v16152_v47 = vld [vmem:[%s17535_s19 + $0xe8c] sm:$0xf]  ;;  %v12843_v19 = vor.u32 %v16088_v43, %v12840_v54  ;;  %8899 = vmatpush.bf16.msrb.mxu1 %v12587_v48 }
 0x679   : > { %v13096_v36 = vld [vmem:[%s17535_s19 + $0xea8] sm:$0xf0] }
 0x67a   : > { %v15952_v22 = vld [vmem:[%s17535_s19 + $0x84c] sm:$0xf]  ;;  %v13099_v60 = vor.u32 %v16152_v47, %v13096_v36  ;;  %8912 = vmatpush.bf16.msrb.mxu2 %v12843_v19 }
 0x67b   : > { %v12296_v52 = vld [vmem:[%s17535_s19 + $0x868] sm:$0xf0] }
 0x67c   : > { %v16016_v26 = vld [vmem:[%s17535_s19 + $0xa4c] sm:$0xf]  ;;  %v12299_v5 = vor.u32 %v15952_v22, %v12296_v52  ;;  %8925 = vmatpush.bf16.msrb.mxu3 %v13099_v60 }
 0x67d   : > { %v12552_v55 = vld [vmem:[%s17535_s19 + $0xa68] sm:$0xf0] }
 0x67e   : > { %v16080_v1 = vld [vmem:[%s17535_s19 + $0xc4c] sm:$0xf]  ;;  %v12555_v27 = vor.u32 %v16016_v26, %v12552_v55  ;;  %8887 = vmatpush.bf16.msrb.mxu0 %v12299_v5 }
 0x67f   : > { %v12808_v57 = vld [vmem:[%s17535_s19 + $0xc68] sm:$0xf0] }
 0x680   : > { %v16144_v3 = vld [vmem:[%s17535_s19 + $0xe4c] sm:$0xf]  ;;  %v12811_v56 = vor.u32 %v16080_v1, %v12808_v57  ;;  %8900 = vmatpush.bf16.msrb.mxu1 %v12555_v27 }
 0x681   : > { %v13064_v39 = vld [vmem:[%s17535_s19 + $0xe68] sm:$0xf0] }
 0x682   : > { %v15944_v8 = vld [vmem:[%s17535_s19 + $0x80c] sm:$0xf]  ;;  %v13067_v13 = vor.u32 %v16144_v3, %v13064_v39  ;;  %8913 = vmatpush.bf16.msrb.mxu2 %v12811_v56 }
 0x683   : > { %v12264_v9 = vld [vmem:[%s17535_s19 + $0x828] sm:$0xf0] }
 0x684   : > { %v16008_v33 = vld [vmem:[%s17535_s19 + $0xa0c] sm:$0xf]  ;;  %v12267_v24 = vor.u32 %v15944_v8, %v12264_v9  ;;  %8926 = vmatpush.bf16.msrb.mxu3 %v13067_v13 }
 0x685   : > { %v12520_v63 = vld [vmem:[%s17535_s19 + $0xa28] sm:$0xf0] }
 0x686   : > { %v16072_v59 = vld [vmem:[%s17535_s19 + $0xc0c] sm:$0xf]  ;;  %v12523_v25 = vor.u32 %v16008_v33, %v12520_v63  ;;  %8888 = vmatpush.bf16.msrb.mxu0 %v12267_v24  ;;  %v8695_v24 = vpop.f32.mrf.mxu1 }
 0x687   : > { %v12776_v20 = vld [vmem:[%s17535_s19 + $0xc28] sm:$0xf0] }
 0x688   : > { %v16136_v6 = vld [vmem:[%s17535_s19 + $0xe0c] sm:$0xf]  ;;  %v12779_v29 = vor.u32 %v16072_v59, %v12776_v20  ;;  %8901 = vmatpush.bf16.msrb.mxu1 %v12523_v25  ;;  %v8682_v20 = vpop.f32.mrf.mxu0 }
 0x689   : > { %v13032_v10 = vld [vmem:[%s17535_s19 + $0xe28] sm:$0xf0]  ;;  %8889 = vmatmul.bf16.vlgmr.msrb.gmra.mxu0 %v18041_v44 }
 0x68a   : > { %v16256_v18 = vld [vmem:[%s17535_s19 + $0x11cc] sm:$0xf]  ;;  %v13035_v31 = vor.u32 %v16136_v6, %v13032_v10  ;;  %8914 = vmatpush.bf16.msrb.mxu2 %v12779_v29 }
 0x68b   : > { %v13512_v38 = vld [vmem:[%s17535_s19 + $0x11e8] sm:$0xf0]  ;;  %8902 = vmatmul.bf16.vlgmr.msrb.gmra.mxu1 %v18045_v49 }
 0x68c   : > { %v16320_v16 = vld [vmem:[%s17535_s19 + $0x13cc] sm:$0xf]  ;;  %v13515_v32 = vor.u32 %v16256_v18, %v13512_v38  ;;  %8927 = vmatpush.bf16.msrb.mxu3 %v13035_v31 }
 0x68d   : > { %v13768_v42 = vld [vmem:[%s17535_s19 + $0x13e8] sm:$0xf0]  ;;  %8915 = vmatmul.bf16.vlgmr.msrb.gmra.mxu2 %v18039_v62 }
 0x68e   : > { %v16384_v11 = vld [vmem:[%s17535_s19 + $0x15cc] sm:$0xf]  ;;  %v13771_v17 = vor.u32 %v16320_v16, %v13768_v42  ;;  %8933 = vmatpush.bf16.msra.mxu0 %v13515_v32  ;;  %v8683_v16 = vadd.f32 %v8682_v20, %v18850_v58 }
 0x68f   : > { %v14024_v23 = vld [vmem:[%s17535_s19 + $0x15e8] sm:$0xf0]  ;;  %8928 = vmatmul.bf16.vlgmr.msrb.gmra.mxu3 %v18043_v0 }
 0x690   : > { %v16448_v30 = vld [vmem:[%s17535_s19 + $0x17cc] sm:$0xf]  ;;  %v14027_v14 = vor.u32 %v16384_v11, %v14024_v23  ;;  %8946 = vmatpush.bf16.msra.mxu1 %v13771_v17 }
 0x691   : > { %v14280_v28 = vld [vmem:[%s17535_s19 + $0x17e8] sm:$0xf0] }
 0x692   : > { %v16248_v21 = vld [vmem:[%s17535_s19 + $0x118c] sm:$0xf]  ;;  %v14283_v2 = vor.u32 %v16448_v30, %v14280_v28  ;;  %8959 = vmatpush.bf16.msra.mxu2 %v14027_v14  ;;  %v8696_v28 = vadd.f32 %v8695_v24, %v8683_v16 }
 0x693   : > { %v13480_v34 = vld [vmem:[%s17535_s19 + $0x11a8] sm:$0xf0] }
 0x694   : > { %v16312_v35 = vld [vmem:[%s17535_s19 + $0x138c] sm:$0xf]  ;;  %v13483_v36 = vor.u32 %v16248_v21, %v13480_v34  ;;  %8972 = vmatpush.bf16.msra.mxu3 %v14283_v2  ;;  %v8708_v34 = vpop.f32.mrf.mxu2 }
 0x695   : > { %v13736_v43 = vld [vmem:[%s17535_s19 + $0x13a8] sm:$0xf0] }
 0x696   : > { %v16376_v54 = vld [vmem:[%s17535_s19 + $0x158c] sm:$0xf]  ;;  %v13739_v37 = vor.u32 %v16312_v35, %v13736_v43  ;;  %8934 = vmatpush.bf16.msra.mxu0 %v13483_v36 }
 0x697   : > { %v13992_v45 = vld [vmem:[%s17535_s19 + $0x15a8] sm:$0xf0] }
 0x698   : > { %v16440_v46 = vld [vmem:[%s17535_s19 + $0x178c] sm:$0xf]  ;;  %v13995_v40 = vor.u32 %v16376_v54, %v13992_v45  ;;  %8947 = vmatpush.bf16.msra.mxu1 %v13739_v37  ;;  %v8709_v45 = vadd.f32 %v8708_v34, %v8696_v28 }
 0x699   : > { %v14248_v47 = vld [vmem:[%s17535_s19 + $0x17a8] sm:$0xf0] }
 0x69a   : > { %v16240_v48 = vld [vmem:[%s17535_s19 + $0x114c] sm:$0xf]  ;;  %v14251_v52 = vor.u32 %v16440_v46, %v14248_v47  ;;  %8960 = vmatpush.bf16.msra.mxu2 %v13995_v40  ;;  %v8721_v46 = vpop.f32.mrf.mxu3 }
 0x69b   : > { %v13448_v19 = vld [vmem:[%s17535_s19 + $0x1168] sm:$0xf0]  ;;  %v18921_v40 = vadd.f32 %v8721_v46, %v8709_v45 }
 0x69c   : > { %v16304_v22 = vld [vmem:[%s17535_s19 + $0x134c] sm:$0xf]  ;;  %v13451_v57 = vor.u32 %v16240_v48, %v13448_v19  ;;  %8973 = vmatpush.bf16.msra.mxu3 %v14251_v52  ;;  %v8684_v48 = vpop.f32.mrf.mxu0 }
 0x69d   : > { %v13704_v26 = vld [vmem:[%s17535_s19 + $0x1368] sm:$0xf0] }
 0x69e   : > { %v16368_v53 = vld [vmem:[%s17535_s19 + $0x154c] sm:$0xf]  ;;  %v13707_v3 = vor.u32 %v16304_v22, %v13704_v26  ;;  %8935 = vmatpush.bf16.msra.mxu0 %v13451_v57 }
 0x69f   : > { %v13960_v60 = vld [vmem:[%s17535_s19 + $0x1568] sm:$0xf0] }
 0x6a0   : > { %v16432_v55 = vld [vmem:[%s17535_s19 + $0x174c] sm:$0xf]  ;;  %v13963_v39 = vor.u32 %v16368_v53, %v13960_v60  ;;  %8948 = vmatpush.bf16.msra.mxu1 %v13707_v3  ;;  %v8697_v60 = vpop.f32.mrf.mxu1 }
 0x6a1   : > { %v14216_v1 = vld [vmem:[%s17535_s19 + $0x1768] sm:$0xf0] }
 0x6a2   : > { %v16232_v5 = vld [vmem:[%s17535_s19 + $0x110c] sm:$0xf]  ;;  %v14219_v27 = vor.u32 %v16432_v55, %v14216_v1  ;;  %8961 = vmatpush.bf16.msra.mxu2 %v13963_v39 }
 0x6a3   : > { %v13416_v8 = vld [vmem:[%s17535_s19 + $0x1128] sm:$0xf0] }
 0x6a4   : > { %v16296_v9 = vld [vmem:[%s17535_s19 + $0x130c] sm:$0xf]  ;;  %v13419_v13 = vor.u32 %v16232_v5, %v13416_v8  ;;  %8974 = vmatpush.bf16.msra.mxu3 %v14219_v27 }
 0x6a5   : > { %v13672_v56 = vld [vmem:[%s17535_s19 + $0x1328] sm:$0xf0] }
 0x6a6   : > { %v16360_v33 = vld [vmem:[%s17535_s19 + $0x150c] sm:$0xf]  ;;  %v13675_v6 = vor.u32 %v16296_v9, %v13672_v56  ;;  %8936 = vmatpush.bf16.msra.mxu0 %v13419_v13  ;;  %v8710_v13 = vpop.f32.mrf.mxu2 }
 0x6a7   : > { %v13928_v63 = vld [vmem:[%s17535_s19 + $0x1528] sm:$0xf0] }
 0x6a8   : > { %v16424_v59 = vld [vmem:[%s17535_s19 + $0x170c] sm:$0xf]  ;;  %v13931_v10 = vor.u32 %v16360_v33, %v13928_v63  ;;  %8949 = vmatpush.bf16.msra.mxu1 %v13675_v6 }
 0x6a9   : > { %v14184_v12 = vld [vmem:[%s17535_s19 + $0x1728] sm:$0xf0] }
 0x6aa   : > { %v16224_v15 = vld [vmem:[%s17535_s19 + $0x10cc] sm:$0xf]  ;;  %v14187_v42 = vor.u32 %v16424_v59, %v14184_v12  ;;  %8962 = vmatpush.bf16.msra.mxu2 %v13931_v10 }
 0x6ab   : > { %v13384_v18 = vld [vmem:[%s17535_s19 + $0x10e8] sm:$0xf0] }
 0x6ac   : > { %v16288_v38 = vld [vmem:[%s17535_s19 + $0x12cc] sm:$0xf]  ;;  %v13387_v31 = vor.u32 %v16224_v15, %v13384_v18  ;;  %8975 = vmatpush.bf16.msra.mxu3 %v14187_v42  ;;  %v8723_v18 = vpop.f32.mrf.mxu3 }
 0x6ad   : > { %v13640_v11 = vld [vmem:[%s17535_s19 + $0x12e8] sm:$0xf0] }
 0x6ae   : > { %v16352_v23 = vld [vmem:[%s17535_s19 + $0x14cc] sm:$0xf]  ;;  %v13643_v58 = vor.u32 %v16288_v38, %v13640_v11  ;;  %8937 = vmatpush.bf16.msra.mxu0 %v13387_v31 }
 0x6af   : > { %v13896_v25 = vld [vmem:[%s17535_s19 + $0x14e8] sm:$0xf0] }
 0x6b0   : > { %v16416_v29 = vld [vmem:[%s17535_s19 + $0x16cc] sm:$0xf]  ;;  %v13899_v32 = vor.u32 %v16352_v23, %v13896_v25  ;;  %8950 = vmatpush.bf16.msra.mxu1 %v13643_v58 }
 0x6b1   : > { %v14152_v30 = vld [vmem:[%s17535_s19 + $0x16e8] sm:$0xf0] }
 0x6b2   : > { %v16216_v17 = vld [vmem:[%s17535_s19 + $0x108c] sm:$0xf]  ;;  %v14155_v35 = vor.u32 %v16416_v29, %v14152_v30  ;;  %8963 = vmatpush.bf16.msra.mxu2 %v13899_v32 }
 0x6b3   : > { %v13352_v14 = vld [vmem:[%s17535_s19 + $0x10a8] sm:$0xf0] }
 0x6b4   : > { %v16280_v21 = vld [vmem:[%s17535_s19 + $0x128c] sm:$0xf]  ;;  %v13355_v37 = vor.u32 %v16216_v17, %v13352_v14  ;;  %8976 = vmatpush.bf16.msra.mxu3 %v14155_v35 }
 0x6b5   : > { %v13608_v2 = vld [vmem:[%s17535_s19 + $0x12a8] sm:$0xf0] }
 0x6b6   : > { %v16344_v43 = vld [vmem:[%s17535_s19 + $0x148c] sm:$0xf]  ;;  %v13611_v19 = vor.u32 %v16280_v21, %v13608_v2  ;;  %8938 = vmatpush.bf16.msra.mxu0 %v13355_v37 }
 0x6b7   : > { %v13864_v54 = vld [vmem:[%s17535_s19 + $0x14a8] sm:$0xf0] }
 0x6b8   : > { %v16408_v47 = vld [vmem:[%s17535_s19 + $0x168c] sm:$0xf]  ;;  %v13867_v22 = vor.u32 %v16344_v43, %v13864_v54  ;;  %8951 = vmatpush.bf16.msra.mxu1 %v13611_v19 }
 0x6b9   : > { %v14120_v36 = vld [vmem:[%s17535_s19 + $0x16a8] sm:$0xf0] }
 0x6ba   : > { %v16208_v52 = vld [vmem:[%s17535_s19 + $0x104c] sm:$0xf]  ;;  %v14123_v55 = vor.u32 %v16408_v47, %v14120_v36  ;;  %8964 = vmatpush.bf16.msra.mxu2 %v13867_v22 }
 0x6bb   : > { %v13320_v26 = vld [vmem:[%s17535_s19 + $0x1068] sm:$0xf0] }
 0x6bc   : > { %v16272_v53 = vld [vmem:[%s17535_s19 + $0x124c] sm:$0xf]  ;;  %v13323_v8 = vor.u32 %v16208_v52, %v13320_v26  ;;  %8977 = vmatpush.bf16.msra.mxu3 %v14123_v55  ;;  %v16908_v26 = vld [vmem:[#allocation1] sm:$0xff] }
 0x6bd   : > { %v13576_v1 = vld [vmem:[%s17535_s19 + $0x1268] sm:$0xf0] }
 0x6be   : > { %v16336_v57 = vld [vmem:[%s17535_s19 + $0x144c] sm:$0xf]  ;;  %v13579_v56 = vor.u32 %v16272_v53, %v13576_v1  ;;  %8939 = vmatpush.bf16.msra.mxu0 %v13323_v8  ;;  %v16911_v8 = vld [vmem:[#allocation1 + $0x1b] sm:$0xff] }
 0x6bf   : > { %v13832_v3 = vld [vmem:[%s17535_s19 + $0x1468] sm:$0xf0] }
 0x6c0   : > { %v16400_v39 = vld [vmem:[%s17535_s19 + $0x164c] sm:$0xf]  ;;  %v13835_v33 = vor.u32 %v16336_v57, %v13832_v3  ;;  %8952 = vmatpush.bf16.msra.mxu1 %v13579_v56  ;;  %v16910_v3 = vld [vmem:[#allocation1 + $0x9] sm:$0xff] }
 0x6c1   : > { %v14088_v5 = vld [vmem:[%s17535_s19 + $0x1668] sm:$0xf0] }
 0x6c2   : > { %v16200_v9 = vld [vmem:[%s17535_s19 + $0x100c] sm:$0xf]  ;;  %v14091_v20 = vor.u32 %v16400_v39, %v14088_v5  ;;  %8965 = vmatpush.bf16.msra.mxu2 %v13835_v33 }
 0x6c3   : > { %v13288_v27 = vld [vmem:[%s17535_s19 + $0x1028] sm:$0xf0] }
 0x6c4   : > { %v16264_v63 = vld [vmem:[%s17535_s19 + $0x120c] sm:$0xf]  ;;  %v13291_v42 = vor.u32 %v16200_v9, %v13288_v27  ;;  %8978 = vmatpush.bf16.msra.mxu3 %v14091_v20 }
 0x6c5   : > { %v13544_v59 = vld [vmem:[%s17535_s19 + $0x1228] sm:$0xf0] }
 0x6c6   : > { %v16328_v12 = vld [vmem:[%s17535_s19 + $0x140c] sm:$0xf]  ;;  %v13547_v29 = vor.u32 %v16264_v63, %v13544_v59  ;;  %8940 = vmatpush.bf16.msra.mxu0 %v13291_v42 }
 0x6c7   : > { %v13800_v6 = vld [vmem:[%s17535_s19 + $0x1428] sm:$0xf0] }
 0x6c8   : > { %v16392_v10 = vld [vmem:[%s17535_s19 + $0x160c] sm:$0xf]  ;;  %v13803_v30 = vor.u32 %v16328_v12, %v13800_v6  ;;  %8953 = vmatpush.bf16.msra.mxu1 %v13547_v29 }
 0x6c9   : > { %v14056_v15 = vld [vmem:[%s17535_s19 + $0x1628] sm:$0xf0]  ;;  %8941 = vmatmul.bf16.vlgmr.msra.gmra.mxu0 %v16908_v26 }
 0x6ca   : > { %v16512_v38 = vld [vmem:[%s17535_s19 + $0x19cc] sm:$0xf]  ;;  %v14059_v58 = vor.u32 %v16392_v10, %v14056_v15  ;;  %8966 = vmatpush.bf16.msra.mxu2 %v13803_v30  ;;  %v8734_v10 = vpop.f32.mrf.mxu0 }
 0x6cb   : > { %v14536_v16 = vld [vmem:[%s17535_s19 + $0x19e8] sm:$0xf0]  ;;  %8954 = vmatmul.bf16.vlgmr.msra.gmra.mxu1 %v16910_v3 }
 0x6cc   : > { %v16576_v24 = vld [vmem:[%s17535_s19 + $0x1bcc] sm:$0xf]  ;;  %v14539_v32 = vor.u32 %v16512_v38, %v14536_v16  ;;  %8979 = vmatpush.bf16.msra.mxu3 %v14059_v58  ;;  %v8735_v38 = vadd.f32 %v8734_v10, %v18921_v40 }
 0x6cd   : > { %v14792_v11 = vld [vmem:[%s17535_s19 + $0x1be8] sm:$0xf0] }
 0x6ce   : > { %v16640_v23 = vld [vmem:[%s17535_s19 + $0x1dcc] sm:$0xf]  ;;  %v14795_v17 = vor.u32 %v16576_v24, %v14792_v11  ;;  %8985 = vmatpush.bf16.msrb.mxu0 %v14539_v32  ;;  %v8747_v24 = vpop.f32.mrf.mxu1 }
 0x6cf   : > { %v15048_v25 = vld [vmem:[%s17535_s19 + $0x1de8] sm:$0xf0]  ;;  %8980 = vmatmul.bf16.vlgmr.msra.gmra.mxu3 %v16911_v8 }
 0x6d0   : > { %v16704_v28 = vld [vmem:[%s17535_s19 + $0x1fcc] sm:$0xf]  ;;  %v15051_v14 = vor.u32 %v16640_v23, %v15048_v25  ;;  %8998 = vmatpush.bf16.msrb.mxu1 %v14795_v17 }
 0x6d1   : > { %v15304_v31 = vld [vmem:[%s17535_s19 + $0x1fe8] sm:$0xf0] }
 0x6d2   : > { %v16504_v21 = vld [vmem:[%s17535_s19 + $0x198c] sm:$0xf]  ;;  %v15307_v2 = vor.u32 %v16704_v28, %v15304_v31  ;;  %9011 = vmatpush.bf16.msrb.mxu2 %v15051_v14  ;;  %v8748_v28 = vadd.f32 %v8747_v24, %v8735_v38 }
 0x6d3   : > { %v14504_v34 = vld [vmem:[%s17535_s19 + $0x19a8] sm:$0xf0] }
 0x6d4   : > { %v16568_v35 = vld [vmem:[%s17535_s19 + $0x1b8c] sm:$0xf]  ;;  %v14507_v36 = vor.u32 %v16504_v21, %v14504_v34  ;;  %9024 = vmatpush.bf16.msrb.mxu3 %v15307_v2 }
 0x6d5   : > { %v14760_v43 = vld [vmem:[%s17535_s19 + $0x1ba8] sm:$0xf0] }
 0x6d6   : > { %v16632_v54 = vld [vmem:[%s17535_s19 + $0x1d8c] sm:$0xf]  ;;  %v14763_v37 = vor.u32 %v16568_v35, %v14760_v43  ;;  %8986 = vmatpush.bf16.msrb.mxu0 %v14507_v36 }
 0x6d7   : > { %v15016_v45 = vld [vmem:[%s17535_s19 + $0x1da8] sm:$0xf0] }
 0x6d8   : > { %v16696_v46 = vld [vmem:[%s17535_s19 + $0x1f8c] sm:$0xf]  ;;  %v15019_v48 = vor.u32 %v16632_v54, %v15016_v45  ;;  %8999 = vmatpush.bf16.msrb.mxu1 %v14763_v37  ;;  %v8760_v45 = vpop.f32.mrf.mxu2 }
 0x6d9   : > { %v15272_v47 = vld [vmem:[%s17535_s19 + $0x1fa8] sm:$0xf0]  ;;  %v8761_v37 = vadd.f32 %v8760_v45, %v8748_v28  ;;  %v15813_v28 = vld [vmem:[%s17535_s19 + $0x3ec] sm:$0xf0] }
 0x6da   : > { %v16496_v19 = vld [vmem:[%s17535_s19 + $0x194c] sm:$0xf]  ;;  %v15275_v53 = vor.u32 %v16696_v46, %v15272_v47  ;;  %9012 = vmatpush.bf16.msrb.mxu2 %v15019_v48  ;;  %v8773_v48 = vpop.f32.mrf.mxu3  ;;  %v11694_v45 = vld [vmem:[%s17535_s19 + $0x390] sm:$0xf] }
 0x6db   : > { %v14472_v22 = vld [vmem:[%s17535_s19 + $0x1968] sm:$0xf0] }
 0x6dc   : > { %v16560_v52 = vld [vmem:[%s17535_s19 + $0x1b4c] sm:$0xf]  ;;  %v14475_v9 = vor.u32 %v16496_v19, %v14472_v22  ;;  %9025 = vmatpush.bf16.msrb.mxu3 %v15275_v53  ;;  %v8749_v53 = vpop.f32.mrf.mxu1 }
 0x6dd   : > { %v14728_v60 = vld [vmem:[%s17535_s19 + $0x1b68] sm:$0xf0]  ;;  %v11406_v53 = vld [vmem:[%s17535_s19 + $0x150] sm:$0xf] }
 0x6de   : > { %v16624_v55 = vld [vmem:[%s17535_s19 + $0x1d4c] sm:$0xf]  ;;  %v14731_v27 = vor.u32 %v16560_v52, %v14728_v60  ;;  %8987 = vmatpush.bf16.msrb.mxu0 %v14475_v9  ;;  %v8736_v52 = vpop.f32.mrf.mxu0  ;;  %v18988_v60 = vadd.f32 %v8773_v48, %v8761_v37  ;;  %v15869_v37 = vld [vmem:[%s17535_s19 + $0x5ac] sm:$0xf0] }
 0x6df   : > { %v14984_v1 = vld [vmem:[%s17535_s19 + $0x1d68] sm:$0xf0]  ;;  %v12206_v48 = vld [vmem:[%s17535_s19 + $0x790] sm:$0xf] }
 0x6e0   : > { %v16909_v57 = vld [vmem:[#allocation1 + $0x12] sm:$0xff]  ;;  %v14987_v56 = vor.u32 %v16624_v55, %v14984_v1  ;;  %9000 = vmatpush.bf16.msrb.mxu1 %v14731_v27 }
 0x6e1   : > { %8967 = vmatmul.bf16.vlgmr.msra.gmra.mxu2 %v16909_v57  ;;  %v16688_v39 = vld [vmem:[%s17535_s19 + $0x1f4c] sm:$0xf] }
 0x6e2   : > { %v15240_v5 = vld [vmem:[%s17535_s19 + $0x1f68] sm:$0xf0]  ;;  %9013 = vmatpush.bf16.msrb.mxu2 %v14987_v56 }
 0x6e3   : > { %v16488_v33 = vld [vmem:[%s17535_s19 + $0x190c] sm:$0xf]  ;;  %v15243_v12 = vor.u32 %v16688_v39, %v15240_v5 }
 0x6e4   : > { %v14440_v63 = vld [vmem:[%s17535_s19 + $0x1928] sm:$0xf0] }
 0x6e5   : > { %v16552_v59 = vld [vmem:[%s17535_s19 + $0x1b0c] sm:$0xf]  ;;  %v14443_v16 = vor.u32 %v16488_v33, %v14440_v63  ;;  %9026 = vmatpush.bf16.msrb.mxu3 %v15243_v12 }
 0x6e6   : > { %v14696_v13 = vld [vmem:[%s17535_s19 + $0x1b28] sm:$0xf0] }
 0x6e7   : > { %v16616_v20 = vld [vmem:[%s17535_s19 + $0x1d0c] sm:$0xf]  ;;  %v14699_v42 = vor.u32 %v16552_v59, %v14696_v13  ;;  %8988 = vmatpush.bf16.msrb.mxu0 %v14443_v16 }
 0x6e8   : > { %v14952_v6 = vld [vmem:[%s17535_s19 + $0x1d28] sm:$0xf0] }
 0x6e9   : > { %v16680_v15 = vld [vmem:[%s17535_s19 + $0x1f0c] sm:$0xf]  ;;  %v14955_v11 = vor.u32 %v16616_v20, %v14952_v6  ;;  %9001 = vmatpush.bf16.msrb.mxu1 %v14699_v42  ;;  %v8762_v42 = vpop.f32.mrf.mxu2 }
 0x6ea   : > { %v15208_v18 = vld [vmem:[%s17535_s19 + $0x1f28] sm:$0xf0]  ;;  %v12142_v42 = vld [vmem:[%s17535_s19 + $0x710] sm:$0xf] }
 0x6eb   : > { %v16480_v23 = vld [vmem:[%s17535_s19 + $0x18cc] sm:$0xf]  ;;  %v15211_v30 = vor.u32 %v16680_v15, %v15208_v18  ;;  %9014 = vmatpush.bf16.msrb.mxu2 %v14955_v11  ;;  %v11470_v11 = vld [vmem:[%s17535_s19 + $0x1d0] sm:$0xf] }
 0x6ec   : > { %v14408_v25 = vld [vmem:[%s17535_s19 + $0x18e8] sm:$0xf0] }
 0x6ed   : > { %v16544_v29 = vld [vmem:[%s17535_s19 + $0x1acc] sm:$0xf]  ;;  %v14411_v14 = vor.u32 %v16480_v23, %v14408_v25  ;;  %9027 = vmatpush.bf16.msrb.mxu3 %v15211_v30  ;;  %v15749_v23 = vld [vmem:[%s17535_s19 + $0x1ec] sm:$0xf0] }
 0x6ee   : > { %v14664_v31 = vld [vmem:[%s17535_s19 + $0x1ae8] sm:$0xf0]  ;;  %v11726_v25 = vld [vmem:[%s17535_s19 + $0x3d0] sm:$0xf] }
 0x6ef   : > { %v16608_v58 = vld [vmem:[%s17535_s19 + $0x1ccc] sm:$0xf]  ;;  %v14667_v21 = vor.u32 %v16544_v29, %v14664_v31  ;;  %8989 = vmatpush.bf16.msrb.mxu0 %v14411_v14  ;;  %v8775_v29 = vpop.f32.mrf.mxu3  ;;  %v11982_v31 = vld [vmem:[%s17535_s19 + $0x5d0] sm:$0xf] }
 0x6f0   : > { %v14920_v40 = vld [vmem:[%s17535_s19 + $0x1ce8] sm:$0xf0]  ;;  %v15941_v14 = vld [vmem:[%s17535_s19 + $0x7ec] sm:$0xf0]  ;;  %v8799_v29 = vpop.f32.mrf.mxu1 }
 0x6f1   : > { %v16672_v32 = vld [vmem:[%s17535_s19 + $0x1ecc] sm:$0xf]  ;;  %v14923_v34 = vor.u32 %v16608_v58, %v14920_v40  ;;  %9002 = vmatpush.bf16.msrb.mxu1 %v14667_v21  ;;  %v15877_v58 = vld [vmem:[%s17535_s19 + $0x5ec] sm:$0xf0] }
 0x6f2   : > { %v15176_v17 = vld [vmem:[%s17535_s19 + $0x1ee8] sm:$0xf0] }
 0x6f3   : > { %v16472_v35 = vld [vmem:[%s17535_s19 + $0x188c] sm:$0xf]  ;;  %v15179_v54 = vor.u32 %v16672_v32, %v15176_v17  ;;  %9015 = vmatpush.bf16.msrb.mxu2 %v14923_v34  ;;  %v12238_v17 = vld [vmem:[%s17535_s19 + $0x7d0] sm:$0xf]  ;;  %v11471_v34 = vor.u32 %v15749_v23, %v11470_v11 }
 0x6f4   : > { %v14376_v2 = vld [vmem:[%s17535_s19 + $0x18a8] sm:$0xf0]  ;;  %v15917_v11 = vld [vmem:[%s17535_s19 + $0x72c] sm:$0xf0] }
 0x6f5   : > { %v16536_v43 = vld [vmem:[%s17535_s19 + $0x1a8c] sm:$0xf]  ;;  %v14379_v26 = vor.u32 %v16472_v35, %v14376_v2  ;;  %9028 = vmatpush.bf16.msrb.mxu3 %v15179_v54  ;;  %v11727_v35 = vor.u32 %v15813_v28, %v11726_v25  ;;  %v11983_v2 = vor.u32 %v15877_v58, %v11982_v31  ;;  %v15741_v54 = vld [vmem:[%s17535_s19 + $0x1ac] sm:$0xf0] }
 0x6f6   : > { %v14632_v46 = vld [vmem:[%s17535_s19 + $0x1aa8] sm:$0xf0]  ;;  %v11342_v31 = vld [vmem:[%s17535_s19 + $0xd0] sm:$0xf] }
 0x6f7   : > { %v16600_v47 = vld [vmem:[%s17535_s19 + $0x1c8c] sm:$0xf]  ;;  %v14635_v55 = vor.u32 %v16536_v43, %v14632_v46  ;;  %8990 = vmatpush.bf16.msrb.mxu0 %v14379_v26  ;;  %v11438_v43 = vld [vmem:[%s17535_s19 + $0x190] sm:$0xf]  ;;  %v12239_v46 = vor.u32 %v15941_v14, %v12238_v17 }
 0x6f8   : > { %v14888_v36 = vld [vmem:[%s17535_s19 + $0x1ca8] sm:$0xf0]  ;;  %v15717_v58 = vld [vmem:[%s17535_s19 + $0xec] sm:$0xf0] }
 0x6f9   : > { %v16664_v19 = vld [vmem:[%s17535_s19 + $0x1e8c] sm:$0xf]  ;;  %v14891_v1 = vor.u32 %v16600_v47, %v14888_v36  ;;  %9003 = vmatpush.bf16.msrb.mxu1 %v14635_v55  ;;  %v15805_v47 = vld [vmem:[%s17535_s19 + $0x3ac] sm:$0xf0] }
 0x6fa   : > { %v15144_v22 = vld [vmem:[%s17535_s19 + $0x1ea8] sm:$0xf0]  ;;  %v11950_v36 = vld [vmem:[%s17535_s19 + $0x590] sm:$0xf]  ;;  %v11695_v52 = vor.u32 %v15805_v47, %v11694_v45 }
 0x6fb   : > { %v16464_v57 = vld [vmem:[%s17535_s19 + $0x184c] sm:$0xf]  ;;  %v15147_v5 = vor.u32 %v16664_v19, %v15144_v22  ;;  %9016 = vmatpush.bf16.msrb.mxu2 %v14891_v1  ;;  %v15933_v19 = vld [vmem:[%s17535_s19 + $0x7ac] sm:$0xf0]  ;;  %v11439_v22 = vor.u32 %v15741_v54, %v11438_v43  ;;  %v11951_v26 = vor.u32 %v15869_v37, %v11950_v36  ;;  %v8812_v37 = vpop.f32.mrf.mxu2 }
 0x6fc   : > { %v14344_v3 = vld [vmem:[%s17535_s19 + $0x1868] sm:$0xf0]  ;;  %v15733_v55 = vld [vmem:[%s17535_s19 + $0x16c] sm:$0xf0] }
 0x6fd   : > { %v16528_v39 = vld [vmem:[%s17535_s19 + $0x1a4c] sm:$0xf]  ;;  %v14347_v63 = vor.u32 %v16464_v57, %v14344_v3  ;;  %9029 = vmatpush.bf16.msrb.mxu3 %v15147_v5  ;;  %v11662_v1 = vld [vmem:[%s17535_s19 + $0x350] sm:$0xf]  ;;  %v16912_v57 = vld [vmem:[#allocation1 + $0x24] sm:$0xff]  ;;  %v12207_v3 = vor.u32 %v15933_v19, %v12206_v48 }
 0x6fe   : > { %v14600_v8 = vld [vmem:[%s17535_s19 + $0x1a68] sm:$0xf0]  ;;  %v11918_v5 = vld [vmem:[%s17535_s19 + $0x550] sm:$0xf] }
 0x6ff   : > { %v16592_v9 = vld [vmem:[%s17535_s19 + $0x1c4c] sm:$0xf]  ;;  %v14603_v13 = vor.u32 %v16528_v39, %v14600_v8  ;;  %8991 = vmatpush.bf16.msrb.mxu0 %v14347_v63  ;;  %v15797_v39 = vld [vmem:[%s17535_s19 + $0x36c] sm:$0xf0]  ;;  %v16915_v63 = vld [vmem:[#allocation1 + $0x3f] sm:$0xff] }
 0x700   : > { %v14856_v27 = vld [vmem:[%s17535_s19 + $0x1c68] sm:$0xf0]  ;;  %v15861_v8 = vld [vmem:[%s17535_s19 + $0x56c] sm:$0xf0] }
 0x701   : > { %v16656_v56 = vld [vmem:[%s17535_s19 + $0x1e4c] sm:$0xf]  ;;  %v14859_v20 = vor.u32 %v16592_v9, %v14856_v27  ;;  %9004 = vmatpush.bf16.msrb.mxu1 %v14603_v13  ;;  %v16914_v27 = vld [vmem:[#allocation1 + $0x2d] sm:$0xff]  ;;  %v11919_v13 = vor.u32 %v15861_v8, %v11918_v5  ;;  %v15781_v14 = vld [vmem:[%s17535_s19 + $0x2ec] sm:$0xf0] }
 0x702   : > { %v15112_v33 = vld [vmem:[%s17535_s19 + $0x1e68] sm:$0xf0]  ;;  %v11310_v45 = vld [vmem:[%s17535_s19 + $0x90] sm:$0xf] }
 0x703   : > { %v16456_v59 = vld [vmem:[%s17535_s19 + $0x180c] sm:$0xf]  ;;  %v15115_v18 = vor.u32 %v16656_v56, %v15112_v33  ;;  %9017 = vmatpush.bf16.msrb.mxu2 %v14859_v20  ;;  %v12174_v56 = vld [vmem:[%s17535_s19 + $0x750] sm:$0xf] }
 0x704   : > { %v14312_v12 = vld [vmem:[%s17535_s19 + $0x1828] sm:$0xf0]  ;;  %v15925_v33 = vld [vmem:[%s17535_s19 + $0x76c] sm:$0xf0] }
 0x705   : > { %v16520_v6 = vld [vmem:[%s17535_s19 + $0x1a0c] sm:$0xf]  ;;  %v14315_v30 = vor.u32 %v16456_v59, %v14312_v12  ;;  %9030 = vmatpush.bf16.msrb.mxu3 %v15115_v18  ;;  %v11407_v59 = vor.u32 %v15733_v55, %v11406_v53  ;;  %v11663_v12 = vor.u32 %v15797_v39, %v11662_v1  ;;  %v11374_v20 = vld [vmem:[%s17535_s19 + $0x110] sm:$0xf]  ;;  %v8801_v39 = vpop.f32.mrf.mxu1 }
 0x706   : > { %v14568_v10 = vld [vmem:[%s17535_s19 + $0x1a28] sm:$0xf0]  ;;  %v15789_v18 = vld [vmem:[%s17535_s19 + $0x32c] sm:$0xf0] }
 0x707   : > { %v16584_v15 = vld [vmem:[%s17535_s19 + $0x1c0c] sm:$0xf]  ;;  %v14571_v40 = vor.u32 %v16520_v6, %v14568_v10  ;;  %8992 = vmatpush.bf16.msrb.mxu0 %v14315_v30  ;;  %v15725_v6 = vld [vmem:[%s17535_s19 + $0x12c] sm:$0xf0] }
 0x708   : > { %v14824_v38 = vld [vmem:[%s17535_s19 + $0x1c28] sm:$0xf0]  ;;  %v11630_v10 = vld [vmem:[%s17535_s19 + $0x310] sm:$0xf]  ;;  %v11375_v25 = vor.u32 %v15725_v6, %v11374_v20 }
 0x709   : > { %v16648_v16 = vld [vmem:[%s17535_s19 + $0x1e0c] sm:$0xf]  ;;  %v14827_v32 = vor.u32 %v16584_v15, %v14824_v38  ;;  %9005 = vmatpush.bf16.msrb.mxu1 %v14571_v40  ;;  %v12175_v15 = vor.u32 %v15925_v33, %v12174_v56  ;;  %v11886_v38 = vld [vmem:[%s17535_s19 + $0x510] sm:$0xf]  ;;  %v11631_v30 = vor.u32 %v15789_v18, %v11630_v10 }
 0x70a   : > { %v15080_v24 = vld [vmem:[%s17535_s19 + $0x1e28] sm:$0xf0]  ;;  %8993 = vmatmul.bf16.vlgmr.msrb.gmra.mxu0 %v16912_v57  ;;  %v11598_v40 = vld [vmem:[%s17535_s19 + $0x2d0] sm:$0xf] }
 0x70b   : > { %v15083_v21 = vor.u32 %v16648_v16, %v15080_v24  ;;  %9018 = vmatpush.bf16.msrb.mxu2 %v14827_v32  ;;  %9037 = vmatpush.bf16.msra.mxu0 %v11471_v34  ;;  %v16913_v9 = vld [vmem:[#allocation1 + $0x36] sm:$0xff]  ;;  %v8786_v24 = vpop.f32.mrf.mxu0  ;;  %v12143_v32 = vor.u32 %v15917_v11, %v12142_v42  ;;  %v11599_v43 = vor.u32 %v15781_v14, %v11598_v40 }
 0x70c   : > { %9006 = vmatmul.bf16.vlgmr.msrb.gmra.mxu1 %v16914_v27  ;;  %v15853_v16 = vld [vmem:[%s17535_s19 + $0x52c] sm:$0xf0]  ;;  %v8787_v23 = vadd.f32 %v8786_v24, %v18988_v60 }
 0x70d   : > { %9031 = vmatpush.bf16.msrb.mxu3 %v15083_v21  ;;  %9050 = vmatpush.bf16.msra.mxu1 %v11727_v35  ;;  %v11887_v28 = vor.u32 %v15853_v16, %v11886_v38  ;;  %v11854_v21 = vld [vmem:[%s17535_s19 + $0x4d0] sm:$0xf] }
 0x70e   : > { %9019 = vmatmul.bf16.vlgmr.msrb.gmra.mxu2 %v16913_v9  ;;  %v8800_v17 = vadd.f32 %v8799_v29, %v8787_v23  ;;  %v15845_v60 = vld [vmem:[%s17535_s19 + $0x4ec] sm:$0xf0] }
 0x70f   : > { %9063 = vmatpush.bf16.msra.mxu2 %v11983_v2  ;;  %9038 = vmatpush.bf16.msra.mxu0 %v11439_v22  ;;  %v12110_v34 = vld [vmem:[%s17535_s19 + $0x6d0] sm:$0xf]  ;;  %v11343_v2 = vor.u32 %v15717_v58, %v11342_v31  ;;  %v11855_v54 = vor.u32 %v15845_v60, %v11854_v21  ;;  %v8814_v31 = vpop.f32.mrf.mxu2 }
 0x710   : > { %9032 = vmatmul.bf16.vlgmr.msrb.gmra.mxu3 %v16915_v63  ;;  %v15909_v35 = vld [vmem:[%s17535_s19 + $0x6ec] sm:$0xf0] }
 0x711   : > { %9076 = vmatpush.bf16.msra.mxu3 %v12239_v46  ;;  %9051 = vmatpush.bf16.msra.mxu1 %v11695_v52  ;;  %v15709_v46 = vld [vmem:[%s17535_s19 + $0xac] sm:$0xf0]  ;;  %v12111_v36 = vor.u32 %v15909_v35, %v12110_v34  ;;  %v8813_v52 = vadd.f32 %v8812_v37, %v8800_v17 }
 0x712   : > { %v11566_v47 = vld [vmem:[%s17535_s19 + $0x290] sm:$0xf]  ;;  %v11311_v57 = vor.u32 %v15709_v46, %v11310_v45 }
 0x713   : > { %9064 = vmatpush.bf16.msra.mxu2 %v11951_v26  ;;  %9039 = vmatpush.bf16.msra.mxu0 %v11407_v59  ;;  %v15773_v48 = vld [vmem:[%s17535_s19 + $0x2ac] sm:$0xf0]  ;;  %v8825_v26 = vpop.f32.mrf.mxu3  ;;  %v8788_v1 = vpop.f32.mrf.mxu0 }
 0x714   : > { %v11822_v19 = vld [vmem:[%s17535_s19 + $0x490] sm:$0xf]  ;;  %v8826_v5 = vadd.f32 %v8825_v26, %v8813_v52  ;;  %v11567_v8 = vor.u32 %v15773_v48, %v11566_v47 }
 0x715   : > { %9077 = vmatpush.bf16.msra.mxu3 %v12207_v3  ;;  %9052 = vmatpush.bf16.msra.mxu1 %v11663_v12  ;;  %v15837_v22 = vld [vmem:[%s17535_s19 + $0x4ac] sm:$0xf0] }
 0x716   : > { %v12078_v53 = vld [vmem:[%s17535_s19 + $0x690] sm:$0xf]  ;;  %v11823_v9 = vor.u32 %v15837_v22, %v11822_v19  ;;  %vm9871_vm13 = vcmp.gt.f32.partialorder %v8826_v5, 0.0  ;;  %v9879_v20 = vmul.f32 0.2, %v8826_v5 }
 0x717   : > { %9065 = vmatpush.bf16.msra.mxu2 %v11919_v13  ;;  %9040 = vmatpush.bf16.msra.mxu0 %v11375_v25  ;;  %v15901_v55 = vld [vmem:[%s17535_s19 + $0x6ac] sm:$0xf0] }
 0x718   : > { %v11278_v3 = vld [vmem:[%s17535_s19 + $0x50] sm:$0xf]  ;;  %v12079_v63 = vor.u32 %v15901_v55, %v12078_v53  ;;  %v19065_v38 = vsel %vm9871_vm13, %v8826_v5, %v9879_v20 }
 0x719   : > { %9078 = vmatpush.bf16.msra.mxu3 %v12175_v15  ;;  %9053 = vmatpush.bf16.msra.mxu1 %v11631_v30  ;;  %v15701_v27 = vld [vmem:[%s17535_s19 + $0x6c] sm:$0xf0] }
 0x71a   : > { %v11534_v56 = vld [vmem:[%s17535_s19 + $0x250] sm:$0xf]  ;;  %v11279_v10 = vor.u32 %v15701_v27, %v11278_v3 }
 0x71b   : > { %9066 = vmatpush.bf16.msra.mxu2 %v11887_v28  ;;  %9041 = vmatpush.bf16.msra.mxu0 %v11343_v2  ;;  %v15765_v33 = vld [vmem:[%s17535_s19 + $0x26c] sm:$0xf0]  ;;  %v8827_v17 = vpop.f32.mrf.mxu3  ;;  %v8838_v31 = vpop.f32.mrf.mxu0 }
 0x71c   : > { %v11790_v59 = vld [vmem:[%s17535_s19 + $0x450] sm:$0xf]  ;;  %v11535_v16 = vor.u32 %v15765_v33, %v11534_v56 }
 0x71d   : > { %9079 = vmatpush.bf16.msra.mxu3 %v12143_v32  ;;  %9054 = vmatpush.bf16.msra.mxu1 %v11599_v43  ;;  %v15829_v12 = vld [vmem:[%s17535_s19 + $0x46c] sm:$0xf0] }
 0x71e   : > { %v12046_v13 = vld [vmem:[%s17535_s19 + $0x650] sm:$0xf]  ;;  %v11791_v24 = vor.u32 %v15829_v12, %v11790_v59 }
 0x71f   : > { %9067 = vmatpush.bf16.msra.mxu2 %v11855_v54  ;;  %v15893_v6 = vld [vmem:[%s17535_s19 + $0x66c] sm:$0xf0]  ;;  %9042 = vmatpush.bf16.msra.mxu0 %v11311_v57 }
 0x720   : > { %v11246_v15 = vld [vmem:[%s17535_s19 + $0x10] sm:$0xf]  ;;  %v12047_v25 = vor.u32 %v15893_v6, %v12046_v13 }
 0x721   : > { %9080 = vmatpush.bf16.msra.mxu3 %v12111_v36  ;;  %v15693_v18 = vld [vmem:[%s17535_s19 + $0x2c] sm:$0xf0]  ;;  %9055 = vmatpush.bf16.msra.mxu1 %v11567_v8 }
 0x722   : > { %v11502_v42 = vld [vmem:[%s17535_s19 + $0x210] sm:$0xf]  ;;  %v11247_v14 = vor.u32 %v15693_v18, %v11246_v15 }
 0x723   : > { %9068 = vmatpush.bf16.msra.mxu2 %v11823_v9  ;;  %v15757_v11 = vld [vmem:[%s17535_s19 + $0x22c] sm:$0xf0]  ;;  %9043 = vmatpush.bf16.msra.mxu0 %v11279_v10 }
 0x724   : > { %v11758_v23 = vld [vmem:[%s17535_s19 + $0x410] sm:$0xf]  ;;  %v11503_v35 = vor.u32 %v15757_v11, %v11502_v42 }
 0x725   : > { %9081 = vmatpush.bf16.msra.mxu3 %v12079_v63  ;;  %v15821_v29 = vld [vmem:[%s17535_s19 + $0x42c] sm:$0xf0]  ;;  %9056 = vmatpush.bf16.msra.mxu1 %v11535_v16  ;;  %v16916_v16 = vld [vmem:[%s17550_s16] sm:$0xff] }
 0x726   : > { %v12014_v30 = vld [vmem:[%s17535_s19 + $0x610] sm:$0xf]  ;;  %v11759_v2 = vor.u32 %v15821_v29, %v11758_v23 }
 0x727   : > { %v15885_v28 = vld [vmem:[%s17535_s19 + $0x62c] sm:$0xf0]  ;;  %9069 = vmatpush.bf16.msra.mxu2 %v11791_v24  ;;  %9044 = vmatpush.bf16.msra.mxu0 %v11247_v14  ;;  %v3036_v24 = vperm.slane %v16916_v16, 3 }
 0x728   : > { %v12494_v58 = vld [vmem:[%s17535_s19 + $0x9d0] sm:$0xf]  ;;  %v12015_v45 = vor.u32 %v15885_v28, %v12014_v30 }
 0x729   : > { %v16005_v40 = vld [vmem:[%s17535_s19 + $0x9ec] sm:$0xf0]  ;;  %9082 = vmatpush.bf16.msra.mxu3 %v12047_v25  ;;  %9057 = vmatpush.bf16.msra.mxu1 %v11503_v35 }
 0x72a   : > { %v12750_v32 = vld [vmem:[%s17535_s19 + $0xbd0] sm:$0xf]  ;;  %v12495_v46 = vor.u32 %v16005_v40, %v12494_v58  ;;  %9045 = vmatmul.bf16.vlgmr.msra.gmra.mxu0 %v18003_v41 }
 0x72b   : > { %v16069_v21 = vld [vmem:[%s17535_s19 + $0xbec] sm:$0xf0]  ;;  %9070 = vmatpush.bf16.msra.mxu2 %v11759_v2 }
 0x72c   : > { %v13006_v60 = vld [vmem:[%s17535_s19 + $0xdd0] sm:$0xf]  ;;  %v12751_v47 = vor.u32 %v16069_v21, %v12750_v32  ;;  %9089 = vmatpush.bf16.msrb.mxu0 %v12495_v46  ;;  %9058 = vmatmul.bf16.vlgmr.msra.gmra.mxu1 %v18010_v50  ;;  %v8839_v21 = vadd.f32 %v8838_v31, %v3036_v24 }
 0x72d   : > { %v16133_v34 = vld [vmem:[%s17535_s19 + $0xdec] sm:$0xf0]  ;;  %9083 = vmatpush.bf16.msra.mxu3 %v12015_v45 }
 0x72e   : > { %v13262_v43 = vld [vmem:[%s17535_s19 + $0xfd0] sm:$0xf]  ;;  %v13007_v36 = vor.u32 %v16133_v34, %v13006_v60  ;;  %9102 = vmatpush.bf16.msrb.mxu1 %v12751_v47  ;;  %9071 = vmatmul.bf16.vlgmr.msra.gmra.mxu2 %v18001_v4  ;;  %v8851_v60 = vpop.f32.mrf.mxu1 }
 0x72f   : > { %v16197_v54 = vld [vmem:[%s17535_s19 + $0xfec] sm:$0xf0]  ;;  %v8852_v46 = vadd.f32 %v8851_v60, %v8839_v21 }
 0x730   : > { %v12462_v37 = vld [vmem:[%s17535_s19 + $0x990] sm:$0xf]  ;;  %v13263_v22 = vor.u32 %v16197_v54, %v13262_v43  ;;  %9115 = vmatpush.bf16.msrb.mxu2 %v13007_v36  ;;  %9084 = vmatmul.bf16.vlgmr.msra.gmra.mxu3 %v18005_v61 }
 0x731   : > { %v15997_v48 = vld [vmem:[%s17535_s19 + $0x9ac] sm:$0xf0] }
 0x732   : > { %v12718_v19 = vld [vmem:[%s17535_s19 + $0xb90] sm:$0xf]  ;;  %v12463_v57 = vor.u32 %v15997_v48, %v12462_v37  ;;  %9128 = vmatpush.bf16.msrb.mxu3 %v13263_v22 }
 0x733   : > { %v16061_v52 = vld [vmem:[%s17535_s19 + $0xbac] sm:$0xf0] }
 0x734   : > { %v12974_v26 = vld [vmem:[%s17535_s19 + $0xd90] sm:$0xf]  ;;  %v12719_v3 = vor.u32 %v16061_v52, %v12718_v19  ;;  %9090 = vmatpush.bf16.msrb.mxu0 %v12463_v57  ;;  %v8864_v52 = vpop.f32.mrf.mxu2 }
 0x735   : > { %v16125_v53 = vld [vmem:[%s17535_s19 + $0xdac] sm:$0xf0]  ;;  %v8865_v57 = vadd.f32 %v8864_v52, %v8852_v46 }
 0x736   : > { %v13230_v55 = vld [vmem:[%s17535_s19 + $0xf90] sm:$0xf]  ;;  %v12975_v39 = vor.u32 %v16125_v53, %v12974_v26  ;;  %9103 = vmatpush.bf16.msrb.mxu1 %v12719_v3  ;;  %v8877_v3 = vpop.f32.mrf.mxu3 }
 0x737   : > { %v16189_v1 = vld [vmem:[%s17535_s19 + $0xfac] sm:$0xf0] }
 0x738   : > { %v12430_v5 = vld [vmem:[%s17535_s19 + $0x950] sm:$0xf]  ;;  %v13231_v27 = vor.u32 %v16189_v1, %v13230_v55  ;;  %9116 = vmatpush.bf16.msrb.mxu2 %v12975_v39 }
 0x739   : > { %v15989_v8 = vld [vmem:[%s17535_s19 + $0x96c] sm:$0xf0] }
 0x73a   : > { %v12686_v9 = vld [vmem:[%s17535_s19 + $0xb50] sm:$0xf]  ;;  %v12431_v13 = vor.u32 %v15989_v8, %v12430_v5  ;;  %9129 = vmatpush.bf16.msrb.mxu3 %v13231_v27  ;;  %v8840_v27 = vpop.f32.mrf.mxu0 }
 0x73b   : > { %v16053_v56 = vld [vmem:[%s17535_s19 + $0xb6c] sm:$0xf0] }
 0x73c   : > { %v12942_v33 = vld [vmem:[%s17535_s19 + $0xd50] sm:$0xf]  ;;  %v12687_v6 = vor.u32 %v16053_v56, %v12686_v9  ;;  %9091 = vmatpush.bf16.msrb.mxu0 %v12431_v13  ;;  %v19126_v9 = vadd.f32 %v8877_v3, %v8865_v57  ;;  %v8853_v13 = vpop.f32.mrf.mxu1  ;;  %v8866_v31 = vpop.f32.mrf.mxu2 }
 0x73d   : > { %v16117_v63 = vld [vmem:[%s17535_s19 + $0xd6c] sm:$0xf0] }
 0x73e   : > { %v13198_v59 = vld [vmem:[%s17535_s19 + $0xf50] sm:$0xf]  ;;  %v12943_v10 = vor.u32 %v16117_v63, %v12942_v33  ;;  %9104 = vmatpush.bf16.msrb.mxu1 %v12687_v6 }
 0x73f   : > { %v16181_v12 = vld [vmem:[%s17535_s19 + $0xf6c] sm:$0xf0] }
 0x740   : > { %v12398_v20 = vld [vmem:[%s17535_s19 + $0x910] sm:$0xf]  ;;  %v13199_v42 = vor.u32 %v16181_v12, %v13198_v59  ;;  %9117 = vmatpush.bf16.msrb.mxu2 %v12943_v10 }
 0x741   : > { %v15981_v15 = vld [vmem:[%s17535_s19 + $0x92c] sm:$0xf0] }
 0x742   : > { %v12654_v18 = vld [vmem:[%s17535_s19 + $0xb10] sm:$0xf]  ;;  %v12399_v28 = vor.u32 %v15981_v15, %v12398_v20  ;;  %9130 = vmatpush.bf16.msrb.mxu3 %v13199_v42 }
 0x743   : > { %v16045_v11 = vld [vmem:[%s17535_s19 + $0xb2c] sm:$0xf0] }
 0x744   : > { %v12910_v23 = vld [vmem:[%s17535_s19 + $0xd10] sm:$0xf]  ;;  %v12655_v58 = vor.u32 %v16045_v11, %v12654_v18  ;;  %9092 = vmatpush.bf16.msrb.mxu0 %v12399_v28 }
 0x745   : > { %v16109_v25 = vld [vmem:[%s17535_s19 + $0xd2c] sm:$0xf0] }
 0x746   : > { %v13166_v29 = vld [vmem:[%s17535_s19 + $0xf10] sm:$0xf]  ;;  %v12911_v40 = vor.u32 %v16109_v25, %v12910_v23  ;;  %9105 = vmatpush.bf16.msrb.mxu1 %v12655_v58 }
 0x747   : > { %v16173_v30 = vld [vmem:[%s17535_s19 + $0xf2c] sm:$0xf0] }
 0x748   : > { %v12366_v32 = vld [vmem:[%s17535_s19 + $0x8d0] sm:$0xf]  ;;  %v13167_v34 = vor.u32 %v16173_v30, %v13166_v29  ;;  %9118 = vmatpush.bf16.msrb.mxu2 %v12911_v40 }
 0x749   : > { %v15973_v17 = vld [vmem:[%s17535_s19 + $0x8ec] sm:$0xf0] }
 0x74a   : > { %v12622_v14 = vld [vmem:[%s17535_s19 + $0xad0] sm:$0xf]  ;;  %v12367_v47 = vor.u32 %v15973_v17, %v12366_v32  ;;  %9131 = vmatpush.bf16.msrb.mxu3 %v13167_v34 }
 0x74b   : > { %v16037_v35 = vld [vmem:[%s17535_s19 + $0xaec] sm:$0xf0] }
 0x74c   : > { %v12878_v2 = vld [vmem:[%s17535_s19 + $0xcd0] sm:$0xf]  ;;  %v12623_v36 = vor.u32 %v16037_v35, %v12622_v14  ;;  %9093 = vmatpush.bf16.msrb.mxu0 %v12367_v47  ;;  %v8879_v14 = vpop.f32.mrf.mxu3 }
 0x74d   : > { %v16101_v43 = vld [vmem:[%s17535_s19 + $0xcec] sm:$0xf0] }
 0x74e   : > { %v13134_v54 = vld [vmem:[%s17535_s19 + $0xed0] sm:$0xf]  ;;  %v12879_v37 = vor.u32 %v16101_v43, %v12878_v2  ;;  %9106 = vmatpush.bf16.msrb.mxu1 %v12623_v36 }
 0x74f   : > { %v16165_v45 = vld [vmem:[%s17535_s19 + $0xeec] sm:$0xf0] }
 0x750   : > { %v12334_v48 = vld [vmem:[%s17535_s19 + $0x890] sm:$0xf]  ;;  %v13135_v26 = vor.u32 %v16165_v45, %v13134_v54  ;;  %9119 = vmatpush.bf16.msrb.mxu2 %v12879_v37 }
 0x751   : > { %v15965_v19 = vld [vmem:[%s17535_s19 + $0x8ac] sm:$0xf0] }
 0x752   : > { %v12590_v22 = vld [vmem:[%s17535_s19 + $0xa90] sm:$0xf]  ;;  %v12335_v8 = vor.u32 %v15965_v19, %v12334_v48  ;;  %9132 = vmatpush.bf16.msrb.mxu3 %v13135_v26 }
 0x753   : > { %v16029_v53 = vld [vmem:[%s17535_s19 + $0xaac] sm:$0xf0] }
 0x754   : > { %v12846_v55 = vld [vmem:[%s17535_s19 + $0xc90] sm:$0xf]  ;;  %v12591_v56 = vor.u32 %v16029_v53, %v12590_v22  ;;  %9094 = vmatpush.bf16.msrb.mxu0 %v12335_v8 }
 0x755   : > { %v16093_v1 = vld [vmem:[%s17535_s19 + $0xcac] sm:$0xf0] }
 0x756   : > { %v13102_v39 = vld [vmem:[%s17535_s19 + $0xe90] sm:$0xf]  ;;  %v12847_v33 = vor.u32 %v16093_v1, %v12846_v55  ;;  %9107 = vmatpush.bf16.msrb.mxu1 %v12591_v56 }
 0x757   : > { %v16157_v5 = vld [vmem:[%s17535_s19 + $0xeac] sm:$0xf0] }
 0x758   : > { %v12302_v63 = vld [vmem:[%s17535_s19 + $0x850] sm:$0xf]  ;;  %v13103_v20 = vor.u32 %v16157_v5, %v13102_v39  ;;  %9120 = vmatpush.bf16.msrb.mxu2 %v12847_v33 }
 0x759   : > { %v15957_v59 = vld [vmem:[%s17535_s19 + $0x86c] sm:$0xf0] }
 0x75a   : > { %v12558_v12 = vld [vmem:[%s17535_s19 + $0xa50] sm:$0xf]  ;;  %v12303_v24 = vor.u32 %v15957_v59, %v12302_v63  ;;  %9133 = vmatpush.bf16.msrb.mxu3 %v13103_v20 }
 0x75b   : > { %v16021_v6 = vld [vmem:[%s17535_s19 + $0xa6c] sm:$0xf0] }
 0x75c   : > { %v12814_v10 = vld [vmem:[%s17535_s19 + $0xc50] sm:$0xf]  ;;  %v12559_v23 = vor.u32 %v16021_v6, %v12558_v12  ;;  %9095 = vmatpush.bf16.msrb.mxu0 %v12303_v24 }
 0x75d   : > { %v16085_v15 = vld [vmem:[%s17535_s19 + $0xc6c] sm:$0xf0] }
 0x75e   : > { %v13070_v18 = vld [vmem:[%s17535_s19 + $0xe50] sm:$0xf]  ;;  %v12815_v25 = vor.u32 %v16085_v15, %v12814_v10  ;;  %9108 = vmatpush.bf16.msrb.mxu1 %v12559_v23 }
 0x75f   : > { %v16149_v16 = vld [vmem:[%s17535_s19 + $0xe6c] sm:$0xf0] }
 0x760   : > { %v12270_v42 = vld [vmem:[%s17535_s19 + $0x810] sm:$0xf]  ;;  %v13071_v58 = vor.u32 %v16149_v16, %v13070_v18  ;;  %9121 = vmatpush.bf16.msrb.mxu2 %v12815_v25 }
 0x761   : > { %v15949_v11 = vld [vmem:[%s17535_s19 + $0x82c] sm:$0xf0] }
 0x762   : > { %v12526_v29 = vld [vmem:[%s17535_s19 + $0xa10] sm:$0xf]  ;;  %v12271_v35 = vor.u32 %v15949_v11, %v12270_v42  ;;  %9134 = vmatpush.bf16.msrb.mxu3 %v13071_v58 }
 0x763   : > { %v16013_v30 = vld [vmem:[%s17535_s19 + $0xa2c] sm:$0xf0] }
 0x764   : > { %v12782_v28 = vld [vmem:[%s17535_s19 + $0xc10] sm:$0xf]  ;;  %v12527_v45 = vor.u32 %v16013_v30, %v12526_v29  ;;  %9096 = vmatpush.bf16.msrb.mxu0 %v12271_v35 }
 0x765   : > { %v16077_v40 = vld [vmem:[%s17535_s19 + $0xc2c] sm:$0xf0] }
 0x766   : > { %v13038_v32 = vld [vmem:[%s17535_s19 + $0xe10] sm:$0xf]  ;;  %v12783_v46 = vor.u32 %v16077_v40, %v12782_v28  ;;  %9109 = vmatpush.bf16.msrb.mxu1 %v12527_v45 }
 0x767   : > { %v16141_v17 = vld [vmem:[%s17535_s19 + $0xe2c] sm:$0xf0]  ;;  %9097 = vmatmul.bf16.vlgmr.msrb.gmra.mxu0 %v18041_v44 }
 0x768   : > { %v13518_v21 = vld [vmem:[%s17535_s19 + $0x11d0] sm:$0xf]  ;;  %v13039_v37 = vor.u32 %v16141_v17, %v13038_v32  ;;  %9122 = vmatpush.bf16.msrb.mxu2 %v12783_v46  ;;  %v8890_v32 = vpop.f32.mrf.mxu0 }
 0x769   : > { %v16261_v60 = vld [vmem:[%s17535_s19 + $0x11ec] sm:$0xf0]  ;;  %9110 = vmatmul.bf16.vlgmr.msrb.gmra.mxu1 %v18045_v49  ;;  %v8891_v35 = vadd.f32 %v8890_v32, %v19126_v9 }
 0x76a   : > { %v13774_v34 = vld [vmem:[%s17535_s19 + $0x13d0] sm:$0xf]  ;;  %v13519_v48 = vor.u32 %v16261_v60, %v13518_v21  ;;  %9135 = vmatpush.bf16.msrb.mxu3 %v13039_v37 }
 0x76b   : > { %v16325_v2 = vld [vmem:[%s17535_s19 + $0x13ec] sm:$0xf0]  ;;  %9123 = vmatmul.bf16.vlgmr.msrb.gmra.mxu2 %v18039_v62 }
 0x76c   : > { %v14030_v43 = vld [vmem:[%s17535_s19 + $0x15d0] sm:$0xf]  ;;  %v13775_v19 = vor.u32 %v16325_v2, %v13774_v34  ;;  %9141 = vmatpush.bf16.msra.mxu0 %v13519_v48  ;;  %v8903_v2 = vpop.f32.mrf.mxu1 }
 0x76d   : > { %v16389_v54 = vld [vmem:[%s17535_s19 + $0x15ec] sm:$0xf0]  ;;  %9136 = vmatmul.bf16.vlgmr.msrb.gmra.mxu3 %v18043_v0  ;;  %v8904_v37 = vadd.f32 %v8903_v2, %v8891_v35 }
 0x76e   : > { %v14286_v47 = vld [vmem:[%s17535_s19 + $0x17d0] sm:$0xf]  ;;  %v14031_v22 = vor.u32 %v16389_v54, %v14030_v43  ;;  %9154 = vmatpush.bf16.msra.mxu1 %v13775_v19 }
 0x76f   : > { %v16453_v36 = vld [vmem:[%s17535_s19 + $0x17ec] sm:$0xf0] }
 0x770   : > { %v13486_v52 = vld [vmem:[%s17535_s19 + $0x1190] sm:$0xf]  ;;  %v14287_v55 = vor.u32 %v16453_v36, %v14286_v47  ;;  %9167 = vmatpush.bf16.msra.mxu2 %v14031_v22 }
 0x771   : > { %v16253_v26 = vld [vmem:[%s17535_s19 + $0x11ac] sm:$0xf0] }
 0x772   : > { %v13742_v53 = vld [vmem:[%s17535_s19 + $0x1390] sm:$0xf]  ;;  %v13487_v8 = vor.u32 %v16253_v26, %v13486_v52  ;;  %9180 = vmatpush.bf16.msra.mxu3 %v14287_v55 }
 0x773   : > { %v16317_v1 = vld [vmem:[%s17535_s19 + $0x13ac] sm:$0xf0] }
 0x774   : > { %v13998_v57 = vld [vmem:[%s17535_s19 + $0x1590] sm:$0xf]  ;;  %v13743_v27 = vor.u32 %v16317_v1, %v13742_v53  ;;  %9142 = vmatpush.bf16.msra.mxu0 %v13487_v8  ;;  %v8916_v53 = vpop.f32.mrf.mxu2 }
 0x775   : > { %v16381_v3 = vld [vmem:[%s17535_s19 + $0x15ac] sm:$0xf0] }
 0x776   : > { %v14254_v39 = vld [vmem:[%s17535_s19 + $0x1790] sm:$0xf]  ;;  %v13999_v56 = vor.u32 %v16381_v3, %v13998_v57  ;;  %9155 = vmatpush.bf16.msra.mxu1 %v13743_v27 }
 0x777   : > { %v16445_v5 = vld [vmem:[%s17535_s19 + $0x17ac] sm:$0xf0] }
 0x778   : > { %v13454_v33 = vld [vmem:[%s17535_s19 + $0x1150] sm:$0xf]  ;;  %v14255_v12 = vor.u32 %v16445_v5, %v14254_v39  ;;  %9168 = vmatpush.bf16.msra.mxu2 %v13999_v56  ;;  %v8917_v39 = vadd.f32 %v8916_v53, %v8904_v37  ;;  %v8929_v5 = vpop.f32.mrf.mxu3 }
 0x779   : > { %v16245_v63 = vld [vmem:[%s17535_s19 + $0x116c] sm:$0xf0] }
 0x77a   : > { %v13710_v59 = vld [vmem:[%s17535_s19 + $0x1350] sm:$0xf]  ;;  %v13455_v18 = vor.u32 %v16245_v63, %v13454_v33  ;;  %9181 = vmatpush.bf16.msra.mxu3 %v14255_v12  ;;  %v19197_v33 = vadd.f32 %v8929_v5, %v8917_v39  ;;  %v8892_v63 = vpop.f32.mrf.mxu0 }
 0x77b   : > { %v16309_v13 = vld [vmem:[%s17535_s19 + $0x136c] sm:$0xf0] }
 0x77c   : > { %v13966_v20 = vld [vmem:[%s17535_s19 + $0x1550] sm:$0xf]  ;;  %v13711_v16 = vor.u32 %v16309_v13, %v13710_v59  ;;  %9143 = vmatpush.bf16.msra.mxu0 %v13455_v18  ;;  %v8918_v32 = vpop.f32.mrf.mxu2 }
 0x77d   : > { %v16373_v6 = vld [vmem:[%s17535_s19 + $0x156c] sm:$0xf0] }
 0x77e   : > { %v14222_v10 = vld [vmem:[%s17535_s19 + $0x1750] sm:$0xf]  ;;  %v13967_v24 = vor.u32 %v16373_v6, %v13966_v20  ;;  %9156 = vmatpush.bf16.msra.mxu1 %v13711_v16 }
 0x77f   : > { %v16437_v15 = vld [vmem:[%s17535_s19 + $0x176c] sm:$0xf0] }
 0x780   : > { %v13422_v42 = vld [vmem:[%s17535_s19 + $0x1110] sm:$0xf]  ;;  %v14223_v25 = vor.u32 %v16437_v15, %v14222_v10  ;;  %9169 = vmatpush.bf16.msra.mxu2 %v13967_v24  ;;  %v8905_v10 = vpop.f32.mrf.mxu1 }
 0x781   : > { %v16237_v11 = vld [vmem:[%s17535_s19 + $0x112c] sm:$0xf0] }
 0x782   : > { %v13678_v23 = vld [vmem:[%s17535_s19 + $0x1310] sm:$0xf]  ;;  %v13423_v40 = vor.u32 %v16237_v11, %v13422_v42  ;;  %9182 = vmatpush.bf16.msra.mxu3 %v14223_v25 }
 0x783   : > { %v16301_v29 = vld [vmem:[%s17535_s19 + $0x132c] sm:$0xf0] }
 0x784   : > { %v13934_v30 = vld [vmem:[%s17535_s19 + $0x1510] sm:$0xf]  ;;  %v13679_v17 = vor.u32 %v16301_v29, %v13678_v23  ;;  %9144 = vmatpush.bf16.msra.mxu0 %v13423_v40 }
 0x785   : > { %v16365_v28 = vld [vmem:[%s17535_s19 + $0x152c] sm:$0xf0] }
 0x786   : > { %v14190_v31 = vld [vmem:[%s17535_s19 + $0x1710] sm:$0xf]  ;;  %v13935_v14 = vor.u32 %v16365_v28, %v13934_v30  ;;  %9157 = vmatpush.bf16.msra.mxu1 %v13679_v17 }
 0x787   : > { %v16429_v58 = vld [vmem:[%s17535_s19 + $0x172c] sm:$0xf0] }
 0x788   : > { %v13390_v21 = vld [vmem:[%s17535_s19 + $0x10d0] sm:$0xf]  ;;  %v14191_v43 = vor.u32 %v16429_v58, %v14190_v31  ;;  %9170 = vmatpush.bf16.msra.mxu2 %v13935_v14 }
 0x789   : > { %v16229_v60 = vld [vmem:[%s17535_s19 + $0x10ec] sm:$0xf0] }
 0x78a   : > { %v13646_v34 = vld [vmem:[%s17535_s19 + $0x12d0] sm:$0xf]  ;;  %v13391_v48 = vor.u32 %v16229_v60, %v13390_v21  ;;  %9183 = vmatpush.bf16.msra.mxu3 %v14191_v43 }
 0x78b   : > { %v16293_v54 = vld [vmem:[%s17535_s19 + $0x12ec] sm:$0xf0] }
 0x78c   : > { %v13902_v45 = vld [vmem:[%s17535_s19 + $0x14d0] sm:$0xf]  ;;  %v13647_v9 = vor.u32 %v16293_v54, %v13646_v34  ;;  %9145 = vmatpush.bf16.msra.mxu0 %v13391_v48  ;;  %v8931_v34 = vpop.f32.mrf.mxu3 }
 0x78d   : > { %v16357_v46 = vld [vmem:[%s17535_s19 + $0x14ec] sm:$0xf0] }
 0x78e   : > { %v14158_v47 = vld [vmem:[%s17535_s19 + $0x16d0] sm:$0xf]  ;;  %v13903_v19 = vor.u32 %v16357_v46, %v13902_v45  ;;  %9158 = vmatpush.bf16.msra.mxu1 %v13647_v9 }
 0x78f   : > { %v16421_v36 = vld [vmem:[%s17535_s19 + $0x16ec] sm:$0xf0] }
 0x790   : > { %v13358_v22 = vld [vmem:[%s17535_s19 + $0x1090] sm:$0xf]  ;;  %v14159_v55 = vor.u32 %v16421_v36, %v14158_v47  ;;  %9171 = vmatpush.bf16.msra.mxu2 %v13903_v19 }
 0x791   : > { %v16221_v52 = vld [vmem:[%s17535_s19 + $0x10ac] sm:$0xf0] }
 0x792   : > { %v13614_v26 = vld [vmem:[%s17535_s19 + $0x1290] sm:$0xf]  ;;  %v13359_v56 = vor.u32 %v16221_v52, %v13358_v22  ;;  %9184 = vmatpush.bf16.msra.mxu3 %v14159_v55 }
 0x793   : > { %v16285_v1 = vld [vmem:[%s17535_s19 + $0x12ac] sm:$0xf0] }
 0x794   : > { %v13870_v57 = vld [vmem:[%s17535_s19 + $0x1490] sm:$0xf]  ;;  %v13615_v59 = vor.u32 %v16285_v1, %v13614_v26  ;;  %9146 = vmatpush.bf16.msra.mxu0 %v13359_v56 }
 0x795   : > { %v16349_v3 = vld [vmem:[%s17535_s19 + $0x14ac] sm:$0xf0] }
 0x796   : > { %v14126_v8 = vld [vmem:[%s17535_s19 + $0x1690] sm:$0xf]  ;;  %v13871_v12 = vor.u32 %v16349_v3, %v13870_v57  ;;  %9159 = vmatpush.bf16.msra.mxu1 %v13615_v59 }
 0x797   : > { %v16413_v27 = vld [vmem:[%s17535_s19 + $0x16ac] sm:$0xf0] }
 0x798   : > { %v13326_v13 = vld [vmem:[%s17535_s19 + $0x1050] sm:$0xf]  ;;  %v14127_v15 = vor.u32 %v16413_v27, %v14126_v8  ;;  %9172 = vmatpush.bf16.msra.mxu2 %v13871_v12 }
 0x799   : > { %v16213_v20 = vld [vmem:[%s17535_s19 + $0x106c] sm:$0xf0] }
 0x79a   : > { %v13582_v6 = vld [vmem:[%s17535_s19 + $0x1250] sm:$0xf]  ;;  %v13327_v23 = vor.u32 %v16213_v20, %v13326_v13  ;;  %9185 = vmatpush.bf16.msra.mxu3 %v14127_v15 }
 0x79b   : > { %v16277_v18 = vld [vmem:[%s17535_s19 + $0x126c] sm:$0xf0] }
 0x79c   : > { %v13838_v16 = vld [vmem:[%s17535_s19 + $0x1450] sm:$0xf]  ;;  %v13583_v30 = vor.u32 %v16277_v18, %v13582_v6  ;;  %9147 = vmatpush.bf16.msra.mxu0 %v13327_v23  ;;  %v16917_v6 = vld [vmem:[#allocation1] sm:$0xff] }
 0x79d   : > { %v16341_v24 = vld [vmem:[%s17535_s19 + $0x146c] sm:$0xf0] }
 0x79e   : > { %v14094_v42 = vld [vmem:[%s17535_s19 + $0x1650] sm:$0xf]  ;;  %v13839_v28 = vor.u32 %v16341_v24, %v13838_v16  ;;  %9160 = vmatpush.bf16.msra.mxu1 %v13583_v30  ;;  %v16918_v24 = vld [vmem:[#allocation1 + $0x12] sm:$0xff] }
 0x79f   : > { %v16405_v11 = vld [vmem:[%s17535_s19 + $0x166c] sm:$0xf0] }
 0x7a0   : > { %v13294_v25 = vld [vmem:[%s17535_s19 + $0x1010] sm:$0xf]  ;;  %v14095_v17 = vor.u32 %v16405_v11, %v14094_v42  ;;  %9173 = vmatpush.bf16.msra.mxu2 %v13839_v28  ;;  %v16919_v42 = vld [vmem:[#allocation1 + $0x9] sm:$0xff] }
 0x7a1   : > { %v16205_v29 = vld [vmem:[%s17535_s19 + $0x102c] sm:$0xf0] }
 0x7a2   : > { %v13550_v31 = vld [vmem:[%s17535_s19 + $0x1210] sm:$0xf]  ;;  %v13295_v54 = vor.u32 %v16205_v29, %v13294_v25  ;;  %9186 = vmatpush.bf16.msra.mxu3 %v14095_v17 }
 0x7a3   : > { %v16269_v58 = vld [vmem:[%s17535_s19 + $0x122c] sm:$0xf0] }
 0x7a4   : > { %v13806_v40 = vld [vmem:[%s17535_s19 + $0x1410] sm:$0xf]  ;;  %v13551_v36 = vor.u32 %v16269_v58, %v13550_v31  ;;  %9148 = vmatpush.bf16.msra.mxu0 %v13295_v54  ;;  %v8955_v54 = vpop.f32.mrf.mxu1 }
 0x7a5   : > { %v16333_v14 = vld [vmem:[%s17535_s19 + $0x142c] sm:$0xf0] }
 0x7a6   : > { %v14062_v21 = vld [vmem:[%s17535_s19 + $0x1610] sm:$0xf]  ;;  %v13807_v37 = vor.u32 %v16333_v14, %v13806_v40  ;;  %9161 = vmatpush.bf16.msra.mxu1 %v13551_v36 }
 0x7a7   : > { %v16397_v60 = vld [vmem:[%s17535_s19 + $0x162c] sm:$0xf0]  ;;  %9149 = vmatmul.bf16.vlgmr.msra.gmra.mxu0 %v16917_v6 }
 0x7a8   : > { %v14542_v35 = vld [vmem:[%s17535_s19 + $0x19d0] sm:$0xf]  ;;  %v14063_v19 = vor.u32 %v16397_v60, %v14062_v21  ;;  %9174 = vmatpush.bf16.msra.mxu2 %v13807_v37  ;;  %v8942_v60 = vpop.f32.mrf.mxu0 }
 0x7a9   : > { %v16517_v2 = vld [vmem:[%s17535_s19 + $0x19ec] sm:$0xf0]  ;;  %9162 = vmatmul.bf16.vlgmr.msra.gmra.mxu1 %v16919_v42 }
 0x7aa   : > { %v14798_v43 = vld [vmem:[%s17535_s19 + $0x1bd0] sm:$0xf]  ;;  %v14543_v22 = vor.u32 %v16517_v2, %v14542_v35  ;;  %9187 = vmatpush.bf16.msra.mxu3 %v14063_v19  ;;  %v8943_v2 = vadd.f32 %v8942_v60, %v19197_v33 }
 0x7ab   : > { %v16581_v45 = vld [vmem:[%s17535_s19 + $0x1bec] sm:$0xf0]  ;;  %9175 = vmatmul.bf16.vlgmr.msra.gmra.mxu2 %v16918_v24 }
 0x7ac   : > { %v15054_v46 = vld [vmem:[%s17535_s19 + $0x1dd0] sm:$0xf]  ;;  %v14799_v52 = vor.u32 %v16581_v45, %v14798_v43  ;;  %9193 = vmatpush.bf16.msrb.mxu0 %v14543_v22 }
 0x7ad   : > { %v16645_v47 = vld [vmem:[%s17535_s19 + $0x1dec] sm:$0xf0] }
 0x7ae   : > { %v15310_v48 = vld [vmem:[%s17535_s19 + $0x1fd0] sm:$0xf]  ;;  %v15055_v26 = vor.u32 %v16645_v47, %v15054_v46  ;;  %9206 = vmatpush.bf16.msrb.mxu1 %v14799_v52 }
 0x7af   : > { %v16709_v9 = vld [vmem:[%s17535_s19 + $0x1fec] sm:$0xf0] }
 0x7b0   : > { %v14510_v53 = vld [vmem:[%s17535_s19 + $0x1990] sm:$0xf]  ;;  %v15311_v57 = vor.u32 %v16709_v9, %v15310_v48  ;;  %9219 = vmatpush.bf16.msrb.mxu2 %v15055_v26  ;;  %v8956_v9 = vadd.f32 %v8955_v54, %v8943_v2  ;;  %v8944_v6 = vpop.f32.mrf.mxu0 }
 0x7b1   : > { %v16509_v55 = vld [vmem:[%s17535_s19 + $0x19ac] sm:$0xf0] }
 0x7b2   : > { %v14766_v1 = vld [vmem:[%s17535_s19 + $0x1b90] sm:$0xf]  ;;  %v14511_v56 = vor.u32 %v16509_v55, %v14510_v53  ;;  %9232 = vmatpush.bf16.msrb.mxu3 %v15311_v57 }
 0x7b3   : > { %v16573_v3 = vld [vmem:[%s17535_s19 + $0x1bac] sm:$0xf0] }
 0x7b4   : > { %v15022_v39 = vld [vmem:[%s17535_s19 + $0x1d90] sm:$0xf]  ;;  %v14767_v63 = vor.u32 %v16573_v3, %v14766_v1  ;;  %9194 = vmatpush.bf16.msrb.mxu0 %v14511_v56 }
 0x7b5   : > { %v16637_v5 = vld [vmem:[%s17535_s19 + $0x1dac] sm:$0xf0] }
 0x7b6   : > { %v15278_v8 = vld [vmem:[%s17535_s19 + $0x1f90] sm:$0xf]  ;;  %v15023_v59 = vor.u32 %v16637_v5, %v15022_v39  ;;  %9207 = vmatpush.bf16.msrb.mxu1 %v14767_v63 }
 0x7b7   : > { %v16701_v27 = vld [vmem:[%s17535_s19 + $0x1fac] sm:$0xf0] }
 0x7b8   : > { %v14478_v12 = vld [vmem:[%s17535_s19 + $0x1950] sm:$0xf]  ;;  %v15279_v10 = vor.u32 %v16701_v27, %v15278_v8  ;;  %9220 = vmatpush.bf16.msrb.mxu2 %v15023_v59  ;;  %v8968_v8 = vpop.f32.mrf.mxu2 }
 0x7b9   : > { %v16501_v13 = vld [vmem:[%s17535_s19 + $0x196c] sm:$0xf0]  ;;  %v8969_v59 = vadd.f32 %v8968_v8, %v8956_v9  ;;  %v11440_v8 = vld [vmem:[%s17535_s19 + $0x1b0] sm:$0xf0] }
 0x7ba   : > { %v14734_v20 = vld [vmem:[%s17535_s19 + $0x1b50] sm:$0xf]  ;;  %v14479_v29 = vor.u32 %v16501_v13, %v14478_v12  ;;  %9233 = vmatpush.bf16.msrb.mxu3 %v15279_v10  ;;  %v8981_v12 = vpop.f32.mrf.mxu3 }
 0x7bb   : > { %v16565_v15 = vld [vmem:[%s17535_s19 + $0x1b6c] sm:$0xf0] }
 0x7bc   : > { %v14990_v18 = vld [vmem:[%s17535_s19 + $0x1d50] sm:$0xf]  ;;  %v14735_v30 = vor.u32 %v16565_v15, %v14734_v20  ;;  %9195 = vmatpush.bf16.msrb.mxu0 %v14479_v29  ;;  %v8957_v15 = vpop.f32.mrf.mxu1 }
 0x7bd   : > { %v16629_v16 = vld [vmem:[%s17535_s19 + $0x1d6c] sm:$0xf0] }
 0x7be   : > { %v15246_v11 = vld [vmem:[%s17535_s19 + $0x1f50] sm:$0xf]  ;;  %v14991_v28 = vor.u32 %v16629_v16, %v14990_v18  ;;  %9208 = vmatpush.bf16.msrb.mxu1 %v14735_v30  ;;  %v19264_v18 = vadd.f32 %v8981_v12, %v8969_v59  ;;  %v15865_v59 = vld [vmem:[%s17535_s19 + $0x594] sm:$0xf] }
 0x7bf   : > { %v16693_v23 = vld [vmem:[%s17535_s19 + $0x1f6c] sm:$0xf0]  ;;  %v11952_v12 = vld [vmem:[%s17535_s19 + $0x5b0] sm:$0xf0] }
 0x7c0   : > { %v16920_v25 = vld [vmem:[#allocation1 + $0x1b] sm:$0xff]  ;;  %v15247_v32 = vor.u32 %v16693_v23, %v15246_v11  ;;  %9221 = vmatpush.bf16.msrb.mxu2 %v14991_v28  ;;  %v11955_v15 = vor.u32 %v15865_v59, %v11952_v12 }
 0x7c1   : > { %9188 = vmatmul.bf16.vlgmr.msra.gmra.mxu3 %v16920_v25  ;;  %v14446_v31 = vld [vmem:[%s17535_s19 + $0x1910] sm:$0xf]  ;;  %v15769_v59 = vld [vmem:[%s17535_s19 + $0x294] sm:$0xf] }
 0x7c2   : > { %v16493_v58 = vld [vmem:[%s17535_s19 + $0x192c] sm:$0xf0]  ;;  %9234 = vmatpush.bf16.msrb.mxu3 %v15247_v32 }
 0x7c3   : > { %v14702_v40 = vld [vmem:[%s17535_s19 + $0x1b10] sm:$0xf]  ;;  %v14447_v43 = vor.u32 %v16493_v58, %v14446_v31 }
 0x7c4   : > { %v16557_v17 = vld [vmem:[%s17535_s19 + $0x1b2c] sm:$0xf0] }
 0x7c5   : > { %v14958_v14 = vld [vmem:[%s17535_s19 + $0x1d10] sm:$0xf]  ;;  %v14703_v45 = vor.u32 %v16557_v17, %v14702_v40  ;;  %9196 = vmatpush.bf16.msrb.mxu0 %v14447_v43 }
 0x7c6   : > { %v16621_v21 = vld [vmem:[%s17535_s19 + $0x1d2c] sm:$0xf0] }
 0x7c7   : > { %v15214_v34 = vld [vmem:[%s17535_s19 + $0x1f10] sm:$0xf]  ;;  %v14959_v46 = vor.u32 %v16621_v21, %v14958_v14  ;;  %9209 = vmatpush.bf16.msrb.mxu1 %v14703_v45 }
 0x7c8   : > { %v16685_v35 = vld [vmem:[%s17535_s19 + $0x1f2c] sm:$0xf0] }
 0x7c9   : > { %v14414_v47 = vld [vmem:[%s17535_s19 + $0x18d0] sm:$0xf]  ;;  %v15215_v48 = vor.u32 %v16685_v35, %v15214_v34  ;;  %9222 = vmatpush.bf16.msrb.mxu2 %v14959_v46  ;;  %v8970_v46 = vpop.f32.mrf.mxu2 }
 0x7ca   : > { %v16485_v36 = vld [vmem:[%s17535_s19 + $0x18ec] sm:$0xf0]  ;;  %v8994_v46 = vpop.f32.mrf.mxu0 }
 0x7cb   : > { %v14670_v37 = vld [vmem:[%s17535_s19 + $0x1ad0] sm:$0xf]  ;;  %v14415_v53 = vor.u32 %v16485_v36, %v14414_v47  ;;  %9235 = vmatpush.bf16.msrb.mxu3 %v15215_v48  ;;  %v15745_v47 = vld [vmem:[%s17535_s19 + $0x1d4] sm:$0xf]  ;;  %v8983_v48 = vpop.f32.mrf.mxu3 }
 0x7cc   : > { %v16549_v19 = vld [vmem:[%s17535_s19 + $0x1aec] sm:$0xf0]  ;;  %v11472_v36 = vld [vmem:[%s17535_s19 + $0x1f0] sm:$0xf0] }
 0x7cd   : > { %v14926_v22 = vld [vmem:[%s17535_s19 + $0x1cd0] sm:$0xf]  ;;  %v14671_v55 = vor.u32 %v16549_v19, %v14670_v37  ;;  %9197 = vmatpush.bf16.msrb.mxu0 %v14415_v53  ;;  %v15809_v37 = vld [vmem:[%s17535_s19 + $0x3d4] sm:$0xf] }
 0x7ce   : > { %v16613_v33 = vld [vmem:[%s17535_s19 + $0x1cec] sm:$0xf0]  ;;  %v11728_v19 = vld [vmem:[%s17535_s19 + $0x3f0] sm:$0xf0] }
 0x7cf   : > { %v15182_v52 = vld [vmem:[%s17535_s19 + $0x1ed0] sm:$0xf]  ;;  %v14927_v1 = vor.u32 %v16613_v33, %v14926_v22  ;;  %9210 = vmatpush.bf16.msrb.mxu1 %v14671_v55  ;;  %v15873_v22 = vld [vmem:[%s17535_s19 + $0x5d4] sm:$0xf] }
 0x7d0   : > { %v16677_v26 = vld [vmem:[%s17535_s19 + $0x1eec] sm:$0xf0]  ;;  %v11984_v33 = vld [vmem:[%s17535_s19 + $0x5f0] sm:$0xf0] }
 0x7d1   : > { %v14382_v57 = vld [vmem:[%s17535_s19 + $0x1890] sm:$0xf]  ;;  %v15183_v5 = vor.u32 %v16677_v26, %v15182_v52  ;;  %9223 = vmatpush.bf16.msrb.mxu2 %v14927_v1  ;;  %v15937_v53 = vld [vmem:[%s17535_s19 + $0x7d4] sm:$0xf] }
 0x7d2   : > { %v16477_v3 = vld [vmem:[%s17535_s19 + $0x18ac] sm:$0xf0]  ;;  %v12240_v55 = vld [vmem:[%s17535_s19 + $0x7f0] sm:$0xf0] }
 0x7d3   : > { %v14638_v39 = vld [vmem:[%s17535_s19 + $0x1a90] sm:$0xf]  ;;  %v14383_v10 = vor.u32 %v16477_v3, %v14382_v57  ;;  %9236 = vmatpush.bf16.msrb.mxu3 %v15183_v5  ;;  %v11475_v57 = vor.u32 %v15745_v47, %v11472_v36  ;;  %v11731_v3 = vor.u32 %v15809_v37, %v11728_v19  ;;  %v15737_v5 = vld [vmem:[%s17535_s19 + $0x194] sm:$0xf]  ;;  %v8995_v37 = vadd.f32 %v8994_v46, %v19264_v18 }
 0x7d4   : > { %v16541_v27 = vld [vmem:[%s17535_s19 + $0x1aac] sm:$0xf0]  ;;  %v11443_v6 = vor.u32 %v15737_v5, %v11440_v8  ;;  %v15913_v47 = vld [vmem:[%s17535_s19 + $0x714] sm:$0xf] }
 0x7d5   : > { %v14894_v56 = vld [vmem:[%s17535_s19 + $0x1c90] sm:$0xf]  ;;  %v14639_v16 = vor.u32 %v16541_v27, %v14638_v39  ;;  %9198 = vmatpush.bf16.msrb.mxu0 %v14383_v10  ;;  %v11987_v39 = vor.u32 %v15873_v22, %v11984_v33  ;;  %v15801_v27 = vld [vmem:[%s17535_s19 + $0x394] sm:$0xf] }
 0x7d6   : > { %v16605_v63 = vld [vmem:[%s17535_s19 + $0x1cac] sm:$0xf0]  ;;  %v12144_v36 = vld [vmem:[%s17535_s19 + $0x730] sm:$0xf0] }
 0x7d7   : > { %v15150_v13 = vld [vmem:[%s17535_s19 + $0x1e90] sm:$0xf]  ;;  %v14895_v24 = vor.u32 %v16605_v63, %v14894_v56  ;;  %9211 = vmatpush.bf16.msrb.mxu1 %v14639_v16  ;;  %v12243_v56 = vor.u32 %v15937_v53, %v12240_v55  ;;  %v11696_v63 = vld [vmem:[%s17535_s19 + $0x3b0] sm:$0xf0]  ;;  %v12147_v53 = vor.u32 %v15913_v47, %v12144_v36 }
 0x7d8   : > { %v16669_v20 = vld [vmem:[%s17535_s19 + $0x1eac] sm:$0xf0]  ;;  %v11699_v10 = vor.u32 %v15801_v27, %v11696_v63  ;;  %v15729_v16 = vld [vmem:[%s17535_s19 + $0x154] sm:$0xf] }
 0x7d9   : > { %v14350_v42 = vld [vmem:[%s17535_s19 + $0x1850] sm:$0xf]  ;;  %v15151_v25 = vor.u32 %v16669_v20, %v15150_v13  ;;  %9224 = vmatpush.bf16.msrb.mxu2 %v14895_v24  ;;  %v15929_v13 = vld [vmem:[%s17535_s19 + $0x794] sm:$0xf] }
 0x7da   : > { %v16469_v11 = vld [vmem:[%s17535_s19 + $0x186c] sm:$0xf0]  ;;  %v12208_v20 = vld [vmem:[%s17535_s19 + $0x7b0] sm:$0xf0] }
 0x7db   : > { %v14606_v23 = vld [vmem:[%s17535_s19 + $0x1a50] sm:$0xf]  ;;  %v14351_v40 = vor.u32 %v16469_v11, %v14350_v42  ;;  %9237 = vmatpush.bf16.msrb.mxu3 %v15151_v25  ;;  %v11408_v24 = vld [vmem:[%s17535_s19 + $0x170] sm:$0xf0]  ;;  %v16921_v11 = vld [vmem:[#allocation1 + $0x24] sm:$0xff] }
 0x7dc   : > { %v16533_v29 = vld [vmem:[%s17535_s19 + $0x1a6c] sm:$0xf0]  ;;  %v15793_v42 = vld [vmem:[%s17535_s19 + $0x354] sm:$0xf] }
 0x7dd   : > { %v14862_v30 = vld [vmem:[%s17535_s19 + $0x1c50] sm:$0xf]  ;;  %v14607_v14 = vor.u32 %v16533_v29, %v14606_v23  ;;  %9199 = vmatpush.bf16.msrb.mxu0 %v14351_v40  ;;  %v12211_v23 = vor.u32 %v15929_v13, %v12208_v20  ;;  %v11664_v25 = vld [vmem:[%s17535_s19 + $0x370] sm:$0xf0]  ;;  %v9020_v13 = vpop.f32.mrf.mxu2 }
 0x7de   : > { %v16597_v28 = vld [vmem:[%s17535_s19 + $0x1c6c] sm:$0xf0]  ;;  %v15857_v29 = vld [vmem:[%s17535_s19 + $0x554] sm:$0xf] }
 0x7df   : > { %v15118_v31 = vld [vmem:[%s17535_s19 + $0x1e50] sm:$0xf]  ;;  %v14863_v21 = vor.u32 %v16597_v28, %v14862_v30  ;;  %9212 = vmatpush.bf16.msrb.mxu1 %v14607_v14  ;;  %v11920_v30 = vld [vmem:[%s17535_s19 + $0x570] sm:$0xf0]  ;;  %v11667_v14 = vor.u32 %v15793_v42, %v11664_v25 }
 0x7e0   : > { %v16661_v58 = vld [vmem:[%s17535_s19 + $0x1e6c] sm:$0xf0]  ;;  %v12176_v40 = vld [vmem:[%s17535_s19 + $0x770] sm:$0xf0] }
 0x7e1   : > { %v14318_v32 = vld [vmem:[%s17535_s19 + $0x1810] sm:$0xf]  ;;  %v15119_v2 = vor.u32 %v16661_v58, %v15118_v31  ;;  %9225 = vmatpush.bf16.msrb.mxu2 %v14863_v21  ;;  %v16923_v31 = vld [vmem:[#allocation1 + $0x2d] sm:$0xff]  ;;  %v15921_v58 = vld [vmem:[%s17535_s19 + $0x754] sm:$0xf]  ;;  %v11923_v21 = vor.u32 %v15857_v29, %v11920_v30 }
 0x7e2   : > { %v16461_v17 = vld [vmem:[%s17535_s19 + $0x182c] sm:$0xf0]  ;;  %v15713_v33 = vld [vmem:[%s17535_s19 + $0xd4] sm:$0xf] }
 0x7e3   : > { %v14574_v60 = vld [vmem:[%s17535_s19 + $0x1a10] sm:$0xf]  ;;  %v14319_v9 = vor.u32 %v16461_v17, %v14318_v32  ;;  %9238 = vmatpush.bf16.msrb.mxu3 %v15119_v2  ;;  %v16924_v32 = vld [vmem:[#allocation1 + $0x3f] sm:$0xff]  ;;  %v11411_v17 = vor.u32 %v15729_v16, %v11408_v24  ;;  %v12179_v2 = vor.u32 %v15921_v58, %v12176_v40  ;;  %v9033_v16 = vpop.f32.mrf.mxu3 }
 0x7e4   : > { %v16525_v34 = vld [vmem:[%s17535_s19 + $0x1a2c] sm:$0xf0]  ;;  %v11856_v18 = vld [vmem:[%s17535_s19 + $0x4f0] sm:$0xf0] }
 0x7e5   : > { %v14830_v35 = vld [vmem:[%s17535_s19 + $0x1c10] sm:$0xf]  ;;  %v14575_v52 = vor.u32 %v16525_v34, %v14574_v60  ;;  %9200 = vmatpush.bf16.msrb.mxu0 %v14319_v9  ;;  %v15721_v60 = vld [vmem:[%s17535_s19 + $0x114] sm:$0xf]  ;;  %v9007_v9 = vpop.f32.mrf.mxu1 }
 0x7e6   : > { %v16589_v43 = vld [vmem:[%s17535_s19 + $0x1c2c] sm:$0xf0]  ;;  %v11376_v34 = vld [vmem:[%s17535_s19 + $0x130] sm:$0xf0]  ;;  %v9008_v55 = vadd.f32 %v9007_v9, %v8995_v37 }
 0x7e7   : > { %v15086_v54 = vld [vmem:[%s17535_s19 + $0x1e10] sm:$0xf]  ;;  %v14831_v26 = vor.u32 %v16589_v43, %v14830_v35  ;;  %9213 = vmatpush.bf16.msrb.mxu1 %v14575_v52  ;;  %v15785_v35 = vld [vmem:[%s17535_s19 + $0x314] sm:$0xf]  ;;  %v11379_v48 = vor.u32 %v15721_v60, %v11376_v34 }
 0x7e8   : > { %v16653_v45 = vld [vmem:[%s17535_s19 + $0x1e2c] sm:$0xf0]  ;;  %9201 = vmatmul.bf16.vlgmr.msrb.gmra.mxu0 %v16921_v11  ;;  %v11632_v43 = vld [vmem:[%s17535_s19 + $0x330] sm:$0xf0]  ;;  %v8996_v11 = vpop.f32.mrf.mxu0 }
 0x7e9   : > { %v15087_v1 = vor.u32 %v16653_v45, %v15086_v54  ;;  %9226 = vmatpush.bf16.msrb.mxu2 %v14831_v26  ;;  %9245 = vmatpush.bf16.msra.mxu0 %v11475_v57  ;;  %v16922_v28 = vld [vmem:[#allocation1 + $0x36] sm:$0xff]  ;;  %v15849_v54 = vld [vmem:[%s17535_s19 + $0x514] sm:$0xf]  ;;  %v11635_v19 = vor.u32 %v15785_v35, %v11632_v43 }
 0x7ea   : > { %9214 = vmatmul.bf16.vlgmr.msrb.gmra.mxu1 %v16923_v31  ;;  %v11888_v45 = vld [vmem:[%s17535_s19 + $0x530] sm:$0xf0] }
 0x7eb   : > { %9239 = vmatpush.bf16.msrb.mxu3 %v15087_v1  ;;  %9258 = vmatpush.bf16.msra.mxu1 %v11731_v3  ;;  %v11891_v22 = vor.u32 %v15849_v54, %v11888_v45  ;;  %v11344_v52 = vld [vmem:[%s17535_s19 + $0xf0] sm:$0xf0] }
 0x7ec   : > { %9227 = vmatmul.bf16.vlgmr.msrb.gmra.mxu2 %v16922_v28  ;;  %v15777_v26 = vld [vmem:[%s17535_s19 + $0x2d4] sm:$0xf]  ;;  %v11347_v5 = vor.u32 %v15713_v33, %v11344_v52  ;;  %v9022_v52 = vpop.f32.mrf.mxu2 }
 0x7ed   : > { %9271 = vmatpush.bf16.msra.mxu2 %v11987_v39  ;;  %9246 = vmatpush.bf16.msra.mxu0 %v11443_v6  ;;  %v11600_v1 = vld [vmem:[%s17535_s19 + $0x2f0] sm:$0xf0]  ;;  %v9009_v29 = vpop.f32.mrf.mxu1 }
 0x7ee   : > { %9240 = vmatmul.bf16.vlgmr.msrb.gmra.mxu3 %v16924_v32  ;;  %v15841_v57 = vld [vmem:[%s17535_s19 + $0x4d4] sm:$0xf]  ;;  %v11603_v8 = vor.u32 %v15777_v26, %v11600_v1  ;;  %v9035_v1 = vpop.f32.mrf.mxu3 }
 0x7ef   : > { %9284 = vmatpush.bf16.msra.mxu3 %v12243_v56  ;;  %9259 = vmatpush.bf16.msra.mxu1 %v11699_v10  ;;  %v15905_v3 = vld [vmem:[%s17535_s19 + $0x6d4] sm:$0xf]  ;;  %v11859_v27 = vor.u32 %v15841_v57, %v11856_v18 }
 0x7f0   : > { %v12112_v39 = vld [vmem:[%s17535_s19 + $0x6f0] sm:$0xf0] }
 0x7f1   : > { %9272 = vmatpush.bf16.msra.mxu2 %v11955_v15  ;;  %9247 = vmatpush.bf16.msra.mxu0 %v11411_v17  ;;  %v15705_v56 = vld [vmem:[%s17535_s19 + $0x94] sm:$0xf]  ;;  %v12115_v12 = vor.u32 %v15905_v3, %v12112_v39  ;;  %v9021_v15 = vadd.f32 %v9020_v13, %v9008_v55 }
 0x7f2   : > { %v11312_v63 = vld [vmem:[%s17535_s19 + $0xb0] sm:$0xf0] }
 0x7f3   : > { %9285 = vmatpush.bf16.msra.mxu3 %v12211_v23  ;;  %9260 = vmatpush.bf16.msra.mxu1 %v11667_v14  ;;  %v11568_v20 = vld [vmem:[%s17535_s19 + $0x2b0] sm:$0xf0]  ;;  %v11315_v23 = vor.u32 %v15705_v56, %v11312_v63  ;;  %v9034_v30 = vadd.f32 %v9033_v16, %v9021_v15 }
 0x7f4   : > { %v15833_v6 = vld [vmem:[%s17535_s19 + $0x494] sm:$0xf]  ;;  %v11571_v28 = vor.u32 %v15769_v59, %v11568_v20 }
 0x7f5   : > { %9273 = vmatpush.bf16.msra.mxu2 %v11923_v21  ;;  %9248 = vmatpush.bf16.msra.mxu0 %v11379_v48  ;;  %v11824_v10 = vld [vmem:[%s17535_s19 + $0x4b0] sm:$0xf0]  ;;  %vm9872_vm14 = vcmp.gt.f32.partialorder %v9034_v30, 0.0  ;;  %v9880_v34 = vmul.f32 0.2, %v9034_v30 }
 0x7f6   : > { %v15897_v24 = vld [vmem:[%s17535_s19 + $0x694] sm:$0xf]  ;;  %v11827_v31 = vor.u32 %v15833_v6, %v11824_v10 }
 0x7f7   : > { %9286 = vmatpush.bf16.msra.mxu3 %v12179_v2  ;;  %9261 = vmatpush.bf16.msra.mxu1 %v11635_v19  ;;  %v12080_v42 = vld [vmem:[%s17535_s19 + $0x6b0] sm:$0xf0]  ;;  %v19341_v45 = vsel %vm9872_vm14, %v9034_v30, %v9880_v34 }
 0x7f8   : > { %v15697_v25 = vld [vmem:[%s17535_s19 + $0x54] sm:$0xf]  ;;  %v12083_v17 = vor.u32 %v15897_v24, %v12080_v42 }
 0x7f9   : > { %9274 = vmatpush.bf16.msra.mxu2 %v11891_v22  ;;  %9249 = vmatpush.bf16.msra.mxu0 %v11347_v5  ;;  %v11280_v58 = vld [vmem:[%s17535_s19 + $0x70] sm:$0xf0] }
 0x7fa   : > { %v15761_v40 = vld [vmem:[%s17535_s19 + $0x254] sm:$0xf]  ;;  %v11283_v2 = vor.u32 %v15697_v25, %v11280_v58 }
 0x7fb   : > { %9287 = vmatpush.bf16.msra.mxu3 %v12147_v53  ;;  %9262 = vmatpush.bf16.msra.mxu1 %v11603_v8  ;;  %v11536_v32 = vld [vmem:[%s17535_s19 + $0x270] sm:$0xf0] }
 0x7fc   : > { %v15825_v14 = vld [vmem:[%s17535_s19 + $0x454] sm:$0xf]  ;;  %v11539_v46 = vor.u32 %v15761_v40, %v11536_v32 }
 0x7fd   : > { %9275 = vmatpush.bf16.msra.mxu2 %v11859_v27  ;;  %v11792_v21 = vld [vmem:[%s17535_s19 + $0x470] sm:$0xf0]  ;;  %9250 = vmatpush.bf16.msra.mxu0 %v11315_v23 }
 0x7fe   : > { %v15889_v60 = vld [vmem:[%s17535_s19 + $0x654] sm:$0xf]  ;;  %v11795_v47 = vor.u32 %v15825_v14, %v11792_v21 }
 0x7ff   : > { %9288 = vmatpush.bf16.msra.mxu3 %v12115_v12  ;;  %v12048_v35 = vld [vmem:[%s17535_s19 + $0x670] sm:$0xf0]  ;;  %9263 = vmatpush.bf16.msra.mxu1 %v11571_v28 }
 0x800   : > { %v15689_v43 = vld [vmem:[%s17535_s19 + $0x14] sm:$0xf]  ;;  %v12051_v9 = vor.u32 %v15889_v60, %v12048_v35 }
 0x801   : > { %v11248_v54 = vld [vmem:[%s17535_s19 + $0x30] sm:$0xf0]  ;;  %9276 = vmatpush.bf16.msra.mxu2 %v11827_v31  ;;  %9251 = vmatpush.bf16.msra.mxu0 %v11283_v2 }
 0x802   : > { %v15753_v36 = vld [vmem:[%s17535_s19 + $0x214] sm:$0xf]  ;;  %v11251_v57 = vor.u32 %v15689_v43, %v11248_v54 }
 0x803   : > { %v11504_v37 = vld [vmem:[%s17535_s19 + $0x230] sm:$0xf0]  ;;  %9289 = vmatpush.bf16.msra.mxu3 %v12083_v17  ;;  %9264 = vmatpush.bf16.msra.mxu1 %v11539_v46 }
 0x804   : > { %v15817_v48 = vld [vmem:[%s17535_s19 + $0x414] sm:$0xf]  ;;  %v11507_v5 = vor.u32 %v15753_v36, %v11504_v37 }
 0x805   : > { %v11760_v19 = vld [vmem:[%s17535_s19 + $0x430] sm:$0xf0]  ;;  %9277 = vmatpush.bf16.msra.mxu2 %v11795_v47  ;;  %9252 = vmatpush.bf16.msra.mxu0 %v11251_v57  ;;  %v16925_v47 = vld [vmem:[%s17550_s16] sm:$0xff] }
 0x806   : > { %v15881_v22 = vld [vmem:[%s17535_s19 + $0x614] sm:$0xf]  ;;  %v11763_v8 = vor.u32 %v15817_v48, %v11760_v19  ;;  %v3037_v36 = vperm.slane %v16925_v47, 4 }
 0x807   : > { %v12016_v33 = vld [vmem:[%s17535_s19 + $0x630] sm:$0xf0]  ;;  %9290 = vmatpush.bf16.msra.mxu3 %v12051_v9  ;;  %9265 = vmatpush.bf16.msra.mxu1 %v11507_v5 }
 0x808   : > { %v16001_v26 = vld [vmem:[%s17535_s19 + $0x9d4] sm:$0xf]  ;;  %v12019_v63 = vor.u32 %v15881_v22, %v12016_v33  ;;  %9253 = vmatmul.bf16.vlgmr.msra.gmra.mxu0 %v18003_v41 }
 0x809   : > { %v12496_v53 = vld [vmem:[%s17535_s19 + $0x9f0] sm:$0xf0]  ;;  %9278 = vmatpush.bf16.msra.mxu2 %v11763_v8 }
 0x80a   : > { %v16065_v55 = vld [vmem:[%s17535_s19 + $0xbd4] sm:$0xf]  ;;  %v12499_v59 = vor.u32 %v16001_v26, %v12496_v53  ;;  %9266 = vmatmul.bf16.vlgmr.msra.gmra.mxu1 %v18010_v50  ;;  %v9046_v26 = vpop.f32.mrf.mxu0 }
 0x80b   : > { %v12752_v18 = vld [vmem:[%s17535_s19 + $0xbf0] sm:$0xf0]  ;;  %9291 = vmatpush.bf16.msra.mxu3 %v12019_v63 }
 0x80c   : > { %v16129_v3 = vld [vmem:[%s17535_s19 + $0xdd4] sm:$0xf]  ;;  %v12755_v12 = vor.u32 %v16065_v55, %v12752_v18  ;;  %9297 = vmatpush.bf16.msrb.mxu0 %v12499_v59  ;;  %9279 = vmatmul.bf16.vlgmr.msra.gmra.mxu2 %v18001_v4 }
 0x80d   : > { %v13008_v39 = vld [vmem:[%s17535_s19 + $0xdf0] sm:$0xf0] }
 0x80e   : > { %v16193_v27 = vld [vmem:[%s17535_s19 + $0xfd4] sm:$0xf]  ;;  %v13011_v13 = vor.u32 %v16129_v3, %v13008_v39  ;;  %9310 = vmatpush.bf16.msrb.mxu1 %v12755_v12  ;;  %9292 = vmatmul.bf16.vlgmr.msra.gmra.mxu3 %v18005_v61  ;;  %v9047_v3 = vadd.f32 %v9046_v26, %v3037_v36  ;;  %v9059_v39 = vpop.f32.mrf.mxu1 }
 0x80f   : > { %v13264_v56 = vld [vmem:[%s17535_s19 + $0xff0] sm:$0xf0] }
 0x810   : > { %v15993_v20 = vld [vmem:[%s17535_s19 + $0x994] sm:$0xf]  ;;  %v13267_v15 = vor.u32 %v16193_v27, %v13264_v56  ;;  %9323 = vmatpush.bf16.msrb.mxu2 %v13011_v13  ;;  %v9060_v12 = vadd.f32 %v9059_v39, %v9047_v3 }
 0x811   : > { %v12464_v6 = vld [vmem:[%s17535_s19 + $0x9b0] sm:$0xf0] }
 0x812   : > { %v16057_v10 = vld [vmem:[%s17535_s19 + $0xb94] sm:$0xf]  ;;  %v12467_v25 = vor.u32 %v15993_v20, %v12464_v6  ;;  %9336 = vmatpush.bf16.msrb.mxu3 %v13267_v15 }
 0x813   : > { %v12720_v16 = vld [vmem:[%s17535_s19 + $0xbb0] sm:$0xf0] }
 0x814   : > { %v16121_v24 = vld [vmem:[%s17535_s19 + $0xd94] sm:$0xf]  ;;  %v12723_v29 = vor.u32 %v16057_v10, %v12720_v16  ;;  %9298 = vmatpush.bf16.msrb.mxu0 %v12467_v25 }
 0x815   : > { %v12976_v42 = vld [vmem:[%s17535_s19 + $0xdb0] sm:$0xf0] }
 0x816   : > { %v16185_v11 = vld [vmem:[%s17535_s19 + $0xf94] sm:$0xf]  ;;  %v12979_v30 = vor.u32 %v16121_v24, %v12976_v42  ;;  %9311 = vmatpush.bf16.msrb.mxu1 %v12723_v29  ;;  %v9072_v24 = vpop.f32.mrf.mxu2 }
 0x817   : > { %v13232_v23 = vld [vmem:[%s17535_s19 + $0xfb0] sm:$0xf0]  ;;  %v9073_v29 = vadd.f32 %v9072_v24, %v9060_v12 }
 0x818   : > { %v15985_v28 = vld [vmem:[%s17535_s19 + $0x954] sm:$0xf]  ;;  %v13235_v40 = vor.u32 %v16185_v11, %v13232_v23  ;;  %9324 = vmatpush.bf16.msrb.mxu2 %v12979_v30  ;;  %v9085_v30 = vpop.f32.mrf.mxu3 }
 0x819   : > { %v12432_v31 = vld [vmem:[%s17535_s19 + $0x970] sm:$0xf0] }
 0x81a   : > { %v16049_v58 = vld [vmem:[%s17535_s19 + $0xb54] sm:$0xf]  ;;  %v12435_v34 = vor.u32 %v15985_v28, %v12432_v31  ;;  %9337 = vmatpush.bf16.msrb.mxu3 %v13235_v40  ;;  %v19402_v40 = vadd.f32 %v9085_v30, %v9073_v29 }
 0x81b   : > { %v12688_v32 = vld [vmem:[%s17535_s19 + $0xb70] sm:$0xf0] }
 0x81c   : > { %v16113_v17 = vld [vmem:[%s17535_s19 + $0xd54] sm:$0xf]  ;;  %v12691_v2 = vor.u32 %v16049_v58, %v12688_v32  ;;  %9299 = vmatpush.bf16.msrb.mxu0 %v12435_v34  ;;  %v9048_v32 = vpop.f32.mrf.mxu0 }
 0x81d   : > { %v12944_v14 = vld [vmem:[%s17535_s19 + $0xd70] sm:$0xf0] }
 0x81e   : > { %v16177_v21 = vld [vmem:[%s17535_s19 + $0xf54] sm:$0xf]  ;;  %v12947_v43 = vor.u32 %v16113_v17, %v12944_v14  ;;  %9312 = vmatpush.bf16.msrb.mxu1 %v12691_v2 }
 0x81f   : > { %v13200_v60 = vld [vmem:[%s17535_s19 + $0xf70] sm:$0xf0] }
 0x820   : > { %v15977_v35 = vld [vmem:[%s17535_s19 + $0x914] sm:$0xf]  ;;  %v13203_v37 = vor.u32 %v16177_v21, %v13200_v60  ;;  %9325 = vmatpush.bf16.msrb.mxu2 %v12947_v43  ;;  %v9087_v3 = vpop.f32.mrf.mxu3 }
 0x821   : > { %v12400_v54 = vld [vmem:[%s17535_s19 + $0x930] sm:$0xf0] }
 0x822   : > { %v16041_v46 = vld [vmem:[%s17535_s19 + $0xb14] sm:$0xf]  ;;  %v12403_v52 = vor.u32 %v15977_v35, %v12400_v54  ;;  %9338 = vmatpush.bf16.msrb.mxu3 %v13203_v37  ;;  %v9061_v35 = vpop.f32.mrf.mxu1 }
 0x823   : > { %v12656_v48 = vld [vmem:[%s17535_s19 + $0xb30] sm:$0xf0] }
 0x824   : > { %v16105_v9 = vld [vmem:[%s17535_s19 + $0xd14] sm:$0xf]  ;;  %v12659_v53 = vor.u32 %v16041_v46, %v12656_v48  ;;  %9300 = vmatpush.bf16.msrb.mxu0 %v12403_v52 }
 0x825   : > { %v12912_v19 = vld [vmem:[%s17535_s19 + $0xd30] sm:$0xf0] }
 0x826   : > { %v16169_v22 = vld [vmem:[%s17535_s19 + $0xf14] sm:$0xf]  ;;  %v12915_v55 = vor.u32 %v16105_v9, %v12912_v19  ;;  %9313 = vmatpush.bf16.msrb.mxu1 %v12659_v53  ;;  %v9074_v53 = vpop.f32.mrf.mxu2 }
 0x827   : > { %v13168_v33 = vld [vmem:[%s17535_s19 + $0xf30] sm:$0xf0] }
 0x828   : > { %v15969_v1 = vld [vmem:[%s17535_s19 + $0x8d4] sm:$0xf]  ;;  %v13171_v5 = vor.u32 %v16169_v22, %v13168_v33  ;;  %9326 = vmatpush.bf16.msrb.mxu2 %v12915_v55 }
 0x829   : > { %v12368_v57 = vld [vmem:[%s17535_s19 + $0x8f0] sm:$0xf0] }
 0x82a   : > { %v16033_v18 = vld [vmem:[%s17535_s19 + $0xad4] sm:$0xf]  ;;  %v12371_v13 = vor.u32 %v15969_v1, %v12368_v57  ;;  %9339 = vmatpush.bf16.msrb.mxu3 %v13171_v5 }
 0x82b   : > { %v12624_v8 = vld [vmem:[%s17535_s19 + $0xaf0] sm:$0xf0] }
 0x82c   : > { %v16097_v27 = vld [vmem:[%s17535_s19 + $0xcd4] sm:$0xf]  ;;  %v12627_v20 = vor.u32 %v16033_v18, %v12624_v8  ;;  %9301 = vmatpush.bf16.msrb.mxu0 %v12371_v13 }
 0x82d   : > { %v12880_v56 = vld [vmem:[%s17535_s19 + $0xcf0] sm:$0xf0] }
 0x82e   : > { %v16161_v63 = vld [vmem:[%s17535_s19 + $0xed4] sm:$0xf]  ;;  %v12883_v6 = vor.u32 %v16097_v27, %v12880_v56  ;;  %9314 = vmatpush.bf16.msrb.mxu1 %v12627_v20 }
 0x82f   : > { %v13136_v59 = vld [vmem:[%s17535_s19 + $0xef0] sm:$0xf0] }
 0x830   : > { %v15961_v10 = vld [vmem:[%s17535_s19 + $0x894] sm:$0xf]  ;;  %v13139_v42 = vor.u32 %v16161_v63, %v13136_v59  ;;  %9327 = vmatpush.bf16.msrb.mxu2 %v12883_v6 }
 0x831   : > { %v12336_v15 = vld [vmem:[%s17535_s19 + $0x8b0] sm:$0xf0] }
 0x832   : > { %v16025_v16 = vld [vmem:[%s17535_s19 + $0xa94] sm:$0xf]  ;;  %v12339_v58 = vor.u32 %v15961_v10, %v12336_v15  ;;  %9340 = vmatpush.bf16.msrb.mxu3 %v13139_v42 }
 0x833   : > { %v12592_v11 = vld [vmem:[%s17535_s19 + $0xab0] sm:$0xf0] }
 0x834   : > { %v16089_v23 = vld [vmem:[%s17535_s19 + $0xc94] sm:$0xf]  ;;  %v12595_v17 = vor.u32 %v16025_v16, %v12592_v11  ;;  %9302 = vmatpush.bf16.msrb.mxu0 %v12339_v58 }
 0x835   : > { %v12848_v25 = vld [vmem:[%s17535_s19 + $0xcb0] sm:$0xf0] }
 0x836   : > { %v16153_v28 = vld [vmem:[%s17535_s19 + $0xe94] sm:$0xf]  ;;  %v12851_v14 = vor.u32 %v16089_v23, %v12848_v25  ;;  %9315 = vmatpush.bf16.msrb.mxu1 %v12595_v17 }
 0x837   : > { %v13104_v31 = vld [vmem:[%s17535_s19 + $0xeb0] sm:$0xf0] }
 0x838   : > { %v15953_v21 = vld [vmem:[%s17535_s19 + $0x854] sm:$0xf]  ;;  %v13107_v2 = vor.u32 %v16153_v28, %v13104_v31  ;;  %9328 = vmatpush.bf16.msrb.mxu2 %v12851_v14 }
 0x839   : > { %v12304_v60 = vld [vmem:[%s17535_s19 + $0x870] sm:$0xf0] }
 0x83a   : > { %v16017_v34 = vld [vmem:[%s17535_s19 + $0xa54] sm:$0xf]  ;;  %v12307_v37 = vor.u32 %v15953_v21, %v12304_v60  ;;  %9341 = vmatpush.bf16.msrb.mxu3 %v13107_v2 }
 0x83b   : > { %v12560_v43 = vld [vmem:[%s17535_s19 + $0xa70] sm:$0xf0] }
 0x83c   : > { %v16081_v54 = vld [vmem:[%s17535_s19 + $0xc54] sm:$0xf]  ;;  %v12563_v19 = vor.u32 %v16017_v34, %v12560_v43  ;;  %9303 = vmatpush.bf16.msrb.mxu0 %v12307_v37 }
 0x83d   : > { %v12816_v46 = vld [vmem:[%s17535_s19 + $0xc70] sm:$0xf0] }
 0x83e   : > { %v16145_v47 = vld [vmem:[%s17535_s19 + $0xe54] sm:$0xf]  ;;  %v12819_v22 = vor.u32 %v16081_v54, %v12816_v46  ;;  %9316 = vmatpush.bf16.msrb.mxu1 %v12563_v19 }
 0x83f   : > { %v13072_v36 = vld [vmem:[%s17535_s19 + $0xe70] sm:$0xf0] }
 0x840   : > { %v15945_v48 = vld [vmem:[%s17535_s19 + $0x814] sm:$0xf]  ;;  %v13075_v55 = vor.u32 %v16145_v47, %v13072_v36  ;;  %9329 = vmatpush.bf16.msrb.mxu2 %v12819_v22 }
 0x841   : > { %v12272_v9 = vld [vmem:[%s17535_s19 + $0x830] sm:$0xf0] }
 0x842   : > { %v16009_v33 = vld [vmem:[%s17535_s19 + $0xa14] sm:$0xf]  ;;  %v12275_v27 = vor.u32 %v15945_v48, %v12272_v9  ;;  %9342 = vmatpush.bf16.msrb.mxu3 %v13075_v55 }
 0x843   : > { %v12528_v52 = vld [vmem:[%s17535_s19 + $0xa30] sm:$0xf0] }
 0x844   : > { %v16073_v26 = vld [vmem:[%s17535_s19 + $0xc14] sm:$0xf]  ;;  %v12531_v12 = vor.u32 %v16009_v33, %v12528_v52  ;;  %9304 = vmatpush.bf16.msrb.mxu0 %v12275_v27 }
 0x845   : > { %v12784_v1 = vld [vmem:[%s17535_s19 + $0xc30] sm:$0xf0] }
 0x846   : > { %v16137_v57 = vld [vmem:[%s17535_s19 + $0xe14] sm:$0xf]  ;;  %v12787_v13 = vor.u32 %v16073_v26, %v12784_v1  ;;  %9317 = vmatpush.bf16.msrb.mxu1 %v12531_v12 }
 0x847   : > { %v13040_v18 = vld [vmem:[%s17535_s19 + $0xe30] sm:$0xf0]  ;;  %9305 = vmatmul.bf16.vlgmr.msrb.gmra.mxu0 %v18041_v44 }
 0x848   : > { %v16257_v39 = vld [vmem:[%s17535_s19 + $0x11d4] sm:$0xf]  ;;  %v13043_v10 = vor.u32 %v16137_v57, %v13040_v18  ;;  %9330 = vmatpush.bf16.msrb.mxu2 %v12787_v13  ;;  %v9098_v18 = vpop.f32.mrf.mxu0 }
 0x849   : > { %v13520_v5 = vld [vmem:[%s17535_s19 + $0x11f0] sm:$0xf0]  ;;  %9318 = vmatmul.bf16.vlgmr.msrb.gmra.mxu1 %v18045_v49 }
 0x84a   : > { %v16321_v8 = vld [vmem:[%s17535_s19 + $0x13d4] sm:$0xf]  ;;  %v13523_v15 = vor.u32 %v16257_v39, %v13520_v5  ;;  %9343 = vmatpush.bf16.msrb.mxu3 %v13043_v10 }
 0x84b   : > { %v13776_v56 = vld [vmem:[%s17535_s19 + $0x13f0] sm:$0xf0]  ;;  %9331 = vmatmul.bf16.vlgmr.msrb.gmra.mxu2 %v18039_v62 }
 0x84c   : > { %v16385_v63 = vld [vmem:[%s17535_s19 + $0x15d4] sm:$0xf]  ;;  %v13779_v16 = vor.u32 %v16321_v8, %v13776_v56  ;;  %9349 = vmatpush.bf16.msra.mxu0 %v13523_v15  ;;  %v9099_v56 = vadd.f32 %v9098_v18, %v19402_v40 }
 0x84d   : > { %v14032_v59 = vld [vmem:[%s17535_s19 + $0x15f0] sm:$0xf0]  ;;  %9344 = vmatmul.bf16.vlgmr.msrb.gmra.mxu3 %v18043_v0 }
 0x84e   : > { %v16449_v20 = vld [vmem:[%s17535_s19 + $0x17d4] sm:$0xf]  ;;  %v14035_v24 = vor.u32 %v16385_v63, %v14032_v59  ;;  %9362 = vmatpush.bf16.msra.mxu1 %v13779_v16  ;;  %v9111_v63 = vpop.f32.mrf.mxu1 }
 0x84f   : > { %v14288_v6 = vld [vmem:[%s17535_s19 + $0x17f0] sm:$0xf0]  ;;  %v9112_v15 = vadd.f32 %v9111_v63, %v9099_v56 }
 0x850   : > { %v16249_v42 = vld [vmem:[%s17535_s19 + $0x1194] sm:$0xf]  ;;  %v14291_v25 = vor.u32 %v16449_v20, %v14288_v6  ;;  %9375 = vmatpush.bf16.msra.mxu2 %v14035_v24 }
 0x851   : > { %v13488_v11 = vld [vmem:[%s17535_s19 + $0x11b0] sm:$0xf0] }
 0x852   : > { %v16313_v23 = vld [vmem:[%s17535_s19 + $0x1394] sm:$0xf]  ;;  %v13491_v32 = vor.u32 %v16249_v42, %v13488_v11  ;;  %9388 = vmatpush.bf16.msra.mxu3 %v14291_v25  ;;  %v9124_v25 = vpop.f32.mrf.mxu2 }
 0x853   : > { %v13744_v29 = vld [vmem:[%s17535_s19 + $0x13b0] sm:$0xf0] }
 0x854   : > { %v16377_v30 = vld [vmem:[%s17535_s19 + $0x1594] sm:$0xf]  ;;  %v13747_v17 = vor.u32 %v16313_v23, %v13744_v29  ;;  %9350 = vmatpush.bf16.msra.mxu0 %v13491_v32  ;;  %v9137_v32 = vpop.f32.mrf.mxu3 }
 0x855   : > { %v14000_v28 = vld [vmem:[%s17535_s19 + $0x15b0] sm:$0xf0] }
 0x856   : > { %v16441_v31 = vld [vmem:[%s17535_s19 + $0x1794] sm:$0xf]  ;;  %v14003_v14 = vor.u32 %v16377_v30, %v14000_v28  ;;  %9363 = vmatpush.bf16.msra.mxu1 %v13747_v17 }
 0x857   : > { %v14256_v58 = vld [vmem:[%s17535_s19 + $0x17b0] sm:$0xf0] }
 0x858   : > { %v16241_v21 = vld [vmem:[%s17535_s19 + $0x1154] sm:$0xf]  ;;  %v14259_v35 = vor.u32 %v16441_v31, %v14256_v58  ;;  %9376 = vmatpush.bf16.msra.mxu2 %v14003_v14  ;;  %v9125_v58 = vadd.f32 %v9124_v25, %v9112_v15 }
 0x859   : > { %v13456_v60 = vld [vmem:[%s17535_s19 + $0x1170] sm:$0xf0] }
 0x85a   : > { %v16305_v34 = vld [vmem:[%s17535_s19 + $0x1354] sm:$0xf]  ;;  %v13459_v36 = vor.u32 %v16241_v21, %v13456_v60  ;;  %9389 = vmatpush.bf16.msra.mxu3 %v14259_v35  ;;  %v19473_v60 = vadd.f32 %v9137_v32, %v9125_v58 }
 0x85b   : > { %v13712_v2 = vld [vmem:[%s17535_s19 + $0x1370] sm:$0xf0] }
 0x85c   : > { %v16369_v43 = vld [vmem:[%s17535_s19 + $0x1554] sm:$0xf]  ;;  %v13715_v37 = vor.u32 %v16305_v34, %v13712_v2  ;;  %9351 = vmatpush.bf16.msra.mxu0 %v13459_v36  ;;  %v9100_v34 = vpop.f32.mrf.mxu0  ;;  %v9139_v56 = vpop.f32.mrf.mxu3 }
 0x85d   : > { %v13968_v54 = vld [vmem:[%s17535_s19 + $0x1570] sm:$0xf0] }
 0x85e   : > { %v16433_v46 = vld [vmem:[%s17535_s19 + $0x1754] sm:$0xf]  ;;  %v13971_v48 = vor.u32 %v16369_v43, %v13968_v54  ;;  %9364 = vmatpush.bf16.msra.mxu1 %v13715_v37 }
 0x85f   : > { %v14224_v47 = vld [vmem:[%s17535_s19 + $0x1770] sm:$0xf0] }
 0x860   : > { %v16233_v9 = vld [vmem:[%s17535_s19 + $0x1114] sm:$0xf]  ;;  %v14227_v33 = vor.u32 %v16433_v46, %v14224_v47  ;;  %9377 = vmatpush.bf16.msra.mxu2 %v13971_v48  ;;  %v9113_v47 = vpop.f32.mrf.mxu1 }
 0x861   : > { %v13424_v19 = vld [vmem:[%s17535_s19 + $0x1130] sm:$0xf0] }
 0x862   : > { %v16297_v22 = vld [vmem:[%s17535_s19 + $0x1314] sm:$0xf]  ;;  %v13427_v57 = vor.u32 %v16233_v9, %v13424_v19  ;;  %9390 = vmatpush.bf16.msra.mxu3 %v14227_v33 }
 0x863   : > { %v13680_v52 = vld [vmem:[%s17535_s19 + $0x1330] sm:$0xf0] }
 0x864   : > { %v16361_v26 = vld [vmem:[%s17535_s19 + $0x1514] sm:$0xf]  ;;  %v13683_v3 = vor.u32 %v16297_v22, %v13680_v52  ;;  %9352 = vmatpush.bf16.msra.mxu0 %v13427_v57  ;;  %v9150_v56 = vpop.f32.mrf.mxu0 }
 0x865   : > { %v13936_v53 = vld [vmem:[%s17535_s19 + $0x1530] sm:$0xf0] }
 0x866   : > { %v16425_v55 = vld [vmem:[%s17535_s19 + $0x1714] sm:$0xf]  ;;  %v13939_v39 = vor.u32 %v16361_v26, %v13936_v53  ;;  %9365 = vmatpush.bf16.msra.mxu1 %v13683_v3  ;;  %v9126_v3 = vpop.f32.mrf.mxu2 }
 0x867   : > { %v14192_v1 = vld [vmem:[%s17535_s19 + $0x1730] sm:$0xf0] }
 0x868   : > { %v16225_v5 = vld [vmem:[%s17535_s19 + $0x10d4] sm:$0xf]  ;;  %v14195_v59 = vor.u32 %v16425_v55, %v14192_v1  ;;  %9378 = vmatpush.bf16.msra.mxu2 %v13939_v39 }
 0x869   : > { %v13392_v8 = vld [vmem:[%s17535_s19 + $0x10f0] sm:$0xf0] }
 0x86a   : > { %v16289_v27 = vld [vmem:[%s17535_s19 + $0x12d4] sm:$0xf]  ;;  %v13395_v16 = vor.u32 %v16225_v5, %v13392_v8  ;;  %9391 = vmatpush.bf16.msra.mxu3 %v14195_v59 }
 0x86b   : > { %v13648_v12 = vld [vmem:[%s17535_s19 + $0x12f0] sm:$0xf0] }
 0x86c   : > { %v16353_v13 = vld [vmem:[%s17535_s19 + $0x14d4] sm:$0xf]  ;;  %v13651_v40 = vor.u32 %v16289_v27, %v13648_v12  ;;  %9353 = vmatpush.bf16.msra.mxu0 %v13395_v16 }
 0x86d   : > { %v13904_v20 = vld [vmem:[%s17535_s19 + $0x14f0] sm:$0xf0] }
 0x86e   : > { %v16417_v6 = vld [vmem:[%s17535_s19 + $0x16d4] sm:$0xf]  ;;  %v13907_v24 = vor.u32 %v16353_v13, %v13904_v20  ;;  %9366 = vmatpush.bf16.msra.mxu1 %v13651_v40 }
 0x86f   : > { %v14160_v10 = vld [vmem:[%s17535_s19 + $0x16f0] sm:$0xf0] }
 0x870   : > { %v16217_v42 = vld [vmem:[%s17535_s19 + $0x1094] sm:$0xf]  ;;  %v14163_v29 = vor.u32 %v16417_v6, %v14160_v10  ;;  %9379 = vmatpush.bf16.msra.mxu2 %v13907_v24 }
 0x871   : > { %v13360_v11 = vld [vmem:[%s17535_s19 + $0x10b0] sm:$0xf0] }
 0x872   : > { %v16281_v23 = vld [vmem:[%s17535_s19 + $0x1294] sm:$0xf]  ;;  %v13363_v21 = vor.u32 %v16217_v42, %v13360_v11  ;;  %9392 = vmatpush.bf16.msra.mxu3 %v14163_v29 }
 0x873   : > { %v13616_v30 = vld [vmem:[%s17535_s19 + $0x12b0] sm:$0xf0] }
 0x874   : > { %v16345_v28 = vld [vmem:[%s17535_s19 + $0x1494] sm:$0xf]  ;;  %v13619_v35 = vor.u32 %v16281_v23, %v13616_v30  ;;  %9354 = vmatpush.bf16.msra.mxu0 %v13363_v21 }
 0x875   : > { %v13872_v31 = vld [vmem:[%s17535_s19 + $0x14b0] sm:$0xf0] }
 0x876   : > { %v16409_v17 = vld [vmem:[%s17535_s19 + $0x1694] sm:$0xf]  ;;  %v13875_v2 = vor.u32 %v16345_v28, %v13872_v31  ;;  %9367 = vmatpush.bf16.msra.mxu1 %v13619_v35 }
 0x877   : > { %v14128_v14 = vld [vmem:[%s17535_s19 + $0x16b0] sm:$0xf0] }
 0x878   : > { %v16209_v43 = vld [vmem:[%s17535_s19 + $0x1054] sm:$0xf]  ;;  %v14131_v36 = vor.u32 %v16409_v17, %v14128_v14  ;;  %9380 = vmatpush.bf16.msra.mxu2 %v13875_v2 }
 0x879   : > { %v13328_v54 = vld [vmem:[%s17535_s19 + $0x1070] sm:$0xf0] }
 0x87a   : > { %v16273_v46 = vld [vmem:[%s17535_s19 + $0x1254] sm:$0xf]  ;;  %v13331_v33 = vor.u32 %v16209_v43, %v13328_v54  ;;  %9393 = vmatpush.bf16.msra.mxu3 %v14131_v36 }
 0x87b   : > { %v13584_v37 = vld [vmem:[%s17535_s19 + $0x1270] sm:$0xf0] }
 0x87c   : > { %v16337_v48 = vld [vmem:[%s17535_s19 + $0x1454] sm:$0xf]  ;;  %v13587_v53 = vor.u32 %v16273_v46, %v13584_v37  ;;  %9355 = vmatpush.bf16.msra.mxu0 %v13331_v33 }
 0x87d   : > { %v13840_v9 = vld [vmem:[%s17535_s19 + $0x1470] sm:$0xf0] }
 0x87e   : > { %v16401_v19 = vld [vmem:[%s17535_s19 + $0x1654] sm:$0xf]  ;;  %v13843_v55 = vor.u32 %v16337_v48, %v13840_v9  ;;  %9368 = vmatpush.bf16.msra.mxu1 %v13587_v53 }
 0x87f   : > { %v14096_v22 = vld [vmem:[%s17535_s19 + $0x1670] sm:$0xf0] }
 0x880   : > { %v16201_v52 = vld [vmem:[%s17535_s19 + $0x1014] sm:$0xf]  ;;  %v14099_v39 = vor.u32 %v16401_v19, %v14096_v22  ;;  %9381 = vmatpush.bf16.msra.mxu2 %v13843_v55  ;;  %v16927_v19 = vld [vmem:[#allocation1 + $0x12] sm:$0xff]  ;;  %v16928_v22 = vld [vmem:[#allocation1 + $0x9] sm:$0xff] }
 0x881   : > { %v13296_v26 = vld [vmem:[%s17535_s19 + $0x1030] sm:$0xf0] }
 0x882   : > { %v16265_v1 = vld [vmem:[%s17535_s19 + $0x1214] sm:$0xf]  ;;  %v13299_v13 = vor.u32 %v16201_v52, %v13296_v26  ;;  %9394 = vmatpush.bf16.msra.mxu3 %v14099_v39 }
 0x883   : > { %v13552_v57 = vld [vmem:[%s17535_s19 + $0x1230] sm:$0xf0] }
 0x884   : > { %v16329_v18 = vld [vmem:[%s17535_s19 + $0x1414] sm:$0xf]  ;;  %v13555_v15 = vor.u32 %v16265_v1, %v13552_v57  ;;  %9356 = vmatpush.bf16.msra.mxu0 %v13299_v13 }
 0x885   : > { %v13808_v5 = vld [vmem:[%s17535_s19 + $0x1430] sm:$0xf0] }
 0x886   : > { %v16393_v8 = vld [vmem:[%s17535_s19 + $0x1614] sm:$0xf]  ;;  %v13811_v16 = vor.u32 %v16329_v18, %v13808_v5  ;;  %9369 = vmatpush.bf16.msra.mxu1 %v13555_v15 }
 0x887   : > { %v14064_v27 = vld [vmem:[%s17535_s19 + $0x1630] sm:$0xf0] }
 0x888   : > { %v16513_v63 = vld [vmem:[%s17535_s19 + $0x19d4] sm:$0xf]  ;;  %v14067_v42 = vor.u32 %v16393_v8, %v14064_v27  ;;  %9382 = vmatpush.bf16.msra.mxu2 %v13811_v16 }
 0x889   : > { %v14544_v59 = vld [vmem:[%s17535_s19 + $0x19f0] sm:$0xf0]  ;;  %9370 = vmatmul.bf16.vlgmr.msra.gmra.mxu1 %v16928_v22 }
 0x88a   : > { %v16577_v12 = vld [vmem:[%s17535_s19 + $0x1bd4] sm:$0xf]  ;;  %v14547_v11 = vor.u32 %v16513_v63, %v14544_v59  ;;  %9395 = vmatpush.bf16.msra.mxu3 %v14067_v42 }
 0x88b   : > { %v14800_v20 = vld [vmem:[%s17535_s19 + $0x1bf0] sm:$0xf0]  ;;  %9383 = vmatmul.bf16.vlgmr.msra.gmra.mxu2 %v16927_v19 }
 0x88c   : > { %v16641_v6 = vld [vmem:[%s17535_s19 + $0x1dd4] sm:$0xf]  ;;  %v14803_v23 = vor.u32 %v16577_v12, %v14800_v20  ;;  %9401 = vmatpush.bf16.msrb.mxu0 %v14547_v11  ;;  %v9151_v12 = vadd.f32 %v9150_v56, %v19473_v60  ;;  %v9163_v20 = vpop.f32.mrf.mxu1 }
 0x88d   : > { %v15056_v10 = vld [vmem:[%s17535_s19 + $0x1df0] sm:$0xf0] }
 0x88e   : > { %v16705_v40 = vld [vmem:[%s17535_s19 + $0x1fd4] sm:$0xf]  ;;  %v15059_v25 = vor.u32 %v16641_v6, %v15056_v10  ;;  %9414 = vmatpush.bf16.msrb.mxu1 %v14803_v23  ;;  %v9164_v42 = vadd.f32 %v9163_v20, %v9151_v12 }
 0x88f   : > { %v15312_v24 = vld [vmem:[%s17535_s19 + $0x1ff0] sm:$0xf0] }
 0x890   : > { %v16505_v29 = vld [vmem:[%s17535_s19 + $0x1994] sm:$0xf]  ;;  %v15315_v31 = vor.u32 %v16705_v40, %v15312_v24  ;;  %9427 = vmatpush.bf16.msrb.mxu2 %v15059_v25 }
 0x891   : > { %v14512_v30 = vld [vmem:[%s17535_s19 + $0x19b0] sm:$0xf0] }
 0x892   : > { %v16569_v28 = vld [vmem:[%s17535_s19 + $0x1b94] sm:$0xf]  ;;  %v14515_v34 = vor.u32 %v16505_v29, %v14512_v30  ;;  %9440 = vmatpush.bf16.msrb.mxu3 %v15315_v31 }
 0x893   : > { %v14768_v58 = vld [vmem:[%s17535_s19 + $0x1bb0] sm:$0xf0] }
 0x894   : > { %v16633_v32 = vld [vmem:[%s17535_s19 + $0x1d94] sm:$0xf]  ;;  %v14771_v35 = vor.u32 %v16569_v28, %v14768_v58  ;;  %9402 = vmatpush.bf16.msrb.mxu0 %v14515_v34 }
 0x895   : > { %v15024_v17 = vld [vmem:[%s17535_s19 + $0x1db0] sm:$0xf0] }
 0x896   : > { %v16697_v14 = vld [vmem:[%s17535_s19 + $0x1f94] sm:$0xf]  ;;  %v15027_v2 = vor.u32 %v16633_v32, %v15024_v17  ;;  %9415 = vmatpush.bf16.msrb.mxu1 %v14771_v35 }
 0x897   : > { %v15280_v21 = vld [vmem:[%s17535_s19 + $0x1fb0] sm:$0xf0] }
 0x898   : > { %v16497_v43 = vld [vmem:[%s17535_s19 + $0x1954] sm:$0xf]  ;;  %v15283_v36 = vor.u32 %v16697_v14, %v15280_v21  ;;  %9428 = vmatpush.bf16.msrb.mxu2 %v15027_v2  ;;  %v9176_v21 = vpop.f32.mrf.mxu2 }
 0x899   : > { %v14480_v54 = vld [vmem:[%s17535_s19 + $0x1970] sm:$0xf0] }
 0x89a   : > { %v16561_v46 = vld [vmem:[%s17535_s19 + $0x1b54] sm:$0xf]  ;;  %v14483_v53 = vor.u32 %v16497_v43, %v14480_v54  ;;  %9441 = vmatpush.bf16.msrb.mxu3 %v15283_v36  ;;  %v9177_v43 = vadd.f32 %v9176_v21, %v9164_v42  ;;  %v9189_v54 = vpop.f32.mrf.mxu3  ;;  %v9152_v36 = vpop.f32.mrf.mxu0  ;;  %v11446_v21 = vld [vmem:[%s17535_s19 + $0x198] sm:$0xf] }
 0x89b   : > { %v16926_v47 = vld [vmem:[#allocation1] sm:$0xff] }
 0x89c   : > { %9357 = vmatmul.bf16.vlgmr.msra.gmra.mxu0 %v16926_v47  ;;  %v14736_v37 = vld [vmem:[%s17535_s19 + $0x1b70] sm:$0xf0]  ;;  %v15934_v36 = vld [vmem:[%s17535_s19 + $0x7b4] sm:$0xf0] }
 0x89d   : > { %v16625_v48 = vld [vmem:[%s17535_s19 + $0x1d54] sm:$0xf]  ;;  %v14739_v55 = vor.u32 %v16561_v46, %v14736_v37  ;;  %9403 = vmatpush.bf16.msrb.mxu0 %v14483_v53 }
 0x89e   : > { %v14992_v9 = vld [vmem:[%s17535_s19 + $0x1d70] sm:$0xf0] }
 0x89f   : > { %v16689_v33 = vld [vmem:[%s17535_s19 + $0x1f54] sm:$0xf]  ;;  %v14995_v1 = vor.u32 %v16625_v48, %v14992_v9  ;;  %9416 = vmatpush.bf16.msrb.mxu1 %v14739_v55  ;;  %v9165_v48 = vpop.f32.mrf.mxu1  ;;  %v19540_v9 = vadd.f32 %v9189_v54, %v9177_v43  ;;  %v15806_v43 = vld [vmem:[%s17535_s19 + $0x3b4] sm:$0xf0] }
 0x8a0   : > { %v15248_v52 = vld [vmem:[%s17535_s19 + $0x1f70] sm:$0xf0]  ;;  %v11958_v54 = vld [vmem:[%s17535_s19 + $0x598] sm:$0xf] }
 0x8a1   : > { %v16929_v26 = vld [vmem:[#allocation1 + $0x1b] sm:$0xff]  ;;  %v15251_v39 = vor.u32 %v16689_v33, %v15248_v52  ;;  %9429 = vmatpush.bf16.msrb.mxu2 %v14995_v1 }
 0x8a2   : > { %9396 = vmatmul.bf16.vlgmr.msra.gmra.mxu3 %v16929_v26  ;;  %v16489_v57 = vld [vmem:[%s17535_s19 + $0x1914] sm:$0xf]  ;;  %v9191_v42 = vpop.f32.mrf.mxu3 }
 0x8a3   : > { %v14448_v18 = vld [vmem:[%s17535_s19 + $0x1930] sm:$0xf0]  ;;  %9442 = vmatpush.bf16.msrb.mxu3 %v15251_v39 }
 0x8a4   : > { %v16553_v3 = vld [vmem:[%s17535_s19 + $0x1b14] sm:$0xf]  ;;  %v14451_v13 = vor.u32 %v16489_v57, %v14448_v18 }
 0x8a5   : > { %v14704_v5 = vld [vmem:[%s17535_s19 + $0x1b30] sm:$0xf0] }
 0x8a6   : > { %v16617_v8 = vld [vmem:[%s17535_s19 + $0x1d14] sm:$0xf]  ;;  %v14707_v6 = vor.u32 %v16553_v3, %v14704_v5  ;;  %9404 = vmatpush.bf16.msrb.mxu0 %v14451_v13 }
 0x8a7   : > { %v14960_v27 = vld [vmem:[%s17535_s19 + $0x1d30] sm:$0xf0] }
 0x8a8   : > { %v16681_v63 = vld [vmem:[%s17535_s19 + $0x1f14] sm:$0xf]  ;;  %v14963_v10 = vor.u32 %v16617_v8, %v14960_v27  ;;  %9417 = vmatpush.bf16.msrb.mxu1 %v14707_v6 }
 0x8a9   : > { %v15216_v59 = vld [vmem:[%s17535_s19 + $0x1f30] sm:$0xf0] }
 0x8aa   : > { %v16481_v15 = vld [vmem:[%s17535_s19 + $0x18d4] sm:$0xf]  ;;  %v15219_v24 = vor.u32 %v16681_v63, %v15216_v59  ;;  %9430 = vmatpush.bf16.msrb.mxu2 %v14963_v10 }
 0x8ab   : > { %v14416_v16 = vld [vmem:[%s17535_s19 + $0x18f0] sm:$0xf0] }
 0x8ac   : > { %v16545_v40 = vld [vmem:[%s17535_s19 + $0x1ad4] sm:$0xf]  ;;  %v14419_v30 = vor.u32 %v16481_v15, %v14416_v16  ;;  %9443 = vmatpush.bf16.msrb.mxu3 %v15219_v24  ;;  %v9178_v15 = vpop.f32.mrf.mxu2  ;;  %v11478_v16 = vld [vmem:[%s17535_s19 + $0x1d8] sm:$0xf] }
 0x8ad   : > { %v14672_v11 = vld [vmem:[%s17535_s19 + $0x1af0] sm:$0xf0]  ;;  %v11734_v24 = vld [vmem:[%s17535_s19 + $0x3d8] sm:$0xf] }
 0x8ae   : > { %v16609_v23 = vld [vmem:[%s17535_s19 + $0x1cd4] sm:$0xf]  ;;  %v14675_v28 = vor.u32 %v16545_v40, %v14672_v11  ;;  %9405 = vmatpush.bf16.msrb.mxu0 %v14419_v30  ;;  %v15750_v40 = vld [vmem:[%s17535_s19 + $0x1f4] sm:$0xf0] }
 0x8af   : > { %v14928_v60 = vld [vmem:[%s17535_s19 + $0x1cf0] sm:$0xf0]  ;;  %v15854_v15 = vld [vmem:[%s17535_s19 + $0x534] sm:$0xf0] }
 0x8b0   : > { %v16673_v25 = vld [vmem:[%s17535_s19 + $0x1ed4] sm:$0xf]  ;;  %v14931_v31 = vor.u32 %v16609_v23, %v14928_v60  ;;  %9418 = vmatpush.bf16.msrb.mxu1 %v14675_v28  ;;  %v15814_v23 = vld [vmem:[%s17535_s19 + $0x3f4] sm:$0xf0] }
 0x8b1   : > { %v15184_v29 = vld [vmem:[%s17535_s19 + $0x1ef0] sm:$0xf0]  ;;  %v11990_v60 = vld [vmem:[%s17535_s19 + $0x5d8] sm:$0xf] }
 0x8b2   : > { %v16473_v58 = vld [vmem:[%s17535_s19 + $0x1894] sm:$0xf]  ;;  %v15187_v14 = vor.u32 %v16673_v25, %v15184_v29  ;;  %9431 = vmatpush.bf16.msrb.mxu2 %v14931_v31  ;;  %v15878_v25 = vld [vmem:[%s17535_s19 + $0x5f4] sm:$0xf0] }
 0x8b3   : > { %v14384_v32 = vld [vmem:[%s17535_s19 + $0x18b0] sm:$0xf0]  ;;  %v12246_v28 = vld [vmem:[%s17535_s19 + $0x7d8] sm:$0xf] }
 0x8b4   : > { %v16537_v17 = vld [vmem:[%s17535_s19 + $0x1a94] sm:$0xf]  ;;  %v14387_v37 = vor.u32 %v16473_v58, %v14384_v32  ;;  %9444 = vmatpush.bf16.msrb.mxu3 %v15187_v14  ;;  %v15942_v31 = vld [vmem:[%s17535_s19 + $0x7f4] sm:$0xf0]  ;;  %v11479_v32 = vor.u32 %v15750_v40, %v11478_v16  ;;  %v11991_v14 = vor.u32 %v15878_v25, %v11990_v60  ;;  %v9202_v16 = vpop.f32.mrf.mxu0 }
 0x8b5   : > { %v14640_v34 = vld [vmem:[%s17535_s19 + $0x1ab0] sm:$0xf0]  ;;  %v12150_v40 = vld [vmem:[%s17535_s19 + $0x718] sm:$0xf]  ;;  %v9203_v42 = vadd.f32 %v9202_v16, %v19540_v9 }
 0x8b6   : > { %v16601_v35 = vld [vmem:[%s17535_s19 + $0x1c94] sm:$0xf]  ;;  %v14643_v19 = vor.u32 %v16537_v17, %v14640_v34  ;;  %9406 = vmatpush.bf16.msrb.mxu0 %v14387_v37  ;;  %v11735_v17 = vor.u32 %v15814_v23, %v11734_v24  ;;  %v15742_v34 = vld [vmem:[%s17535_s19 + $0x1b4] sm:$0xf0]  ;;  %v9215_v23 = vpop.f32.mrf.mxu1 }
 0x8b7   : > { %v14896_v2 = vld [vmem:[%s17535_s19 + $0x1cb0] sm:$0xf0]  ;;  %v11447_v37 = vor.u32 %v15742_v34, %v11446_v21  ;;  %v15918_v24 = vld [vmem:[%s17535_s19 + $0x734] sm:$0xf0] }
 0x8b8   : > { %v16665_v46 = vld [vmem:[%s17535_s19 + $0x1e94] sm:$0xf]  ;;  %v14899_v22 = vor.u32 %v16601_v35, %v14896_v2  ;;  %9419 = vmatpush.bf16.msrb.mxu1 %v14643_v19  ;;  %v11702_v35 = vld [vmem:[%s17535_s19 + $0x398] sm:$0xf]  ;;  %v12247_v2 = vor.u32 %v15942_v31, %v12246_v28  ;;  %v12151_v31 = vor.u32 %v15918_v24, %v12150_v40 }
 0x8b9   : > { %v15152_v47 = vld [vmem:[%s17535_s19 + $0x1eb0] sm:$0xf0]  ;;  %v11703_v48 = vor.u32 %v15806_v43, %v11702_v35  ;;  %v11606_v28 = vld [vmem:[%s17535_s19 + $0x2d8] sm:$0xf] }
 0x8ba   : > { %v16465_v33 = vld [vmem:[%s17535_s19 + $0x1854] sm:$0xf]  ;;  %v15155_v53 = vor.u32 %v16665_v46, %v15152_v47  ;;  %9432 = vmatpush.bf16.msrb.mxu2 %v14899_v22  ;;  %v15870_v46 = vld [vmem:[%s17535_s19 + $0x5b4] sm:$0xf0] }
 0x8bb   : > { %v14352_v52 = vld [vmem:[%s17535_s19 + $0x1870] sm:$0xf0]  ;;  %v12214_v47 = vld [vmem:[%s17535_s19 + $0x798] sm:$0xf]  ;;  %v11959_v19 = vor.u32 %v15870_v46, %v11958_v54 }
 0x8bc   : > { %v16529_v26 = vld [vmem:[%s17535_s19 + $0x1a54] sm:$0xf]  ;;  %v14355_v39 = vor.u32 %v16465_v33, %v14352_v52  ;;  %9445 = vmatpush.bf16.msrb.mxu3 %v15155_v53  ;;  %v11414_v22 = vld [vmem:[%s17535_s19 + $0x158] sm:$0xf]  ;;  %v12215_v53 = vor.u32 %v15934_v36, %v12214_v47  ;;  %v9228_v36 = vpop.f32.mrf.mxu2 }
 0x8bd   : > { %v14608_v55 = vld [vmem:[%s17535_s19 + $0x1a70] sm:$0xf0]  ;;  %v15734_v33 = vld [vmem:[%s17535_s19 + $0x174] sm:$0xf0] }
 0x8be   : > { %v16593_v1 = vld [vmem:[%s17535_s19 + $0x1c54] sm:$0xf]  ;;  %v14611_v27 = vor.u32 %v16529_v26, %v14608_v55  ;;  %9407 = vmatpush.bf16.msrb.mxu0 %v14355_v39  ;;  %v11670_v52 = vld [vmem:[%s17535_s19 + $0x358] sm:$0xf] }
 0x8bf   : > { %v14864_v57 = vld [vmem:[%s17535_s19 + $0x1c70] sm:$0xf0]  ;;  %v16930_v26 = vld [vmem:[#allocation1 + $0x24] sm:$0xff] }
 0x8c0   : > { %v16657_v18 = vld [vmem:[%s17535_s19 + $0x1e54] sm:$0xf]  ;;  %v14867_v56 = vor.u32 %v16593_v1, %v14864_v57  ;;  %9420 = vmatpush.bf16.msrb.mxu1 %v14611_v27  ;;  %v15798_v55 = vld [vmem:[%s17535_s19 + $0x374] sm:$0xf0]  ;;  %v11415_v27 = vor.u32 %v15734_v33, %v11414_v22  ;;  %v9241_v33 = vpop.f32.mrf.mxu3 }
 0x8c1   : > { %v15120_v3 = vld [vmem:[%s17535_s19 + $0x1e70] sm:$0xf0]  ;;  %v11926_v1 = vld [vmem:[%s17535_s19 + $0x558] sm:$0xf] }
 0x8c2   : > { %v16457_v5 = vld [vmem:[%s17535_s19 + $0x1814] sm:$0xf]  ;;  %v15123_v13 = vor.u32 %v16657_v18, %v15120_v3  ;;  %9433 = vmatpush.bf16.msrb.mxu2 %v14867_v56  ;;  %v15862_v57 = vld [vmem:[%s17535_s19 + $0x574] sm:$0xf0]  ;;  %v16931_v18 = vld [vmem:[#allocation1 + $0x36] sm:$0xff]  ;;  %v11671_v56 = vor.u32 %v15798_v55, %v11670_v52 }
 0x8c3   : > { %v14320_v8 = vld [vmem:[%s17535_s19 + $0x1830] sm:$0xf0]  ;;  %v16932_v3 = vld [vmem:[#allocation1 + $0x2d] sm:$0xff]  ;;  %v12182_v39 = vld [vmem:[%s17535_s19 + $0x758] sm:$0xf] }
 0x8c4   : > { %v16521_v63 = vld [vmem:[%s17535_s19 + $0x1a14] sm:$0xf]  ;;  %v14323_v11 = vor.u32 %v16457_v5, %v14320_v8  ;;  %9446 = vmatpush.bf16.msrb.mxu3 %v15123_v13  ;;  %v15926_v5 = vld [vmem:[%s17535_s19 + $0x774] sm:$0xf0] }
 0x8c5   : > { %v14576_v59 = vld [vmem:[%s17535_s19 + $0x1a30] sm:$0xf0]  ;;  %v11638_v13 = vld [vmem:[%s17535_s19 + $0x318] sm:$0xf] }
 0x8c6   : > { %v16585_v12 = vld [vmem:[%s17535_s19 + $0x1c14] sm:$0xf]  ;;  %v14579_v29 = vor.u32 %v16521_v63, %v14576_v59  ;;  %9408 = vmatpush.bf16.msrb.mxu0 %v14323_v11  ;;  %v11927_v63 = vor.u32 %v15862_v57, %v11926_v1  ;;  %v11382_v59 = vld [vmem:[%s17535_s19 + $0x118] sm:$0xf]  ;;  %v9217_v57 = vpop.f32.mrf.mxu1 }
 0x8c7   : > { %v14832_v20 = vld [vmem:[%s17535_s19 + $0x1c30] sm:$0xf0]  ;;  %v15846_v9 = vld [vmem:[%s17535_s19 + $0x4f4] sm:$0xf0] }
 0x8c8   : > { %v16649_v6 = vld [vmem:[%s17535_s19 + $0x1e14] sm:$0xf]  ;;  %v14835_v30 = vor.u32 %v16585_v12, %v14832_v20  ;;  %9421 = vmatpush.bf16.msrb.mxu1 %v14579_v29  ;;  %v15726_v12 = vld [vmem:[%s17535_s19 + $0x134] sm:$0xf0]  ;;  %v12183_v20 = vor.u32 %v15926_v5, %v12182_v39 }
 0x8c9   : > { %v15088_v10 = vld [vmem:[%s17535_s19 + $0x1e30] sm:$0xf0]  ;;  %9409 = vmatmul.bf16.vlgmr.msrb.gmra.mxu0 %v16930_v26  ;;  %v11383_v11 = vor.u32 %v15726_v12, %v11382_v59  ;;  %v11350_v29 = vld [vmem:[%s17535_s19 + $0xd8] sm:$0xf] }
 0x8ca   : > { %v15091_v58 = vor.u32 %v16649_v6, %v15088_v10  ;;  %9434 = vmatpush.bf16.msrb.mxu2 %v14835_v30  ;;  %9453 = vmatpush.bf16.msra.mxu0 %v11479_v32  ;;  %v16933_v8 = vld [vmem:[#allocation1 + $0x3f] sm:$0xff] }
 0x8cb   : > { %9422 = vmatmul.bf16.vlgmr.msrb.gmra.mxu1 %v16932_v3  ;;  %v15790_v6 = vld [vmem:[%s17535_s19 + $0x334] sm:$0xf0] }
 0x8cc   : > { %9447 = vmatpush.bf16.msrb.mxu3 %v15091_v58  ;;  %9466 = vmatpush.bf16.msra.mxu1 %v11735_v17  ;;  %v11894_v10 = vld [vmem:[%s17535_s19 + $0x518] sm:$0xf]  ;;  %v11639_v60 = vor.u32 %v15790_v6, %v11638_v13  ;;  %v9216_v58 = vadd.f32 %v9215_v23, %v9203_v42 }
 0x8cd   : > { %9435 = vmatmul.bf16.vlgmr.msrb.gmra.mxu2 %v16931_v18  ;;  %v11895_v25 = vor.u32 %v15854_v15, %v11894_v10  ;;  %v15718_v30 = vld [vmem:[%s17535_s19 + $0xf4] sm:$0xf0] }
 0x8ce   : > { %9479 = vmatpush.bf16.msra.mxu2 %v11991_v14  ;;  %9454 = vmatpush.bf16.msra.mxu0 %v11447_v37  ;;  %v15782_v32 = vld [vmem:[%s17535_s19 + $0x2f4] sm:$0xf0]  ;;  %v11351_v34 = vor.u32 %v15718_v30, %v11350_v29  ;;  %v9229_v22 = vadd.f32 %v9228_v36, %v9216_v58 }
 0x8cf   : > { %9448 = vmatmul.bf16.vlgmr.msrb.gmra.mxu3 %v16933_v8  ;;  %v11862_v17 = vld [vmem:[%s17535_s19 + $0x4d8] sm:$0xf]  ;;  %v11607_v35 = vor.u32 %v15782_v32, %v11606_v28  ;;  %v9230_v28 = vpop.f32.mrf.mxu2 }
 0x8d0   : > { %9492 = vmatpush.bf16.msra.mxu3 %v12247_v2  ;;  %9467 = vmatpush.bf16.msra.mxu1 %v11703_v48  ;;  %v12118_v14 = vld [vmem:[%s17535_s19 + $0x6d8] sm:$0xf]  ;;  %v11863_v2 = vor.u32 %v15846_v9, %v11862_v17  ;;  %v9242_v18 = vadd.f32 %v9241_v33, %v9229_v22  ;;  %v9243_v17 = vpop.f32.mrf.mxu3 }
 0x8d1   : > { %v15910_v21 = vld [vmem:[%s17535_s19 + $0x6f4] sm:$0xf0] }
 0x8d2   : > { %9480 = vmatpush.bf16.msra.mxu2 %v11959_v19  ;;  %9455 = vmatpush.bf16.msra.mxu0 %v11415_v27  ;;  %v11318_v43 = vld [vmem:[%s17535_s19 + $0x98] sm:$0xf]  ;;  %v12119_v47 = vor.u32 %v15910_v21, %v12118_v14  ;;  %vm9873_vm15 = vcmp.gt.f32.partialorder %v9242_v18, 0.0  ;;  %v9881_v13 = vmul.f32 0.2, %v9242_v18 }
 0x8d3   : > { %v15710_v54 = vld [vmem:[%s17535_s19 + $0xb4] sm:$0xf0] }
 0x8d4   : > { %9493 = vmatpush.bf16.msra.mxu3 %v12215_v53  ;;  %9468 = vmatpush.bf16.msra.mxu1 %v11671_v56  ;;  %v11574_v46 = vld [vmem:[%s17535_s19 + $0x298] sm:$0xf]  ;;  %v9204_v53 = vpop.f32.mrf.mxu0  ;;  %v11319_v55 = vor.u32 %v15710_v54, %v11318_v43  ;;  %v19617_v16 = vsel %vm9873_vm15, %v9242_v18, %v9881_v13 }
 0x8d5   : > { %v15774_v37 = vld [vmem:[%s17535_s19 + $0x2b4] sm:$0xf0] }
 0x8d6   : > { %9481 = vmatpush.bf16.msra.mxu2 %v11927_v63  ;;  %9456 = vmatpush.bf16.msra.mxu0 %v11383_v11  ;;  %v11830_v48 = vld [vmem:[%s17535_s19 + $0x498] sm:$0xf]  ;;  %v11575_v3 = vor.u32 %v15774_v37, %v11574_v46 }
 0x8d7   : > { %v15838_v19 = vld [vmem:[%s17535_s19 + $0x4b4] sm:$0xf0] }
 0x8d8   : > { %9494 = vmatpush.bf16.msra.mxu3 %v12183_v20  ;;  %9469 = vmatpush.bf16.msra.mxu1 %v11639_v60  ;;  %v12086_v52 = vld [vmem:[%s17535_s19 + $0x698] sm:$0xf]  ;;  %v11831_v39 = vor.u32 %v15838_v19, %v11830_v48 }
 0x8d9   : > { %v15902_v26 = vld [vmem:[%s17535_s19 + $0x6b4] sm:$0xf0] }
 0x8da   : > { %9482 = vmatpush.bf16.msra.mxu2 %v11895_v25  ;;  %9457 = vmatpush.bf16.msra.mxu0 %v11351_v34  ;;  %v11286_v1 = vld [vmem:[%s17535_s19 + $0x58] sm:$0xf]  ;;  %v12087_v56 = vor.u32 %v15902_v26, %v12086_v52 }
 0x8db   : > { %v15702_v5 = vld [vmem:[%s17535_s19 + $0x74] sm:$0xf0] }
 0x8dc   : > { %9495 = vmatpush.bf16.msra.mxu3 %v12151_v31  ;;  %9470 = vmatpush.bf16.msra.mxu1 %v11607_v35  ;;  %v11542_v8 = vld [vmem:[%s17535_s19 + $0x258] sm:$0xf]  ;;  %v11287_v6 = vor.u32 %v15702_v5, %v11286_v1 }
 0x8dd   : > { %v15766_v27 = vld [vmem:[%s17535_s19 + $0x274] sm:$0xf0] }
 0x8de   : > { %9483 = vmatpush.bf16.msra.mxu2 %v11863_v2  ;;  %v11798_v63 = vld [vmem:[%s17535_s19 + $0x458] sm:$0xf]  ;;  %9458 = vmatpush.bf16.msra.mxu0 %v11319_v55  ;;  %v11543_v40 = vor.u32 %v15766_v27, %v11542_v8 }
 0x8df   : > { %v15830_v59 = vld [vmem:[%s17535_s19 + $0x474] sm:$0xf0] }
 0x8e0   : > { %9496 = vmatpush.bf16.msra.mxu3 %v12119_v47  ;;  %v12054_v12 = vld [vmem:[%s17535_s19 + $0x658] sm:$0xf]  ;;  %9471 = vmatpush.bf16.msra.mxu1 %v11575_v3  ;;  %v11799_v24 = vor.u32 %v15830_v59, %v11798_v63 }
 0x8e1   : > { %v15894_v20 = vld [vmem:[%s17535_s19 + $0x674] sm:$0xf0] }
 0x8e2   : > { %v11254_v10 = vld [vmem:[%s17535_s19 + $0x18] sm:$0xf]  ;;  %9484 = vmatpush.bf16.msra.mxu2 %v11831_v39  ;;  %v12055_v60 = vor.u32 %v15894_v20, %v12054_v12  ;;  %9459 = vmatpush.bf16.msra.mxu0 %v11287_v6 }
 0x8e3   : > { %v15694_v15 = vld [vmem:[%s17535_s19 + $0x34] sm:$0xf0] }
 0x8e4   : > { %v11510_v42 = vld [vmem:[%s17535_s19 + $0x218] sm:$0xf]  ;;  %9497 = vmatpush.bf16.msra.mxu3 %v12087_v56  ;;  %v11255_v9 = vor.u32 %v15694_v15, %v11254_v10  ;;  %9472 = vmatpush.bf16.msra.mxu1 %v11543_v40 }
 0x8e5   : > { %v15758_v11 = vld [vmem:[%s17535_s19 + $0x234] sm:$0xf0] }
 0x8e6   : > { %v11766_v23 = vld [vmem:[%s17535_s19 + $0x418] sm:$0xf]  ;;  %9485 = vmatpush.bf16.msra.mxu2 %v11799_v24  ;;  %v11511_v35 = vor.u32 %v15758_v11, %v11510_v42  ;;  %9460 = vmatpush.bf16.msra.mxu0 %v11255_v9  ;;  %v16934_v42 = vld [vmem:[%s17550_s16] sm:$0xff] }
 0x8e7   : > { %v15822_v25 = vld [vmem:[%s17535_s19 + $0x434] sm:$0xf0]  ;;  %v3038_v11 = vperm.slane %v16934_v42, 5 }
 0x8e8   : > { %v12022_v29 = vld [vmem:[%s17535_s19 + $0x618] sm:$0xf]  ;;  %v11767_v2 = vor.u32 %v15822_v25, %v11766_v23  ;;  %9498 = vmatpush.bf16.msra.mxu3 %v12055_v60  ;;  %9473 = vmatpush.bf16.msra.mxu1 %v11511_v35  ;;  %v9267_v35 = vpop.f32.mrf.mxu1 }
 0x8e9   : > { %v15886_v30 = vld [vmem:[%s17535_s19 + $0x634] sm:$0xf0]  ;;  %9461 = vmatmul.bf16.vlgmr.msra.gmra.mxu0 %v18003_v41 }
 0x8ea   : > { %v12502_v31 = vld [vmem:[%s17535_s19 + $0x9d8] sm:$0xf]  ;;  %v12023_v46 = vor.u32 %v15886_v30, %v12022_v29  ;;  %9486 = vmatpush.bf16.msra.mxu2 %v11767_v2 }
 0x8eb   : > { %v16006_v58 = vld [vmem:[%s17535_s19 + $0x9f4] sm:$0xf0]  ;;  %9474 = vmatmul.bf16.vlgmr.msra.gmra.mxu1 %v18010_v50 }
 0x8ec   : > { %v12758_v32 = vld [vmem:[%s17535_s19 + $0xbd8] sm:$0xf]  ;;  %v12503_v47 = vor.u32 %v16006_v58, %v12502_v31  ;;  %9499 = vmatpush.bf16.msra.mxu3 %v12023_v46  ;;  %v9254_v58 = vpop.f32.mrf.mxu0 }
 0x8ed   : > { %v16070_v14 = vld [vmem:[%s17535_s19 + $0xbf4] sm:$0xf0]  ;;  %9487 = vmatmul.bf16.vlgmr.msra.gmra.mxu2 %v18001_v4 }
 0x8ee   : > { %v13014_v21 = vld [vmem:[%s17535_s19 + $0xdd8] sm:$0xf]  ;;  %v12759_v36 = vor.u32 %v16070_v14, %v12758_v32  ;;  %9505 = vmatpush.bf16.msrb.mxu0 %v12503_v47 }
 0x8ef   : > { %v16134_v34 = vld [vmem:[%s17535_s19 + $0xdf4] sm:$0xf0]  ;;  %9500 = vmatmul.bf16.vlgmr.msra.gmra.mxu3 %v18005_v61 }
 0x8f0   : > { %v13270_v43 = vld [vmem:[%s17535_s19 + $0xfd8] sm:$0xf]  ;;  %v13015_v37 = vor.u32 %v16134_v34, %v13014_v21  ;;  %9518 = vmatpush.bf16.msrb.mxu1 %v12759_v36  ;;  %v9255_v34 = vadd.f32 %v9254_v58, %v3038_v11 }
 0x8f1   : > { %v16198_v54 = vld [vmem:[%s17535_s19 + $0xff4] sm:$0xf0] }
 0x8f2   : > { %v12470_v48 = vld [vmem:[%s17535_s19 + $0x998] sm:$0xf]  ;;  %v13271_v33 = vor.u32 %v16198_v54, %v13270_v43  ;;  %9531 = vmatpush.bf16.msrb.mxu2 %v13015_v37  ;;  %v9268_v37 = vadd.f32 %v9267_v35, %v9255_v34 }
 0x8f3   : > { %v15998_v19 = vld [vmem:[%s17535_s19 + $0x9b4] sm:$0xf0] }
 0x8f4   : > { %v12726_v22 = vld [vmem:[%s17535_s19 + $0xb98] sm:$0xf]  ;;  %v12471_v57 = vor.u32 %v15998_v19, %v12470_v48  ;;  %9544 = vmatpush.bf16.msrb.mxu3 %v13271_v33 }
 0x8f5   : > { %v16062_v52 = vld [vmem:[%s17535_s19 + $0xbb4] sm:$0xf0] }
 0x8f6   : > { %v12982_v26 = vld [vmem:[%s17535_s19 + $0xd98] sm:$0xf]  ;;  %v12727_v18 = vor.u32 %v16062_v52, %v12726_v22  ;;  %9506 = vmatpush.bf16.msrb.mxu0 %v12471_v57 }
 0x8f7   : > { %v16126_v53 = vld [vmem:[%s17535_s19 + $0xdb4] sm:$0xf0] }
 0x8f8   : > { %v13238_v55 = vld [vmem:[%s17535_s19 + $0xf98] sm:$0xf]  ;;  %v12983_v3 = vor.u32 %v16126_v53, %v12982_v26  ;;  %9519 = vmatpush.bf16.msrb.mxu1 %v12727_v18  ;;  %v9280_v53 = vpop.f32.mrf.mxu2 }
 0x8f9   : > { %v16190_v1 = vld [vmem:[%s17535_s19 + $0xfb4] sm:$0xf0] }
 0x8fa   : > { %v12438_v39 = vld [vmem:[%s17535_s19 + $0x958] sm:$0xf]  ;;  %v13239_v27 = vor.u32 %v16190_v1, %v13238_v55  ;;  %9532 = vmatpush.bf16.msrb.mxu2 %v12983_v3  ;;  %v9281_v3 = vadd.f32 %v9280_v53, %v9268_v37 }
 0x8fb   : > { %v15990_v5 = vld [vmem:[%s17535_s19 + $0x974] sm:$0xf0] }
 0x8fc   : > { %v12694_v8 = vld [vmem:[%s17535_s19 + $0xb58] sm:$0xf]  ;;  %v12439_v20 = vor.u32 %v15990_v5, %v12438_v39  ;;  %9545 = vmatpush.bf16.msrb.mxu3 %v13239_v27  ;;  %v9293_v39 = vpop.f32.mrf.mxu3 }
 0x8fd   : > { %v16054_v56 = vld [vmem:[%s17535_s19 + $0xb74] sm:$0xf0] }
 0x8fe   : > { %v12950_v63 = vld [vmem:[%s17535_s19 + $0xd58] sm:$0xf]  ;;  %v12695_v10 = vor.u32 %v16054_v56, %v12694_v8  ;;  %9507 = vmatpush.bf16.msrb.mxu0 %v12439_v20  ;;  %v19678_v56 = vadd.f32 %v9293_v39, %v9281_v3 }
 0x8ff   : > { %v16118_v59 = vld [vmem:[%s17535_s19 + $0xd74] sm:$0xf0] }
 0x900   : > { %v13206_v12 = vld [vmem:[%s17535_s19 + $0xf58] sm:$0xf]  ;;  %v12951_v15 = vor.u32 %v16118_v59, %v12950_v63  ;;  %9520 = vmatpush.bf16.msrb.mxu1 %v12695_v10  ;;  %v9256_v63 = vpop.f32.mrf.mxu0  ;;  %v9269_v10 = vpop.f32.mrf.mxu1 }
 0x901   : > { %v16182_v13 = vld [vmem:[%s17535_s19 + $0xf74] sm:$0xf0] }
 0x902   : > { %v12406_v6 = vld [vmem:[%s17535_s19 + $0x918] sm:$0xf]  ;;  %v13207_v23 = vor.u32 %v16182_v13, %v13206_v12  ;;  %9533 = vmatpush.bf16.msrb.mxu2 %v12951_v15 }
 0x903   : > { %v15982_v40 = vld [vmem:[%s17535_s19 + $0x934] sm:$0xf0] }
 0x904   : > { %v12662_v24 = vld [vmem:[%s17535_s19 + $0xb18] sm:$0xf]  ;;  %v12407_v31 = vor.u32 %v15982_v40, %v12406_v6  ;;  %9546 = vmatpush.bf16.msrb.mxu3 %v13207_v23  ;;  %v9295_v35 = vpop.f32.mrf.mxu3 }
 0x905   : > { %v16046_v60 = vld [vmem:[%s17535_s19 + $0xb34] sm:$0xf0] }
 0x906   : > { %v12918_v25 = vld [vmem:[%s17535_s19 + $0xd18] sm:$0xf]  ;;  %v12663_v32 = vor.u32 %v16046_v60, %v12662_v24  ;;  %9508 = vmatpush.bf16.msrb.mxu0 %v12407_v31 }
 0x907   : > { %v16110_v29 = vld [vmem:[%s17535_s19 + $0xd34] sm:$0xf0] }
 0x908   : > { %v13174_v30 = vld [vmem:[%s17535_s19 + $0xf18] sm:$0xf]  ;;  %v12919_v17 = vor.u32 %v16110_v29, %v12918_v25  ;;  %9521 = vmatpush.bf16.msrb.mxu1 %v12663_v32  ;;  %v9306_v35 = vpop.f32.mrf.mxu0 }
 0x909   : > { %v16174_v28 = vld [vmem:[%s17535_s19 + $0xf34] sm:$0xf0] }
 0x90a   : > { %v12374_v9 = vld [vmem:[%s17535_s19 + $0x8d8] sm:$0xf]  ;;  %v13175_v2 = vor.u32 %v16174_v28, %v13174_v30  ;;  %9534 = vmatpush.bf16.msrb.mxu2 %v12919_v17  ;;  %v9282_v17 = vpop.f32.mrf.mxu2 }
 0x90b   : > { %v15974_v14 = vld [vmem:[%s17535_s19 + $0x8f4] sm:$0xf0] }
 0x90c   : > { %v12630_v21 = vld [vmem:[%s17535_s19 + $0xad8] sm:$0xf]  ;;  %v12375_v48 = vor.u32 %v15974_v14, %v12374_v9  ;;  %9547 = vmatpush.bf16.msrb.mxu3 %v13175_v2 }
 0x90d   : > { %v16038_v43 = vld [vmem:[%s17535_s19 + $0xaf4] sm:$0xf0] }
 0x90e   : > { %v12886_v54 = vld [vmem:[%s17535_s19 + $0xcd8] sm:$0xf]  ;;  %v12631_v19 = vor.u32 %v16038_v43, %v12630_v21  ;;  %9509 = vmatpush.bf16.msrb.mxu0 %v12375_v48 }
 0x90f   : > { %v16102_v46 = vld [vmem:[%s17535_s19 + $0xcf4] sm:$0xf0] }
 0x910   : > { %v13142_v47 = vld [vmem:[%s17535_s19 + $0xed8] sm:$0xf]  ;;  %v12887_v22 = vor.u32 %v16102_v46, %v12886_v54  ;;  %9522 = vmatpush.bf16.msrb.mxu1 %v12631_v19 }
 0x911   : > { %v16166_v36 = vld [vmem:[%s17535_s19 + $0xef4] sm:$0xf0] }
 0x912   : > { %v12342_v33 = vld [vmem:[%s17535_s19 + $0x898] sm:$0xf]  ;;  %v13143_v55 = vor.u32 %v16166_v36, %v13142_v47  ;;  %9535 = vmatpush.bf16.msrb.mxu2 %v12887_v22 }
 0x913   : > { %v15966_v52 = vld [vmem:[%s17535_s19 + $0x8b4] sm:$0xf0] }
 0x914   : > { %v12598_v26 = vld [vmem:[%s17535_s19 + $0xa98] sm:$0xf]  ;;  %v12343_v27 = vor.u32 %v15966_v52, %v12342_v33  ;;  %9548 = vmatpush.bf16.msrb.mxu3 %v13143_v55 }
 0x915   : > { %v16030_v1 = vld [vmem:[%s17535_s19 + $0xab4] sm:$0xf0] }
 0x916   : > { %v12854_v57 = vld [vmem:[%s17535_s19 + $0xc98] sm:$0xf]  ;;  %v12599_v59 = vor.u32 %v16030_v1, %v12598_v26  ;;  %9510 = vmatpush.bf16.msrb.mxu0 %v12343_v27 }
 0x917   : > { %v16094_v18 = vld [vmem:[%s17535_s19 + $0xcb4] sm:$0xf0] }
 0x918   : > { %v13110_v5 = vld [vmem:[%s17535_s19 + $0xe98] sm:$0xf]  ;;  %v12855_v12 = vor.u32 %v16094_v18, %v12854_v57  ;;  %9523 = vmatpush.bf16.msrb.mxu1 %v12599_v59 }
 0x919   : > { %v16158_v8 = vld [vmem:[%s17535_s19 + $0xeb4] sm:$0xf0] }
 0x91a   : > { %v12310_v13 = vld [vmem:[%s17535_s19 + $0x858] sm:$0xf]  ;;  %v13111_v15 = vor.u32 %v16158_v8, %v13110_v5  ;;  %9536 = vmatpush.bf16.msrb.mxu2 %v12855_v12 }
 0x91b   : > { %v15958_v20 = vld [vmem:[%s17535_s19 + $0x874] sm:$0xf0] }
 0x91c   : > { %v12566_v6 = vld [vmem:[%s17535_s19 + $0xa58] sm:$0xf]  ;;  %v12311_v60 = vor.u32 %v15958_v20, %v12310_v13  ;;  %9549 = vmatpush.bf16.msrb.mxu3 %v13111_v15 }
 0x91d   : > { %v16022_v40 = vld [vmem:[%s17535_s19 + $0xa74] sm:$0xf0] }
 0x91e   : > { %v12822_v24 = vld [vmem:[%s17535_s19 + $0xc58] sm:$0xf]  ;;  %v12567_v30 = vor.u32 %v16022_v40, %v12566_v6  ;;  %9511 = vmatpush.bf16.msrb.mxu0 %v12311_v60 }
 0x91f   : > { %v16086_v42 = vld [vmem:[%s17535_s19 + $0xc74] sm:$0xf0] }
 0x920   : > { %v13078_v11 = vld [vmem:[%s17535_s19 + $0xe58] sm:$0xf]  ;;  %v12823_v28 = vor.u32 %v16086_v42, %v12822_v24  ;;  %9524 = vmatpush.bf16.msrb.mxu1 %v12567_v30 }
 0x921   : > { %v16150_v23 = vld [vmem:[%s17535_s19 + $0xe74] sm:$0xf0] }
 0x922   : > { %v12278_v25 = vld [vmem:[%s17535_s19 + $0x818] sm:$0xf]  ;;  %v13079_v9 = vor.u32 %v16150_v23, %v13078_v11  ;;  %9537 = vmatpush.bf16.msrb.mxu2 %v12823_v28 }
 0x923   : > { %v15950_v29 = vld [vmem:[%s17535_s19 + $0x834] sm:$0xf0] }
 0x924   : > { %v12534_v31 = vld [vmem:[%s17535_s19 + $0xa18] sm:$0xf]  ;;  %v12279_v46 = vor.u32 %v15950_v29, %v12278_v25  ;;  %9550 = vmatpush.bf16.msrb.mxu3 %v13079_v9 }
 0x925   : > { %v16014_v58 = vld [vmem:[%s17535_s19 + $0xa34] sm:$0xf0] }
 0x926   : > { %v12790_v32 = vld [vmem:[%s17535_s19 + $0xc18] sm:$0xf]  ;;  %v12535_v48 = vor.u32 %v16014_v58, %v12534_v31  ;;  %9512 = vmatpush.bf16.msrb.mxu0 %v12279_v46 }
 0x927   : > { %v16078_v14 = vld [vmem:[%s17535_s19 + $0xc34] sm:$0xf0] }
 0x928   : > { %v13046_v21 = vld [vmem:[%s17535_s19 + $0xe18] sm:$0xf]  ;;  %v12791_v19 = vor.u32 %v16078_v14, %v12790_v32  ;;  %9525 = vmatpush.bf16.msrb.mxu1 %v12535_v48 }
 0x929   : > { %v16142_v34 = vld [vmem:[%s17535_s19 + $0xe34] sm:$0xf0]  ;;  %9513 = vmatmul.bf16.vlgmr.msrb.gmra.mxu0 %v18041_v44 }
 0x92a   : > { %v13526_v2 = vld [vmem:[%s17535_s19 + $0x11d8] sm:$0xf]  ;;  %v13047_v52 = vor.u32 %v16142_v34, %v13046_v21  ;;  %9538 = vmatpush.bf16.msrb.mxu2 %v12791_v19 }
 0x92b   : > { %v16262_v43 = vld [vmem:[%s17535_s19 + $0x11f4] sm:$0xf0]  ;;  %9526 = vmatmul.bf16.vlgmr.msrb.gmra.mxu1 %v18045_v49 }
 0x92c   : > { %v13782_v54 = vld [vmem:[%s17535_s19 + $0x13d8] sm:$0xf]  ;;  %v13527_v26 = vor.u32 %v16262_v43, %v13526_v2  ;;  %9551 = vmatpush.bf16.msrb.mxu3 %v13047_v52 }
 0x92d   : > { %v16326_v47 = vld [vmem:[%s17535_s19 + $0x13f4] sm:$0xf0]  ;;  %9539 = vmatmul.bf16.vlgmr.msrb.gmra.mxu2 %v18039_v62 }
 0x92e   : > { %v14038_v36 = vld [vmem:[%s17535_s19 + $0x15d8] sm:$0xf]  ;;  %v13783_v53 = vor.u32 %v16326_v47, %v13782_v54  ;;  %9557 = vmatpush.bf16.msra.mxu0 %v13527_v26 }
 0x92f   : > { %v16390_v37 = vld [vmem:[%s17535_s19 + $0x15f4] sm:$0xf0]  ;;  %9552 = vmatmul.bf16.vlgmr.msrb.gmra.mxu3 %v18043_v0 }
 0x930   : > { %v14294_v22 = vld [vmem:[%s17535_s19 + $0x17d8] sm:$0xf]  ;;  %v14039_v55 = vor.u32 %v16390_v37, %v14038_v36  ;;  %9570 = vmatpush.bf16.msra.mxu1 %v13783_v53  ;;  %v9307_v36 = vadd.f32 %v9306_v35, %v19678_v56  ;;  %v9319_v37 = vpop.f32.mrf.mxu1 }
 0x931   : > { %v16454_v33 = vld [vmem:[%s17535_s19 + $0x17f4] sm:$0xf0] }
 0x932   : > { %v13494_v1 = vld [vmem:[%s17535_s19 + $0x1198] sm:$0xf]  ;;  %v14295_v3 = vor.u32 %v16454_v33, %v14294_v22  ;;  %9583 = vmatpush.bf16.msra.mxu2 %v14039_v55  ;;  %v9320_v53 = vadd.f32 %v9319_v37, %v9307_v36 }
 0x933   : > { %v16254_v57 = vld [vmem:[%s17535_s19 + $0x11b4] sm:$0xf0] }
 0x934   : > { %v13750_v18 = vld [vmem:[%s17535_s19 + $0x1398] sm:$0xf]  ;;  %v13495_v59 = vor.u32 %v16254_v57, %v13494_v1  ;;  %9596 = vmatpush.bf16.msra.mxu3 %v14295_v3 }
 0x935   : > { %v16318_v39 = vld [vmem:[%s17535_s19 + $0x13b4] sm:$0xf0] }
 0x936   : > { %v14006_v5 = vld [vmem:[%s17535_s19 + $0x1598] sm:$0xf]  ;;  %v13751_v12 = vor.u32 %v16318_v39, %v13750_v18  ;;  %9558 = vmatpush.bf16.msra.mxu0 %v13495_v59  ;;  %v9332_v39 = vpop.f32.mrf.mxu2 }
 0x937   : > { %v16382_v8 = vld [vmem:[%s17535_s19 + $0x15b4] sm:$0xf0]  ;;  %v9333_v59 = vadd.f32 %v9332_v39, %v9320_v53 }
 0x938   : > { %v14262_v27 = vld [vmem:[%s17535_s19 + $0x1798] sm:$0xf]  ;;  %v14007_v13 = vor.u32 %v16382_v8, %v14006_v5  ;;  %9571 = vmatpush.bf16.msra.mxu1 %v13751_v12  ;;  %v9345_v12 = vpop.f32.mrf.mxu3 }
 0x939   : > { %v16446_v63 = vld [vmem:[%s17535_s19 + $0x17b4] sm:$0xf0] }
 0x93a   : > { %v13462_v20 = vld [vmem:[%s17535_s19 + $0x1158] sm:$0xf]  ;;  %v14263_v15 = vor.u32 %v16446_v63, %v14262_v27  ;;  %9584 = vmatpush.bf16.msra.mxu2 %v14007_v13 }
 0x93b   : > { %v16246_v6 = vld [vmem:[%s17535_s19 + $0x1174] sm:$0xf0] }
 0x93c   : > { %v13718_v10 = vld [vmem:[%s17535_s19 + $0x1358] sm:$0xf]  ;;  %v13463_v60 = vor.u32 %v16246_v6, %v13462_v20  ;;  %9597 = vmatpush.bf16.msra.mxu3 %v14263_v15  ;;  %v9308_v15 = vpop.f32.mrf.mxu0 }
 0x93d   : > { %v16310_v40 = vld [vmem:[%s17535_s19 + $0x1374] sm:$0xf0] }
 0x93e   : > { %v13974_v24 = vld [vmem:[%s17535_s19 + $0x1558] sm:$0xf]  ;;  %v13719_v25 = vor.u32 %v16310_v40, %v13718_v10  ;;  %9559 = vmatpush.bf16.msra.mxu0 %v13463_v60  ;;  %v19749_v10 = vadd.f32 %v9345_v12, %v9333_v59  ;;  %v9321_v60 = vpop.f32.mrf.mxu1 }
 0x93f   : > { %v16374_v42 = vld [vmem:[%s17535_s19 + $0x1574] sm:$0xf0] }
 0x940   : > { %v14230_v11 = vld [vmem:[%s17535_s19 + $0x1758] sm:$0xf]  ;;  %v13975_v29 = vor.u32 %v16374_v42, %v13974_v24  ;;  %9572 = vmatpush.bf16.msra.mxu1 %v13719_v25  ;;  %v9347_v37 = vpop.f32.mrf.mxu3 }
 0x941   : > { %v16438_v23 = vld [vmem:[%s17535_s19 + $0x1774] sm:$0xf0] }
 0x942   : > { %v13430_v30 = vld [vmem:[%s17535_s19 + $0x1118] sm:$0xf]  ;;  %v14231_v58 = vor.u32 %v16438_v23, %v14230_v11  ;;  %9585 = vmatpush.bf16.msra.mxu2 %v13975_v29 }
 0x943   : > { %v16238_v28 = vld [vmem:[%s17535_s19 + $0x1134] sm:$0xf0] }
 0x944   : > { %v13686_v31 = vld [vmem:[%s17535_s19 + $0x1318] sm:$0xf]  ;;  %v13431_v34 = vor.u32 %v16238_v28, %v13430_v30  ;;  %9598 = vmatpush.bf16.msra.mxu3 %v14231_v58 }
 0x945   : > { %v16302_v32 = vld [vmem:[%s17535_s19 + $0x1334] sm:$0xf0] }
 0x946   : > { %v13942_v17 = vld [vmem:[%s17535_s19 + $0x1518] sm:$0xf]  ;;  %v13687_v2 = vor.u32 %v16302_v32, %v13686_v31  ;;  %9560 = vmatpush.bf16.msra.mxu0 %v13431_v34 }
 0x947   : > { %v16366_v9 = vld [vmem:[%s17535_s19 + $0x1534] sm:$0xf0] }
 0x948   : > { %v14198_v14 = vld [vmem:[%s17535_s19 + $0x1718] sm:$0xf]  ;;  %v13943_v43 = vor.u32 %v16366_v9, %v13942_v17  ;;  %9573 = vmatpush.bf16.msra.mxu1 %v13687_v2 }
 0x949   : > { %v16430_v21 = vld [vmem:[%s17535_s19 + $0x1734] sm:$0xf0] }
 0x94a   : > { %v13398_v54 = vld [vmem:[%s17535_s19 + $0x10d8] sm:$0xf]  ;;  %v14199_v48 = vor.u32 %v16430_v21, %v14198_v14  ;;  %9586 = vmatpush.bf16.msra.mxu2 %v13943_v43  ;;  %v9334_v43 = vpop.f32.mrf.mxu2 }
 0x94b   : > { %v16230_v46 = vld [vmem:[%s17535_s19 + $0x10f4] sm:$0xf0] }
 0x94c   : > { %v13654_v47 = vld [vmem:[%s17535_s19 + $0x12d8] sm:$0xf]  ;;  %v13399_v55 = vor.u32 %v16230_v46, %v13398_v54  ;;  %9599 = vmatpush.bf16.msra.mxu3 %v14199_v48 }
 0x94d   : > { %v16294_v19 = vld [vmem:[%s17535_s19 + $0x12f4] sm:$0xf0] }
 0x94e   : > { %v13910_v22 = vld [vmem:[%s17535_s19 + $0x14d8] sm:$0xf]  ;;  %v13655_v56 = vor.u32 %v16294_v19, %v13654_v47  ;;  %9561 = vmatpush.bf16.msra.mxu0 %v13399_v55 }
 0x94f   : > { %v16358_v33 = vld [vmem:[%s17535_s19 + $0x14f4] sm:$0xf0] }
 0x950   : > { %v14166_v52 = vld [vmem:[%s17535_s19 + $0x16d8] sm:$0xf]  ;;  %v13911_v1 = vor.u32 %v16358_v33, %v13910_v22  ;;  %9574 = vmatpush.bf16.msra.mxu1 %v13655_v56 }
 0x951   : > { %v16422_v26 = vld [vmem:[%s17535_s19 + $0x16f4] sm:$0xf0] }
 0x952   : > { %v13366_v57 = vld [vmem:[%s17535_s19 + $0x1098] sm:$0xf]  ;;  %v14167_v5 = vor.u32 %v16422_v26, %v14166_v52  ;;  %9587 = vmatpush.bf16.msra.mxu2 %v13911_v1 }
 0x953   : > { %v16222_v18 = vld [vmem:[%s17535_s19 + $0x10b4] sm:$0xf0] }
 0x954   : > { %v13622_v3 = vld [vmem:[%s17535_s19 + $0x1298] sm:$0xf]  ;;  %v13367_v6 = vor.u32 %v16222_v18, %v13366_v57  ;;  %9600 = vmatpush.bf16.msra.mxu3 %v14167_v5 }
 0x955   : > { %v16286_v8 = vld [vmem:[%s17535_s19 + $0x12b4] sm:$0xf0] }
 0x956   : > { %v13878_v27 = vld [vmem:[%s17535_s19 + $0x1498] sm:$0xf]  ;;  %v13623_v40 = vor.u32 %v16286_v8, %v13622_v3  ;;  %9562 = vmatpush.bf16.msra.mxu0 %v13367_v6 }
 0x957   : > { %v16350_v63 = vld [vmem:[%s17535_s19 + $0x14b4] sm:$0xf0] }
 0x958   : > { %v14134_v13 = vld [vmem:[%s17535_s19 + $0x1698] sm:$0xf]  ;;  %v13879_v24 = vor.u32 %v16350_v63, %v13878_v27  ;;  %9575 = vmatpush.bf16.msra.mxu1 %v13623_v40 }
 0x959   : > { %v16414_v20 = vld [vmem:[%s17535_s19 + $0x16b4] sm:$0xf0] }
 0x95a   : > { %v13334_v42 = vld [vmem:[%s17535_s19 + $0x1058] sm:$0xf]  ;;  %v14135_v25 = vor.u32 %v16414_v20, %v14134_v13  ;;  %9588 = vmatpush.bf16.msra.mxu2 %v13879_v24 }
 0x95b   : > { %v16214_v11 = vld [vmem:[%s17535_s19 + $0x1074] sm:$0xf0] }
 0x95c   : > { %v13590_v23 = vld [vmem:[%s17535_s19 + $0x1258] sm:$0xf]  ;;  %v13335_v32 = vor.u32 %v16214_v11, %v13334_v42  ;;  %9601 = vmatpush.bf16.msra.mxu3 %v14135_v25 }
 0x95d   : > { %v16278_v29 = vld [vmem:[%s17535_s19 + $0x1274] sm:$0xf0] }
 0x95e   : > { %v13846_v30 = vld [vmem:[%s17535_s19 + $0x1458] sm:$0xf]  ;;  %v13591_v14 = vor.u32 %v16278_v29, %v13590_v23  ;;  %9563 = vmatpush.bf16.msra.mxu0 %v13335_v32  ;;  %v16937_v32 = vld [vmem:[#allocation1 + $0x9] sm:$0xff] }
 0x95f   : > { %v16342_v28 = vld [vmem:[%s17535_s19 + $0x1474] sm:$0xf0] }
 0x960   : > { %v14102_v31 = vld [vmem:[%s17535_s19 + $0x1658] sm:$0xf]  ;;  %v13847_v21 = vor.u32 %v16342_v28, %v13846_v30  ;;  %9576 = vmatpush.bf16.msra.mxu1 %v13591_v14 }
 0x961   : > { %v16406_v58 = vld [vmem:[%s17535_s19 + $0x1674] sm:$0xf0] }
 0x962   : > { %v13302_v17 = vld [vmem:[%s17535_s19 + $0x1018] sm:$0xf]  ;;  %v14103_v54 = vor.u32 %v16406_v58, %v14102_v31  ;;  %9589 = vmatpush.bf16.msra.mxu2 %v13847_v21  ;;  %v16936_v58 = vld [vmem:[#allocation1 + $0x12] sm:$0xff] }
 0x963   : > { %v16206_v9 = vld [vmem:[%s17535_s19 + $0x1034] sm:$0xf0] }
 0x964   : > { %v13558_v34 = vld [vmem:[%s17535_s19 + $0x1218] sm:$0xf]  ;;  %v13303_v33 = vor.u32 %v16206_v9, %v13302_v17  ;;  %9602 = vmatpush.bf16.msra.mxu3 %v14103_v54 }
 0x965   : > { %v16270_v35 = vld [vmem:[%s17535_s19 + $0x1234] sm:$0xf0] }
 0x966   : > { %v13814_v2 = vld [vmem:[%s17535_s19 + $0x1418] sm:$0xf]  ;;  %v13559_v55 = vor.u32 %v16270_v35, %v13558_v34  ;;  %9564 = vmatpush.bf16.msra.mxu0 %v13303_v33 }
 0x967   : > { %v16334_v46 = vld [vmem:[%s17535_s19 + $0x1434] sm:$0xf0] }
 0x968   : > { %v14070_v47 = vld [vmem:[%s17535_s19 + $0x1618] sm:$0xf]  ;;  %v13815_v56 = vor.u32 %v16334_v46, %v13814_v2  ;;  %9577 = vmatpush.bf16.msra.mxu1 %v13559_v55 }
 0x969   : > { %v16398_v36 = vld [vmem:[%s17535_s19 + $0x1634] sm:$0xf0] }
 0x96a   : > { %v14550_v48 = vld [vmem:[%s17535_s19 + $0x19d8] sm:$0xf]  ;;  %v14071_v18 = vor.u32 %v16398_v36, %v14070_v47  ;;  %9590 = vmatpush.bf16.msra.mxu2 %v13815_v56 }
 0x96b   : > { %v16518_v19 = vld [vmem:[%s17535_s19 + $0x19f4] sm:$0xf0]  ;;  %9578 = vmatmul.bf16.vlgmr.msra.gmra.mxu1 %v16937_v32 }
 0x96c   : > { %v14806_v22 = vld [vmem:[%s17535_s19 + $0x1bd8] sm:$0xf]  ;;  %v14551_v3 = vor.u32 %v16518_v19, %v14550_v48  ;;  %9603 = vmatpush.bf16.msra.mxu3 %v14071_v18  ;;  %v9358_v48 = vpop.f32.mrf.mxu0 }
 0x96d   : > { %v16582_v52 = vld [vmem:[%s17535_s19 + $0x1bf4] sm:$0xf0]  ;;  %9591 = vmatmul.bf16.vlgmr.msra.gmra.mxu2 %v16936_v58  ;;  %v9359_v33 = vadd.f32 %v9358_v48, %v19749_v10 }
 0x96e   : > { %v15062_v26 = vld [vmem:[%s17535_s19 + $0x1dd8] sm:$0xf]  ;;  %v14807_v39 = vor.u32 %v16582_v52, %v14806_v22  ;;  %9609 = vmatpush.bf16.msrb.mxu0 %v14551_v3 }
 0x96f   : > { %v16646_v53 = vld [vmem:[%s17535_s19 + $0x1df4] sm:$0xf0] }
 0x970   : > { %v15318_v1 = vld [vmem:[%s17535_s19 + $0x1fd8] sm:$0xf]  ;;  %v15063_v5 = vor.u32 %v16646_v53, %v15062_v26  ;;  %9622 = vmatpush.bf16.msrb.mxu1 %v14807_v39  ;;  %v9371_v26 = vpop.f32.mrf.mxu1 }
 0x971   : > { %v16710_v57 = vld [vmem:[%s17535_s19 + $0x1ff4] sm:$0xf0]  ;;  %v9372_v3 = vadd.f32 %v9371_v26, %v9359_v33 }
 0x972   : > { %v14518_v8 = vld [vmem:[%s17535_s19 + $0x1998] sm:$0xf]  ;;  %v15319_v59 = vor.u32 %v16710_v57, %v15318_v1  ;;  %9635 = vmatpush.bf16.msrb.mxu2 %v15063_v5 }
 0x973   : > { %v16510_v27 = vld [vmem:[%s17535_s19 + $0x19b4] sm:$0xf0] }
 0x974   : > { %v14774_v63 = vld [vmem:[%s17535_s19 + $0x1b98] sm:$0xf]  ;;  %v14519_v40 = vor.u32 %v16510_v27, %v14518_v8  ;;  %9648 = vmatpush.bf16.msrb.mxu3 %v15319_v59 }
 0x975   : > { %v16574_v12 = vld [vmem:[%s17535_s19 + $0x1bb4] sm:$0xf0] }
 0x976   : > { %v15030_v13 = vld [vmem:[%s17535_s19 + $0x1d98] sm:$0xf]  ;;  %v14775_v24 = vor.u32 %v16574_v12, %v14774_v63  ;;  %9610 = vmatpush.bf16.msrb.mxu0 %v14519_v40  ;;  %v9384_v40 = vpop.f32.mrf.mxu2 }
 0x977   : > { %v16638_v20 = vld [vmem:[%s17535_s19 + $0x1db4] sm:$0xf0] }
 0x978   : > { %v15286_v6 = vld [vmem:[%s17535_s19 + $0x1f98] sm:$0xf]  ;;  %v15031_v42 = vor.u32 %v16638_v20, %v15030_v13  ;;  %9623 = vmatpush.bf16.msrb.mxu1 %v14775_v24 }
 0x979   : > { %v16702_v15 = vld [vmem:[%s17535_s19 + $0x1fb4] sm:$0xf0] }
 0x97a   : > { %v14486_v11 = vld [vmem:[%s17535_s19 + $0x1958] sm:$0xf]  ;;  %v15287_v29 = vor.u32 %v16702_v15, %v15286_v6  ;;  %9636 = vmatpush.bf16.msrb.mxu2 %v15031_v42 }
 0x97b   : > { %v16502_v23 = vld [vmem:[%s17535_s19 + $0x1974] sm:$0xf0] }
 0x97c   : > { %v14742_v60 = vld [vmem:[%s17535_s19 + $0x1b58] sm:$0xf]  ;;  %v14487_v21 = vor.u32 %v16502_v23, %v14486_v11  ;;  %9649 = vmatpush.bf16.msrb.mxu3 %v15287_v29  ;;  %v9385_v23 = vadd.f32 %v9384_v40, %v9372_v3  ;;  %v15810_v3 = vld [vmem:[%s17535_s19 + $0x3dc] sm:$0xf] }
 0x97d   : > { %v16935_v25 = vld [vmem:[#allocation1] sm:$0xff] }
 0x97e   : > { %9565 = vmatmul.bf16.vlgmr.msra.gmra.mxu0 %v16935_v25  ;;  %v16566_v30 = vld [vmem:[%s17535_s19 + $0x1b74] sm:$0xf0] }
 0x97f   : > { %v14998_v28 = vld [vmem:[%s17535_s19 + $0x1d58] sm:$0xf]  ;;  %v14743_v34 = vor.u32 %v16566_v30, %v14742_v60  ;;  %9611 = vmatpush.bf16.msrb.mxu0 %v14487_v21  ;;  %v9397_v60 = vpop.f32.mrf.mxu3  ;;  %v9360_v30 = vpop.f32.mrf.mxu0 }
 0x980   : > { %v16630_v31 = vld [vmem:[%s17535_s19 + $0x1d74] sm:$0xf0]  ;;  %v19816_v58 = vadd.f32 %v9397_v60, %v9385_v23  ;;  %v11704_v60 = vld [vmem:[%s17535_s19 + $0x3b8] sm:$0xf0] }
 0x981   : > { %v15254_v17 = vld [vmem:[%s17535_s19 + $0x1f58] sm:$0xf]  ;;  %v14999_v35 = vor.u32 %v16630_v31, %v14998_v28  ;;  %9624 = vmatpush.bf16.msrb.mxu1 %v14743_v34  ;;  %v9373_v31 = vpop.f32.mrf.mxu1  ;;  %v15930_v30 = vld [vmem:[%s17535_s19 + $0x79c] sm:$0xf] }
 0x982   : > { %v16694_v9 = vld [vmem:[%s17535_s19 + $0x1f74] sm:$0xf0] }
 0x983   : > { %v16938_v14 = vld [vmem:[#allocation1 + $0x1b] sm:$0xff]  ;;  %v15255_v46 = vor.u32 %v16694_v9, %v15254_v17  ;;  %9637 = vmatpush.bf16.msrb.mxu2 %v14999_v35 }
 0x984   : > { %9604 = vmatmul.bf16.vlgmr.msra.gmra.mxu3 %v16938_v14  ;;  %v14454_v2 = vld [vmem:[%s17535_s19 + $0x1918] sm:$0xf] }
 0x985   : > { %v16494_v43 = vld [vmem:[%s17535_s19 + $0x1934] sm:$0xf0]  ;;  %9650 = vmatpush.bf16.msrb.mxu3 %v15255_v46 }
 0x986   : > { %v14710_v54 = vld [vmem:[%s17535_s19 + $0x1b18] sm:$0xf]  ;;  %v14455_v52 = vor.u32 %v16494_v43, %v14454_v2 }
 0x987   : > { %v16558_v47 = vld [vmem:[%s17535_s19 + $0x1b34] sm:$0xf0] }
 0x988   : > { %v14966_v36 = vld [vmem:[%s17535_s19 + $0x1d18] sm:$0xf]  ;;  %v14711_v53 = vor.u32 %v16558_v47, %v14710_v54  ;;  %9612 = vmatpush.bf16.msrb.mxu0 %v14455_v52 }
 0x989   : > { %v16622_v37 = vld [vmem:[%s17535_s19 + $0x1d34] sm:$0xf0] }
 0x98a   : > { %v15222_v19 = vld [vmem:[%s17535_s19 + $0x1f18] sm:$0xf]  ;;  %v14967_v55 = vor.u32 %v16622_v37, %v14966_v36  ;;  %9625 = vmatpush.bf16.msrb.mxu1 %v14711_v53 }
 0x98b   : > { %v16686_v22 = vld [vmem:[%s17535_s19 + $0x1f34] sm:$0xf0] }
 0x98c   : > { %v14422_v56 = vld [vmem:[%s17535_s19 + $0x18d8] sm:$0xf]  ;;  %v15223_v18 = vor.u32 %v16686_v22, %v15222_v19  ;;  %9638 = vmatpush.bf16.msrb.mxu2 %v14967_v55 }
 0x98d   : > { %v16486_v1 = vld [vmem:[%s17535_s19 + $0x18f4] sm:$0xf0] }
 0x98e   : > { %v14678_v57 = vld [vmem:[%s17535_s19 + $0x1ad8] sm:$0xf]  ;;  %v14423_v63 = vor.u32 %v16486_v1, %v14422_v56  ;;  %9651 = vmatpush.bf16.msrb.mxu3 %v15223_v18  ;;  %v9386_v1 = vpop.f32.mrf.mxu2  ;;  %v11480_v18 = vld [vmem:[%s17535_s19 + $0x1f8] sm:$0xf0] }
 0x98f   : > { %v16550_v39 = vld [vmem:[%s17535_s19 + $0x1af4] sm:$0xf0]  ;;  %v15850_v1 = vld [vmem:[%s17535_s19 + $0x51c] sm:$0xf] }
 0x990   : > { %v14934_v5 = vld [vmem:[%s17535_s19 + $0x1cd8] sm:$0xf]  ;;  %v14679_v59 = vor.u32 %v16550_v39, %v14678_v57  ;;  %9613 = vmatpush.bf16.msrb.mxu0 %v14423_v63  ;;  %v15746_v57 = vld [vmem:[%s17535_s19 + $0x1dc] sm:$0xf]  ;;  %v9399_v39 = vpop.f32.mrf.mxu3 }
 0x991   : > { %v16614_v10 = vld [vmem:[%s17535_s19 + $0x1cf4] sm:$0xf0]  ;;  %v12152_v39 = vld [vmem:[%s17535_s19 + $0x738] sm:$0xf0] }
 0x992   : > { %v15190_v8 = vld [vmem:[%s17535_s19 + $0x1ed8] sm:$0xf]  ;;  %v14935_v12 = vor.u32 %v16614_v10, %v14934_v5  ;;  %9626 = vmatpush.bf16.msrb.mxu1 %v14679_v59  ;;  %v11736_v10 = vld [vmem:[%s17535_s19 + $0x3f8] sm:$0xf0] }
 0x993   : > { %v16678_v27 = vld [vmem:[%s17535_s19 + $0x1ef4] sm:$0xf0] }
 0x994   : > { %v14390_v13 = vld [vmem:[%s17535_s19 + $0x1898] sm:$0xf]  ;;  %v15191_v15 = vor.u32 %v16678_v27, %v15190_v8  ;;  %9639 = vmatpush.bf16.msrb.mxu2 %v14935_v12  ;;  %v15874_v8 = vld [vmem:[%s17535_s19 + $0x5dc] sm:$0xf] }
 0x995   : > { %v16478_v20 = vld [vmem:[%s17535_s19 + $0x18b4] sm:$0xf0]  ;;  %v11992_v27 = vld [vmem:[%s17535_s19 + $0x5f8] sm:$0xf0] }
 0x996   : > { %v14646_v6 = vld [vmem:[%s17535_s19 + $0x1a98] sm:$0xf]  ;;  %v14391_v28 = vor.u32 %v16478_v20, %v14390_v13  ;;  %9652 = vmatpush.bf16.msrb.mxu3 %v15191_v15  ;;  %v15938_v12 = vld [vmem:[%s17535_s19 + $0x7dc] sm:$0xf]  ;;  %v11739_v15 = vor.u32 %v15810_v3, %v11736_v10  ;;  %v11995_v40 = vor.u32 %v15874_v8, %v11992_v27  ;;  %v9423_v8 = vpop.f32.mrf.mxu1 }
 0x997   : > { %v16542_v24 = vld [vmem:[%s17535_s19 + $0x1ab4] sm:$0xf0]  ;;  %v12248_v13 = vld [vmem:[%s17535_s19 + $0x7f8] sm:$0xf0] }
 0x998   : > { %v14902_v42 = vld [vmem:[%s17535_s19 + $0x1c98] sm:$0xf]  ;;  %v14647_v32 = vor.u32 %v16542_v24, %v14646_v6  ;;  %9614 = vmatpush.bf16.msrb.mxu0 %v14391_v28  ;;  %v11483_v6 = vor.u32 %v15746_v57, %v11480_v18  ;;  %v15738_v24 = vld [vmem:[%s17535_s19 + $0x19c] sm:$0xf]  ;;  %v12251_v23 = vor.u32 %v15938_v12, %v12248_v13  ;;  %v9410_v18 = vpop.f32.mrf.mxu0 }
 0x999   : > { %v16606_v11 = vld [vmem:[%s17535_s19 + $0x1cb4] sm:$0xf0]  ;;  %v12216_v28 = vld [vmem:[%s17535_s19 + $0x7b8] sm:$0xf0] }
 0x99a   : > { %v15158_v25 = vld [vmem:[%s17535_s19 + $0x1e98] sm:$0xf]  ;;  %v14903_v17 = vor.u32 %v16606_v11, %v14902_v42  ;;  %9627 = vmatpush.bf16.msrb.mxu1 %v14647_v32  ;;  %v11448_v42 = vld [vmem:[%s17535_s19 + $0x1b8] sm:$0xf0] }
 0x99b   : > { %v16670_v29 = vld [vmem:[%s17535_s19 + $0x1eb4] sm:$0xf0]  ;;  %v15802_v11 = vld [vmem:[%s17535_s19 + $0x39c] sm:$0xf]  ;;  %v11451_v31 = vor.u32 %v15738_v24, %v11448_v42 }
 0x99c   : > { %v14358_v9 = vld [vmem:[%s17535_s19 + $0x1858] sm:$0xf]  ;;  %v15159_v34 = vor.u32 %v16670_v29, %v15158_v25  ;;  %9640 = vmatpush.bf16.msrb.mxu2 %v14903_v17  ;;  %v15866_v25 = vld [vmem:[%s17535_s19 + $0x59c] sm:$0xf]  ;;  %v11707_v32 = vor.u32 %v15802_v11, %v11704_v60 }
 0x99d   : > { %v16470_v14 = vld [vmem:[%s17535_s19 + $0x1874] sm:$0xf0]  ;;  %v11960_v29 = vld [vmem:[%s17535_s19 + $0x5b8] sm:$0xf0] }
 0x99e   : > { %v14614_v21 = vld [vmem:[%s17535_s19 + $0x1a58] sm:$0xf]  ;;  %v14359_v47 = vor.u32 %v16470_v14, %v14358_v9  ;;  %9653 = vmatpush.bf16.msrb.mxu3 %v15159_v34  ;;  %v11963_v17 = vor.u32 %v15866_v25, %v11960_v29  ;;  %v15730_v9 = vld [vmem:[%s17535_s19 + $0x15c] sm:$0xf] }
 0x99f   : > { %v16534_v35 = vld [vmem:[%s17535_s19 + $0x1a74] sm:$0xf0]  ;;  %v11416_v14 = vld [vmem:[%s17535_s19 + $0x178] sm:$0xf0] }
 0x9a0   : > { %v14870_v2 = vld [vmem:[%s17535_s19 + $0x1c58] sm:$0xf]  ;;  %v14615_v48 = vor.u32 %v16534_v35, %v14614_v21  ;;  %9615 = vmatpush.bf16.msrb.mxu0 %v14359_v47  ;;  %v15794_v21 = vld [vmem:[%s17535_s19 + $0x35c] sm:$0xf]  ;;  %v12219_v35 = vor.u32 %v15930_v30, %v12216_v28  ;;  %v16941_v47 = vld [vmem:[#allocation1 + $0x2d] sm:$0xff] }
 0x9a1   : > { %v16598_v43 = vld [vmem:[%s17535_s19 + $0x1c74] sm:$0xf0]  ;;  %v11896_v57 = vld [vmem:[%s17535_s19 + $0x538] sm:$0xf0] }
 0x9a2   : > { %v15126_v54 = vld [vmem:[%s17535_s19 + $0x1e58] sm:$0xf]  ;;  %v14871_v19 = vor.u32 %v16598_v43, %v14870_v2  ;;  %9628 = vmatpush.bf16.msrb.mxu1 %v14615_v48  ;;  %v11672_v2 = vld [vmem:[%s17535_s19 + $0x378] sm:$0xf0] }
 0x9a3   : > { %v16662_v46 = vld [vmem:[%s17535_s19 + $0x1e74] sm:$0xf0]  ;;  %v15858_v43 = vld [vmem:[%s17535_s19 + $0x55c] sm:$0xf] }
 0x9a4   : > { %v14326_v36 = vld [vmem:[%s17535_s19 + $0x1818] sm:$0xf]  ;;  %v15127_v26 = vor.u32 %v16662_v46, %v15126_v54  ;;  %9641 = vmatpush.bf16.msrb.mxu2 %v14871_v19  ;;  %v11928_v54 = vld [vmem:[%s17535_s19 + $0x578] sm:$0xf0]  ;;  %v16940_v46 = vld [vmem:[#allocation1 + $0x36] sm:$0xff]  ;;  %v11419_v19 = vor.u32 %v15730_v9, %v11416_v14 }
 0x9a5   : > { %v16462_v37 = vld [vmem:[%s17535_s19 + $0x1834] sm:$0xf0]  ;;  %v15914_v3 = vld [vmem:[%s17535_s19 + $0x71c] sm:$0xf] }
 0x9a6   : > { %v14582_v22 = vld [vmem:[%s17535_s19 + $0x1a18] sm:$0xf]  ;;  %v14327_v5 = vor.u32 %v16462_v37, %v14326_v36  ;;  %9654 = vmatpush.bf16.msrb.mxu3 %v15127_v26  ;;  %v15922_v36 = vld [vmem:[%s17535_s19 + $0x75c] sm:$0xf] }
 0x9a7   : > { %v16526_v33 = vld [vmem:[%s17535_s19 + $0x1a34] sm:$0xf0]  ;;  %v12184_v37 = vld [vmem:[%s17535_s19 + $0x778] sm:$0xf0] }
 0x9a8   : > { %v14838_v52 = vld [vmem:[%s17535_s19 + $0x1c18] sm:$0xf]  ;;  %v14583_v63 = vor.u32 %v16526_v33, %v14582_v22  ;;  %9616 = vmatpush.bf16.msrb.mxu0 %v14327_v5  ;;  %v11675_v22 = vor.u32 %v15794_v21, %v11672_v2  ;;  %v11931_v33 = vor.u32 %v15858_v43, %v11928_v54  ;;  %v11384_v26 = vld [vmem:[%s17535_s19 + $0x138] sm:$0xf0]  ;;  %v9411_v5 = vadd.f32 %v9410_v18, %v19816_v58  ;;  %v9449_v21 = vpop.f32.mrf.mxu3  ;;  %v9412_v2 = vpop.f32.mrf.mxu0 }
 0x9a9   : > { %v16590_v53 = vld [vmem:[%s17535_s19 + $0x1c34] sm:$0xf0]  ;;  %v11352_v12 = vld [vmem:[%s17535_s19 + $0xf8] sm:$0xf0] }
 0x9aa   : > { %v15094_v55 = vld [vmem:[%s17535_s19 + $0x1e18] sm:$0xf]  ;;  %v14839_v59 = vor.u32 %v16590_v53, %v14838_v52  ;;  %9629 = vmatpush.bf16.msrb.mxu1 %v14583_v63  ;;  %v15722_v52 = vld [vmem:[%s17535_s19 + $0x11c] sm:$0xf]  ;;  %v11899_v63 = vor.u32 %v15850_v1, %v11896_v57 }
 0x9ab   : > { %v16654_v56 = vld [vmem:[%s17535_s19 + $0x1e34] sm:$0xf0]  ;;  %v15786_v53 = vld [vmem:[%s17535_s19 + $0x31c] sm:$0xf]  ;;  %v11387_v10 = vor.u32 %v15722_v52, %v11384_v26 }
 0x9ac   : > { %v15095_v20 = vor.u32 %v16654_v56, %v15094_v55  ;;  %9642 = vmatpush.bf16.msrb.mxu2 %v14839_v59  ;;  %9661 = vmatpush.bf16.msra.mxu0 %v11483_v6  ;;  %v16939_v34 = vld [vmem:[#allocation1 + $0x24] sm:$0xff]  ;;  %v12187_v55 = vor.u32 %v15922_v36, %v12184_v37  ;;  %v9424_v6 = vadd.f32 %v9423_v8, %v9411_v5 }
 0x9ad   : > { %9617 = vmatmul.bf16.vlgmr.msrb.gmra.mxu0 %v16939_v34  ;;  %9630 = vmatmul.bf16.vlgmr.msrb.gmra.mxu1 %v16941_v47  ;;  %v16942_v48 = vld [vmem:[#allocation1 + $0x3f] sm:$0xff] }
 0x9ae   : > { %9655 = vmatpush.bf16.msrb.mxu3 %v15095_v20  ;;  %9674 = vmatpush.bf16.msra.mxu1 %v11739_v15  ;;  %v11640_v56 = vld [vmem:[%s17535_s19 + $0x338] sm:$0xf0]  ;;  %v12155_v20 = vor.u32 %v15914_v3, %v12152_v39 }
 0x9af   : > { %9643 = vmatmul.bf16.vlgmr.msrb.gmra.mxu2 %v16940_v46  ;;  %v11643_v27 = vor.u32 %v15786_v53, %v11640_v56  ;;  %v15714_v59 = vld [vmem:[%s17535_s19 + $0xdc] sm:$0xf]  ;;  %v9425_v46 = vpop.f32.mrf.mxu1 }
 0x9b0   : > { %9687 = vmatpush.bf16.msra.mxu2 %v11995_v40  ;;  %9662 = vmatpush.bf16.msra.mxu0 %v11451_v31  ;;  %v15778_v13 = vld [vmem:[%s17535_s19 + $0x2dc] sm:$0xf]  ;;  %v11355_v11 = vor.u32 %v15714_v59, %v11352_v12  ;;  %v9436_v31 = vpop.f32.mrf.mxu2 }
 0x9b1   : > { %9656 = vmatmul.bf16.vlgmr.msrb.gmra.mxu3 %v16942_v48  ;;  %v11608_v15 = vld [vmem:[%s17535_s19 + $0x2f8] sm:$0xf0]  ;;  %v9437_v14 = vadd.f32 %v9436_v31, %v9424_v6 }
 0x9b2   : > { %9700 = vmatpush.bf16.msra.mxu3 %v12251_v23  ;;  %9675 = vmatpush.bf16.msra.mxu1 %v11707_v32  ;;  %v15842_v40 = vld [vmem:[%s17535_s19 + $0x4dc] sm:$0xf]  ;;  %v11611_v23 = vor.u32 %v15778_v13, %v11608_v15 }
 0x9b3   : > { %v11864_v58 = vld [vmem:[%s17535_s19 + $0x4f8] sm:$0xf0]  ;;  %v9450_v47 = vadd.f32 %v9449_v21, %v9437_v14 }
 0x9b4   : > { %9688 = vmatpush.bf16.msra.mxu2 %v11963_v17  ;;  %9663 = vmatpush.bf16.msra.mxu0 %v11419_v19  ;;  %v15906_v24 = vld [vmem:[%s17535_s19 + $0x6dc] sm:$0xf]  ;;  %v11867_v60 = vor.u32 %v15842_v40, %v11864_v58  ;;  %v9451_v58 = vpop.f32.mrf.mxu3 }
 0x9b5   : > { %v12120_v42 = vld [vmem:[%s17535_s19 + $0x6f8] sm:$0xf0]  ;;  %vm9874_vm0 = vcmp.gt.f32.partialorder %v9450_v47, 0.0 }
 0x9b6   : > { %9701 = vmatpush.bf16.msra.mxu3 %v12219_v35  ;;  %9676 = vmatpush.bf16.msra.mxu1 %v11675_v22  ;;  %v15706_v25 = vld [vmem:[%s17535_s19 + $0x9c] sm:$0xf]  ;;  %v12123_v28 = vor.u32 %v15906_v24, %v12120_v42 }
 0x9b7   : > { %v11320_v29 = vld [vmem:[%s17535_s19 + $0xb8] sm:$0xf0] }
 0x9b8   : > { %9689 = vmatpush.bf16.msra.mxu2 %v11931_v33  ;;  %9664 = vmatpush.bf16.msra.mxu0 %v11387_v10  ;;  %v15770_v30 = vld [vmem:[%s17535_s19 + $0x29c] sm:$0xf]  ;;  %v11323_v43 = vor.u32 %v15706_v25, %v11320_v29 }
 0x9b9   : > { %v11576_v32 = vld [vmem:[%s17535_s19 + $0x2b8] sm:$0xf0] }
 0x9ba   : > { %9702 = vmatpush.bf16.msra.mxu3 %v12187_v55  ;;  %9677 = vmatpush.bf16.msra.mxu1 %v11643_v27  ;;  %v15834_v17 = vld [vmem:[%s17535_s19 + $0x49c] sm:$0xf]  ;;  %v11579_v36 = vor.u32 %v15770_v30, %v11576_v32  ;;  %v9882_v55 = vmul.f32 0.2, %v9450_v47 }
 0x9bb   : > { %v11832_v9 = vld [vmem:[%s17535_s19 + $0x4b8] sm:$0xf0] }
 0x9bc   : > { %9690 = vmatpush.bf16.msra.mxu2 %v11899_v63  ;;  %v15898_v34 = vld [vmem:[%s17535_s19 + $0x69c] sm:$0xf]  ;;  %9665 = vmatpush.bf16.msra.mxu0 %v11355_v11  ;;  %v11835_v37 = vor.u32 %v15834_v17, %v11832_v9  ;;  %v19893_v3 = vsel %vm9874_vm0, %v9450_v47, %v9882_v55 }
 0x9bd   : > { %v12088_v35 = vld [vmem:[%s17535_s19 + $0x6b8] sm:$0xf0] }
 0x9be   : > { %9703 = vmatpush.bf16.msra.mxu3 %v12155_v20  ;;  %v15698_v54 = vld [vmem:[%s17535_s19 + $0x5c] sm:$0xf]  ;;  %9678 = vmatpush.bf16.msra.mxu1 %v11611_v23  ;;  %v12091_v33 = vor.u32 %v15898_v34, %v12088_v35  ;;  %v9438_v20 = vpop.f32.mrf.mxu2 }
 0x9bf   : > { %v11288_v48 = vld [vmem:[%s17535_s19 + $0x78] sm:$0xf0] }
 0x9c0   : > { %9691 = vmatpush.bf16.msra.mxu2 %v11867_v60  ;;  %v15762_v19 = vld [vmem:[%s17535_s19 + $0x25c] sm:$0xf]  ;;  %9666 = vmatpush.bf16.msra.mxu0 %v11323_v43  ;;  %v11291_v1 = vor.u32 %v15698_v54, %v11288_v48 }
 0x9c1   : > { %v11544_v22 = vld [vmem:[%s17535_s19 + $0x278] sm:$0xf0] }
 0x9c2   : > { %9704 = vmatpush.bf16.msra.mxu3 %v12123_v28  ;;  %v15826_v52 = vld [vmem:[%s17535_s19 + $0x45c] sm:$0xf]  ;;  %9679 = vmatpush.bf16.msra.mxu1 %v11579_v36  ;;  %v11547_v39 = vor.u32 %v15762_v19, %v11544_v22 }
 0x9c3   : > { %v11800_v26 = vld [vmem:[%s17535_s19 + $0x478] sm:$0xf0] }
 0x9c4   : > { %v15890_v53 = vld [vmem:[%s17535_s19 + $0x65c] sm:$0xf]  ;;  %9692 = vmatpush.bf16.msra.mxu2 %v11835_v37  ;;  %v11803_v5 = vor.u32 %v15826_v52, %v11800_v26  ;;  %9667 = vmatpush.bf16.msra.mxu0 %v11291_v1 }
 0x9c5   : > { %v12056_v56 = vld [vmem:[%s17535_s19 + $0x678] sm:$0xf0] }
 0x9c6   : > { %v15690_v57 = vld [vmem:[%s17535_s19 + $0x1c] sm:$0xf]  ;;  %9705 = vmatpush.bf16.msra.mxu3 %v12091_v33  ;;  %v12059_v63 = vor.u32 %v15890_v53, %v12056_v56  ;;  %9680 = vmatpush.bf16.msra.mxu1 %v11547_v39 }
 0x9c7   : > { %v11256_v18 = vld [vmem:[%s17535_s19 + $0x38] sm:$0xf0] }
 0x9c8   : > { %v15754_v10 = vld [vmem:[%s17535_s19 + $0x21c] sm:$0xf]  ;;  %v11259_v24 = vor.u32 %v15690_v57, %v11256_v18  ;;  %9693 = vmatpush.bf16.msra.mxu2 %v11803_v5 }
 0x9c9   : > { %v11512_v8 = vld [vmem:[%s17535_s19 + $0x238] sm:$0xf0] }
 0x9ca   : > { %v15818_v27 = vld [vmem:[%s17535_s19 + $0x41c] sm:$0xf]  ;;  %v11515_v60 = vor.u32 %v15754_v10, %v11512_v8  ;;  %9706 = vmatpush.bf16.msra.mxu3 %v12059_v63  ;;  %9668 = vmatpush.bf16.msra.mxu0 %v11259_v24  ;;  %v19933_v10 = vld [vmem:[%s17550_s16] sm:$0xff] }
 0x9cb   : > { %v11768_v59 = vld [vmem:[%s17535_s19 + $0x438] sm:$0xf0] }
 0x9cc   : > { %v15882_v12 = vld [vmem:[%s17535_s19 + $0x61c] sm:$0xf]  ;;  %v11771_v25 = vor.u32 %v15818_v27, %v11768_v59  ;;  %9681 = vmatpush.bf16.msra.mxu1 %v11515_v60 }
 0x9cd   : > { %v12024_v13 = vld [vmem:[%s17535_s19 + $0x638] sm:$0xf0]  ;;  %9669 = vmatmul.bf16.vlgmr.msra.gmra.mxu0 %v18003_v41  ;;  %v3039_v41 = vperm.slane %v19933_v10, 6 }
 0x9ce   : > { %v16002_v6 = vld [vmem:[%s17535_s19 + $0x9dc] sm:$0xf]  ;;  %v12027_v28 = vor.u32 %v15882_v12, %v12024_v13  ;;  %9694 = vmatpush.bf16.msra.mxu2 %v11771_v25  ;;  %v9462_v13 = vpop.f32.mrf.mxu0 }
 0x9cf   : > { %v12504_v15 = vld [vmem:[%s17535_s19 + $0x9f8] sm:$0xf0]  ;;  %9682 = vmatmul.bf16.vlgmr.msra.gmra.mxu1 %v18010_v50  ;;  %v9463_v24 = vadd.f32 %v9462_v13, %v3039_v41 }
 0x9d0   : > { %v16066_v40 = vld [vmem:[%s17535_s19 + $0xbdc] sm:$0xf]  ;;  %v12507_v31 = vor.u32 %v16002_v6, %v12504_v15  ;;  %9707 = vmatpush.bf16.msra.mxu3 %v12027_v28 }
 0x9d1   : > { %v12760_v42 = vld [vmem:[%s17535_s19 + $0xbf8] sm:$0xf0]  ;;  %9695 = vmatmul.bf16.vlgmr.msra.gmra.mxu2 %v18001_v4 }
 0x9d2   : > { %v16130_v11 = vld [vmem:[%s17535_s19 + $0xddc] sm:$0xf]  ;;  %v12763_v32 = vor.u32 %v16066_v40, %v12760_v42  ;;  %9713 = vmatpush.bf16.msrb.mxu0 %v12507_v31  ;;  %v9475_v42 = vpop.f32.mrf.mxu1 }
 0x9d3   : > { %v13016_v23 = vld [vmem:[%s17535_s19 + $0xdf8] sm:$0xf0]  ;;  %9708 = vmatmul.bf16.vlgmr.msra.gmra.mxu3 %v18005_v61  ;;  %v9476_v28 = vadd.f32 %v9475_v42, %v9463_v24 }
 0x9d4   : > { %v16194_v29 = vld [vmem:[%s17535_s19 + $0xfdc] sm:$0xf]  ;;  %v13019_v17 = vor.u32 %v16130_v11, %v13016_v23  ;;  %9726 = vmatpush.bf16.msrb.mxu1 %v12763_v32 }
 0x9d5   : > { %v13272_v30 = vld [vmem:[%s17535_s19 + $0xff8] sm:$0xf0] }
 0x9d6   : > { %v15994_v9 = vld [vmem:[%s17535_s19 + $0x99c] sm:$0xf]  ;;  %v13275_v34 = vor.u32 %v16194_v29, %v13272_v30  ;;  %9739 = vmatpush.bf16.msrb.mxu2 %v13019_v17 }
 0x9d7   : > { %v12472_v14 = vld [vmem:[%s17535_s19 + $0x9b8] sm:$0xf0] }
 0x9d8   : > { %v16058_v21 = vld [vmem:[%s17535_s19 + $0xb9c] sm:$0xf]  ;;  %v12475_v47 = vor.u32 %v15994_v9, %v12472_v14  ;;  %9752 = vmatpush.bf16.msrb.mxu3 %v13275_v34  ;;  %v9488_v34 = vpop.f32.mrf.mxu2 }
 0x9d9   : > { %v12728_v35 = vld [vmem:[%s17535_s19 + $0xbb8] sm:$0xf0] }
 0x9da   : > { %v16122_v2 = vld [vmem:[%s17535_s19 + $0xd9c] sm:$0xf]  ;;  %v12731_v36 = vor.u32 %v16058_v21, %v12728_v35  ;;  %9714 = vmatpush.bf16.msrb.mxu0 %v12475_v47  ;;  %v9501_v47 = vpop.f32.mrf.mxu3 }
 0x9db   : > { %v12984_v43 = vld [vmem:[%s17535_s19 + $0xdb8] sm:$0xf0] }
 0x9dc   : > { %v16186_v54 = vld [vmem:[%s17535_s19 + $0xf9c] sm:$0xf]  ;;  %v12987_v37 = vor.u32 %v16122_v2, %v12984_v43  ;;  %9727 = vmatpush.bf16.msrb.mxu1 %v12731_v36 }
 0x9dd   : > { %v13240_v46 = vld [vmem:[%s17535_s19 + $0xfb8] sm:$0xf0] }
 0x9de   : > { %v15986_v48 = vld [vmem:[%s17535_s19 + $0x95c] sm:$0xf]  ;;  %v13243_v33 = vor.u32 %v16186_v54, %v13240_v46  ;;  %9740 = vmatpush.bf16.msrb.mxu2 %v12987_v37  ;;  %v9489_v46 = vadd.f32 %v9488_v34, %v9476_v28 }
 0x9df   : > { %v12440_v19 = vld [vmem:[%s17535_s19 + $0x978] sm:$0xf0] }
 0x9e0   : > { %v16050_v22 = vld [vmem:[%s17535_s19 + $0xb5c] sm:$0xf]  ;;  %v12443_v1 = vor.u32 %v15986_v48, %v12440_v19  ;;  %9753 = vmatpush.bf16.msrb.mxu3 %v13243_v33  ;;  %v19957_v19 = vadd.f32 %v9501_v47, %v9489_v46  ;;  %v9490_v13 = vpop.f32.mrf.mxu2 }
 0x9e1   : > { %v12696_v52 = vld [vmem:[%s17535_s19 + $0xb78] sm:$0xf0] }
 0x9e2   : > { %v16114_v26 = vld [vmem:[%s17535_s19 + $0xd5c] sm:$0xf]  ;;  %v12699_v18 = vor.u32 %v16050_v22, %v12696_v52  ;;  %9715 = vmatpush.bf16.msrb.mxu0 %v12443_v1  ;;  %v9464_v22 = vpop.f32.mrf.mxu0 }
 0x9e3   : > { %v12952_v53 = vld [vmem:[%s17535_s19 + $0xd78] sm:$0xf0] }
 0x9e4   : > { %v16178_v55 = vld [vmem:[%s17535_s19 + $0xf5c] sm:$0xf]  ;;  %v12955_v4 = vor.u32 %v16114_v26, %v12952_v53  ;;  %9728 = vmatpush.bf16.msrb.mxu1 %v12699_v18 }
 0x9e5   : > { %v13208_v56 = vld [vmem:[%s17535_s19 + $0xf78] sm:$0xf0] }
 0x9e6   : > { %v15978_v57 = vld [vmem:[%s17535_s19 + $0x91c] sm:$0xf]  ;;  %v13211_v61 = vor.u32 %v16178_v55, %v13208_v56  ;;  %9741 = vmatpush.bf16.msrb.mxu2 %v12955_v4  ;;  %v9477_v56 = vpop.f32.mrf.mxu1 }
 0x9e7   : > { %v12408_v39 = vld [vmem:[%s17535_s19 + $0x938] sm:$0xf0] }
 0x9e8   : > { %v16042_v5 = vld [vmem:[%s17535_s19 + $0xb1c] sm:$0xf]  ;;  %v12411_v12 = vor.u32 %v15978_v57, %v12408_v39  ;;  %9754 = vmatpush.bf16.msrb.mxu3 %v13211_v61 }
 0x9e9   : > { %v12664_v8 = vld [vmem:[%s17535_s19 + $0xb38] sm:$0xf0] }
 0x9ea   : > { %v16106_v27 = vld [vmem:[%s17535_s19 + $0xd1c] sm:$0xf]  ;;  %v12667_v20 = vor.u32 %v16042_v5, %v12664_v8  ;;  %9716 = vmatpush.bf16.msrb.mxu0 %v12411_v12 }
 0x9eb   : > { %v12920_v63 = vld [vmem:[%s17535_s19 + $0xd38] sm:$0xf0] }
 0x9ec   : > { %v16170_v59 = vld [vmem:[%s17535_s19 + $0xf1c] sm:$0xf]  ;;  %v12923_v6 = vor.u32 %v16106_v27, %v12920_v63  ;;  %9729 = vmatpush.bf16.msrb.mxu1 %v12667_v20 }
 0x9ed   : > { %v13176_v50 = vld [vmem:[%s17535_s19 + $0xf38] sm:$0xf0] }
 0x9ee   : > { %v15970_v15 = vld [vmem:[%s17535_s19 + $0x8dc] sm:$0xf]  ;;  %v13179_v11 = vor.u32 %v16170_v59, %v13176_v50  ;;  %9742 = vmatpush.bf16.msrb.mxu2 %v12923_v6 }
 0x9ef   : > { %v12376_v40 = vld [vmem:[%s17535_s19 + $0x8f8] sm:$0xf0] }
 0x9f0   : > { %v16034_v58 = vld [vmem:[%s17535_s19 + $0xadc] sm:$0xf]  ;;  %v12379_v31 = vor.u32 %v15970_v15, %v12376_v40  ;;  %9755 = vmatpush.bf16.msrb.mxu3 %v13179_v11 }
 0x9f1   : > { %v12632_v23 = vld [vmem:[%s17535_s19 + $0xaf8] sm:$0xf0] }
 0x9f2   : > { %v16098_v60 = vld [vmem:[%s17535_s19 + $0xcdc] sm:$0xf]  ;;  %v12635_v32 = vor.u32 %v16034_v58, %v12632_v23  ;;  %9717 = vmatpush.bf16.msrb.mxu0 %v12379_v31  ;;  %v9503_v58 = vpop.f32.mrf.mxu3 }
 0x9f3   : > { %v12888_v25 = vld [vmem:[%s17535_s19 + $0xcf8] sm:$0xf0] }
 0x9f4   : > { %v16162_v29 = vld [vmem:[%s17535_s19 + $0xedc] sm:$0xf]  ;;  %v12891_v17 = vor.u32 %v16098_v60, %v12888_v25  ;;  %9730 = vmatpush.bf16.msrb.mxu1 %v12635_v32 }
 0x9f5   : > { %v13144_v30 = vld [vmem:[%s17535_s19 + $0xef8] sm:$0xf0] }
 0x9f6   : > { %v15962_v9 = vld [vmem:[%s17535_s19 + $0x89c] sm:$0xf]  ;;  %v13147_v35 = vor.u32 %v16162_v29, %v13144_v30  ;;  %9743 = vmatpush.bf16.msrb.mxu2 %v12891_v17 }
 0x9f7   : > { %v12344_v14 = vld [vmem:[%s17535_s19 + $0x8b8] sm:$0xf0] }
 0x9f8   : > { %v16026_v21 = vld [vmem:[%s17535_s19 + $0xa9c] sm:$0xf]  ;;  %v12347_v48 = vor.u32 %v15962_v9, %v12344_v14  ;;  %9756 = vmatpush.bf16.msrb.mxu3 %v13147_v35 }
 0x9f9   : > { %v12600_v2 = vld [vmem:[%s17535_s19 + $0xab8] sm:$0xf0] }
 0x9fa   : > { %v16090_v43 = vld [vmem:[%s17535_s19 + $0xc9c] sm:$0xf]  ;;  %v12603_v33 = vor.u32 %v16026_v21, %v12600_v2  ;;  %9718 = vmatpush.bf16.msrb.mxu0 %v12347_v48 }
 0x9fb   : > { %v12856_v54 = vld [vmem:[%s17535_s19 + $0xcb8] sm:$0xf0] }
 0x9fc   : > { %v16154_v36 = vld [vmem:[%s17535_s19 + $0xe9c] sm:$0xf]  ;;  %v12859_v52 = vor.u32 %v16090_v43, %v12856_v54  ;;  %9731 = vmatpush.bf16.msrb.mxu1 %v12603_v33 }
 0x9fd   : > { %v13112_v37 = vld [vmem:[%s17535_s19 + $0xeb8] sm:$0xf0] }
 0x9fe   : > { %v15954_v26 = vld [vmem:[%s17535_s19 + $0x85c] sm:$0xf]  ;;  %v13115_v1 = vor.u32 %v16154_v36, %v13112_v37  ;;  %9744 = vmatpush.bf16.msrb.mxu2 %v12859_v52 }
 0x9ff   : > { %v12312_v53 = vld [vmem:[%s17535_s19 + $0x878] sm:$0xf0] }
 0xa00   : > { %v16018_v55 = vld [vmem:[%s17535_s19 + $0xa5c] sm:$0xf]  ;;  %v12315_v41 = vor.u32 %v15954_v26, %v12312_v53  ;;  %9757 = vmatpush.bf16.msrb.mxu3 %v13115_v1 }
 0xa01   : > { %v12568_v57 = vld [vmem:[%s17535_s19 + $0xa78] sm:$0xf0] }
 0xa02   : > { %v16082_v18 = vld [vmem:[%s17535_s19 + $0xc5c] sm:$0xf]  ;;  %v12571_v27 = vor.u32 %v16018_v55, %v12568_v57  ;;  %9719 = vmatpush.bf16.msrb.mxu0 %v12315_v41 }
 0xa03   : > { %v12824_v4 = vld [vmem:[%s17535_s19 + $0xc78] sm:$0xf0] }
 0xa04   : > { %v16146_v39 = vld [vmem:[%s17535_s19 + $0xe5c] sm:$0xf]  ;;  %v12827_v63 = vor.u32 %v16082_v18, %v12824_v4  ;;  %9732 = vmatpush.bf16.msrb.mxu1 %v12571_v27 }
 0xa05   : > { %v13080_v5 = vld [vmem:[%s17535_s19 + $0xe78] sm:$0xf0] }
 0xa06   : > { %v15946_v61 = vld [vmem:[%s17535_s19 + $0x81c] sm:$0xf]  ;;  %v13083_v20 = vor.u32 %v16146_v39, %v13080_v5  ;;  %9745 = vmatpush.bf16.msrb.mxu2 %v12827_v63 }
 0xa07   : > { %v12280_v8 = vld [vmem:[%s17535_s19 + $0x838] sm:$0xf0] }
 0xa08   : > { %v16010_v59 = vld [vmem:[%s17535_s19 + $0xa1c] sm:$0xf]  ;;  %v12283_v23 = vor.u32 %v15946_v61, %v12280_v8  ;;  %9758 = vmatpush.bf16.msrb.mxu3 %v13083_v20 }
 0xa09   : > { %v12536_v50 = vld [vmem:[%s17535_s19 + $0xa38] sm:$0xf0] }
 0xa0a   : > { %v16074_v12 = vld [vmem:[%s17535_s19 + $0xc1c] sm:$0xf]  ;;  %v12539_v30 = vor.u32 %v16010_v59, %v12536_v50  ;;  %9720 = vmatpush.bf16.msrb.mxu0 %v12283_v23 }
 0xa0b   : > { %v12792_v6 = vld [vmem:[%s17535_s19 + $0xc38] sm:$0xf0] }
 0xa0c   : > { %v16138_v15 = vld [vmem:[%s17535_s19 + $0xe1c] sm:$0xf]  ;;  %v12795_v28 = vor.u32 %v16074_v12, %v12792_v6  ;;  %9733 = vmatpush.bf16.msrb.mxu1 %v12539_v30  ;;  %v9514_v12 = vpop.f32.mrf.mxu0 }
 0xa0d   : > { %v13048_v40 = vld [vmem:[%s17535_s19 + $0xe38] sm:$0xf0]  ;;  %9721 = vmatmul.bf16.vlgmr.msrb.gmra.mxu0 %v18041_v44  ;;  %v9515_v58 = vadd.f32 %v9514_v12, %v19957_v19 }
 0xa0e   : > { %v16258_v24 = vld [vmem:[%s17535_s19 + $0x11dc] sm:$0xf]  ;;  %v13051_v17 = vor.u32 %v16138_v15, %v13048_v40  ;;  %9746 = vmatpush.bf16.msrb.mxu2 %v12795_v28 }
 0xa0f   : > { %v13528_v42 = vld [vmem:[%s17535_s19 + $0x11f8] sm:$0xf0]  ;;  %9734 = vmatmul.bf16.vlgmr.msrb.gmra.mxu1 %v18045_v49 }
 0xa10   : > { %v16322_v11 = vld [vmem:[%s17535_s19 + $0x13dc] sm:$0xf]  ;;  %v13531_v9 = vor.u32 %v16258_v24, %v13528_v42  ;;  %9759 = vmatpush.bf16.msrb.mxu3 %v13051_v17  ;;  %v9527_v24 = vpop.f32.mrf.mxu1 }
 0xa11   : > { %v13784_v60 = vld [vmem:[%s17535_s19 + $0x13f8] sm:$0xf0]  ;;  %9747 = vmatmul.bf16.vlgmr.msrb.gmra.mxu2 %v18039_v62  ;;  %v9528_v30 = vadd.f32 %v9527_v24, %v9515_v58 }
 0xa12   : > { %v16386_v25 = vld [vmem:[%s17535_s19 + $0x15dc] sm:$0xf]  ;;  %v13787_v14 = vor.u32 %v16322_v11, %v13784_v60  ;;  %9765 = vmatpush.bf16.msra.mxu0 %v13531_v9 }
 0xa13   : > { %v14040_v29 = vld [vmem:[%s17535_s19 + $0x15f8] sm:$0xf0]  ;;  %9760 = vmatmul.bf16.vlgmr.msrb.gmra.mxu3 %v18043_v0 }
 0xa14   : > { %v16450_v31 = vld [vmem:[%s17535_s19 + $0x17dc] sm:$0xf]  ;;  %v14043_v21 = vor.u32 %v16386_v25, %v14040_v29  ;;  %9778 = vmatpush.bf16.msra.mxu1 %v13787_v14  ;;  %v9540_v14 = vpop.f32.mrf.mxu2 }
 0xa15   : > { %v14296_v32 = vld [vmem:[%s17535_s19 + $0x17f8] sm:$0xf0] }
 0xa16   : > { %v16250_v34 = vld [vmem:[%s17535_s19 + $0x119c] sm:$0xf]  ;;  %v14299_v43 = vor.u32 %v16450_v31, %v14296_v32  ;;  %9791 = vmatpush.bf16.msra.mxu2 %v14043_v21 }
 0xa17   : > { %v13496_v35 = vld [vmem:[%s17535_s19 + $0x11b8] sm:$0xf0] }
 0xa18   : > { %v16314_v2 = vld [vmem:[%s17535_s19 + $0x139c] sm:$0xf]  ;;  %v13499_v48 = vor.u32 %v16250_v34, %v13496_v35  ;;  %9804 = vmatpush.bf16.msra.mxu3 %v14299_v43  ;;  %v9541_v43 = vadd.f32 %v9540_v14, %v9528_v30 }
 0xa19   : > { %v13752_v54 = vld [vmem:[%s17535_s19 + $0x13b8] sm:$0xf0] }
 0xa1a   : > { %v16378_v46 = vld [vmem:[%s17535_s19 + $0x159c] sm:$0xf]  ;;  %v13755_v22 = vor.u32 %v16314_v2, %v13752_v54  ;;  %9766 = vmatpush.bf16.msra.mxu0 %v13499_v48  ;;  %v9553_v54 = vpop.f32.mrf.mxu3  ;;  %v9516_v48 = vpop.f32.mrf.mxu0 }
 0xa1b   : > { %v14008_v47 = vld [vmem:[%s17535_s19 + $0x15b8] sm:$0xf0] }
 0xa1c   : > { %v16442_v36 = vld [vmem:[%s17535_s19 + $0x179c] sm:$0xf]  ;;  %v14011_v33 = vor.u32 %v16378_v46, %v14008_v47  ;;  %9779 = vmatpush.bf16.msra.mxu1 %v13755_v22 }
 0xa1d   : > { %v14264_v37 = vld [vmem:[%s17535_s19 + $0x17b8] sm:$0xf0] }
 0xa1e   : > { %v16242_v52 = vld [vmem:[%s17535_s19 + $0x115c] sm:$0xf]  ;;  %v14267_v55 = vor.u32 %v16442_v36, %v14264_v37  ;;  %9792 = vmatpush.bf16.msra.mxu2 %v14011_v33  ;;  %v20028_v37 = vadd.f32 %v9553_v54, %v9541_v43 }
 0xa1f   : > { %v13464_v26 = vld [vmem:[%s17535_s19 + $0x1178] sm:$0xf0] }
 0xa20   : > { %v16306_v53 = vld [vmem:[%s17535_s19 + $0x135c] sm:$0xf]  ;;  %v13467_v39 = vor.u32 %v16242_v52, %v13464_v26  ;;  %9805 = vmatpush.bf16.msra.mxu3 %v14267_v55  ;;  %v9529_v55 = vpop.f32.mrf.mxu1 }
 0xa21   : > { %v13720_v56 = vld [vmem:[%s17535_s19 + $0x1378] sm:$0xf0]  ;;  %v16945_v55 = vld [vmem:[#allocation1 + $0x12] sm:$0xff] }
 0xa22   : > { %v16370_v1 = vld [vmem:[%s17535_s19 + $0x155c] sm:$0xf]  ;;  %v13723_v62 = vor.u32 %v16306_v53, %v13720_v56  ;;  %9767 = vmatpush.bf16.msra.mxu0 %v13467_v39 }
 0xa23   : > { %v13976_v57 = vld [vmem:[%s17535_s19 + $0x1578] sm:$0xf0] }
 0xa24   : > { %v16434_v18 = vld [vmem:[%s17535_s19 + $0x175c] sm:$0xf]  ;;  %v13979_v5 = vor.u32 %v16370_v1, %v13976_v57  ;;  %9780 = vmatpush.bf16.msra.mxu1 %v13723_v62 }
 0xa25   : > { %v14232_v4 = vld [vmem:[%s17535_s19 + $0x1778] sm:$0xf0] }
 0xa26   : > { %v16234_v41 = vld [vmem:[%s17535_s19 + $0x111c] sm:$0xf]  ;;  %v14235_v0 = vor.u32 %v16434_v18, %v14232_v4  ;;  %9793 = vmatpush.bf16.msra.mxu2 %v13979_v5 }
 0xa27   : > { %v13432_v61 = vld [vmem:[%s17535_s19 + $0x1138] sm:$0xf0] }
 0xa28   : > { %v16298_v44 = vld [vmem:[%s17535_s19 + $0x131c] sm:$0xf]  ;;  %v13435_v49 = vor.u32 %v16234_v41, %v13432_v61  ;;  %9806 = vmatpush.bf16.msra.mxu3 %v14235_v0 }
 0xa29   : > { %v13688_v8 = vld [vmem:[%s17535_s19 + $0x1338] sm:$0xf0] }
 0xa2a   : > { %v16362_v27 = vld [vmem:[%s17535_s19 + $0x151c] sm:$0xf]  ;;  %v13691_v13 = vor.u32 %v16298_v44, %v13688_v8  ;;  %9768 = vmatpush.bf16.msra.mxu0 %v13435_v49 }
 0xa2b   : > { %v13944_v63 = vld [vmem:[%s17535_s19 + $0x1538] sm:$0xf0] }
 0xa2c   : > { %v16426_v59 = vld [vmem:[%s17535_s19 + $0x171c] sm:$0xf]  ;;  %v13947_v20 = vor.u32 %v16362_v27, %v13944_v63  ;;  %9781 = vmatpush.bf16.msra.mxu1 %v13691_v13  ;;  %v9542_v63 = vpop.f32.mrf.mxu2  ;;  %v9555_v13 = vpop.f32.mrf.mxu3 }
 0xa2d   : > { %v14200_v50 = vld [vmem:[%s17535_s19 + $0x1738] sm:$0xf0]  ;;  %v9566_v63 = vpop.f32.mrf.mxu0  ;;  %v9579_v13 = vpop.f32.mrf.mxu1 }
 0xa2e   : > { %v16226_v6 = vld [vmem:[%s17535_s19 + $0x10dc] sm:$0xf]  ;;  %v14203_v42 = vor.u32 %v16426_v59, %v14200_v50  ;;  %9794 = vmatpush.bf16.msra.mxu2 %v13947_v20 }
 0xa2f   : > { %v13400_v15 = vld [vmem:[%s17535_s19 + $0x10f8] sm:$0xf0] }
 0xa30   : > { %v16290_v40 = vld [vmem:[%s17535_s19 + $0x12dc] sm:$0xf]  ;;  %v13403_v28 = vor.u32 %v16226_v6, %v13400_v15  ;;  %9807 = vmatpush.bf16.msra.mxu3 %v14203_v42 }
 0xa31   : > { %v13656_v11 = vld [vmem:[%s17535_s19 + $0x12f8] sm:$0xf0] }
 0xa32   : > { %v16354_v23 = vld [vmem:[%s17535_s19 + $0x14dc] sm:$0xf]  ;;  %v13659_v19 = vor.u32 %v16290_v40, %v13656_v11  ;;  %9769 = vmatpush.bf16.msra.mxu0 %v13403_v28 }
 0xa33   : > { %v13912_v60 = vld [vmem:[%s17535_s19 + $0x14f8] sm:$0xf0] }
 0xa34   : > { %v16418_v25 = vld [vmem:[%s17535_s19 + $0x16dc] sm:$0xf]  ;;  %v13915_v31 = vor.u32 %v16354_v23, %v13912_v60  ;;  %9782 = vmatpush.bf16.msra.mxu1 %v13659_v19 }
 0xa35   : > { %v14168_v29 = vld [vmem:[%s17535_s19 + $0x16f8] sm:$0xf0] }
 0xa36   : > { %v16218_v32 = vld [vmem:[%s17535_s19 + $0x109c] sm:$0xf]  ;;  %v14171_v21 = vor.u32 %v16418_v25, %v14168_v29  ;;  %9795 = vmatpush.bf16.msra.mxu2 %v13915_v31 }
 0xa37   : > { %v13368_v17 = vld [vmem:[%s17535_s19 + $0x10b8] sm:$0xf0] }
 0xa38   : > { %v16282_v9 = vld [vmem:[%s17535_s19 + $0x129c] sm:$0xf]  ;;  %v13371_v36 = vor.u32 %v16218_v32, %v13368_v17  ;;  %9808 = vmatpush.bf16.msra.mxu3 %v14171_v21 }
 0xa39   : > { %v13624_v34 = vld [vmem:[%s17535_s19 + $0x12b8] sm:$0xf0] }
 0xa3a   : > { %v16346_v35 = vld [vmem:[%s17535_s19 + $0x149c] sm:$0xf]  ;;  %v13627_v22 = vor.u32 %v16282_v9, %v13624_v34  ;;  %9770 = vmatpush.bf16.msra.mxu0 %v13371_v36 }
 0xa3b   : > { %v13880_v2 = vld [vmem:[%s17535_s19 + $0x14b8] sm:$0xf0] }
 0xa3c   : > { %v16410_v46 = vld [vmem:[%s17535_s19 + $0x169c] sm:$0xf]  ;;  %v13883_v33 = vor.u32 %v16346_v35, %v13880_v2  ;;  %9783 = vmatpush.bf16.msra.mxu1 %v13627_v22 }
 0xa3d   : > { %v14136_v47 = vld [vmem:[%s17535_s19 + $0x16b8] sm:$0xf0] }
 0xa3e   : > { %v16210_v52 = vld [vmem:[%s17535_s19 + $0x105c] sm:$0xf]  ;;  %v14139_v56 = vor.u32 %v16410_v46, %v14136_v47  ;;  %9796 = vmatpush.bf16.msra.mxu2 %v13883_v33 }
 0xa3f   : > { %v13336_v26 = vld [vmem:[%s17535_s19 + $0x1078] sm:$0xf0] }
 0xa40   : > { %v16274_v53 = vld [vmem:[%s17535_s19 + $0x125c] sm:$0xf]  ;;  %v13339_v62 = vor.u32 %v16210_v52, %v13336_v26  ;;  %9809 = vmatpush.bf16.msra.mxu3 %v14139_v56 }
 0xa41   : > { %v13592_v1 = vld [vmem:[%s17535_s19 + $0x1278] sm:$0xf0] }
 0xa42   : > { %v16338_v57 = vld [vmem:[%s17535_s19 + $0x145c] sm:$0xf]  ;;  %v13595_v61 = vor.u32 %v16274_v53, %v13592_v1  ;;  %9771 = vmatpush.bf16.msra.mxu0 %v13339_v62 }
 0xa43   : > { %v13848_v18 = vld [vmem:[%s17535_s19 + $0x1478] sm:$0xf0] }
 0xa44   : > { %v16402_v4 = vld [vmem:[%s17535_s19 + $0x165c] sm:$0xf]  ;;  %v13851_v44 = vor.u32 %v16338_v57, %v13848_v18  ;;  %9784 = vmatpush.bf16.msra.mxu1 %v13595_v61  ;;  %v16947_v18 = vld [vmem:[#allocation1 + $0x1b] sm:$0xff] }
 0xa45   : > { %v14104_v39 = vld [vmem:[%s17535_s19 + $0x1678] sm:$0xf0] }
 0xa46   : > { %v16202_v5 = vld [vmem:[%s17535_s19 + $0x101c] sm:$0xf]  ;;  %v14107_v59 = vor.u32 %v16402_v4, %v14104_v39  ;;  %9797 = vmatpush.bf16.msra.mxu2 %v13851_v44 }
 0xa47   : > { %v13304_v41 = vld [vmem:[%s17535_s19 + $0x1038] sm:$0xf0] }
 0xa48   : > { %v16266_v0 = vld [vmem:[%s17535_s19 + $0x121c] sm:$0xf]  ;;  %v13307_v40 = vor.u32 %v16202_v5, %v13304_v41  ;;  %9810 = vmatpush.bf16.msra.mxu3 %v14107_v59 }
 0xa49   : > { %v13560_v8 = vld [vmem:[%s17535_s19 + $0x1238] sm:$0xf0] }
 0xa4a   : > { %v16330_v27 = vld [vmem:[%s17535_s19 + $0x141c] sm:$0xf]  ;;  %v13563_v11 = vor.u32 %v16266_v0, %v13560_v8  ;;  %9772 = vmatpush.bf16.msra.mxu0 %v13307_v40 }
 0xa4b   : > { %v13816_v50 = vld [vmem:[%s17535_s19 + $0x1438] sm:$0xf0] }
 0xa4c   : > { %v16394_v49 = vld [vmem:[%s17535_s19 + $0x161c] sm:$0xf]  ;;  %v13819_v23 = vor.u32 %v16330_v27, %v13816_v50  ;;  %9785 = vmatpush.bf16.msra.mxu1 %v13563_v11 }
 0xa4d   : > { %v14072_v12 = vld [vmem:[%s17535_s19 + $0x1638] sm:$0xf0] }
 0xa4e   : > { %v16514_v20 = vld [vmem:[%s17535_s19 + $0x19dc] sm:$0xf]  ;;  %v14075_v29 = vor.u32 %v16394_v49, %v14072_v12  ;;  %9798 = vmatpush.bf16.msra.mxu2 %v13819_v23  ;;  %v9567_v49 = vadd.f32 %v9566_v63, %v20028_v37 }
 0xa4f   : > { %v14552_v6 = vld [vmem:[%s17535_s19 + $0x19f8] sm:$0xf0] }
 0xa50   : > { %v16578_v15 = vld [vmem:[%s17535_s19 + $0x1bdc] sm:$0xf]  ;;  %v14555_v30 = vor.u32 %v16514_v20, %v14552_v6  ;;  %9811 = vmatpush.bf16.msra.mxu3 %v14075_v29 }
 0xa51   : > { %v14808_v58 = vld [vmem:[%s17535_s19 + $0x1bf8] sm:$0xf0]  ;;  %9799 = vmatmul.bf16.vlgmr.msra.gmra.mxu2 %v16945_v55 }
 0xa52   : > { %v16642_v24 = vld [vmem:[%s17535_s19 + $0x1ddc] sm:$0xf]  ;;  %v14811_v28 = vor.u32 %v16578_v15, %v14808_v58  ;;  %9817 = vmatpush.bf16.msrb.mxu0 %v14555_v30 }
 0xa53   : > { %v15064_v42 = vld [vmem:[%s17535_s19 + $0x1df8] sm:$0xf0]  ;;  %9812 = vmatmul.bf16.vlgmr.msra.gmra.mxu3 %v16947_v18 }
 0xa54   : > { %v16706_v60 = vld [vmem:[%s17535_s19 + $0x1fdc] sm:$0xf]  ;;  %v15067_v19 = vor.u32 %v16642_v24, %v15064_v42  ;;  %9830 = vmatpush.bf16.msrb.mxu1 %v14811_v28  ;;  %v9580_v42 = vadd.f32 %v9579_v13, %v9567_v49 }
 0xa55   : > { %v15320_v25 = vld [vmem:[%s17535_s19 + $0x1ff8] sm:$0xf0] }
 0xa56   : > { %v16506_v31 = vld [vmem:[%s17535_s19 + $0x199c] sm:$0xf]  ;;  %v15323_v9 = vor.u32 %v16706_v60, %v15320_v25  ;;  %9843 = vmatpush.bf16.msrb.mxu2 %v15067_v19 }
 0xa57   : > { %v14520_v32 = vld [vmem:[%s17535_s19 + $0x19b8] sm:$0xf0] }
 0xa58   : > { %v16570_v17 = vld [vmem:[%s17535_s19 + $0x1b9c] sm:$0xf]  ;;  %v14523_v43 = vor.u32 %v16506_v31, %v14520_v32  ;;  %9856 = vmatpush.bf16.msrb.mxu3 %v15323_v9  ;;  %v9592_v9 = vpop.f32.mrf.mxu2 }
 0xa59   : > { %v14776_v14 = vld [vmem:[%s17535_s19 + $0x1bb8] sm:$0xf0] }
 0xa5a   : > { %v16634_v21 = vld [vmem:[%s17535_s19 + $0x1d9c] sm:$0xf]  ;;  %v14779_v54 = vor.u32 %v16570_v17, %v14776_v14  ;;  %9818 = vmatpush.bf16.msrb.mxu0 %v14523_v43 }
 0xa5b   : > { %v15032_v34 = vld [vmem:[%s17535_s19 + $0x1db8] sm:$0xf0] }
 0xa5c   : > { %v16698_v35 = vld [vmem:[%s17535_s19 + $0x1f9c] sm:$0xf]  ;;  %v15035_v46 = vor.u32 %v16634_v21, %v15032_v34  ;;  %9831 = vmatpush.bf16.msrb.mxu1 %v14779_v54 }
 0xa5d   : > { %v15288_v2 = vld [vmem:[%s17535_s19 + $0x1fb8] sm:$0xf0] }
 0xa5e   : > { %v16498_v47 = vld [vmem:[%s17535_s19 + $0x195c] sm:$0xf]  ;;  %v15291_v33 = vor.u32 %v16698_v35, %v15288_v2  ;;  %9844 = vmatpush.bf16.msrb.mxu2 %v15035_v46  ;;  %v9593_v35 = vadd.f32 %v9592_v9, %v9580_v42  ;;  %v9605_v2 = vpop.f32.mrf.mxu3  ;;  %v9568_v46 = vpop.f32.mrf.mxu0 }
 0xa5f   : > { %v14488_v36 = vld [vmem:[%s17535_s19 + $0x1978] sm:$0xf0] }
 0xa60   : > { %v16562_v48 = vld [vmem:[%s17535_s19 + $0x1b5c] sm:$0xf]  ;;  %v14491_v4 = vor.u32 %v16498_v47, %v14488_v36  ;;  %9857 = vmatpush.bf16.msrb.mxu3 %v15291_v33  ;;  %v9581_v36 = vpop.f32.mrf.mxu1 }
 0xa61   : > { %v16944_v22 = vld [vmem:[#allocation1] sm:$0xff]  ;;  %v16946_v56 = vld [vmem:[#allocation1 + $0x9] sm:$0xff] }
 0xa62   : > { %9773 = vmatmul.bf16.vlgmr.msra.gmra.mxu0 %v16944_v22  ;;  %v14744_v52 = vld [vmem:[%s17535_s19 + $0x1b78] sm:$0xf0]  ;;  %9786 = vmatmul.bf16.vlgmr.msra.gmra.mxu1 %v16946_v56 }
 0xa63   : > { %v16626_v26 = vld [vmem:[%s17535_s19 + $0x1d5c] sm:$0xf]  ;;  %v14747_v39 = vor.u32 %v16562_v48, %v14744_v52  ;;  %9819 = vmatpush.bf16.msrb.mxu0 %v14491_v4  ;;  %v9606_v48 = vadd.f32 %v9605_v2, %v9593_v35 }
 0xa64   : > { %v15000_v53 = vld [vmem:[%s17535_s19 + $0x1d78] sm:$0xf0] }
 0xa65   : > { %v16690_v1 = vld [vmem:[%s17535_s19 + $0x1f5c] sm:$0xf]  ;;  %v15003_v62 = vor.u32 %v16626_v26, %v15000_v53  ;;  %9832 = vmatpush.bf16.msrb.mxu1 %v14747_v39 }
 0xa66   : > { %v15256_v57 = vld [vmem:[%s17535_s19 + $0x1f78] sm:$0xf0] }
 0xa67   : > { %v16490_v5 = vld [vmem:[%s17535_s19 + $0x191c] sm:$0xf]  ;;  %v15259_v44 = vor.u32 %v16690_v1, %v15256_v57  ;;  %9845 = vmatpush.bf16.msrb.mxu2 %v15003_v62 }
 0xa68   : > { %v14456_v41 = vld [vmem:[%s17535_s19 + $0x1938] sm:$0xf0] }
 0xa69   : > { %v16554_v61 = vld [vmem:[%s17535_s19 + $0x1b1c] sm:$0xf]  ;;  %v14459_v12 = vor.u32 %v16490_v5, %v14456_v41  ;;  %9858 = vmatpush.bf16.msrb.mxu3 %v15259_v44 }
 0xa6a   : > { %v14712_v0 = vld [vmem:[%s17535_s19 + $0x1b38] sm:$0xf0] }
 0xa6b   : > { %v16618_v8 = vld [vmem:[%s17535_s19 + $0x1d1c] sm:$0xf]  ;;  %v14715_v20 = vor.u32 %v16554_v61, %v14712_v0  ;;  %9820 = vmatpush.bf16.msrb.mxu0 %v14459_v12  ;;  %v9607_v12 = vpop.f32.mrf.mxu3 }
 0xa6c   : > { %v14968_v27 = vld [vmem:[%s17535_s19 + $0x1d38] sm:$0xf0] }
 0xa6d   : > { %v16682_v59 = vld [vmem:[%s17535_s19 + $0x1f1c] sm:$0xf]  ;;  %v14971_v6 = vor.u32 %v16618_v8, %v14968_v27  ;;  %9833 = vmatpush.bf16.msrb.mxu1 %v14715_v20 }
 0xa6e   : > { %v15224_v50 = vld [vmem:[%s17535_s19 + $0x1f38] sm:$0xf0] }
 0xa6f   : > { %v16482_v15 = vld [vmem:[%s17535_s19 + $0x18dc] sm:$0xf]  ;;  %v15227_v24 = vor.u32 %v16682_v59, %v15224_v50  ;;  %9846 = vmatpush.bf16.msrb.mxu2 %v14971_v6  ;;  %v9594_v59 = vpop.f32.mrf.mxu2 }
 0xa70   : > { %v14424_v40 = vld [vmem:[%s17535_s19 + $0x18f8] sm:$0xf0] }
 0xa71   : > { %v16546_v58 = vld [vmem:[%s17535_s19 + $0x1adc] sm:$0xf]  ;;  %v14427_v29 = vor.u32 %v16482_v15, %v14424_v40  ;;  %9859 = vmatpush.bf16.msrb.mxu3 %v15227_v24  ;;  %v16950_v24 = vld [vmem:[#allocation1 + $0x36] sm:$0xff] }
 0xa72   : > { %v14680_v11 = vld [vmem:[%s17535_s19 + $0x1af8] sm:$0xf0] }
 0xa73   : > { %v16610_v23 = vld [vmem:[%s17535_s19 + $0x1cdc] sm:$0xf]  ;;  %v14683_v30 = vor.u32 %v16546_v58, %v14680_v11  ;;  %9821 = vmatpush.bf16.msrb.mxu0 %v14427_v29  ;;  %v16949_v58 = vld [vmem:[#allocation1 + $0x2d] sm:$0xff]  ;;  %v9618_v11 = vpop.f32.mrf.mxu0 }
 0xa74   : > { %v14936_v37 = vld [vmem:[%s17535_s19 + $0x1cf8] sm:$0xf0] }
 0xa75   : > { %v16674_v60 = vld [vmem:[%s17535_s19 + $0x1edc] sm:$0xf]  ;;  %v14939_v28 = vor.u32 %v16610_v23, %v14936_v37  ;;  %9834 = vmatpush.bf16.msrb.mxu1 %v14683_v30  ;;  %v9619_v23 = vadd.f32 %v9618_v11, %v9606_v48  ;;  %v9631_v37 = vpop.f32.mrf.mxu1  ;;  %v9657_v30 = vpop.f32.mrf.mxu3 }
 0xa76   : > { %v15192_v25 = vld [vmem:[%s17535_s19 + $0x1ef8] sm:$0xf0] }
 0xa77   : > { %v16474_v19 = vld [vmem:[%s17535_s19 + $0x189c] sm:$0xf]  ;;  %v15195_v17 = vor.u32 %v16674_v60, %v15192_v25  ;;  %9847 = vmatpush.bf16.msrb.mxu2 %v14939_v28  ;;  %v9632_v60 = vadd.f32 %v9631_v37, %v9619_v23  ;;  %v9644_v25 = vpop.f32.mrf.mxu2 }
 0xa78   : > { %v14392_v31 = vld [vmem:[%s17535_s19 + $0x18b8] sm:$0xf0] }
 0xa79   : > { %v16538_v32 = vld [vmem:[%s17535_s19 + $0x1a9c] sm:$0xf]  ;;  %v14395_v47 = vor.u32 %v16474_v19, %v14392_v31  ;;  %9860 = vmatpush.bf16.msrb.mxu3 %v15195_v17  ;;  %v9645_v29 = vadd.f32 %v9644_v25, %v9632_v60 }
 0xa7a   : > { %v14648_v14 = vld [vmem:[%s17535_s19 + $0x1ab8] sm:$0xf0] }
 0xa7b   : > { %v16602_v21 = vld [vmem:[%s17535_s19 + $0x1c9c] sm:$0xf]  ;;  %v14651_v22 = vor.u32 %v16538_v32, %v14648_v14  ;;  %9822 = vmatpush.bf16.msrb.mxu0 %v14395_v47  ;;  %v9620_v28 = vpop.f32.mrf.mxu0  ;;  %v9658_v31 = vadd.f32 %v9657_v30, %v9645_v29 }
 0xa7c   : > { %v14904_v34 = vld [vmem:[%s17535_s19 + $0x1cb8] sm:$0xf0] }
 0xa7d   : > { %v16666_v43 = vld [vmem:[%s17535_s19 + $0x1e9c] sm:$0xf]  ;;  %v14907_v33 = vor.u32 %v16602_v21, %v14904_v34  ;;  %9835 = vmatpush.bf16.msrb.mxu1 %v14651_v22  ;;  %v9633_v19 = vpop.f32.mrf.mxu1  ;;  %vm9875_vm1 = vcmp.gt.f32.partialorder %v9658_v31, 0.0  ;;  %v9883_v32 = vmul.f32 0.2, %v9658_v31  ;;  %v9659_v14 = vpop.f32.mrf.mxu3  ;;  %v3040_v21 = vperm.slane %v19933_v10, 7 }
 0xa7e   : > { %v15160_v54 = vld [vmem:[%s17535_s19 + $0x1eb8] sm:$0xf0] }
 0xa7f   : > { %v16466_v52 = vld [vmem:[%s17535_s19 + $0x185c] sm:$0xf]  ;;  %v15163_v55 = vor.u32 %v16666_v43, %v15160_v54  ;;  %9848 = vmatpush.bf16.msrb.mxu2 %v14907_v33  ;;  %v20111_v17 = vsel %vm9875_vm1, %v9658_v31, %v9883_v32  ;;  %v9646_v9 = vpop.f32.mrf.mxu2 }
 0xa80   : > { %v14360_v26 = vld [vmem:[%s17535_s19 + $0x1878] sm:$0xf0] }
 0xa81   : > { %v16530_v53 = vld [vmem:[%s17535_s19 + $0x1a5c] sm:$0xf]  ;;  %v14363_v39 = vor.u32 %v16466_v52, %v14360_v26  ;;  %9861 = vmatpush.bf16.msrb.mxu3 %v15163_v55 }
 0xa82   : > { %v14616_v56 = vld [vmem:[%s17535_s19 + $0x1a78] sm:$0xf0] }
 0xa83   : > { %v16594_v1 = vld [vmem:[%s17535_s19 + $0x1c5c] sm:$0xf]  ;;  %v14619_v62 = vor.u32 %v16530_v53, %v14616_v56  ;;  %9823 = vmatpush.bf16.msrb.mxu0 %v14363_v39  ;;  %v9670_v34 = vpop.f32.mrf.mxu0 }
 0xa84   : > { %v14872_v57 = vld [vmem:[%s17535_s19 + $0x1c78] sm:$0xf0]  ;;  %v9671_v35 = vadd.f32 %v9670_v34, %v3040_v21 }
 0xa85   : > { %v16658_v18 = vld [vmem:[%s17535_s19 + $0x1e5c] sm:$0xf]  ;;  %v14875_v5 = vor.u32 %v16594_v1, %v14872_v57  ;;  %9836 = vmatpush.bf16.msrb.mxu1 %v14619_v62  ;;  %v9683_v2 = vpop.f32.mrf.mxu1  ;;  %v9709_v47 = vpop.f32.mrf.mxu3 }
 0xa86   : > { %v15128_v4 = vld [vmem:[%s17535_s19 + $0x1e78] sm:$0xf0]  ;;  %v9684_v43 = vadd.f32 %v9683_v2, %v9671_v35 }
 0xa87   : > { %v16458_v41 = vld [vmem:[%s17535_s19 + $0x181c] sm:$0xf]  ;;  %v15131_v0 = vor.u32 %v16658_v18, %v15128_v4  ;;  %9849 = vmatpush.bf16.msrb.mxu2 %v14875_v5  ;;  %v9696_v54 = vpop.f32.mrf.mxu2 }
 0xa88   : > { %v14328_v61 = vld [vmem:[%s17535_s19 + $0x1838] sm:$0xf0]  ;;  %v9697_v46 = vadd.f32 %v9696_v54, %v9684_v43 }
 0xa89   : > { %v16522_v44 = vld [vmem:[%s17535_s19 + $0x1a1c] sm:$0xf]  ;;  %v14331_v13 = vor.u32 %v16458_v41, %v14328_v61  ;;  %9862 = vmatpush.bf16.msrb.mxu3 %v15131_v0 }
 0xa8a   : > { %v14584_v8 = vld [vmem:[%s17535_s19 + $0x1a38] sm:$0xf0]  ;;  %v9710_v36 = vadd.f32 %v9709_v47, %v9697_v46 }
 0xa8b   : > { %v16586_v27 = vld [vmem:[%s17535_s19 + $0x1c1c] sm:$0xf]  ;;  %v14587_v20 = vor.u32 %v16522_v44, %v14584_v8  ;;  %9824 = vmatpush.bf16.msrb.mxu0 %v14331_v13  ;;  %v9672_v48 = vpop.f32.mrf.mxu0 }
 0xa8c   : > { %v14840_v63 = vld [vmem:[%s17535_s19 + $0x1c38] sm:$0xf0] }
 0xa8d   : > { %v16650_v50 = vld [vmem:[%s17535_s19 + $0x1e1c] sm:$0xf]  ;;  %v14843_v6 = vor.u32 %v16586_v27, %v14840_v63  ;;  %9837 = vmatpush.bf16.msrb.mxu1 %v14587_v20  ;;  %v9685_v22 = vpop.f32.mrf.mxu1  ;;  %v9711_v52 = vpop.f32.mrf.mxu3 }
 0xa8e   : > { %v15096_v49 = vld [vmem:[%s17535_s19 + $0x1e38] sm:$0xf0]  ;;  %s15325_s19 = sshll.u32 (!%p15324_p8), %s17363_s21, 10 }
 0xa8f   : > { %v15099_v15 = vor.u32 %v16650_v50, %v15096_v49  ;;  %9850 = vmatpush.bf16.msrb.mxu2 %v14843_v6  ;;  %v16948_v40 = vld [vmem:[#allocation1 + $0x24] sm:$0xff]  ;;  %v9698_v33 = vpop.f32.mrf.mxu2  ;;  %s9936_s16 = sshra.s32 (!%p15324_p8), %s15325_s19, 7 }
 0xa90   : > { %9825 = vmatmul.bf16.vlgmr.msrb.gmra.mxu0 %v16948_v40  ;;  %9838 = vmatmul.bf16.vlgmr.msrb.gmra.mxu1 %v16949_v58  ;;  %v16951_v42 = vld [vmem:[#allocation1 + $0x3f] sm:$0xff]  ;;  %s9938_s20 = scalar_lea.vmem (!%p15324_p8), [#allocation3], %s9936_s16 }
 0xa91   : > { %9863 = vmatpush.bf16.msrb.mxu3 %v15099_v15 }
 0xa92   : > { %9851 = vmatmul.bf16.vlgmr.msrb.gmra.mxu2 %v16950_v24 }
 0xa93   : > { %v9722_v26 = vpop.f32.mrf.mxu0 }
 0xa94   : > { %9864 = vmatmul.bf16.vlgmr.msrb.gmra.mxu3 %v16951_v42  ;;  %v9723_v62 = vadd.f32 %v9722_v26, %v9710_v36 }
 0xa95   : > { %v9735_v53 = vpop.f32.mrf.mxu1 }
 0xa96   : > { %v9761_v56 = vpop.f32.mrf.mxu3  ;;  %v9736_v44 = vadd.f32 %v9735_v53, %v9723_v62 }
 0xa97   : > { %v9748_v55 = vpop.f32.mrf.mxu2 }
 0xa98   : > { %v9749_v8 = vadd.f32 %v9748_v55, %v9736_v44 }
 0xa9a   : > { %v9762_v59 = vadd.f32 %v9761_v56, %v9749_v8 }
 0xa9b   : > { %v9724_v1 = vpop.f32.mrf.mxu0 }
 0xa9d   : > { %v9737_v57 = vpop.f32.mrf.mxu1 }
 0xa9e   : > { %v9763_v10 = vpop.f32.mrf.mxu3 }
 0xa9f   : > { %v9750_v18 = vpop.f32.mrf.mxu2 }
 0xad4   : > { %v9800_v5 = vpop.f32.mrf.mxu2 }
 0xad6   : > { %v9813_v41 = vpop.f32.mrf.mxu3 }
 0xadc   : > { %v9802_v27 = vpop.f32.mrf.mxu2 }
 0xade   : > { %v9815_v63 = vpop.f32.mrf.mxu3 }
 0xadf   : > { %v9774_v4 = vpop.f32.mrf.mxu0  ;;  %v9787_v39 = vpop.f32.mrf.mxu1 }
 0xae0   : > { %v9775_v50 = vadd.f32 %v9774_v4, %v9762_v59 }
 0xae2   : > { %v9788_v49 = vadd.f32 %v9787_v39, %v9775_v50 }
 0xae4   : > { %v9801_v12 = vadd.f32 %v9800_v5, %v9788_v49 }
 0xae6   : > { %v9814_v13 = vadd.f32 %v9813_v41, %v9801_v12 }
 0xae7   : > { %v9776_v61 = vpop.f32.mrf.mxu0  ;;  %v9789_v0 = vpop.f32.mrf.mxu1 }
 0xb0d   : > { %v9826_v20 = vpop.f32.mrf.mxu0  ;;  %v9839_v6 = vpop.f32.mrf.mxu1 }
 0xb0e   : > { %v9827_v15 = vadd.f32 %v9826_v20, %v9814_v13 }
 0xb10   : > { %v9840_v40 = vadd.f32 %v9839_v6, %v9827_v15 }
 0xb15   : > { %v9852_v58 = vpop.f32.mrf.mxu2  ;;  %v9828_v11 = vpop.f32.mrf.mxu0 }
 0xb16   : > { %v9853_v24 = vadd.f32 %v9852_v58, %v9840_v40  ;;  %v9841_v23 = vpop.f32.mrf.mxu1 }
 0xb17   : > { %v9865_v42 = vpop.f32.mrf.mxu3 }
 0xb18   : > { %v9866_v37 = vadd.f32 %v9865_v42, %v9853_v24 }
 0xb1a   : > { %vm9876_vm2 = vcmp.gt.f32.partialorder %v9866_v37, 0.0  ;;  %v9884_v60 = vmul.f32 0.2, %v9866_v37 }
 0xb1b   : > { %9896 = sbr.rel (%p15324_p8) target bundleno = 2857 (0xb29), region = 100 }
 0xb1c   : > { %v20114_v25 = vsel %vm9876_vm2, %v9866_v37, %v9884_v60 }
 0xb1d   : > { %v9854_v29 = vpop.f32.mrf.mxu2 }
 0xb1f   : > { %v9867_v30 = vpop.f32.mrf.mxu3 }
 0xb20   : > { %v9898_v28 = vpack.c.bf16 %v18789_v7, %v18513_v51  ;;  %v9899_v19 = vpack.c.bf16 %v19341_v45, %v19065_v38  ;;  %v9900_v31 = vpack.c.bf16 %v19893_v3, %v19617_v16  ;;  %v9901_v32 = vpack.c.bf16 %v20114_v25, %v20111_v17 }
 0xb21   : > { %vm9913_vm3 = vcmask 1040384   ;;  %vm9917_vm4 = vcmask 1042434   ;;  %vm9921_vm5 = vcmask 1041408   ;;  %vm9923_vm6 = vcmask 1044484  }
 0xb22   : > { %v9906_v9 = vrot.slane %v9898_v28, 3  ;;  %v9907_v14 = vrot.slane %v9899_v19, 6  ;;  %v9908_v21 = vrot.slane %v9899_v19, 1  ;;  %v9909_v34 = vrot.slane %v9900_v31, 4 }
 0xb23   : > { %v9910_v35 = vrot.slane %v9900_v31, 7  ;;  %v9911_v2 = vrot.slane %v9901_v32, 2  ;;  %v9912_v43 = vrot.slane %v9901_v32, 5  ;;  %vm9927_vm7 = vcmask 1046534  }
 0xb24   : > { %v9916_v54 = vsel %vm9913_vm3, %v9898_v28, %v9906_v9  ;;  %v9920_v46 = vsel %vm9917_vm4, %v9907_v14, %v9908_v21  ;;  %vm9931_vm8 = vcmask 1045508   ;;  %vm9933_vm9 = vcmask 1043456  }
 0xb25   : > { %v9922_v47 = vsel %vm9921_vm5, %v9916_v54, %v9920_v46  ;;  %v9926_v36 = vsel %vm9923_vm6, %v9909_v34, %v9910_v35  ;;  %v9930_v48 = vsel %vm9927_vm7, %v9911_v2, %v9912_v43 }
 0xb26   : > { %v9932_v22 = vsel %vm9931_vm8, %v9926_v36, %v9930_v48 }
 0xb27   : > { %v9934_v33 = vsel %vm9933_vm9, %v9922_v47, %v9932_v22 }
 0xb28   : > { %9939 = vst [vmem:[%s9938_s20] sm:$0xff] %v9934_v33 }
 0xb29 PF: > { %v16718_v52 = vld [vmem:[%s17552_s13 + $0x38] sm:$0xff]  ;;  %v16717_v56 = vld [vmem:[%s17552_s13 + $0x30] sm:$0xff]  ;;  %v16716_v10 = vld [vmem:[%s17552_s13 + $0x28] sm:$0xff]  ;;  %v9942_v29 = vpack.c.bf16 %v19065_v38, %v19065_v38  ;;  %v9943_v30 = vpack.c.bf16 %v19341_v45, %v19341_v45  ;;  %v9940_v28 = vpack.c.bf16 %v18513_v51, %v18513_v51  ;;  %v9941_v19 = vpack.c.bf16 %v18789_v7, %v18789_v7  ;;  %p15582_p9 = scmp.ne.s32.totalorder %s17363_s21, 2 }
 0xb2a   : > { %v16726_v26 = vld [vmem:[%s17552_s13 + $0x78] sm:$0xff]  ;;  %10464 = vmatpush.bf16.msra.mxu0 %v16718_v52  ;;  %v16725_v1 = vld [vmem:[%s17552_s13 + $0x70] sm:$0xff]  ;;  %v16724_v4 = vld [vmem:[%s17552_s13 + $0x68] sm:$0xff] }
 0xb2b   : > { %v16734_v53 = vld [vmem:[%s17552_s13 + $0xb8] sm:$0xff]  ;;  %10477 = vmatpush.bf16.msra.mxu1 %v16726_v26  ;;  %v16733_v57 = vld [vmem:[%s17552_s13 + $0xb0] sm:$0xff]  ;;  %v16732_v39 = vld [vmem:[%s17552_s13 + $0xa8] sm:$0xff] }
 0xb2c   : > { %v16742_v55 = vld [vmem:[%s17552_s13 + $0xf8] sm:$0xff]  ;;  %10490 = vmatpush.bf16.msra.mxu2 %v16734_v53  ;;  %v16741_v18 = vld [vmem:[%s17552_s13 + $0xf0] sm:$0xff]  ;;  %v16740_v62 = vld [vmem:[%s17552_s13 + $0xe8] sm:$0xff] }
 0xb2d   : > { %10503 = vmatpush.bf16.msra.mxu3 %v16742_v55  ;;  %v16715_v5 = vld [vmem:[%s17552_s13 + $0x20] sm:$0xff]  ;;  %v16714_v0 = vld [vmem:[%s17552_s13 + $0x18] sm:$0xff]  ;;  %v16713_v59 = vld [vmem:[%s17552_s13 + $0x10] sm:$0xff] }
 0xb2e   : > { %10465 = vmatpush.bf16.msra.mxu0 %v16717_v56  ;;  %v16723_v41 = vld [vmem:[%s17552_s13 + $0x60] sm:$0xff]  ;;  %v16722_v8 = vld [vmem:[%s17552_s13 + $0x58] sm:$0xff]  ;;  %v16721_v50 = vld [vmem:[%s17552_s13 + $0x50] sm:$0xff] }
 0xb2f   : > { %10478 = vmatpush.bf16.msra.mxu1 %v16725_v1  ;;  %v16731_v61 = vld [vmem:[%s17552_s13 + $0xa0] sm:$0xff]  ;;  %v16730_v27 = vld [vmem:[%s17552_s13 + $0x98] sm:$0xff]  ;;  %v16729_v49 = vld [vmem:[%s17552_s13 + $0x90] sm:$0xff] }
 0xb30   : > { %10491 = vmatpush.bf16.msra.mxu2 %v16733_v57  ;;  %v16739_v44 = vld [vmem:[%s17552_s13 + $0xe0] sm:$0xff]  ;;  %v16738_v63 = vld [vmem:[%s17552_s13 + $0xd8] sm:$0xff]  ;;  %v16737_v12 = vld [vmem:[%s17552_s13 + $0xd0] sm:$0xff] }
 0xb31   : > { %10504 = vmatpush.bf16.msra.mxu3 %v16741_v18  ;;  %v16712_v13 = vld [vmem:[%s17552_s13 + $0x8] sm:$0xff]  ;;  %v16711_v40 = vld [vmem:[%s17552_s13] sm:$0xff]  ;;  %v16750_v11 = vld [vmem:[%s17552_s13 + $0x138] sm:$0xff] }
 0xb32   : > { %10466 = vmatpush.bf16.msra.mxu0 %v16716_v10  ;;  %v16720_v20 = vld [vmem:[%s17552_s13 + $0x48] sm:$0xff]  ;;  %v16719_v58 = vld [vmem:[%s17552_s13 + $0x40] sm:$0xff]  ;;  %v16758_v23 = vld [vmem:[%s17552_s13 + $0x178] sm:$0xff]  ;;  %v9944_v10 = vpack.c.bf16 %v19617_v16, %v19617_v16 }
 0xb33   : > { %10479 = vmatpush.bf16.msra.mxu1 %v16724_v4  ;;  %v16728_v6 = vld [vmem:[%s17552_s13 + $0x88] sm:$0xff]  ;;  %v16727_v24 = vld [vmem:[%s17552_s13 + $0x80] sm:$0xff]  ;;  %v16766_v37 = vld [vmem:[%s17552_s13 + $0x1b8] sm:$0xff]  ;;  %v9945_v4 = vpack.c.bf16 %v19893_v3, %v19893_v3 }
 0xb34   : > { %10492 = vmatpush.bf16.msra.mxu2 %v16732_v39  ;;  %v16736_v15 = vld [vmem:[%s17552_s13 + $0xc8] sm:$0xff]  ;;  %v16735_v42 = vld [vmem:[%s17552_s13 + $0xc0] sm:$0xff]  ;;  %v16774_v60 = vld [vmem:[%s17552_s13 + $0x1f8] sm:$0xff]  ;;  %v9946_v39 = vpack.c.bf16 %v20111_v17, %v20111_v17 }
 0xb35   : > { %10505 = vmatpush.bf16.msra.mxu3 %v16740_v62  ;;  %v16749_v31 = vld [vmem:[%s17552_s13 + $0x130] sm:$0xff]  ;;  %v16748_v51 = vld [vmem:[%s17552_s13 + $0x128] sm:$0xff]  ;;  %v16747_v21 = vld [vmem:[%s17552_s13 + $0x120] sm:$0xff]  ;;  %v9947_v62 = vpack.c.bf16 %v20114_v25, %v20114_v25 }
 0xb36   : > { %10467 = vmatpush.bf16.msra.mxu0 %v16715_v5  ;;  %v16757_v32 = vld [vmem:[%s17552_s13 + $0x170] sm:$0xff]  ;;  %v16756_v7 = vld [vmem:[%s17552_s13 + $0x168] sm:$0xff]  ;;  %v16755_v34 = vld [vmem:[%s17552_s13 + $0x160] sm:$0xff] }
 0xb37   : > { %10480 = vmatpush.bf16.msra.mxu1 %v16723_v41  ;;  %v16765_v38 = vld [vmem:[%s17552_s13 + $0x1b0] sm:$0xff]  ;;  %v16764_v9 = vld [vmem:[%s17552_s13 + $0x1a8] sm:$0xff]  ;;  %v16763_v35 = vld [vmem:[%s17552_s13 + $0x1a0] sm:$0xff] }
 0xb38   : > { %10493 = vmatpush.bf16.msra.mxu2 %v16731_v61  ;;  %v16773_v45 = vld [vmem:[%s17552_s13 + $0x1f0] sm:$0xff]  ;;  %v16772_v14 = vld [vmem:[%s17552_s13 + $0x1e8] sm:$0xff]  ;;  %v16771_v2 = vld [vmem:[%s17552_s13 + $0x1e0] sm:$0xff] }
 0xb39   : > { %10506 = vmatpush.bf16.msra.mxu3 %v16739_v44  ;;  %v16746_v43 = vld [vmem:[%s17552_s13 + $0x118] sm:$0xff]  ;;  %v16745_v36 = vld [vmem:[%s17552_s13 + $0x110] sm:$0xff]  ;;  %v16744_v52 = vld [vmem:[%s17552_s13 + $0x108] sm:$0xff] }
 0xb3a   : > { %10468 = vmatpush.bf16.msra.mxu0 %v16714_v0  ;;  %v16754_v54 = vld [vmem:[%s17552_s13 + $0x158] sm:$0xff]  ;;  %v16753_v48 = vld [vmem:[%s17552_s13 + $0x150] sm:$0xff]  ;;  %v16752_v26 = vld [vmem:[%s17552_s13 + $0x148] sm:$0xff] }
 0xb3b   : > { %10481 = vmatpush.bf16.msra.mxu1 %v16722_v8  ;;  %v16762_v46 = vld [vmem:[%s17552_s13 + $0x198] sm:$0xff]  ;;  %v16761_v22 = vld [vmem:[%s17552_s13 + $0x190] sm:$0xff]  ;;  %v16760_v53 = vld [vmem:[%s17552_s13 + $0x188] sm:$0xff] }
 0xb3c   : > { %10494 = vmatpush.bf16.msra.mxu2 %v16730_v27  ;;  %v16770_v47 = vld [vmem:[%s17552_s13 + $0x1d8] sm:$0xff]  ;;  %v16769_v33 = vld [vmem:[%s17552_s13 + $0x1d0] sm:$0xff]  ;;  %v16768_v55 = vld [vmem:[%s17552_s13 + $0x1c8] sm:$0xff] }
 0xb3d   : > { %10507 = vmatpush.bf16.msra.mxu3 %v16738_v63  ;;  %v16743_v56 = vld [vmem:[%s17552_s13 + $0x100] sm:$0xff] }
 0xb3e   : > { %10469 = vmatpush.bf16.msra.mxu0 %v16713_v59  ;;  %v16751_v1 = vld [vmem:[%s17552_s13 + $0x140] sm:$0xff] }
 0xb3f   : > { %10482 = vmatpush.bf16.msra.mxu1 %v16721_v50  ;;  %v16759_v57 = vld [vmem:[%s17552_s13 + $0x180] sm:$0xff] }
 0xb40   : > { %10495 = vmatpush.bf16.msra.mxu2 %v16729_v49  ;;  %v16767_v18 = vld [vmem:[%s17552_s13 + $0x1c0] sm:$0xff] }
 0xb41   : > { %10508 = vmatpush.bf16.msra.mxu3 %v16737_v12  ;;  %v16952_v0 = vld [vmem:[%s516_s25] ss:$0 sm:$0xff] }
 0xb42   : > { %10470 = vmatpush.bf16.msra.mxu0 %v16712_v13 }
 0xb43   : > { %10483 = vmatpush.bf16.msra.mxu1 %v16720_v20 }
 0xb44   : > { %10496 = vmatpush.bf16.msra.mxu2 %v16728_v6 }
 0xb45   : > { %10509 = vmatpush.bf16.msra.mxu3 %v16736_v15 }
 0xb46   : > { %10471 = vmatpush.bf16.msra.mxu0 %v16711_v40 }
 0xb47   : > { %10484 = vmatpush.bf16.msra.mxu1 %v16719_v58 }
 0xb48   : > { %10497 = vmatpush.bf16.msra.mxu2 %v16727_v24 }
 0xb49   : > { %10510 = vmatpush.bf16.msra.mxu3 %v16735_v42  ;;  %10472 = vmatmul.bf16.vlgmr.msra.gmra.mxu0 %v9940_v28 }
 0xb4a   : > { %10516 = vmatpush.bf16.msrb.mxu0 %v16750_v11  ;;  %10485 = vmatmul.bf16.vlgmr.msra.gmra.mxu1 %v9941_v19 }
 0xb4b   : > { %10529 = vmatpush.bf16.msrb.mxu1 %v16758_v23  ;;  %10498 = vmatmul.bf16.vlgmr.msra.gmra.mxu2 %v9942_v29 }
 0xb4c   : > { %10542 = vmatpush.bf16.msrb.mxu2 %v16766_v37  ;;  %10511 = vmatmul.bf16.vlgmr.msra.gmra.mxu3 %v9943_v30 }
 0xb4d   : > { %10555 = vmatpush.bf16.msrb.mxu3 %v16774_v60 }
 0xb4e   : > { %10517 = vmatpush.bf16.msrb.mxu0 %v16749_v31 }
 0xb4f   : > { %10530 = vmatpush.bf16.msrb.mxu1 %v16757_v32 }
 0xb50   : > { %10543 = vmatpush.bf16.msrb.mxu2 %v16765_v38 }
 0xb51   : > { %10556 = vmatpush.bf16.msrb.mxu3 %v16773_v45 }
 0xb52   : > { %10518 = vmatpush.bf16.msrb.mxu0 %v16748_v51 }
 0xb53   : > { %10531 = vmatpush.bf16.msrb.mxu1 %v16756_v7 }
 0xb54   : > { %10544 = vmatpush.bf16.msrb.mxu2 %v16764_v9 }
 0xb55   : > { %10557 = vmatpush.bf16.msrb.mxu3 %v16772_v14 }
 0xb56   : > { %10519 = vmatpush.bf16.msrb.mxu0 %v16747_v21 }
 0xb57   : > { %10532 = vmatpush.bf16.msrb.mxu1 %v16755_v34 }
 0xb58   : > { %10545 = vmatpush.bf16.msrb.mxu2 %v16763_v35 }
 0xb59   : > { %10558 = vmatpush.bf16.msrb.mxu3 %v16771_v2 }
 0xb5a   : > { %10520 = vmatpush.bf16.msrb.mxu0 %v16746_v43 }
 0xb5b   : > { %10533 = vmatpush.bf16.msrb.mxu1 %v16754_v54 }
 0xb5c   : > { %10546 = vmatpush.bf16.msrb.mxu2 %v16762_v46 }
 0xb5d   : > { %10559 = vmatpush.bf16.msrb.mxu3 %v16770_v47 }
 0xb5e   : > { %10521 = vmatpush.bf16.msrb.mxu0 %v16745_v36 }
 0xb5f   : > { %10534 = vmatpush.bf16.msrb.mxu1 %v16753_v48 }
 0xb60   : > { %10547 = vmatpush.bf16.msrb.mxu2 %v16761_v22 }
 0xb61   : > { %10560 = vmatpush.bf16.msrb.mxu3 %v16769_v33 }
 0xb62   : > { %10522 = vmatpush.bf16.msrb.mxu0 %v16744_v52 }
 0xb63   : > { %10535 = vmatpush.bf16.msrb.mxu1 %v16752_v26 }
 0xb64   : > { %10548 = vmatpush.bf16.msrb.mxu2 %v16760_v53 }
 0xb65   : > { %10561 = vmatpush.bf16.msrb.mxu3 %v16768_v55 }
 0xb66   : > { %10523 = vmatpush.bf16.msrb.mxu0 %v16743_v56 }
 0xb67   : > { %10536 = vmatpush.bf16.msrb.mxu1 %v16751_v1 }
 0xb68   : > { %10549 = vmatpush.bf16.msrb.mxu2 %v16759_v57 }
 0xb69   : > { %10562 = vmatpush.bf16.msrb.mxu3 %v16767_v18  ;;  %10524 = vmatmul.bf16.vlgmr.msrb.gmra.mxu0 %v9944_v10 }
 0xb6a   : > { %10537 = vmatmul.bf16.vlgmr.msrb.gmra.mxu1 %v9945_v4 }
 0xb6b   : > { %10550 = vmatmul.bf16.vlgmr.msrb.gmra.mxu2 %v9946_v39 }
 0xb6c   : > { %10563 = vmatmul.bf16.vlgmr.msrb.gmra.mxu3 %v9947_v62 }
 0xbc6   : > { %v10473_v5 = vpop.f32.mrf.mxu0 }
 0xbc7   : > { %v10486_v16 = vpop.f32.mrf.mxu1  ;;  %v10474_v27 = vadd.f32 %v16952_v0, %v10473_v5 }
 0xbc9   : > { %v10487_v63 = vadd.f32 %v10486_v16, %v10474_v27 }
 0xbce   : > { %v10499_v41 = vpop.f32.mrf.mxu2  ;;  %v10475_v3 = vpop.f32.mrf.mxu0 }
 0xbcf   : > { %v10512_v61 = vpop.f32.mrf.mxu3  ;;  %v10488_v44 = vpop.f32.mrf.mxu1  ;;  %v10500_v25 = vadd.f32 %v10499_v41, %v10487_v63 }
 0xbd1   : > { %v10513_v59 = vadd.f32 %v10512_v61, %v10500_v25 }
 0xbd6   : > { %v10501_v8 = vpop.f32.mrf.mxu2 }
 0xbd7   : > { %v10514_v17 = vpop.f32.mrf.mxu3 }
 0xbe6   : > { %v10525_v50 = vpop.f32.mrf.mxu0 }
 0xbe7   : > { %v10538_v49 = vpop.f32.mrf.mxu1  ;;  %v10526_v12 = vadd.f32 %v10525_v50, %v10513_v59 }
 0xbe9   : > { %v10539_v13 = vadd.f32 %v10538_v49, %v10526_v12 }
 0xbee   : > { %v10551_v20 = vpop.f32.mrf.mxu2  ;;  %v10527_v40 = vpop.f32.mrf.mxu0 }
 0xbef   : > { %v10564_v6 = vpop.f32.mrf.mxu3  ;;  %v10552_v15 = vadd.f32 %v10551_v20, %v10539_v13  ;;  %v10540_v58 = vpop.f32.mrf.mxu1 }
 0xbf1   : > { %v10565_v24 = vadd.f32 %v10564_v6, %v10552_v15 }
 0xbf3   : > { %10568 = vst [vmem:[%s17548_s3] sm:$0x3] %v10565_v24  ;;  %10572 = sbr.rel (%p15582_p9) target bundleno = 3067 (0xbfb), region = 104 }
 0xbf6   : > { %v10553_v42 = vpop.f32.mrf.mxu2 }
 0xbf7   : > { %v10566_v11 = vpop.f32.mrf.mxu3 }
 0xbf8   : > { %v10573_v23 = vld [vmem:[#allocation3] sm:$0xff]  ;;  %v10574_v37 = vld [vmem:[#allocation3 + $0x8] sm:$0xff] }
 0xbf9   : > { %10575 = vst [vmem:[#allocation2] sm:$0xff] %v10573_v23 }
 0xbfa   : > { %10576 = vst [vmem:[#allocation2 + $0x8] sm:$0xff] %v10574_v37 }
 0xbfb PF: > { %p16844_p10 = scmp.eq.s32.totalorder %s17363_s21, 4  ;;  %s20271_s25 = sld [smem:[#allocation30_spill]] }
 0xbfc   : > { %s17283_s0 = smov [#allocation16]  }
 0xbfd   : > { %s10587_s28 = sshll.u32 %s17283_s0, 4  ;;  %s10588_s28 = int_to_ptr.vmem [resolvable:$true] %s10587_s28 }
 0xc01   : > { %s10589_s15 = sshll.u32 %s20271_s25, 4  ;;  %s10590_s15 = int_to_ptr.hbm [resolvable:$true] %s10589_s15 }
 0xc02   : > { %16806 = dma.vmem_to_hbm [thread:$0]  (%p16844_p10), %s10588_s28, 512, %s10590_s15, [#allocation6]  }
 0xc03   : > { %17254 = dma.done.wait (%p16844_p10), [#allocation6], 512  }
 0xc04   : > { %17256 = vsyncadd (%p16844_p10), [#allocation6], 4294966784 }
 0xc05 PF: > { %s20272_s20 = sld [smem:[#allocation23_spill]]  ;;  %s20275_s17 = smov %s17263_s18 }
 0xc06   : > { %s20273_s3 = sld [smem:[#allocation22_spill]] }
 0xc07   : > { %s20274_s19 = sld [smem:[#allocation24_spill]] }
 0xc0b   : > { %p23_p0 = scmp.ge.s32.totalorder %s20272_s20, 7  }
 0xc0c   : > { %s20276_s18 = smov %s20273_s3 }
 0xc0d   :  { %25 = sbr.rel (!%p23_p0) target bundleno = 12 (0xc), region = 170 }
 0xc12   :  { %10613 = vsyncpa [#allocation5], 1 }
 0xc13   :  { %10615 = vsyncpa [#allocation5 + $0x1], 1 }
 0xc14   :  { %10616 = vsyncpa [#allocation8], 1 }
 0xc15   :  { %10617 = vsyncpa [#allocation11], 1 }
 0xc16   :  { %10618 = vsyncpa [#allocation6], 1 }
 0xc17   :  { %10620 = vsyncpa [#allocation6 + $0x1], 1 }

</bundles_post_ra>
